<compile_context>
chip_gen: v7x
topology: tpu7x:2x2x1
jax: 0.10.0
libtpu: 0.0.40
codegen_flags: <defaults>
</compile_context>

<pallas_src>
import math
import functools

import jax
import jax.numpy as jnp
from jax.experimental import pallas as pl
from jax.experimental.pallas import tpu as pltpu


_VMEM_LIMIT_CACHE = None


def _vmem_limit():
    """~3/4 of physical VMEM, capped at 100 MiB (v5e/v6e: 96-100 MiB, v7x: 48 MiB)."""
    global _VMEM_LIMIT_CACHE
    if _VMEM_LIMIT_CACHE is None:
        try:
            cap = int(pltpu.get_tpu_info().vmem_capacity_bytes)
        except Exception:
            cap = 64 * 1024 * 1024
        _VMEM_LIMIT_CACHE = int(min(cap * 3 // 4, 100 * 1024 * 1024))
    return _VMEM_LIMIT_CACHE


def _pick_tile(dim, target, align):
    """Largest `align`-aligned divisor of `dim` <= target, else the full dim."""
    if dim <= target:
        return dim
    start = target - (target % align)
    for t in range(start, 0, -align):
        if dim % t == 0:
            return t
    return dim


# ----------------------------------------------------------------------------
# Tiled linear (matmul + bias (+ relu)) kernel: bf16 MXU operands, f32 acc
# ----------------------------------------------------------------------------

def _linear_kernel(x_ref, w_ref, b_ref, o_ref, acc_ref, *, activation):
    k = pl.program_id(2)

    @pl.when(k == 0)
    def _():
        acc_ref[...] = jnp.zeros_like(acc_ref)

    acc_ref[...] += jnp.dot(x_ref[...].astype(jnp.bfloat16),
                            w_ref[...].astype(jnp.bfloat16),
                            preferred_element_type=jnp.float32)

    @pl.when(k == pl.num_programs(2) - 1)
    def _():
        y = acc_ref[...] + b_ref[...].astype(jnp.float32)
        if activation == "relu":
            y = jnp.maximum(y, 0.0)
        o_ref[...] = y.astype(o_ref.dtype)


def linear(x, w, b, activation=None, *, tm=512, tn=256, tk=512):
    """x: [M, K], w: [K, N], b: [N] -> [M, N]."""
    M, K = x.shape
    N = w.shape[1]
    tm = _pick_tile(M, tm, 8)
    tn = _pick_tile(N, tn, 128)
    tk = _pick_tile(K, tk, 128)
    grid = (M // tm, N // tn, K // tk)
    return pl.pallas_call(
        functools.partial(_linear_kernel, activation=activation),
        out_shape=jax.ShapeDtypeStruct((M, N), x.dtype),
        grid=grid,
        in_specs=[
            pl.BlockSpec((tm, tk), lambda i, j, k: (i, k)),
            pl.BlockSpec((tk, tn), lambda i, j, k: (k, j)),
            pl.BlockSpec((1, tn), lambda i, j, k: (0, j)),
        ],
        out_specs=pl.BlockSpec((tm, tn), lambda i, j, k: (i, j)),
        scratch_shapes=[pltpu.VMEM((tm, tn), jnp.float32)],
        compiler_params=pltpu.CompilerParams(
            dimension_semantics=("parallel", "parallel", "arbitrary"),
            vmem_limit_bytes=_vmem_limit()),
    )(x, w, b.reshape(1, N))


# ----------------------------------------------------------------------------
# Fused feed-forward kernel: y = relu(x @ w1 + b1) @ w2 + b2, tiled over hidden
# ----------------------------------------------------------------------------

def _ffn_kernel(x_ref, w1_ref, b1_ref, w2_ref, b2_ref, o_ref, acc_ref):
    j = pl.program_id(1)

    @pl.when(j == 0)
    def _():
        acc_ref[...] = jnp.zeros_like(acc_ref)

    h = jnp.dot(x_ref[...].astype(jnp.bfloat16),
                w1_ref[...].astype(jnp.bfloat16),
                preferred_element_type=jnp.float32)
    h = jnp.maximum(h + b1_ref[...].astype(jnp.float32), 0.0)
    acc_ref[...] += jnp.dot(h.astype(jnp.bfloat16),
                            w2_ref[...].astype(jnp.bfloat16),
                            preferred_element_type=jnp.float32)

    @pl.when(j == pl.num_programs(1) - 1)
    def _():
        o_ref[...] = (acc_ref[...] + b2_ref[...].astype(jnp.float32)).astype(o_ref.dtype)


def feed_forward(p, x, *, tm=512, th=512):
    # Larger tm reduces w1/w2 re-streaming (weight HBM traffic scales as M/tm).
    B, L, D = x.shape
    M = B * L
    H = p["w1"].shape[1]
    tm = _pick_tile(M, tm, 8)
    th = _pick_tile(H, th, 128)
    out = pl.pallas_call(
        _ffn_kernel,
        out_shape=jax.ShapeDtypeStruct((M, D), x.dtype),
        grid=(M // tm, H // th),
        in_specs=[
            pl.BlockSpec((tm, D), lambda i, j: (i, 0)),
            pl.BlockSpec((D, th), lambda i, j: (0, j)),
            pl.BlockSpec((1, th), lambda i, j: (0, j)),
            pl.BlockSpec((th, D), lambda i, j: (j, 0)),
            pl.BlockSpec((1, D), lambda i, j: (0, 0)),
        ],
        out_specs=pl.BlockSpec((tm, D), lambda i, j: (i, 0)),
        scratch_shapes=[pltpu.VMEM((tm, D), jnp.float32)],
        compiler_params=pltpu.CompilerParams(
            dimension_semantics=("parallel", "arbitrary"),
            vmem_limit_bytes=_vmem_limit()),
    )(x.reshape(M, D), p["w1"], p["b1"].reshape(1, H), p["w2"], p["b2"].reshape(1, D))
    return out.reshape(B, L, D)


# ----------------------------------------------------------------------------
# Fused residual-add + layernorm kernel (M-tiled)
# ----------------------------------------------------------------------------

def _add_norm_kernel(x_ref, r_ref, g_ref, b_ref, o_ref, *, eps):
    x = x_ref[...].astype(jnp.float32) + r_ref[...].astype(jnp.float32)
    mean = jnp.mean(x, axis=-1, keepdims=True)
    var = jnp.mean((x - mean) ** 2, axis=-1, keepdims=True)
    y = (x - mean) * jax.lax.rsqrt(var + eps)
    o_ref[...] = (y * g_ref[...] + b_ref[...]).astype(o_ref.dtype)


def add_norm(x, residual, gamma, beta, eps=1e-5, *, tm=512):
    B, L, D = x.shape
    M = B * L
    tm = _pick_tile(M, tm, 8)
    out = pl.pallas_call(
        functools.partial(_add_norm_kernel, eps=eps),
        out_shape=jax.ShapeDtypeStruct((M, D), x.dtype),
        grid=(M // tm,),
        in_specs=[
            pl.BlockSpec((tm, D), lambda i: (i, 0)),
            pl.BlockSpec((tm, D), lambda i: (i, 0)),
            pl.BlockSpec((1, D), lambda i: (0, 0)),
            pl.BlockSpec((1, D), lambda i: (0, 0)),
        ],
        out_specs=pl.BlockSpec((tm, D), lambda i: (i, 0)),
        compiler_params=pltpu.CompilerParams(
            dimension_semantics=("parallel",),
            vmem_limit_bytes=_vmem_limit()),
    )(x.reshape(M, D), residual.reshape(M, D), gamma.reshape(1, D), beta.reshape(1, D))
    return out.reshape(B, L, D)


# ----------------------------------------------------------------------------
# Flash-style attention: fused-QKV input indexed by BlockSpec slot, in-kernel
# masks, causal block skipping, lane-dense [B, Lq, D] output.
# ----------------------------------------------------------------------------

def _flash_kernel(q_ref, k_ref, v_ref, qv_ref, kv_ref, o_ref,
                  m_sc, l_sc, acc_sc, *, scale, causal, tq, tk, n_heads, dh):
    qi = pl.program_id(1)
    ki = pl.program_id(2)

    @pl.when(ki == 0)
    def _():
        m_sc[...] = jnp.full_like(m_sc, -1e30)
        l_sc[...] = jnp.zeros_like(l_sc)
        acc_sc[...] = jnp.zeros_like(acc_sc)

    def update_block():
        # keep-mask built in-kernel from per-token validity (no [B,Lq,Lk] HBM mask)
        keep = (qv_ref[0, :, :] * kv_ref[0, :, :]) > 0.0          # (tq, tk)
        if causal:
            row = qi * tq + jax.lax.broadcasted_iota(jnp.int32, (tq, tk), 0)
            col = ki * tk + jax.lax.broadcasted_iota(jnp.int32, (tq, tk), 1)
            keep = jnp.logical_and(keep, row >= col)

        for h in range(n_heads):
            c0, c1 = h * dh, (h + 1) * dh
            qh = q_ref[0, :, 0, h, :].astype(jnp.bfloat16)         # (tq, dh)
            kh = k_ref[0, :, 0, h, :].astype(jnp.bfloat16)         # (tk, dh)
            vh = v_ref[0, :, 0, h, :].astype(jnp.bfloat16)         # (tk, dh)

            # QK^T without transposing K (contract over dh), bf16 -> f32 acc.
            s = jax.lax.dot_general(qh, kh, (((1,), (1,)), ((), ())),
                                    preferred_element_type=jnp.float32)
            s = jnp.where(keep, s * scale, -1e9)                   # (tq, tk)

            m_prev = m_sc[:, h:h + 1]                              # (tq, 1)
            m_new = jnp.maximum(m_prev, jnp.max(s, axis=-1, keepdims=True))
            alpha = jnp.exp(m_prev - m_new)
            p = jnp.exp(s - m_new)                                 # (tq, tk) f32

            l_sc[:, h:h + 1] = alpha * l_sc[:, h:h + 1] + jnp.sum(p, axis=-1,
                                                                  keepdims=True)
            pv = jax.lax.dot_general(p.astype(jnp.bfloat16), vh,
                                     (((1,), (0,)), ((), ())),
                                     preferred_element_type=jnp.float32)   # (tq, dh)
            acc_sc[:, c0:c1] = alpha * acc_sc[:, c0:c1] + pv
            m_sc[:, h:h + 1] = m_new

    if causal:
        # Skip fully-masked upper-triangular blocks entirely (exact: they
        # contribute exp(-1e9 - m) == 0 for any row with a valid key).
        pl.when(ki * tk <= qi * tq + (tq - 1))(update_block)
    else:
        update_block()

    @pl.when(ki == pl.num_programs(2) - 1)
    def _():
        for h in range(n_heads):
            c0, c1 = h * dh, (h + 1) * dh
            o_ref[0, :, c0:c1] = (acc_sc[:, c0:c1] / l_sc[:, h:h + 1]).astype(o_ref.dtype)


def flash_attention(q_arr, k_arr, v_arr, q_valid, k_valid, *,
                    q_slot, k_slot, v_slot, causal=False, tq=256, tk=512):
    """q_arr: [B,Lq,Sq,H,dh], k_arr/v_arr: [B,Lk,Sk,H,dh] (slot picked via index_map).

    q_valid: [B, Lq] (1.0 valid / 0.0 pad), k_valid: [B, Lk].  Returns [B, Lq, H*dh].
    """
    B, Lq, _, H, dh = q_arr.shape
    Lk = k_arr.shape[1]
    D = H * dh
    scale = 1.0 / math.sqrt(dh)
    tq = _pick_tile(Lq, tq, 8)
    tk = _pick_tile(Lk, tk, 128)
    grid = (B, Lq // tq, Lk // tk)

    qv = q_valid.reshape(B, Lq, 1).astype(jnp.float32)
    kv = k_valid.reshape(B, 1, Lk).astype(jnp.float32)

    return pl.pallas_call(
        functools.partial(_flash_kernel, scale=scale, causal=causal,
                          tq=tq, tk=tk, n_heads=H, dh=dh),
        out_shape=jax.ShapeDtypeStruct((B, Lq, D), q_arr.dtype),
        grid=grid,
        in_specs=[
            pl.BlockSpec((1, tq, 1, H, dh), lambda b, qi, ki: (b, qi, q_slot, 0, 0)),
            pl.BlockSpec((1, tk, 1, H, dh), lambda b, qi, ki: (b, ki, k_slot, 0, 0)),
            pl.BlockSpec((1, tk, 1, H, dh), lambda b, qi, ki: (b, ki, v_slot, 0, 0)),
            pl.BlockSpec((1, tq, 1), lambda b, qi, ki: (b, qi, 0)),
            pl.BlockSpec((1, 1, tk), lambda b, qi, ki: (b, 0, ki)),
        ],
        out_specs=pl.BlockSpec((1, tq, D), lambda b, qi, ki: (b, qi, 0)),
        scratch_shapes=[
            pltpu.VMEM((tq, H), jnp.float32),   # running max   (compact, 2-D)
            pltpu.VMEM((tq, H), jnp.float32),   # running denom (compact, 2-D)
            pltpu.VMEM((tq, D), jnp.float32),   # running output (lane-dense)
        ],
        compiler_params=pltpu.CompilerParams(
            dimension_semantics=("parallel", "parallel", "arbitrary"),
            vmem_limit_bytes=_vmem_limit()),
    )(q_arr, k_arr, v_arr, qv, kv)


# ----------------------------------------------------------------------------
# Model glue (embeddings, layer stacking) in plain JAX
# ----------------------------------------------------------------------------

def multi_head_attention(p, q_in, kv_in, q_valid, k_valid, n_heads, *,
                         causal, self_attn):
    B, Lq, D = q_in.shape
    Lk = kv_in.shape[1]
    dh = D // n_heads

    if self_attn:
        # One fused [D, 3D] projection; attention BlockSpecs index the slots
        # directly (no transposes / slices between projection and attention).
        qkv = linear(q_in.reshape(B * Lq, D), p["wqkv"], p["bqkv"])
        qkv = qkv.reshape(B, Lq, 3, n_heads, dh)
        o = flash_attention(qkv, qkv, qkv, q_valid, k_valid,
                            q_slot=0, k_slot=1, v_slot=2, causal=causal)
    else:
        q = linear(q_in.reshape(B * Lq, D), p["wq"], p["bq"])
        q = q.reshape(B, Lq, 1, n_heads, dh)
        kvp = linear(kv_in.reshape(B * Lk, D), p["wkv"], p["bkv"])
        kvp = kvp.reshape(B, Lk, 2, n_heads, dh)
        o = flash_attention(q, kvp, kvp, q_valid, k_valid,
                            q_slot=0, k_slot=0, v_slot=1, causal=causal)

    # o is already [B, Lq, D] lane-dense; reshape is free.
    return linear(o.reshape(B * Lq, D), p["wo"], p["bo"]).reshape(B, Lq, D)


def positional_encoding(max_len, d_model):
    pos = jnp.arange(max_len, dtype=jnp.float32)[:, None]
    i = jnp.arange(0, d_model, 2, dtype=jnp.float32)
    angle = pos / jnp.power(10000.0, i / d_model)
    pe = jnp.zeros((max_len, d_model), jnp.float32)
    pe = pe.at[:, 0::2].set(jnp.sin(angle))
    pe = pe.at[:, 1::2].set(jnp.cos(angle))
    return pe


def encoder(params, src_tok, src_valid, n_heads):
    L = src_tok.shape[1]
    x = params["tok_emb"][src_tok] + params["pos_emb"][:L][None, :, :]
    for lp in params["layers"]:
        res = x
        x = multi_head_attention(lp["attn"], x, x, src_valid, src_valid, n_heads,
                                 causal=False, self_attn=True)
        x = add_norm(x, res, lp["ln1_g"], lp["ln1_b"])
        res = x
        x = feed_forward(lp["ffn"], x)
        x = add_norm(x, res, lp["ln2_g"], lp["ln2_b"])
    return x


def decoder(params, trg_tok, enc_out, trg_valid, src_valid, n_heads):
    L = trg_tok.shape[1]
    x = params["tok_emb"][trg_tok] + params["pos_emb"][:L][None, :, :]
    for lp in params["layers"]:
        res = x
        x = multi_head_attention(lp["self_attn"], x, x, trg_valid, trg_valid,
                                 n_heads, causal=True, self_attn=True)
        x = add_norm(x, res, lp["ln1_g"], lp["ln1_b"])
        res = x
        x = multi_head_attention(lp["cross_attn"], x, enc_out, trg_valid, src_valid,
                                 n_heads, causal=False, self_attn=False)
        x = add_norm(x, res, lp["ln2_g"], lp["ln2_b"])
        res = x
        x = feed_forward(lp["ffn"], x)
        x = add_norm(x, res, lp["ln3_g"], lp["ln3_b"])
    B_, L_, D = x.shape
    logits = linear(x.reshape(B_ * L_, D), params["out_w"], params["out_b"])
    return logits.reshape(B_, L_, -1)


@functools.partial(jax.jit, static_argnums=(3, 4, 5))
def transformer_forward(params, src, trg, src_pad_idx, trg_pad_idx, n_heads):
    # Per-token validity vectors (O(B*L)); padding/causal masks are rebuilt
    # in-kernel, so no O(B*L^2) mask tensors ever touch HBM.
    src_valid = (src != src_pad_idx).astype(jnp.float32)
    trg_valid = (trg != trg_pad_idx).astype(jnp.float32)

    enc = encoder(params["encoder"], src, src_valid, n_heads)
    out = decoder(params["decoder"], trg, enc, trg_valid, src_valid, n_heads)
    return out


# ----------------------------------------------------------------------------
# Deterministic parameter initialization
# ----------------------------------------------------------------------------

def _init_lin(key, fan_in, fan_out):
    w = jax.random.normal(key, (fan_in, fan_out), jnp.float32) * 0.02
    b = jnp.zeros((fan_out,), jnp.float32)
    return w, b


def _init_attn(key, d_model, *, cross=False):
    ks = jax.random.split(key, 4)
    wq, bq = _init_lin(ks[0], d_model, d_model)
    wk, bk = _init_lin(ks[1], d_model, d_model)
    wv, bv = _init_lin(ks[2], d_model, d_model)
    wo, bo = _init_lin(ks[3], d_model, d_model)
    if cross:
        # Separate Q and fused KV weights: no trace-time slicing of a fused tensor.
        return dict(wq=wq, bq=bq,
                    wkv=jnp.concatenate([wk, wv], axis=1),
                    bkv=jnp.concatenate([bk, bv], axis=0),
                    wo=wo, bo=bo)
    return dict(wqkv=jnp.concatenate([wq, wk, wv], axis=1),
                bqkv=jnp.concatenate([bq, bk, bv], axis=0),
                wo=wo, bo=bo)


def _init_ffn(key, d_model, ffn_hidden):
    k1, k2 = jax.random.split(key)
    w1, b1 = _init_lin(k1, d_model, ffn_hidden)
    w2, b2 = _init_lin(k2, ffn_hidden, d_model)
    return dict(w1=w1, b1=b1, w2=w2, b2=b2)


def init_params(key, enc_voc, dec_voc, max_len, d_model, ffn_hidden, n_layers):
    keys = jax.random.split(key, 4)
    pe = positional_encoding(max_len, d_model)

    def ln_pair():
        return jnp.ones((d_model,), jnp.float32), jnp.zeros((d_model,), jnp.float32)

    enc_layers = []
    for i in range(n_layers):
        k = jax.random.fold_in(keys[0], i)
        ka, kf = jax.random.split(k)
        g1, b1 = ln_pair(); g2, b2 = ln_pair()
        enc_layers.append(dict(attn=_init_attn(ka, d_model),
                               ffn=_init_ffn(kf, d_model, ffn_hidden),
                               ln1_g=g1, ln1_b=b1, ln2_g=g2, ln2_b=b2))

    dec_layers = []
    for i in range(n_layers):
        k = jax.random.fold_in(keys[1], i)
        ks, kc, kf = jax.random.split(k, 3)
        g1, b1 = ln_pair(); g2, b2 = ln_pair(); g3, b3 = ln_pair()
        dec_layers.append(dict(self_attn=_init_attn(ks, d_model),
                               cross_attn=_init_attn(kc, d_model, cross=True),
                               ffn=_init_ffn(kf, d_model, ffn_hidden),
                               ln1_g=g1, ln1_b=b1, ln2_g=g2, ln2_b=b2,
                               ln3_g=g3, ln3_b=b3))

    out_w, out_b = _init_lin(jax.random.fold_in(keys[2], 0), d_model, dec_voc)

    return dict(
        encoder=dict(
            tok_emb=jax.random.normal(jax.random.fold_in(keys[3], 0),
                                      (enc_voc, d_model), jnp.float32) * 0.02,
            pos_emb=pe, layers=enc_layers),
        decoder=dict(
            tok_emb=jax.random.normal(jax.random.fold_in(keys[3], 1),
                                      (dec_voc, d_model), jnp.float32) * 0.02,
            pos_emb=pe, layers=dec_layers,
            out_w=out_w, out_b=out_b),
    )


# ----------------------------------------------------------------------------

if __name__ == "__main__":
    # Small deterministic config
    src_pad_idx, trg_pad_idx = 0, 0
    enc_voc_size, dec_voc_size = 100, 100
    max_len, d_model, n_heads = 16, 32, 4
    ffn_hidden, n_layers = 64, 2
    batch, src_len, trg_len = 2, 8, 8
    # TODO(synk): dropout (drop_prob) is identity in eval mode and is not applied.

    key = jax.random.PRNGKey(0)
    kp, ks, kt = jax.random.split(key, 3)

    params = init_params(kp, enc_voc_size, dec_voc_size, max_len,
                         d_model, ffn_hidden, n_layers)

    src = jax.random.randint(ks, (batch, src_len), 1, enc_voc_size, dtype=jnp.int32)
    trg = jax.random.randint(kt, (batch, trg_len), 1, dec_voc_size, dtype=jnp.int32)
    # introduce some padding tokens to exercise the padding masks
    src = src.at[:, -2:].set(src_pad_idx)
    trg = trg.at[:, -1:].set(trg_pad_idx)

    out = transformer_forward(params, src, trg, src_pad_idx, trg_pad_idx, n_heads)
    out = jax.block_until_ready(out)
    assert out.shape == (batch, trg_len, dec_voc_size)
    assert bool(jnp.all(jnp.isfinite(out)))
    print("KERNEL_OK")
</pallas_src>

<mosaic_0001>
module attributes {stable_mosaic.version = 11 : i64} {
  func.func @_linear_kernel(%arg0: i32, %arg1: i32, %arg2: i32, %arg3: memref<16x32xf32, #tpu.memory_space<vmem>>, %arg4: memref<32x96xf32, #tpu.memory_space<vmem>>, %arg5: memref<1x96xf32, #tpu.memory_space<vmem>>, %arg6: memref<16x96xf32, #tpu.memory_space<vmem>>, %arg7: memref<16x96xf32, #tpu.memory_space<vmem>>) attributes {dimension_semantics = [#tpu.dimension_semantics<parallel>, #tpu.dimension_semantics<parallel>, #tpu.dimension_semantics<arbitrary>], iteration_bounds = array<i64: 1, 1, 1>, scalar_prefetch = 0 : i64, scratch_operands = 1 : i64, tpu.core_type = #tpu.core_type<tc>, window_params = [{transform_indices = @transform_0, window_bounds = array<i64: 16, 32>}, {transform_indices = @transform_1, window_bounds = array<i64: 32, 96>}, {transform_indices = @transform_2, window_bounds = array<i64: 1, 96>}, {transform_indices = @transform_3, window_bounds = array<i64: 16, 96>}]} {
    %c0_i32 = arith.constant 0 : i32
    %0 = arith.cmpi eq, %arg2, %c0_i32 : i32
    %1 = arith.extui %0 : i1 to i32
    %c0_i32_0 = arith.constant 0 : i32
    %2 = arith.cmpi ne, %1, %c0_i32_0 : i32
    scf.if %2 {
      %cst_10 = arith.constant 0.000000e+00 : f32
      %14 = vector.broadcast %cst_10 : f32 to vector<16x96xf32>
      %c0_11 = arith.constant 0 : index
      %c0_12 = arith.constant 0 : index
      %15 = vector.load %arg7[%c0_11, %c0_12] : memref<16x96xf32, #tpu.memory_space<vmem>>, vector<16x96xf32>
      tpu.vector_store %arg7[%c0_11, %c0_12], %14 {strides = array<i32>} : memref<16x96xf32, #tpu.memory_space<vmem>>, vector<16x96xf32>,
    } else {
    }
    %c0 = arith.constant 0 : index
    %c0_1 = arith.constant 0 : index
    %3 = vector.load %arg7[%c0, %c0_1] : memref<16x96xf32, #tpu.memory_space<vmem>>, vector<16x96xf32>
    %c0_2 = arith.constant 0 : index
    %c0_3 = arith.constant 0 : index
    %4 = vector.load %arg3[%c0_2, %c0_3] : memref<16x32xf32, #tpu.memory_space<vmem>>, vector<16x32xf32>
    %5 = arith.truncf %4 : vector<16x32xf32> to vector<16x32xbf16>
    %c0_4 = arith.constant 0 : index
    %c0_5 = arith.constant 0 : index
    %6 = vector.load %arg4[%c0_4, %c0_5] : memref<32x96xf32, #tpu.memory_space<vmem>>, vector<32x96xf32>
    %7 = arith.truncf %6 : vector<32x96xf32> to vector<32x96xbf16>
    %cst = arith.constant dense<0.000000e+00> : vector<16x96xf32>
    %8 = tpu.matmul %5, %7, %cst {dimension_numbers = #tpu.dot_dimension_numbers<[1], [0], [0], [1], [0, 0, 1, 1], [], []>} : vector<16x32xbf16>, vector<32x96xbf16>, vector<16x96xf32> -> vector<16x96xf32>
    %9 = arith.addf %3, %8 : vector<16x96xf32>
    %c0_6 = arith.constant 0 : index
    %c0_7 = arith.constant 0 : index
    %10 = vector.load %arg7[%c0_6, %c0_7] : memref<16x96xf32, #tpu.memory_space<vmem>>, vector<16x96xf32>
    tpu.vector_store %arg7[%c0_6, %c0_7], %9 {strides = array<i32>} : memref<16x96xf32, #tpu.memory_space<vmem>>, vector<16x96xf32>,
    %c0_i32_8 = arith.constant 0 : i32
    %11 = arith.cmpi eq, %arg2, %c0_i32_8 : i32
    %12 = arith.extui %11 : i1 to i32
    %c0_i32_9 = arith.constant 0 : i32
    %13 = arith.cmpi ne, %12, %c0_i32_9 : i32
    scf.if %13 {
      %c0_10 = arith.constant 0 : index
      %c0_11 = arith.constant 0 : index
      %14 = vector.load %arg7[%c0_10, %c0_11] : memref<16x96xf32, #tpu.memory_space<vmem>>, vector<16x96xf32>
      %c0_12 = arith.constant 0 : index
      %c0_13 = arith.constant 0 : index
      %15 = vector.load %arg5[%c0_12, %c0_13] : memref<1x96xf32, #tpu.memory_space<vmem>>, vector<1x96xf32>
      %16 = vector.broadcast %15 : vector<1x96xf32> to vector<16x96xf32>
      %17 = arith.addf %14, %16 : vector<16x96xf32>
      %c0_14 = arith.constant 0 : index
      %c0_15 = arith.constant 0 : index
      %18 = vector.load %arg6[%c0_14, %c0_15] : memref<16x96xf32, #tpu.memory_space<vmem>>, vector<16x96xf32>
      tpu.vector_store %arg6[%c0_14, %c0_15], %17 {strides = array<i32>} : memref<16x96xf32, #tpu.memory_space<vmem>>, vector<16x96xf32>,
    } else {
    }
    return
  }
  func.func @transform_0(%arg0: i32, %arg1: i32, %arg2: i32) -> (i32, i32) {
    %c0_i32 = arith.constant 0 : i32
    return %arg0, %arg2 : i32, i32
  }
  func.func @transform_1(%arg0: i32, %arg1: i32, %arg2: i32) -> (i32, i32) {
    %c0_i32 = arith.constant 0 : i32
    return %arg2, %arg1 : i32, i32
  }
  func.func @transform_2(%arg0: i32, %arg1: i32, %arg2: i32) -> (i32, i32) {
    %c0_i32 = arith.constant 0 : i32
    %c0_i32_0 = arith.constant 0 : i32
    return %c0_i32, %arg1 : i32, i32
  }
  func.func @transform_3(%arg0: i32, %arg1: i32, %arg2: i32) -> (i32, i32) {
    %c0_i32 = arith.constant 0 : i32
    return %arg0, %arg1 : i32, i32
  }
}

module attributes {stable_mosaic.version = 11 : i64} {
  func.func @_add_norm_kernel(%arg0: i32, %arg1: memref<16x32xf32, #tpu.memory_space<vmem>>, %arg2: memref<16x32xf32, #tpu.memory_space<vmem>>, %arg3: memref<1x32xf32, #tpu.memory_space<vmem>>, %arg4: memref<1x32xf32, #tpu.memory_space<vmem>>, %arg5: memref<16x32xf32, #tpu.memory_space<vmem>>) attributes {dimension_semantics = [#tpu.dimension_semantics<parallel>], iteration_bounds = array<i64: 1>, scalar_prefetch = 0 : i64, scratch_operands = 0 : i64, tpu.core_type = #tpu.core_type<tc>, window_params = [{transform_indices = @transform_0, window_bounds = array<i64: 16, 32>}, {transform_indices = @transform_1, window_bounds = array<i64: 16, 32>}, {pipeline_mode = #tpu.pipeline_mode<synchronous>, transform_indices = @transform_2, window_bounds = array<i64: 1, 32>}, {pipeline_mode = #tpu.pipeline_mode<synchronous>, transform_indices = @transform_3, window_bounds = array<i64: 1, 32>}, {transform_indices = @transform_4, window_bounds = array<i64: 16, 32>}]} {
    %c0 = arith.constant 0 : index
    %c0_0 = arith.constant 0 : index
    %0 = vector.load %arg1[%c0, %c0_0] : memref<16x32xf32, #tpu.memory_space<vmem>>, vector<16x32xf32>
    %c0_1 = arith.constant 0 : index
    %c0_2 = arith.constant 0 : index
    %1 = vector.load %arg2[%c0_1, %c0_2] : memref<16x32xf32, #tpu.memory_space<vmem>>, vector<16x32xf32>
    %2 = arith.addf %0, %1 : vector<16x32xf32>
    %cst = arith.constant dense<0.000000e+00> : vector<16xf32>
    %3 = vector.multi_reduction <add>, %2, %cst [1] : vector<16x32xf32> to vector<16xf32>
    %4 = vector.shape_cast %3 : vector<16xf32> to vector<16x1xf32>
    %cst_3 = arith.constant 3.200000e+01 : f32
    %5 = vector.broadcast %cst_3 : f32 to vector<16x1xf32>
    %6 = arith.divf %4, %5 : vector<16x1xf32>
    %7 = vector.broadcast %6 : vector<16x1xf32> to vector<16x32xf32>
    %8 = arith.subf %2, %7 : vector<16x32xf32>
    %9 = arith.mulf %8, %8 : vector<16x32xf32>
    %cst_4 = arith.constant dense<0.000000e+00> : vector<16xf32>
    %10 = vector.multi_reduction <add>, %9, %cst_4 [1] : vector<16x32xf32> to vector<16xf32>
    %11 = vector.shape_cast %10 : vector<16xf32> to vector<16x1xf32>
    %cst_5 = arith.constant 3.200000e+01 : f32
    %12 = vector.broadcast %cst_5 : f32 to vector<16x1xf32>
    %13 = arith.divf %11, %12 : vector<16x1xf32>
    %14 = vector.broadcast %6 : vector<16x1xf32> to vector<16x32xf32>
    %15 = arith.subf %2, %14 : vector<16x32xf32>
    %cst_6 = arith.constant 9.99999974E-6 : f32
    %16 = vector.broadcast %cst_6 : f32 to vector<16x1xf32>
    %17 = arith.addf %13, %16 : vector<16x1xf32>
    %18 = math.rsqrt %17 : vector<16x1xf32>
    %19 = vector.broadcast %18 : vector<16x1xf32> to vector<16x32xf32>
    %20 = arith.mulf %15, %19 : vector<16x32xf32>
    %c0_7 = arith.constant 0 : index
    %c0_8 = arith.constant 0 : index
    %21 = vector.load %arg3[%c0_7, %c0_8] : memref<1x32xf32, #tpu.memory_space<vmem>>, vector<1x32xf32>
    %22 = vector.broadcast %21 : vector<1x32xf32> to vector<16x32xf32>
    %23 = arith.mulf %20, %22 : vector<16x32xf32>
    %c0_9 = arith.constant 0 : index
    %c0_10 = arith.constant 0 : index
    %24 = vector.load %arg4[%c0_9, %c0_10] : memref<1x32xf32, #tpu.memory_space<vmem>>, vector<1x32xf32>
    %25 = vector.broadcast %24 : vector<1x32xf32> to vector<16x32xf32>
    %26 = arith.addf %23, %25 : vector<16x32xf32>
    %c0_11 = arith.constant 0 : index
    %c0_12 = arith.constant 0 : index
    %27 = vector.load %arg5[%c0_11, %c0_12] : memref<16x32xf32, #tpu.memory_space<vmem>>, vector<16x32xf32>
    tpu.vector_store %arg5[%c0_11, %c0_12], %26 {strides = array<i32>} : memref<16x32xf32, #tpu.memory_space<vmem>>, vector<16x32xf32>,
    return
  }
  func.func @transform_0(%arg0: i32) -> (i32, i32) {
    %c0_i32 = arith.constant 0 : i32
    %c0_i32_0 = arith.constant 0 : i32
    return %arg0, %c0_i32 : i32, i32
  }
  func.func @transform_1(%arg0: i32) -> (i32, i32) {
    %c0_i32 = arith.constant 0 : i32
    %c0_i32_0 = arith.constant 0 : i32
    return %arg0, %c0_i32 : i32, i32
  }
  func.func @transform_2(%arg0: i32) -> (i32, i32) {
    %c0_i32 = arith.constant 0 : i32
    %c0_i32_0 = arith.constant 0 : i32
    %c0_i32_1 = arith.constant 0 : i32
    return %c0_i32, %c0_i32_0 : i32, i32
  }
  func.func @transform_3(%arg0: i32) -> (i32, i32) {
    %c0_i32 = arith.constant 0 : i32
    %c0_i32_0 = arith.constant 0 : i32
    %c0_i32_1 = arith.constant 0 : i32
    return %c0_i32, %c0_i32_0 : i32, i32
  }
  func.func @transform_4(%arg0: i32) -> (i32, i32) {
    %c0_i32 = arith.constant 0 : i32
    %c0_i32_0 = arith.constant 0 : i32
    return %arg0, %c0_i32 : i32, i32
  }
}

module attributes {stable_mosaic.version = 11 : i64} {
  func.func @_flash_kernel(%arg0: i32, %arg1: i32, %arg2: i32, %arg3: memref<1x8x1x4x8xf32, #tpu.memory_space<vmem>>, %arg4: memref<1x8x1x4x8xf32, #tpu.memory_space<vmem>>, %arg5: memref<1x8x1x4x8xf32, #tpu.memory_space<vmem>>, %arg6: memref<1x8x1xf32, #tpu.memory_space<vmem>>, %arg7: memref<1x1x8xf32, #tpu.memory_space<vmem>>, %arg8: memref<1x8x32xf32, #tpu.memory_space<vmem>>, %arg9: memref<8x4xf32, #tpu.memory_space<vmem>>, %arg10: memref<8x4xf32, #tpu.memory_space<vmem>>, %arg11: memref<8x32xf32, #tpu.memory_space<vmem>>) attributes {dimension_semantics = [#tpu.dimension_semantics<parallel>, #tpu.dimension_semantics<parallel>, #tpu.dimension_semantics<arbitrary>], iteration_bounds = array<i64: 2, 1, 1>, scalar_prefetch = 0 : i64, scratch_operands = 3 : i64, tpu.core_type = #tpu.core_type<tc>, window_params = [{transform_indices = @transform_0, window_bounds = array<i64: 1, 8, 1, 4, 8>}, {transform_indices = @transform_1, window_bounds = array<i64: 1, 8, 1, 4, 8>}, {transform_indices = @transform_2, window_bounds = array<i64: 1, 8, 1, 4, 8>}, {transform_indices = @transform_3, window_bounds = array<i64: 1, 8, 1>}, {transform_indices = @transform_4, window_bounds = array<i64: 1, 1, 8>}, {transform_indices = @transform_5, window_bounds = array<i64: 1, 8, 32>}]} {
    %c0_i32 = arith.constant 0 : i32
    %0 = arith.cmpi eq, %arg2, %c0_i32 : i32
    %1 = arith.extui %0 : i1 to i32
    %c0_i32_0 = arith.constant 0 : i32
    %2 = arith.cmpi ne, %1, %c0_i32_0 : i32
    scf.if %2 {
      %cst = arith.constant -1.000000e+30 : f32
      %12 = vector.broadcast %cst : f32 to vector<8x4xf32>
      %c0 = arith.constant 0 : index
      %c0_5 = arith.constant 0 : index
      %13 = vector.load %arg9[%c0, %c0_5] : memref<8x4xf32, #tpu.memory_space<vmem>>, vector<8x4xf32>
      tpu.vector_store %arg9[%c0, %c0_5], %12 {strides = array<i32>} : memref<8x4xf32, #tpu.memory_space<vmem>>, vector<8x4xf32>,
      %cst_6 = arith.constant 0.000000e+00 : f32
      %14 = vector.broadcast %cst_6 : f32 to vector<8x4xf32>
      %c0_7 = arith.constant 0 : index
      %c0_8 = arith.constant 0 : index
      %15 = vector.load %arg10[%c0_7, %c0_8] : memref<8x4xf32, #tpu.memory_space<vmem>>, vector<8x4xf32>
      tpu.vector_store %arg10[%c0_7, %c0_8], %14 {strides = array<i32>} : memref<8x4xf32, #tpu.memory_space<vmem>>, vector<8x4xf32>,
      %cst_9 = arith.constant 0.000000e+00 : f32
      %16 = vector.broadcast %cst_9 : f32 to vector<8x32xf32>
      %c0_10 = arith.constant 0 : index
      %c0_11 = arith.constant 0 : index
      %17 = vector.load %arg11[%c0_10, %c0_11] : memref<8x32xf32, #tpu.memory_space<vmem>>, vector<8x32xf32>
      tpu.vector_store %arg11[%c0_10, %c0_11], %16 {strides = array<i32>} : memref<8x32xf32, #tpu.memory_space<vmem>>, vector<8x32xf32>,
    } else {
    }
    %c8_i32 = arith.constant 8 : i32
    %3 = arith.muli %arg2, %c8_i32 : i32
    %c8_i32_1 = arith.constant 8 : i32
    %4 = arith.muli %arg1, %c8_i32_1 : i32
    %c7_i32 = arith.constant 7 : i32
    %5 = arith.addi %4, %c7_i32 : i32
    %6 = arith.cmpi sle, %3, %5 : i32
    %7 = arith.extui %6 : i1 to i32
    %c0_i32_2 = arith.constant 0 : i32
    %8 = arith.cmpi ne, %7, %c0_i32_2 : i32
    scf.if %8 {
      %c0 = arith.constant 0 : index
      %c0_5 = arith.constant 0 : index
      %c0_6 = arith.constant 0 : index
      %12 = vector.load %arg6[%c0, %c0_5, %c0_6] : memref<1x8x1xf32, #tpu.memory_space<vmem>>, vector<1x8x1xf32>
      %13 = vector.shape_cast %12 : vector<1x8x1xf32> to vector<8x1xf32>
      %c0_7 = arith.constant 0 : index
      %c0_8 = arith.constant 0 : index
      %c0_9 = arith.constant 0 : index
      %14 = vector.load %arg7[%c0_7, %c0_8, %c0_9] : memref<1x1x8xf32, #tpu.memory_space<vmem>>, vector<1x1x8xf32>
      %15 = vector.shape_cast %14 : vector<1x1x8xf32> to vector<1x8xf32>
      %16 = vector.broadcast %13 : vector<8x1xf32> to vector<8x8xf32>
      %17 = vector.broadcast %15 : vector<1x8xf32> to vector<8x8xf32>
      %18 = arith.mulf %16, %17 : vector<8x8xf32>
      %cst = arith.constant 0.000000e+00 : f32
      %19 = vector.broadcast %cst : f32 to vector<8x8xf32>
      %20 = arith.cmpf ogt, %18, %19 : vector<8x8xf32>
      %c8_i32_10 = arith.constant 8 : i32
      %21 = arith.muli %arg1, %c8_i32_10 : i32
      %22 = tpu.iota {dimensions = array<i32: 0>} : vector<8x8xi32>
      %23 = vector.broadcast %21 : i32 to vector<8x8xi32>
      %24 = arith.addi %23, %22 : vector<8x8xi32>
      %c8_i32_11 = arith.constant 8 : i32
      %25 = arith.muli %arg2, %c8_i32_11 : i32
      %26 = tpu.iota {dimensions = array<i32: 1>} : vector<8x8xi32>
      %27 = vector.broadcast %25 : i32 to vector<8x8xi32>
      %28 = arith.addi %27, %26 : vector<8x8xi32>
      %29 = arith.cmpi sge, %24, %28 : vector<8x8xi32>
      %30 = arith.andi %20, %29 : vector<8x8xi1>
      %c0_12 = arith.constant 0 : index
      %c0_13 = arith.constant 0 : index
      %c0_14 = arith.constant 0 : index
      %c0_15 = arith.constant 0 : index
      %c0_16 = arith.constant 0 : index
      %31 = vector.load %arg3[%c0_12, %c0_13, %c0_14, %c0_15, %c0_16] : memref<1x8x1x4x8xf32, #tpu.memory_space<vmem>>, vector<1x8x1x1x8xf32>
      %32 = vector.shape_cast %31 : vector<1x8x1x1x8xf32> to vector<8x8xf32>
      %33 = arith.truncf %32 : vector<8x8xf32> to vector<8x8xbf16>
      %c0_17 = arith.constant 0 : index
      %c0_18 = arith.constant 0 : index
      %c0_19 = arith.constant 0 : index
      %c0_20 = arith.constant 0 : index
      %c0_21 = arith.constant 0 : index
      %34 = vector.load %arg4[%c0_17, %c0_18, %c0_19, %c0_20, %c0_21] : memref<1x8x1x4x8xf32, #tpu.memory_space<vmem>>, vector<1x8x1x1x8xf32>
      %35 = vector.shape_cast %34 : vector<1x8x1x1x8xf32> to vector<8x8xf32>
      %36 = arith.truncf %35 : vector<8x8xf32> to vector<8x8xbf16>
      %c0_22 = arith.constant 0 : index
      %c0_23 = arith.constant 0 : index
      %c0_24 = arith.constant 0 : index
      %c0_25 = arith.constant 0 : index
      %c0_26 = arith.constant 0 : index
      %37 = vector.load %arg5[%c0_22, %c0_23, %c0_24, %c0_25, %c0_26] : memref<1x8x1x4x8xf32, #tpu.memory_space<vmem>>, vector<1x8x1x1x8xf32>
      %38 = vector.shape_cast %37 : vector<1x8x1x1x8xf32> to vector<8x8xf32>
      %39 = arith.truncf %38 : vector<8x8xf32> to vector<8x8xbf16>
      %cst_27 = arith.constant dense<0.000000e+00> : vector<8x8xf32>
      %40 = tpu.matmul %33, %36, %cst_27 {dimension_numbers = #tpu.dot_dimension_numbers<[1], [1], [0], [0], [0, 0, 1, 0], [], []>} : vector<8x8xbf16>, vector<8x8xbf16>, vector<8x8xf32> -> vector<8x8xf32>
      %cst_28 = arith.constant 0.353553385 : f32
      %41 = vector.broadcast %cst_28 : f32 to vector<8x8xf32>
      %42 = arith.mulf %40, %41 : vector<8x8xf32>
      %cst_29 = arith.constant -1.000000e+09 : f32
      %43 = vector.broadcast %cst_29 : f32 to vector<8x8xf32>
      %44 = arith.select %30, %42, %43 : vector<8x8xi1>, vector<8x8xf32>
      %c0_30 = arith.constant 0 : index
      %c0_31 = arith.constant 0 : index
      %45 = vector.load %arg9[%c0_30, %c0_31] : memref<8x4xf32, #tpu.memory_space<vmem>>, vector<8x1xf32>
      %cst_32 = arith.constant dense<0xFF800000> : vector<8xf32>
      %46 = vector.multi_reduction <maximumf>, %44, %cst_32 [1] : vector<8x8xf32> to vector<8xf32>
      %47 = vector.shape_cast %46 : vector<8xf32> to vector<8x1xf32>
      %48 = arith.maximumf %45, %47 : vector<8x1xf32>
      %49 = arith.subf %45, %48 : vector<8x1xf32>
      %50 = math.exp %49 : vector<8x1xf32>
      %51 = vector.broadcast %48 : vector<8x1xf32> to vector<8x8xf32>
      %52 = arith.subf %44, %51 : vector<8x8xf32>
      %53 = math.exp %52 : vector<8x8xf32>
      %c0_33 = arith.constant 0 : index
      %c0_34 = arith.constant 0 : index
      %54 = vector.load %arg10[%c0_33, %c0_34] : memref<8x4xf32, #tpu.memory_space<vmem>>, vector<8x1xf32>
      %55 = arith.mulf %50, %54 : vector<8x1xf32>
      %cst_35 = arith.constant dense<0.000000e+00> : vector<8xf32>
      %56 = vector.multi_reduction <add>, %53, %cst_35 [1] : vector<8x8xf32> to vector<8xf32>
      %57 = vector.shape_cast %56 : vector<8xf32> to vector<8x1xf32>
      %58 = arith.addf %55, %57 : vector<8x1xf32>
      %c0_36 = arith.constant 0 : index
      %c0_37 = arith.constant 0 : index
      %59 = vector.load %arg10[%c0_36, %c0_37] : memref<8x4xf32, #tpu.memory_space<vmem>>, vector<8x1xf32>
      tpu.vector_store %arg10[%c0_36, %c0_37], %58 {strides = array<i32>} : memref<8x4xf32, #tpu.memory_space<vmem>>, vector<8x1xf32>,
      %60 = arith.truncf %53 : vector<8x8xf32> to vector<8x8xbf16>
      %cst_38 = arith.constant dense<0.000000e+00> : vector<8x8xf32>
      %61 = tpu.matmul %60, %39, %cst_38 {dimension_numbers = #tpu.dot_dimension_numbers<[1], [0], [0], [1], [0, 0, 1, 1], [], []>} : vector<8x8xbf16>, vector<8x8xbf16>, vector<8x8xf32> -> vector<8x8xf32>
      %c0_39 = arith.constant 0 : index
      %c0_40 = arith.constant 0 : index
      %62 = vector.load %arg11[%c0_39, %c0_40] : memref<8x32xf32, #tpu.memory_space<vmem>>, vector<8x8xf32>
      %63 = vector.broadcast %50 : vector<8x1xf32> to vector<8x8xf32>
      %64 = arith.mulf %63, %62 : vector<8x8xf32>
      %65 = arith.addf %64, %61 : vector<8x8xf32>
      %c0_41 = arith.constant 0 : index
      %c0_42 = arith.constant 0 : index
      %66 = vector.load %arg11[%c0_41, %c0_42] : memref<8x32xf32, #tpu.memory_space<vmem>>, vector<8x8xf32>
      tpu.vector_store %arg11[%c0_41, %c0_42], %65 {strides = array<i32>} : memref<8x32xf32, #tpu.memory_space<vmem>>, vector<8x8xf32>,
      %c0_43 = arith.constant 0 : index
      %c0_44 = arith.constant 0 : index
      %67 = vector.load %arg9[%c0_43, %c0_44] : memref<8x4xf32, #tpu.memory_space<vmem>>, vector<8x1xf32>
      tpu.vector_store %arg9[%c0_43, %c0_44], %48 {strides = array<i32>} : memref<8x4xf32, #tpu.memory_space<vmem>>, vector<8x1xf32>,
      %c0_45 = arith.constant 0 : index
      %c0_46 = arith.constant 0 : index
      %c0_47 = arith.constant 0 : index
      %c1 = arith.constant 1 : index
      %c0_48 = arith.constant 0 : index
      %68 = vector.load %arg3[%c0_45, %c0_46, %c0_47, %c1, %c0_48] : memref<1x8x1x4x8xf32, #tpu.memory_space<vmem>>, vector<1x8x1x1x8xf32>
      %69 = vector.shape_cast %68 : vector<1x8x1x1x8xf32> to vector<8x8xf32>
      %70 = arith.truncf %69 : vector<8x8xf32> to vector<8x8xbf16>
      %c0_49 = arith.constant 0 : index
      %c0_50 = arith.constant 0 : index
      %c0_51 = arith.constant 0 : index
      %c1_52 = arith.constant 1 : index
      %c0_53 = arith.constant 0 : index
      %71 = vector.load %arg4[%c0_49, %c0_50, %c0_51, %c1_52, %c0_53] : memref<1x8x1x4x8xf32, #tpu.memory_space<vmem>>, vector<1x8x1x1x8xf32>
      %72 = vector.shape_cast %71 : vector<1x8x1x1x8xf32> to vector<8x8xf32>
      %73 = arith.truncf %72 : vector<8x8xf32> to vector<8x8xbf16>
      %c0_54 = arith.constant 0 : index
      %c0_55 = arith.constant 0 : index
      %c0_56 = arith.constant 0 : index
      %c1_57 = arith.constant 1 : index
      %c0_58 = arith.constant 0 : index
      %74 = vector.load %arg5[%c0_54, %c0_55, %c0_56, %c1_57, %c0_58] : memref<1x8x1x4x8xf32, #tpu.memory_space<vmem>>, vector<1x8x1x1x8xf32>
      %75 = vector.shape_cast %74 : vector<1x8x1x1x8xf32> to vector<8x8xf32>
      %76 = arith.truncf %75 : vector<8x8xf32> to vector<8x8xbf16>
      %cst_59 = arith.constant dense<0.000000e+00> : vector<8x8xf32>
      %77 = tpu.matmul %70, %73, %cst_59 {dimension_numbers = #tpu.dot_dimension_numbers<[1], [1], [0], [0], [0, 0, 1, 0], [], []>} : vector<8x8xbf16>, vector<8x8xbf16>, vector<8x8xf32> -> vector<8x8xf32>
      %cst_60 = arith.constant 0.353553385 : f32
      %78 = vector.broadcast %cst_60 : f32 to vector<8x8xf32>
      %79 = arith.mulf %77, %78 : vector<8x8xf32>
      %cst_61 = arith.constant -1.000000e+09 : f32
      %80 = vector.broadcast %cst_61 : f32 to vector<8x8xf32>
      %81 = arith.select %30, %79, %80 : vector<8x8xi1>, vector<8x8xf32>
      %c0_62 = arith.constant 0 : index
      %c1_63 = arith.constant 1 : index
      %82 = vector.load %arg9[%c0_62, %c1_63] : memref<8x4xf32, #tpu.memory_space<vmem>>, vector<8x1xf32>
      %cst_64 = arith.constant dense<0xFF800000> : vector<8xf32>
      %83 = vector.multi_reduction <maximumf>, %81, %cst_64 [1] : vector<8x8xf32> to vector<8xf32>
      %84 = vector.shape_cast %83 : vector<8xf32> to vector<8x1xf32>
      %85 = arith.maximumf %82, %84 : vector<8x1xf32>
      %86 = arith.subf %82, %85 : vector<8x1xf32>
      %87 = math.exp %86 : vector<8x1xf32>
      %88 = vector.broadcast %85 : vector<8x1xf32> to vector<8x8xf32>
      %89 = arith.subf %81, %88 : vector<8x8xf32>
      %90 = math.exp %89 : vector<8x8xf32>
      %c0_65 = arith.constant 0 : index
      %c1_66 = arith.constant 1 : index
      %91 = vector.load %arg10[%c0_65, %c1_66] : memref<8x4xf32, #tpu.memory_space<vmem>>, vector<8x1xf32>
      %92 = arith.mulf %87, %91 : vector<8x1xf32>
      %cst_67 = arith.constant dense<0.000000e+00> : vector<8xf32>
      %93 = vector.multi_reduction <add>, %90, %cst_67 [1] : vector<8x8xf32> to vector<8xf32>
      %94 = vector.shape_cast %93 : vector<8xf32> to vector<8x1xf32>
      %95 = arith.addf %92, %94 : vector<8x1xf32>
      %c0_68 = arith.constant 0 : index
      %c1_69 = arith.constant 1 : index
      %96 = vector.load %arg10[%c0_68, %c1_69] : memref<8x4xf32, #tpu.memory_space<vmem>>, vector<8x1xf32>
      tpu.vector_store %arg10[%c0_68, %c1_69], %95 {strides = array<i32>} : memref<8x4xf32, #tpu.memory_space<vmem>>, vector<8x1xf32>,
      %97 = arith.truncf %90 : vector<8x8xf32> to vector<8x8xbf16>
      %cst_70 = arith.constant dense<0.000000e+00> : vector<8x8xf32>
      %98 = tpu.matmul %97, %76, %cst_70 {dimension_numbers = #tpu.dot_dimension_numbers<[1], [0], [0], [1], [0, 0, 1, 1], [], []>} : vector<8x8xbf16>, vector<8x8xbf16>, vector<8x8xf32> -> vector<8x8xf32>
      %c0_71 = arith.constant 0 : index
      %c8 = arith.constant 8 : index
      %99 = vector.load %arg11[%c0_71, %c8] : memref<8x32xf32, #tpu.memory_space<vmem>>, vector<8x8xf32>
      %100 = vector.broadcast %87 : vector<8x1xf32> to vector<8x8xf32>
      %101 = arith.mulf %100, %99 : vector<8x8xf32>
      %102 = arith.addf %101, %98 : vector<8x8xf32>
      %c0_72 = arith.constant 0 : index
      %c8_73 = arith.constant 8 : index
      %103 = vector.load %arg11[%c0_72, %c8_73] : memref<8x32xf32, #tpu.memory_space<vmem>>, vector<8x8xf32>
      tpu.vector_store %arg11[%c0_72, %c8_73], %102 {strides = array<i32>} : memref<8x32xf32, #tpu.memory_space<vmem>>, vector<8x8xf32>,
      %c0_74 = arith.constant 0 : index
      %c1_75 = arith.constant 1 : index
      %104 = vector.load %arg9[%c0_74, %c1_75] : memref<8x4xf32, #tpu.memory_space<vmem>>, vector<8x1xf32>
      tpu.vector_store %arg9[%c0_74, %c1_75], %85 {strides = array<i32>} : memref<8x4xf32, #tpu.memory_space<vmem>>, vector<8x1xf32>,
      %c0_76 = arith.constant 0 : index
      %c0_77 = arith.constant 0 : index
      %c0_78 = arith.constant 0 : index
      %c2 = arith.constant 2 : index
      %c0_79 = arith.constant 0 : index
      %105 = vector.load %arg3[%c0_76, %c0_77, %c0_78, %c2, %c0_79] : memref<1x8x1x4x8xf32, #tpu.memory_space<vmem>>, vector<1x8x1x1x8xf32>
      %106 = vector.shape_cast %105 : vector<1x8x1x1x8xf32> to vector<8x8xf32>
      %107 = arith.truncf %106 : vector<8x8xf32> to vector<8x8xbf16>
      %c0_80 = arith.constant 0 : index
      %c0_81 = arith.constant 0 : index
      %c0_82 = arith.constant 0 : index
      %c2_83 = arith.constant 2 : index
      %c0_84 = arith.constant 0 : index
      %108 = vector.load %arg4[%c0_80, %c0_81, %c0_82, %c2_83, %c0_84] : memref<1x8x1x4x8xf32, #tpu.memory_space<vmem>>, vector<1x8x1x1x8xf32>
      %109 = vector.shape_cast %108 : vector<1x8x1x1x8xf32> to vector<8x8xf32>
      %110 = arith.truncf %109 : vector<8x8xf32> to vector<8x8xbf16>
      %c0_85 = arith.constant 0 : index
      %c0_86 = arith.constant 0 : index
      %c0_87 = arith.constant 0 : index
      %c2_88 = arith.constant 2 : index
      %c0_89 = arith.constant 0 : index
      %111 = vector.load %arg5[%c0_85, %c0_86, %c0_87, %c2_88, %c0_89] : memref<1x8x1x4x8xf32, #tpu.memory_space<vmem>>, vector<1x8x1x1x8xf32>
      %112 = vector.shape_cast %111 : vector<1x8x1x1x8xf32> to vector<8x8xf32>
      %113 = arith.truncf %112 : vector<8x8xf32> to vector<8x8xbf16>
      %cst_90 = arith.constant dense<0.000000e+00> : vector<8x8xf32>
      %114 = tpu.matmul %107, %110, %cst_90 {dimension_numbers = #tpu.dot_dimension_numbers<[1], [1], [0], [0], [0, 0, 1, 0], [], []>} : vector<8x8xbf16>, vector<8x8xbf16>, vector<8x8xf32> -> vector<8x8xf32>
      %cst_91 = arith.constant 0.353553385 : f32
      %115 = vector.broadcast %cst_91 : f32 to vector<8x8xf32>
      %116 = arith.mulf %114, %115 : vector<8x8xf32>
      %cst_92 = arith.constant -1.000000e+09 : f32
      %117 = vector.broadcast %cst_92 : f32 to vector<8x8xf32>
      %118 = arith.select %30, %116, %117 : vector<8x8xi1>, vector<8x8xf32>
      %c0_93 = arith.constant 0 : index
      %c2_94 = arith.constant 2 : index
      %119 = vector.load %arg9[%c0_93, %c2_94] : memref<8x4xf32, #tpu.memory_space<vmem>>, vector<8x1xf32>
      %cst_95 = arith.constant dense<0xFF800000> : vector<8xf32>
      %120 = vector.multi_reduction <maximumf>, %118, %cst_95 [1] : vector<8x8xf32> to vector<8xf32>
      %121 = vector.shape_cast %120 : vector<8xf32> to vector<8x1xf32>
      %122 = arith.maximumf %119, %121 : vector<8x1xf32>
      %123 = arith.subf %119, %122 : vector<8x1xf32>
      %124 = math.exp %123 : vector<8x1xf32>
      %125 = vector.broadcast %122 : vector<8x1xf32> to vector<8x8xf32>
      %126 = arith.subf %118, %125 : vector<8x8xf32>
      %127 = math.exp %126 : vector<8x8xf32>
      %c0_96 = arith.constant 0 : index
      %c2_97 = arith.constant 2 : index
      %128 = vector.load %arg10[%c0_96, %c2_97] : memref<8x4xf32, #tpu.memory_space<vmem>>, vector<8x1xf32>
      %129 = arith.mulf %124, %128 : vector<8x1xf32>
      %cst_98 = arith.constant dense<0.000000e+00> : vector<8xf32>
      %130 = vector.multi_reduction <add>, %127, %cst_98 [1] : vector<8x8xf32> to vector<8xf32>
      %131 = vector.shape_cast %130 : vector<8xf32> to vector<8x1xf32>
      %132 = arith.addf %129, %131 : vector<8x1xf32>
      %c0_99 = arith.constant 0 : index
      %c2_100 = arith.constant 2 : index
      %133 = vector.load %arg10[%c0_99, %c2_100] : memref<8x4xf32, #tpu.memory_space<vmem>>, vector<8x1xf32>
      tpu.vector_store %arg10[%c0_99, %c2_100], %132 {strides = array<i32>} : memref<8x4xf32, #tpu.memory_space<vmem>>, vector<8x1xf32>,
      %134 = arith.truncf %127 : vector<8x8xf32> to vector<8x8xbf16>
      %cst_101 = arith.constant dense<0.000000e+00> : vector<8x8xf32>
      %135 = tpu.matmul %134, %113, %cst_101 {dimension_numbers = #tpu.dot_dimension_numbers<[1], [0], [0], [1], [0, 0, 1, 1], [], []>} : vector<8x8xbf16>, vector<8x8xbf16>, vector<8x8xf32> -> vector<8x8xf32>
      %c0_102 = arith.constant 0 : index
      %c16 = arith.constant 16 : index
      %136 = vector.load %arg11[%c0_102, %c16] : memref<8x32xf32, #tpu.memory_space<vmem>>, vector<8x8xf32>
      %137 = vector.broadcast %124 : vector<8x1xf32> to vector<8x8xf32>
      %138 = arith.mulf %137, %136 : vector<8x8xf32>
      %139 = arith.addf %138, %135 : vector<8x8xf32>
      %c0_103 = arith.constant 0 : index
      %c16_104 = arith.constant 16 : index
      %140 = vector.load %arg11[%c0_103, %c16_104] : memref<8x32xf32, #tpu.memory_space<vmem>>, vector<8x8xf32>
      tpu.vector_store %arg11[%c0_103, %c16_104], %139 {strides = array<i32>} : memref<8x32xf32, #tpu.memory_space<vmem>>, vector<8x8xf32>,
      %c0_105 = arith.constant 0 : index
      %c2_106 = arith.constant 2 : index
      %141 = vector.load %arg9[%c0_105, %c2_106] : memref<8x4xf32, #tpu.memory_space<vmem>>, vector<8x1xf32>
      tpu.vector_store %arg9[%c0_105, %c2_106], %122 {strides = array<i32>} : memref<8x4xf32, #tpu.memory_space<vmem>>, vector<8x1xf32>,
      %c0_107 = arith.constant 0 : index
      %c0_108 = arith.constant 0 : index
      %c0_109 = arith.constant 0 : index
      %c3 = arith.constant 3 : index
      %c0_110 = arith.constant 0 : index
      %142 = vector.load %arg3[%c0_107, %c0_108, %c0_109, %c3, %c0_110] : memref<1x8x1x4x8xf32, #tpu.memory_space<vmem>>, vector<1x8x1x1x8xf32>
      %143 = vector.shape_cast %142 : vector<1x8x1x1x8xf32> to vector<8x8xf32>
      %144 = arith.truncf %143 : vector<8x8xf32> to vector<8x8xbf16>
      %c0_111 = arith.constant 0 : index
      %c0_112 = arith.constant 0 : index
      %c0_113 = arith.constant 0 : index
      %c3_114 = arith.constant 3 : index
      %c0_115 = arith.constant 0 : index
      %145 = vector.load %arg4[%c0_111, %c0_112, %c0_113, %c3_114, %c0_115] : memref<1x8x1x4x8xf32, #tpu.memory_space<vmem>>, vector<1x8x1x1x8xf32>
      %146 = vector.shape_cast %145 : vector<1x8x1x1x8xf32> to vector<8x8xf32>
      %147 = arith.truncf %146 : vector<8x8xf32> to vector<8x8xbf16>
      %c0_116 = arith.constant 0 : index
      %c0_117 = arith.constant 0 : index
      %c0_118 = arith.constant 0 : index
      %c3_119 = arith.constant 3 : index
      %c0_120 = arith.constant 0 : index
      %148 = vector.load %arg5[%c0_116, %c0_117, %c0_118, %c3_119, %c0_120] : memref<1x8x1x4x8xf32, #tpu.memory_space<vmem>>, vector<1x8x1x1x8xf32>
      %149 = vector.shape_cast %148 : vector<1x8x1x1x8xf32> to vector<8x8xf32>
      %150 = arith.truncf %149 : vector<8x8xf32> to vector<8x8xbf16>
      %cst_121 = arith.constant dense<0.000000e+00> : vector<8x8xf32>
      %151 = tpu.matmul %144, %147, %cst_121 {dimension_numbers = #tpu.dot_dimension_numbers<[1], [1], [0], [0], [0, 0, 1, 0], [], []>} : vector<8x8xbf16>, vector<8x8xbf16>, vector<8x8xf32> -> vector<8x8xf32>
      %cst_122 = arith.constant 0.353553385 : f32
      %152 = vector.broadcast %cst_122 : f32 to vector<8x8xf32>
      %153 = arith.mulf %151, %152 : vector<8x8xf32>
      %cst_123 = arith.constant -1.000000e+09 : f32
      %154 = vector.broadcast %cst_123 : f32 to vector<8x8xf32>
      %155 = arith.select %30, %153, %154 : vector<8x8xi1>, vector<8x8xf32>
      %c0_124 = arith.constant 0 : index
      %c3_125 = arith.constant 3 : index
      %156 = vector.load %arg9[%c0_124, %c3_125] : memref<8x4xf32, #tpu.memory_space<vmem>>, vector<8x1xf32>
      %cst_126 = arith.constant dense<0xFF800000> : vector<8xf32>
      %157 = vector.multi_reduction <maximumf>, %155, %cst_126 [1] : vector<8x8xf32> to vector<8xf32>
      %158 = vector.shape_cast %157 : vector<8xf32> to vector<8x1xf32>
      %159 = arith.maximumf %156, %158 : vector<8x1xf32>
      %160 = arith.subf %156, %159 : vector<8x1xf32>
      %161 = math.exp %160 : vector<8x1xf32>
      %162 = vector.broadcast %159 : vector<8x1xf32> to vector<8x8xf32>
      %163 = arith.subf %155, %162 : vector<8x8xf32>
      %164 = math.exp %163 : vector<8x8xf32>
      %c0_127 = arith.constant 0 : index
      %c3_128 = arith.constant 3 : index
      %165 = vector.load %arg10[%c0_127, %c3_128] : memref<8x4xf32, #tpu.memory_space<vmem>>, vector<8x1xf32>
      %166 = arith.mulf %161, %165 : vector<8x1xf32>
      %cst_129 = arith.constant dense<0.000000e+00> : vector<8xf32>
      %167 = vector.multi_reduction <add>, %164, %cst_129 [1] : vector<8x8xf32> to vector<8xf32>
      %168 = vector.shape_cast %167 : vector<8xf32> to vector<8x1xf32>
      %169 = arith.addf %166, %168 : vector<8x1xf32>
      %c0_130 = arith.constant 0 : index
      %c3_131 = arith.constant 3 : index
      %170 = vector.load %arg10[%c0_130, %c3_131] : memref<8x4xf32, #tpu.memory_space<vmem>>, vector<8x1xf32>
      tpu.vector_store %arg10[%c0_130, %c3_131], %169 {strides = array<i32>} : memref<8x4xf32, #tpu.memory_space<vmem>>, vector<8x1xf32>,
      %171 = arith.truncf %164 : vector<8x8xf32> to vector<8x8xbf16>
      %cst_132 = arith.constant dense<0.000000e+00> : vector<8x8xf32>
      %172 = tpu.matmul %171, %150, %cst_132 {dimension_numbers = #tpu.dot_dimension_numbers<[1], [0], [0], [1], [0, 0, 1, 1], [], []>} : vector<8x8xbf16>, vector<8x8xbf16>, vector<8x8xf32> -> vector<8x8xf32>
      %c0_133 = arith.constant 0 : index
      %c24 = arith.constant 24 : index
      %173 = vector.load %arg11[%c0_133, %c24] : memref<8x32xf32, #tpu.memory_space<vmem>>, vector<8x8xf32>
      %174 = vector.broadcast %161 : vector<8x1xf32> to vector<8x8xf32>
      %175 = arith.mulf %174, %173 : vector<8x8xf32>
      %176 = arith.addf %175, %172 : vector<8x8xf32>
      %c0_134 = arith.constant 0 : index
      %c24_135 = arith.constant 24 : index
      %177 = vector.load %arg11[%c0_134, %c24_135] : memref<8x32xf32, #tpu.memory_space<vmem>>, vector<8x8xf32>
      tpu.vector_store %arg11[%c0_134, %c24_135], %176 {strides = array<i32>} : memref<8x32xf32, #tpu.memory_space<vmem>>, vector<8x8xf32>,
      %c0_136 = arith.constant 0 : index
      %c3_137 = arith.constant 3 : index
      %178 = vector.load %arg9[%c0_136, %c3_137] : memref<8x4xf32, #tpu.memory_space<vmem>>, vector<8x1xf32>
      tpu.vector_store %arg9[%c0_136, %c3_137], %159 {strides = array<i32>} : memref<8x4xf32, #tpu.memory_space<vmem>>, vector<8x1xf32>,
    } else {
    }
    %c0_i32_3 = arith.constant 0 : i32
    %9 = arith.cmpi eq, %arg2, %c0_i32_3 : i32
    %10 = arith.extui %9 : i1 to i32
    %c0_i32_4 = arith.constant 0 : i32
    %11 = arith.cmpi ne, %10, %c0_i32_4 : i32
    scf.if %11 {
      %c0 = arith.constant 0 : index
      %c0_5 = arith.constant 0 : index
      %12 = vector.load %arg11[%c0, %c0_5] : memref<8x32xf32, #tpu.memory_space<vmem>>, vector<8x8xf32>
      %c0_6 = arith.constant 0 : index
      %c0_7 = arith.constant 0 : index
      %13 = vector.load %arg10[%c0_6, %c0_7] : memref<8x4xf32, #tpu.memory_space<vmem>>, vector<8x1xf32>
      %14 = vector.broadcast %13 : vector<8x1xf32> to vector<8x8xf32>
      %15 = arith.divf %12, %14 : vector<8x8xf32>
      %c0_8 = arith.constant 0 : index
      %c0_9 = arith.constant 0 : index
      %c0_10 = arith.constant 0 : index
      %16 = vector.load %arg8[%c0_8, %c0_9, %c0_10] : memref<1x8x32xf32, #tpu.memory_space<vmem>>, vector<1x8x8xf32>
      %17 = vector.shape_cast %16 : vector<1x8x8xf32> to vector<8x8xf32>
      %18 = vector.shape_cast %15 : vector<8x8xf32> to vector<1x8x8xf32>
      tpu.vector_store %arg8[%c0_8, %c0_9, %c0_10], %18 {strides = array<i32>} : memref<1x8x32xf32, #tpu.memory_space<vmem>>, vector<1x8x8xf32>,
      %c0_11 = arith.constant 0 : index
      %c8 = arith.constant 8 : index
      %19 = vector.load %arg11[%c0_11, %c8] : memref<8x32xf32, #tpu.memory_space<vmem>>, vector<8x8xf32>
      %c0_12 = arith.constant 0 : index
      %c1 = arith.constant 1 : index
      %20 = vector.load %arg10[%c0_12, %c1] : memref<8x4xf32, #tpu.memory_space<vmem>>, vector<8x1xf32>
      %21 = vector.broadcast %20 : vector<8x1xf32> to vector<8x8xf32>
      %22 = arith.divf %19, %21 : vector<8x8xf32>
      %c0_13 = arith.constant 0 : index
      %c0_14 = arith.constant 0 : index
      %c8_15 = arith.constant 8 : index
      %23 = vector.load %arg8[%c0_13, %c0_14, %c8_15] : memref<1x8x32xf32, #tpu.memory_space<vmem>>, vector<1x8x8xf32>
      %24 = vector.shape_cast %23 : vector<1x8x8xf32> to vector<8x8xf32>
      %25 = vector.shape_cast %22 : vector<8x8xf32> to vector<1x8x8xf32>
      tpu.vector_store %arg8[%c0_13, %c0_14, %c8_15], %25 {strides = array<i32>} : memref<1x8x32xf32, #tpu.memory_space<vmem>>, vector<1x8x8xf32>,
      %c0_16 = arith.constant 0 : index
      %c16 = arith.constant 16 : index
      %26 = vector.load %arg11[%c0_16, %c16] : memref<8x32xf32, #tpu.memory_space<vmem>>, vector<8x8xf32>
      %c0_17 = arith.constant 0 : index
      %c2 = arith.constant 2 : index
      %27 = vector.load %arg10[%c0_17, %c2] : memref<8x4xf32, #tpu.memory_space<vmem>>, vector<8x1xf32>
      %28 = vector.broadcast %27 : vector<8x1xf32> to vector<8x8xf32>
      %29 = arith.divf %26, %28 : vector<8x8xf32>
      %c0_18 = arith.constant 0 : index
      %c0_19 = arith.constant 0 : index
      %c16_20 = arith.constant 16 : index
      %30 = vector.load %arg8[%c0_18, %c0_19, %c16_20] : memref<1x8x32xf32, #tpu.memory_space<vmem>>, vector<1x8x8xf32>
      %31 = vector.shape_cast %30 : vector<1x8x8xf32> to vector<8x8xf32>
      %32 = vector.shape_cast %29 : vector<8x8xf32> to vector<1x8x8xf32>
      tpu.vector_store %arg8[%c0_18, %c0_19, %c16_20], %32 {strides = array<i32>} : memref<1x8x32xf32, #tpu.memory_space<vmem>>, vector<1x8x8xf32>,
      %c0_21 = arith.constant 0 : index
      %c24 = arith.constant 24 : index
      %33 = vector.load %arg11[%c0_21, %c24] : memref<8x32xf32, #tpu.memory_space<vmem>>, vector<8x8xf32>
      %c0_22 = arith.constant 0 : index
      %c3 = arith.constant 3 : index
      %34 = vector.load %arg10[%c0_22, %c3] : memref<8x4xf32, #tpu.memory_space<vmem>>, vector<8x1xf32>
      %35 = vector.broadcast %34 : vector<8x1xf32> to vector<8x8xf32>
      %36 = arith.divf %33, %35 : vector<8x8xf32>
      %c0_23 = arith.constant 0 : index
      %c0_24 = arith.constant 0 : index
      %c24_25 = arith.constant 24 : index
      %37 = vector.load %arg8[%c0_23, %c0_24, %c24_25] : memref<1x8x32xf32, #tpu.memory_space<vmem>>, vector<1x8x8xf32>
      %38 = vector.shape_cast %37 : vector<1x8x8xf32> to vector<8x8xf32>
      %39 = vector.shape_cast %36 : vector<8x8xf32> to vector<1x8x8xf32>
      tpu.vector_store %arg8[%c0_23, %c0_24, %c24_25], %39 {strides = array<i32>} : memref<1x8x32xf32, #tpu.memory_space<vmem>>, vector<1x8x8xf32>,
    } else {
    }
    return
  }
  func.func @transform_0(%arg0: i32, %arg1: i32, %arg2: i32) -> (i32, i32, i32, i32, i32) {
    %c0_i32 = arith.constant 0 : i32
    %c0_i32_0 = arith.constant 0 : i32
    %c0_i32_1 = arith.constant 0 : i32
    %c0_i32_2 = arith.constant 0 : i32
    return %arg0, %arg1, %c0_i32, %c0_i32_0, %c0_i32_1 : i32, i32, i32, i32, i32
  }
  func.func @transform_1(%arg0: i32, %arg1: i32, %arg2: i32) -> (i32, i32, i32, i32, i32) {
    %c1_i32 = arith.constant 1 : i32
    %c0_i32 = arith.constant 0 : i32
    %c0_i32_0 = arith.constant 0 : i32
    %c0_i32_1 = arith.constant 0 : i32
    return %arg0, %arg2, %c1_i32, %c0_i32, %c0_i32_0 : i32, i32, i32, i32, i32
  }
  func.func @transform_2(%arg0: i32, %arg1: i32, %arg2: i32) -> (i32, i32, i32, i32, i32) {
    %c2_i32 = arith.constant 2 : i32
    %c0_i32 = arith.constant 0 : i32
    %c0_i32_0 = arith.constant 0 : i32
    %c0_i32_1 = arith.constant 0 : i32
    return %arg0, %arg2, %c2_i32, %c0_i32, %c0_i32_0 : i32, i32, i32, i32, i32
  }
  func.func @transform_3(%arg0: i32, %arg1: i32, %arg2: i32) -> (i32, i32, i32) {
    %c0_i32 = arith.constant 0 : i32
    %c0_i32_0 = arith.constant 0 : i32
    return %arg0, %arg1, %c0_i32 : i32, i32, i32
  }
  func.func @transform_4(%arg0: i32, %arg1: i32, %arg2: i32) -> (i32, i32, i32) {
    %c0_i32 = arith.constant 0 : i32
    %c0_i32_0 = arith.constant 0 : i32
    return %arg0, %c0_i32, %arg2 : i32, i32, i32
  }
  func.func @transform_5(%arg0: i32, %arg1: i32, %arg2: i32) -> (i32, i32, i32) {
    %c0_i32 = arith.constant 0 : i32
    %c0_i32_0 = arith.constant 0 : i32
    return %arg0, %arg1, %c0_i32 : i32, i32, i32
  }
}

module attributes {stable_mosaic.version = 11 : i64} {
  func.func @_linear_kernel(%arg0: i32, %arg1: i32, %arg2: i32, %arg3: memref<16x32xf32, #tpu.memory_space<vmem>>, %arg4: memref<32x32xf32, #tpu.memory_space<vmem>>, %arg5: memref<1x32xf32, #tpu.memory_space<vmem>>, %arg6: memref<16x32xf32, #tpu.memory_space<vmem>>, %arg7: memref<16x32xf32, #tpu.memory_space<vmem>>) attributes {dimension_semantics = [#tpu.dimension_semantics<parallel>, #tpu.dimension_semantics<parallel>, #tpu.dimension_semantics<arbitrary>], iteration_bounds = array<i64: 1, 1, 1>, scalar_prefetch = 0 : i64, scratch_operands = 1 : i64, tpu.core_type = #tpu.core_type<tc>, window_params = [{transform_indices = @transform_0, window_bounds = array<i64: 16, 32>}, {transform_indices = @transform_1, window_bounds = array<i64: 32, 32>}, {transform_indices = @transform_2, window_bounds = array<i64: 1, 32>}, {transform_indices = @transform_3, window_bounds = array<i64: 16, 32>}]} {
    %c0_i32 = arith.constant 0 : i32
    %0 = arith.cmpi eq, %arg2, %c0_i32 : i32
    %1 = arith.extui %0 : i1 to i32
    %c0_i32_0 = arith.constant 0 : i32
    %2 = arith.cmpi ne, %1, %c0_i32_0 : i32
    scf.if %2 {
      %cst_10 = arith.constant 0.000000e+00 : f32
      %14 = vector.broadcast %cst_10 : f32 to vector<16x32xf32>
      %c0_11 = arith.constant 0 : index
      %c0_12 = arith.constant 0 : index
      %15 = vector.load %arg7[%c0_11, %c0_12] : memref<16x32xf32, #tpu.memory_space<vmem>>, vector<16x32xf32>
      tpu.vector_store %arg7[%c0_11, %c0_12], %14 {strides = array<i32>} : memref<16x32xf32, #tpu.memory_space<vmem>>, vector<16x32xf32>,
    } else {
    }
    %c0 = arith.constant 0 : index
    %c0_1 = arith.constant 0 : index
    %3 = vector.load %arg7[%c0, %c0_1] : memref<16x32xf32, #tpu.memory_space<vmem>>, vector<16x32xf32>
    %c0_2 = arith.constant 0 : index
    %c0_3 = arith.constant 0 : index
    %4 = vector.load %arg3[%c0_2, %c0_3] : memref<16x32xf32, #tpu.memory_space<vmem>>, vector<16x32xf32>
    %5 = arith.truncf %4 : vector<16x32xf32> to vector<16x32xbf16>
    %c0_4 = arith.constant 0 : index
    %c0_5 = arith.constant 0 : index
    %6 = vector.load %arg4[%c0_4, %c0_5] : memref<32x32xf32, #tpu.memory_space<vmem>>, vector<32x32xf32>
    %7 = arith.truncf %6 : vector<32x32xf32> to vector<32x32xbf16>
    %cst = arith.constant dense<0.000000e+00> : vector<16x32xf32>
    %8 = tpu.matmul %5, %7, %cst {dimension_numbers = #tpu.dot_dimension_numbers<[1], [0], [0], [1], [0, 0, 1, 1], [], []>} : vector<16x32xbf16>, vector<32x32xbf16>, vector<16x32xf32> -> vector<16x32xf32>
    %9 = arith.addf %3, %8 : vector<16x32xf32>
    %c0_6 = arith.constant 0 : index
    %c0_7 = arith.constant 0 : index
    %10 = vector.load %arg7[%c0_6, %c0_7] : memref<16x32xf32, #tpu.memory_space<vmem>>, vector<16x32xf32>
    tpu.vector_store %arg7[%c0_6, %c0_7], %9 {strides = array<i32>} : memref<16x32xf32, #tpu.memory_space<vmem>>, vector<16x32xf32>,
    %c0_i32_8 = arith.constant 0 : i32
    %11 = arith.cmpi eq, %arg2, %c0_i32_8 : i32
    %12 = arith.extui %11 : i1 to i32
    %c0_i32_9 = arith.constant 0 : i32
    %13 = arith.cmpi ne, %12, %c0_i32_9 : i32
    scf.if %13 {
      %c0_10 = arith.constant 0 : index
      %c0_11 = arith.constant 0 : index
      %14 = vector.load %arg7[%c0_10, %c0_11] : memref<16x32xf32, #tpu.memory_space<vmem>>, vector<16x32xf32>
      %c0_12 = arith.constant 0 : index
      %c0_13 = arith.constant 0 : index
      %15 = vector.load %arg5[%c0_12, %c0_13] : memref<1x32xf32, #tpu.memory_space<vmem>>, vector<1x32xf32>
      %16 = vector.broadcast %15 : vector<1x32xf32> to vector<16x32xf32>
      %17 = arith.addf %14, %16 : vector<16x32xf32>
      %c0_14 = arith.constant 0 : index
      %c0_15 = arith.constant 0 : index
      %18 = vector.load %arg6[%c0_14, %c0_15] : memref<16x32xf32, #tpu.memory_space<vmem>>, vector<16x32xf32>
      tpu.vector_store %arg6[%c0_14, %c0_15], %17 {strides = array<i32>} : memref<16x32xf32, #tpu.memory_space<vmem>>, vector<16x32xf32>,
    } else {
    }
    return
  }
  func.func @transform_0(%arg0: i32, %arg1: i32, %arg2: i32) -> (i32, i32) {
    %c0_i32 = arith.constant 0 : i32
    return %arg0, %arg2 : i32, i32
  }
  func.func @transform_1(%arg0: i32, %arg1: i32, %arg2: i32) -> (i32, i32) {
    %c0_i32 = arith.constant 0 : i32
    return %arg2, %arg1 : i32, i32
  }
  func.func @transform_2(%arg0: i32, %arg1: i32, %arg2: i32) -> (i32, i32) {
    %c0_i32 = arith.constant 0 : i32
    %c0_i32_0 = arith.constant 0 : i32
    return %c0_i32, %arg1 : i32, i32
  }
  func.func @transform_3(%arg0: i32, %arg1: i32, %arg2: i32) -> (i32, i32) {
    %c0_i32 = arith.constant 0 : i32
    return %arg0, %arg1 : i32, i32
  }
}

module attributes {stable_mosaic.version = 11 : i64} {
  func.func @_flash_kernel(%arg0: i32, %arg1: i32, %arg2: i32, %arg3: memref<1x8x1x4x8xf32, #tpu.memory_space<vmem>>, %arg4: memref<1x8x1x4x8xf32, #tpu.memory_space<vmem>>, %arg5: memref<1x8x1x4x8xf32, #tpu.memory_space<vmem>>, %arg6: memref<1x8x1xf32, #tpu.memory_space<vmem>>, %arg7: memref<1x1x8xf32, #tpu.memory_space<vmem>>, %arg8: memref<1x8x32xf32, #tpu.memory_space<vmem>>, %arg9: memref<8x4xf32, #tpu.memory_space<vmem>>, %arg10: memref<8x4xf32, #tpu.memory_space<vmem>>, %arg11: memref<8x32xf32, #tpu.memory_space<vmem>>) attributes {dimension_semantics = [#tpu.dimension_semantics<parallel>, #tpu.dimension_semantics<parallel>, #tpu.dimension_semantics<arbitrary>], iteration_bounds = array<i64: 2, 1, 1>, scalar_prefetch = 0 : i64, scratch_operands = 3 : i64, tpu.core_type = #tpu.core_type<tc>, window_params = [{transform_indices = @transform_0, window_bounds = array<i64: 1, 8, 1, 4, 8>}, {transform_indices = @transform_1, window_bounds = array<i64: 1, 8, 1, 4, 8>}, {transform_indices = @transform_2, window_bounds = array<i64: 1, 8, 1, 4, 8>}, {transform_indices = @transform_3, window_bounds = array<i64: 1, 8, 1>}, {transform_indices = @transform_4, window_bounds = array<i64: 1, 1, 8>}, {transform_indices = @transform_5, window_bounds = array<i64: 1, 8, 32>}]} {
    %c0_i32 = arith.constant 0 : i32
    %0 = arith.cmpi eq, %arg2, %c0_i32 : i32
    %1 = arith.extui %0 : i1 to i32
    %c0_i32_0 = arith.constant 0 : i32
    %2 = arith.cmpi ne, %1, %c0_i32_0 : i32
    scf.if %2 {
      %cst_134 = arith.constant -1.000000e+30 : f32
      %163 = vector.broadcast %cst_134 : f32 to vector<8x4xf32>
      %c0_135 = arith.constant 0 : index
      %c0_136 = arith.constant 0 : index
      %164 = vector.load %arg9[%c0_135, %c0_136] : memref<8x4xf32, #tpu.memory_space<vmem>>, vector<8x4xf32>
      tpu.vector_store %arg9[%c0_135, %c0_136], %163 {strides = array<i32>} : memref<8x4xf32, #tpu.memory_space<vmem>>, vector<8x4xf32>,
      %cst_137 = arith.constant 0.000000e+00 : f32
      %165 = vector.broadcast %cst_137 : f32 to vector<8x4xf32>
      %c0_138 = arith.constant 0 : index
      %c0_139 = arith.constant 0 : index
      %166 = vector.load %arg10[%c0_138, %c0_139] : memref<8x4xf32, #tpu.memory_space<vmem>>, vector<8x4xf32>
      tpu.vector_store %arg10[%c0_138, %c0_139], %165 {strides = array<i32>} : memref<8x4xf32, #tpu.memory_space<vmem>>, vector<8x4xf32>,
      %cst_140 = arith.constant 0.000000e+00 : f32
      %167 = vector.broadcast %cst_140 : f32 to vector<8x32xf32>
      %c0_141 = arith.constant 0 : index
      %c0_142 = arith.constant 0 : index
      %168 = vector.load %arg11[%c0_141, %c0_142] : memref<8x32xf32, #tpu.memory_space<vmem>>, vector<8x32xf32>
      tpu.vector_store %arg11[%c0_141, %c0_142], %167 {strides = array<i32>} : memref<8x32xf32, #tpu.memory_space<vmem>>, vector<8x32xf32>,
    } else {
    }
    %c0 = arith.constant 0 : index
    %c0_1 = arith.constant 0 : index
    %c0_2 = arith.constant 0 : index
    %3 = vector.load %arg6[%c0, %c0_1, %c0_2] : memref<1x8x1xf32, #tpu.memory_space<vmem>>, vector<1x8x1xf32>
    %4 = vector.shape_cast %3 : vector<1x8x1xf32> to vector<8x1xf32>
    %c0_3 = arith.constant 0 : index
    %c0_4 = arith.constant 0 : index
    %c0_5 = arith.constant 0 : index
    %5 = vector.load %arg7[%c0_3, %c0_4, %c0_5] : memref<1x1x8xf32, #tpu.memory_space<vmem>>, vector<1x1x8xf32>
    %6 = vector.shape_cast %5 : vector<1x1x8xf32> to vector<1x8xf32>
    %7 = vector.broadcast %4 : vector<8x1xf32> to vector<8x8xf32>
    %8 = vector.broadcast %6 : vector<1x8xf32> to vector<8x8xf32>
    %9 = arith.mulf %7, %8 : vector<8x8xf32>
    %cst = arith.constant 0.000000e+00 : f32
    %10 = vector.broadcast %cst : f32 to vector<8x8xf32>
    %11 = arith.cmpf ogt, %9, %10 : vector<8x8xf32>
    %c0_6 = arith.constant 0 : index
    %c0_7 = arith.constant 0 : index
    %c0_8 = arith.constant 0 : index
    %c0_9 = arith.constant 0 : index
    %c0_10 = arith.constant 0 : index
    %12 = vector.load %arg3[%c0_6, %c0_7, %c0_8, %c0_9, %c0_10] : memref<1x8x1x4x8xf32, #tpu.memory_space<vmem>>, vector<1x8x1x1x8xf32>
    %13 = vector.shape_cast %12 : vector<1x8x1x1x8xf32> to vector<8x8xf32>
    %14 = arith.truncf %13 : vector<8x8xf32> to vector<8x8xbf16>
    %c0_11 = arith.constant 0 : index
    %c0_12 = arith.constant 0 : index
    %c0_13 = arith.constant 0 : index
    %c0_14 = arith.constant 0 : index
    %c0_15 = arith.constant 0 : index
    %15 = vector.load %arg4[%c0_11, %c0_12, %c0_13, %c0_14, %c0_15] : memref<1x8x1x4x8xf32, #tpu.memory_space<vmem>>, vector<1x8x1x1x8xf32>
    %16 = vector.shape_cast %15 : vector<1x8x1x1x8xf32> to vector<8x8xf32>
    %17 = arith.truncf %16 : vector<8x8xf32> to vector<8x8xbf16>
    %c0_16 = arith.constant 0 : index
    %c0_17 = arith.constant 0 : index
    %c0_18 = arith.constant 0 : index
    %c0_19 = arith.constant 0 : index
    %c0_20 = arith.constant 0 : index
    %18 = vector.load %arg5[%c0_16, %c0_17, %c0_18, %c0_19, %c0_20] : memref<1x8x1x4x8xf32, #tpu.memory_space<vmem>>, vector<1x8x1x1x8xf32>
    %19 = vector.shape_cast %18 : vector<1x8x1x1x8xf32> to vector<8x8xf32>
    %20 = arith.truncf %19 : vector<8x8xf32> to vector<8x8xbf16>
    %cst_21 = arith.constant dense<0.000000e+00> : vector<8x8xf32>
    %21 = tpu.matmul %14, %17, %cst_21 {dimension_numbers = #tpu.dot_dimension_numbers<[1], [1], [0], [0], [0, 0, 1, 0], [], []>} : vector<8x8xbf16>, vector<8x8xbf16>, vector<8x8xf32> -> vector<8x8xf32>
    %cst_22 = arith.constant 0.353553385 : f32
    %22 = vector.broadcast %cst_22 : f32 to vector<8x8xf32>
    %23 = arith.mulf %21, %22 : vector<8x8xf32>
    %cst_23 = arith.constant -1.000000e+09 : f32
    %24 = vector.broadcast %cst_23 : f32 to vector<8x8xf32>
    %25 = arith.select %11, %23, %24 : vector<8x8xi1>, vector<8x8xf32>
    %c0_24 = arith.constant 0 : index
    %c0_25 = arith.constant 0 : index
    %26 = vector.load %arg9[%c0_24, %c0_25] : memref<8x4xf32, #tpu.memory_space<vmem>>, vector<8x1xf32>
    %cst_26 = arith.constant dense<0xFF800000> : vector<8xf32>
    %27 = vector.multi_reduction <maximumf>, %25, %cst_26 [1] : vector<8x8xf32> to vector<8xf32>
    %28 = vector.shape_cast %27 : vector<8xf32> to vector<8x1xf32>
    %29 = arith.maximumf %26, %28 : vector<8x1xf32>
    %30 = arith.subf %26, %29 : vector<8x1xf32>
    %31 = math.exp %30 : vector<8x1xf32>
    %32 = vector.broadcast %29 : vector<8x1xf32> to vector<8x8xf32>
    %33 = arith.subf %25, %32 : vector<8x8xf32>
    %34 = math.exp %33 : vector<8x8xf32>
    %c0_27 = arith.constant 0 : index
    %c0_28 = arith.constant 0 : index
    %35 = vector.load %arg10[%c0_27, %c0_28] : memref<8x4xf32, #tpu.memory_space<vmem>>, vector<8x1xf32>
    %36 = arith.mulf %31, %35 : vector<8x1xf32>
    %cst_29 = arith.constant dense<0.000000e+00> : vector<8xf32>
    %37 = vector.multi_reduction <add>, %34, %cst_29 [1] : vector<8x8xf32> to vector<8xf32>
    %38 = vector.shape_cast %37 : vector<8xf32> to vector<8x1xf32>
    %39 = arith.addf %36, %38 : vector<8x1xf32>
    %c0_30 = arith.constant 0 : index
    %c0_31 = arith.constant 0 : index
    %40 = vector.load %arg10[%c0_30, %c0_31] : memref<8x4xf32, #tpu.memory_space<vmem>>, vector<8x1xf32>
    tpu.vector_store %arg10[%c0_30, %c0_31], %39 {strides = array<i32>} : memref<8x4xf32, #tpu.memory_space<vmem>>, vector<8x1xf32>,
    %41 = arith.truncf %34 : vector<8x8xf32> to vector<8x8xbf16>
    %cst_32 = arith.constant dense<0.000000e+00> : vector<8x8xf32>
    %42 = tpu.matmul %41, %20, %cst_32 {dimension_numbers = #tpu.dot_dimension_numbers<[1], [0], [0], [1], [0, 0, 1, 1], [], []>} : vector<8x8xbf16>, vector<8x8xbf16>, vector<8x8xf32> -> vector<8x8xf32>
    %c0_33 = arith.constant 0 : index
    %c0_34 = arith.constant 0 : index
    %43 = vector.load %arg11[%c0_33, %c0_34] : memref<8x32xf32, #tpu.memory_space<vmem>>, vector<8x8xf32>
    %44 = vector.broadcast %31 : vector<8x1xf32> to vector<8x8xf32>
    %45 = arith.mulf %44, %43 : vector<8x8xf32>
    %46 = arith.addf %45, %42 : vector<8x8xf32>
    %c0_35 = arith.constant 0 : index
    %c0_36 = arith.constant 0 : index
    %47 = vector.load %arg11[%c0_35, %c0_36] : memref<8x32xf32, #tpu.memory_space<vmem>>, vector<8x8xf32>
    tpu.vector_store %arg11[%c0_35, %c0_36], %46 {strides = array<i32>} : memref<8x32xf32, #tpu.memory_space<vmem>>, vector<8x8xf32>,
    %c0_37 = arith.constant 0 : index
    %c0_38 = arith.constant 0 : index
    %48 = vector.load %arg9[%c0_37, %c0_38] : memref<8x4xf32, #tpu.memory_space<vmem>>, vector<8x1xf32>
    tpu.vector_store %arg9[%c0_37, %c0_38], %29 {strides = array<i32>} : memref<8x4xf32, #tpu.memory_space<vmem>>, vector<8x1xf32>,
    %c0_39 = arith.constant 0 : index
    %c0_40 = arith.constant 0 : index
    %c0_41 = arith.constant 0 : index
    %c1 = arith.constant 1 : index
    %c0_42 = arith.constant 0 : index
    %49 = vector.load %arg3[%c0_39, %c0_40, %c0_41, %c1, %c0_42] : memref<1x8x1x4x8xf32, #tpu.memory_space<vmem>>, vector<1x8x1x1x8xf32>
    %50 = vector.shape_cast %49 : vector<1x8x1x1x8xf32> to vector<8x8xf32>
    %51 = arith.truncf %50 : vector<8x8xf32> to vector<8x8xbf16>
    %c0_43 = arith.constant 0 : index
    %c0_44 = arith.constant 0 : index
    %c0_45 = arith.constant 0 : index
    %c1_46 = arith.constant 1 : index
    %c0_47 = arith.constant 0 : index
    %52 = vector.load %arg4[%c0_43, %c0_44, %c0_45, %c1_46, %c0_47] : memref<1x8x1x4x8xf32, #tpu.memory_space<vmem>>, vector<1x8x1x1x8xf32>
    %53 = vector.shape_cast %52 : vector<1x8x1x1x8xf32> to vector<8x8xf32>
    %54 = arith.truncf %53 : vector<8x8xf32> to vector<8x8xbf16>
    %c0_48 = arith.constant 0 : index
    %c0_49 = arith.constant 0 : index
    %c0_50 = arith.constant 0 : index
    %c1_51 = arith.constant 1 : index
    %c0_52 = arith.constant 0 : index
    %55 = vector.load %arg5[%c0_48, %c0_49, %c0_50, %c1_51, %c0_52] : memref<1x8x1x4x8xf32, #tpu.memory_space<vmem>>, vector<1x8x1x1x8xf32>
    %56 = vector.shape_cast %55 : vector<1x8x1x1x8xf32> to vector<8x8xf32>
    %57 = arith.truncf %56 : vector<8x8xf32> to vector<8x8xbf16>
    %cst_53 = arith.constant dense<0.000000e+00> : vector<8x8xf32>
    %58 = tpu.matmul %51, %54, %cst_53 {dimension_numbers = #tpu.dot_dimension_numbers<[1], [1], [0], [0], [0, 0, 1, 0], [], []>} : vector<8x8xbf16>, vector<8x8xbf16>, vector<8x8xf32> -> vector<8x8xf32>
    %cst_54 = arith.constant 0.353553385 : f32
    %59 = vector.broadcast %cst_54 : f32 to vector<8x8xf32>
    %60 = arith.mulf %58, %59 : vector<8x8xf32>
    %cst_55 = arith.constant -1.000000e+09 : f32
    %61 = vector.broadcast %cst_55 : f32 to vector<8x8xf32>
    %62 = arith.select %11, %60, %61 : vector<8x8xi1>, vector<8x8xf32>
    %c0_56 = arith.constant 0 : index
    %c1_57 = arith.constant 1 : index
    %63 = vector.load %arg9[%c0_56, %c1_57] : memref<8x4xf32, #tpu.memory_space<vmem>>, vector<8x1xf32>
    %cst_58 = arith.constant dense<0xFF800000> : vector<8xf32>
    %64 = vector.multi_reduction <maximumf>, %62, %cst_58 [1] : vector<8x8xf32> to vector<8xf32>
    %65 = vector.shape_cast %64 : vector<8xf32> to vector<8x1xf32>
    %66 = arith.maximumf %63, %65 : vector<8x1xf32>
    %67 = arith.subf %63, %66 : vector<8x1xf32>
    %68 = math.exp %67 : vector<8x1xf32>
    %69 = vector.broadcast %66 : vector<8x1xf32> to vector<8x8xf32>
    %70 = arith.subf %62, %69 : vector<8x8xf32>
    %71 = math.exp %70 : vector<8x8xf32>
    %c0_59 = arith.constant 0 : index
    %c1_60 = arith.constant 1 : index
    %72 = vector.load %arg10[%c0_59, %c1_60] : memref<8x4xf32, #tpu.memory_space<vmem>>, vector<8x1xf32>
    %73 = arith.mulf %68, %72 : vector<8x1xf32>
    %cst_61 = arith.constant dense<0.000000e+00> : vector<8xf32>
    %74 = vector.multi_reduction <add>, %71, %cst_61 [1] : vector<8x8xf32> to vector<8xf32>
    %75 = vector.shape_cast %74 : vector<8xf32> to vector<8x1xf32>
    %76 = arith.addf %73, %75 : vector<8x1xf32>
    %c0_62 = arith.constant 0 : index
    %c1_63 = arith.constant 1 : index
    %77 = vector.load %arg10[%c0_62, %c1_63] : memref<8x4xf32, #tpu.memory_space<vmem>>, vector<8x1xf32>
    tpu.vector_store %arg10[%c0_62, %c1_63], %76 {strides = array<i32>} : memref<8x4xf32, #tpu.memory_space<vmem>>, vector<8x1xf32>,
    %78 = arith.truncf %71 : vector<8x8xf32> to vector<8x8xbf16>
    %cst_64 = arith.constant dense<0.000000e+00> : vector<8x8xf32>
    %79 = tpu.matmul %78, %57, %cst_64 {dimension_numbers = #tpu.dot_dimension_numbers<[1], [0], [0], [1], [0, 0, 1, 1], [], []>} : vector<8x8xbf16>, vector<8x8xbf16>, vector<8x8xf32> -> vector<8x8xf32>
    %c0_65 = arith.constant 0 : index
    %c8 = arith.constant 8 : index
    %80 = vector.load %arg11[%c0_65, %c8] : memref<8x32xf32, #tpu.memory_space<vmem>>, vector<8x8xf32>
    %81 = vector.broadcast %68 : vector<8x1xf32> to vector<8x8xf32>
    %82 = arith.mulf %81, %80 : vector<8x8xf32>
    %83 = arith.addf %82, %79 : vector<8x8xf32>
    %c0_66 = arith.constant 0 : index
    %c8_67 = arith.constant 8 : index
    %84 = vector.load %arg11[%c0_66, %c8_67] : memref<8x32xf32, #tpu.memory_space<vmem>>, vector<8x8xf32>
    tpu.vector_store %arg11[%c0_66, %c8_67], %83 {strides = array<i32>} : memref<8x32xf32, #tpu.memory_space<vmem>>, vector<8x8xf32>,
    %c0_68 = arith.constant 0 : index
    %c1_69 = arith.constant 1 : index
    %85 = vector.load %arg9[%c0_68, %c1_69] : memref<8x4xf32, #tpu.memory_space<vmem>>, vector<8x1xf32>
    tpu.vector_store %arg9[%c0_68, %c1_69], %66 {strides = array<i32>} : memref<8x4xf32, #tpu.memory_space<vmem>>, vector<8x1xf32>,
    %c0_70 = arith.constant 0 : index
    %c0_71 = arith.constant 0 : index
    %c0_72 = arith.constant 0 : index
    %c2 = arith.constant 2 : index
    %c0_73 = arith.constant 0 : index
    %86 = vector.load %arg3[%c0_70, %c0_71, %c0_72, %c2, %c0_73] : memref<1x8x1x4x8xf32, #tpu.memory_space<vmem>>, vector<1x8x1x1x8xf32>
    %87 = vector.shape_cast %86 : vector<1x8x1x1x8xf32> to vector<8x8xf32>
    %88 = arith.truncf %87 : vector<8x8xf32> to vector<8x8xbf16>
    %c0_74 = arith.constant 0 : index
    %c0_75 = arith.constant 0 : index
    %c0_76 = arith.constant 0 : index
    %c2_77 = arith.constant 2 : index
    %c0_78 = arith.constant 0 : index
    %89 = vector.load %arg4[%c0_74, %c0_75, %c0_76, %c2_77, %c0_78] : memref<1x8x1x4x8xf32, #tpu.memory_space<vmem>>, vector<1x8x1x1x8xf32>
    %90 = vector.shape_cast %89 : vector<1x8x1x1x8xf32> to vector<8x8xf32>
    %91 = arith.truncf %90 : vector<8x8xf32> to vector<8x8xbf16>
    %c0_79 = arith.constant 0 : index
    %c0_80 = arith.constant 0 : index
    %c0_81 = arith.constant 0 : index
    %c2_82 = arith.constant 2 : index
    %c0_83 = arith.constant 0 : index
    %92 = vector.load %arg5[%c0_79, %c0_80, %c0_81, %c2_82, %c0_83] : memref<1x8x1x4x8xf32, #tpu.memory_space<vmem>>, vector<1x8x1x1x8xf32>
    %93 = vector.shape_cast %92 : vector<1x8x1x1x8xf32> to vector<8x8xf32>
    %94 = arith.truncf %93 : vector<8x8xf32> to vector<8x8xbf16>
    %cst_84 = arith.constant dense<0.000000e+00> : vector<8x8xf32>
    %95 = tpu.matmul %88, %91, %cst_84 {dimension_numbers = #tpu.dot_dimension_numbers<[1], [1], [0], [0], [0, 0, 1, 0], [], []>} : vector<8x8xbf16>, vector<8x8xbf16>, vector<8x8xf32> -> vector<8x8xf32>
    %cst_85 = arith.constant 0.353553385 : f32
    %96 = vector.broadcast %cst_85 : f32 to vector<8x8xf32>
    %97 = arith.mulf %95, %96 : vector<8x8xf32>
    %cst_86 = arith.constant -1.000000e+09 : f32
    %98 = vector.broadcast %cst_86 : f32 to vector<8x8xf32>
    %99 = arith.select %11, %97, %98 : vector<8x8xi1>, vector<8x8xf32>
    %c0_87 = arith.constant 0 : index
    %c2_88 = arith.constant 2 : index
    %100 = vector.load %arg9[%c0_87, %c2_88] : memref<8x4xf32, #tpu.memory_space<vmem>>, vector<8x1xf32>
    %cst_89 = arith.constant dense<0xFF800000> : vector<8xf32>
    %101 = vector.multi_reduction <maximumf>, %99, %cst_89 [1] : vector<8x8xf32> to vector<8xf32>
    %102 = vector.shape_cast %101 : vector<8xf32> to vector<8x1xf32>
    %103 = arith.maximumf %100, %102 : vector<8x1xf32>
    %104 = arith.subf %100, %103 : vector<8x1xf32>
    %105 = math.exp %104 : vector<8x1xf32>
    %106 = vector.broadcast %103 : vector<8x1xf32> to vector<8x8xf32>
    %107 = arith.subf %99, %106 : vector<8x8xf32>
    %108 = math.exp %107 : vector<8x8xf32>
    %c0_90 = arith.constant 0 : index
    %c2_91 = arith.constant 2 : index
    %109 = vector.load %arg10[%c0_90, %c2_91] : memref<8x4xf32, #tpu.memory_space<vmem>>, vector<8x1xf32>
    %110 = arith.mulf %105, %109 : vector<8x1xf32>
    %cst_92 = arith.constant dense<0.000000e+00> : vector<8xf32>
    %111 = vector.multi_reduction <add>, %108, %cst_92 [1] : vector<8x8xf32> to vector<8xf32>
    %112 = vector.shape_cast %111 : vector<8xf32> to vector<8x1xf32>
    %113 = arith.addf %110, %112 : vector<8x1xf32>
    %c0_93 = arith.constant 0 : index
    %c2_94 = arith.constant 2 : index
    %114 = vector.load %arg10[%c0_93, %c2_94] : memref<8x4xf32, #tpu.memory_space<vmem>>, vector<8x1xf32>
    tpu.vector_store %arg10[%c0_93, %c2_94], %113 {strides = array<i32>} : memref<8x4xf32, #tpu.memory_space<vmem>>, vector<8x1xf32>,
    %115 = arith.truncf %108 : vector<8x8xf32> to vector<8x8xbf16>
    %cst_95 = arith.constant dense<0.000000e+00> : vector<8x8xf32>
    %116 = tpu.matmul %115, %94, %cst_95 {dimension_numbers = #tpu.dot_dimension_numbers<[1], [0], [0], [1], [0, 0, 1, 1], [], []>} : vector<8x8xbf16>, vector<8x8xbf16>, vector<8x8xf32> -> vector<8x8xf32>
    %c0_96 = arith.constant 0 : index
    %c16 = arith.constant 16 : index
    %117 = vector.load %arg11[%c0_96, %c16] : memref<8x32xf32, #tpu.memory_space<vmem>>, vector<8x8xf32>
    %118 = vector.broadcast %105 : vector<8x1xf32> to vector<8x8xf32>
    %119 = arith.mulf %118, %117 : vector<8x8xf32>
    %120 = arith.addf %119, %116 : vector<8x8xf32>
    %c0_97 = arith.constant 0 : index
    %c16_98 = arith.constant 16 : index
    %121 = vector.load %arg11[%c0_97, %c16_98] : memref<8x32xf32, #tpu.memory_space<vmem>>, vector<8x8xf32>
    tpu.vector_store %arg11[%c0_97, %c16_98], %120 {strides = array<i32>} : memref<8x32xf32, #tpu.memory_space<vmem>>, vector<8x8xf32>,
    %c0_99 = arith.constant 0 : index
    %c2_100 = arith.constant 2 : index
    %122 = vector.load %arg9[%c0_99, %c2_100] : memref<8x4xf32, #tpu.memory_space<vmem>>, vector<8x1xf32>
    tpu.vector_store %arg9[%c0_99, %c2_100], %103 {strides = array<i32>} : memref<8x4xf32, #tpu.memory_space<vmem>>, vector<8x1xf32>,
    %c0_101 = arith.constant 0 : index
    %c0_102 = arith.constant 0 : index
    %c0_103 = arith.constant 0 : index
    %c3 = arith.constant 3 : index
    %c0_104 = arith.constant 0 : index
    %123 = vector.load %arg3[%c0_101, %c0_102, %c0_103, %c3, %c0_104] : memref<1x8x1x4x8xf32, #tpu.memory_space<vmem>>, vector<1x8x1x1x8xf32>
    %124 = vector.shape_cast %123 : vector<1x8x1x1x8xf32> to vector<8x8xf32>
    %125 = arith.truncf %124 : vector<8x8xf32> to vector<8x8xbf16>
    %c0_105 = arith.constant 0 : index
    %c0_106 = arith.constant 0 : index
    %c0_107 = arith.constant 0 : index
    %c3_108 = arith.constant 3 : index
    %c0_109 = arith.constant 0 : index
    %126 = vector.load %arg4[%c0_105, %c0_106, %c0_107, %c3_108, %c0_109] : memref<1x8x1x4x8xf32, #tpu.memory_space<vmem>>, vector<1x8x1x1x8xf32>
    %127 = vector.shape_cast %126 : vector<1x8x1x1x8xf32> to vector<8x8xf32>
    %128 = arith.truncf %127 : vector<8x8xf32> to vector<8x8xbf16>
    %c0_110 = arith.constant 0 : index
    %c0_111 = arith.constant 0 : index
    %c0_112 = arith.constant 0 : index
    %c3_113 = arith.constant 3 : index
    %c0_114 = arith.constant 0 : index
    %129 = vector.load %arg5[%c0_110, %c0_111, %c0_112, %c3_113, %c0_114] : memref<1x8x1x4x8xf32, #tpu.memory_space<vmem>>, vector<1x8x1x1x8xf32>
    %130 = vector.shape_cast %129 : vector<1x8x1x1x8xf32> to vector<8x8xf32>
    %131 = arith.truncf %130 : vector<8x8xf32> to vector<8x8xbf16>
    %cst_115 = arith.constant dense<0.000000e+00> : vector<8x8xf32>
    %132 = tpu.matmul %125, %128, %cst_115 {dimension_numbers = #tpu.dot_dimension_numbers<[1], [1], [0], [0], [0, 0, 1, 0], [], []>} : vector<8x8xbf16>, vector<8x8xbf16>, vector<8x8xf32> -> vector<8x8xf32>
    %cst_116 = arith.constant 0.353553385 : f32
    %133 = vector.broadcast %cst_116 : f32 to vector<8x8xf32>
    %134 = arith.mulf %132, %133 : vector<8x8xf32>
    %cst_117 = arith.constant -1.000000e+09 : f32
    %135 = vector.broadcast %cst_117 : f32 to vector<8x8xf32>
    %136 = arith.select %11, %134, %135 : vector<8x8xi1>, vector<8x8xf32>
    %c0_118 = arith.constant 0 : index
    %c3_119 = arith.constant 3 : index
    %137 = vector.load %arg9[%c0_118, %c3_119] : memref<8x4xf32, #tpu.memory_space<vmem>>, vector<8x1xf32>
    %cst_120 = arith.constant dense<0xFF800000> : vector<8xf32>
    %138 = vector.multi_reduction <maximumf>, %136, %cst_120 [1] : vector<8x8xf32> to vector<8xf32>
    %139 = vector.shape_cast %138 : vector<8xf32> to vector<8x1xf32>
    %140 = arith.maximumf %137, %139 : vector<8x1xf32>
    %141 = arith.subf %137, %140 : vector<8x1xf32>
    %142 = math.exp %141 : vector<8x1xf32>
    %143 = vector.broadcast %140 : vector<8x1xf32> to vector<8x8xf32>
    %144 = arith.subf %136, %143 : vector<8x8xf32>
    %145 = math.exp %144 : vector<8x8xf32>
    %c0_121 = arith.constant 0 : index
    %c3_122 = arith.constant 3 : index
    %146 = vector.load %arg10[%c0_121, %c3_122] : memref<8x4xf32, #tpu.memory_space<vmem>>, vector<8x1xf32>
    %147 = arith.mulf %142, %146 : vector<8x1xf32>
    %cst_123 = arith.constant dense<0.000000e+00> : vector<8xf32>
    %148 = vector.multi_reduction <add>, %145, %cst_123 [1] : vector<8x8xf32> to vector<8xf32>
    %149 = vector.shape_cast %148 : vector<8xf32> to vector<8x1xf32>
    %150 = arith.addf %147, %149 : vector<8x1xf32>
    %c0_124 = arith.constant 0 : index
    %c3_125 = arith.constant 3 : index
    %151 = vector.load %arg10[%c0_124, %c3_125] : memref<8x4xf32, #tpu.memory_space<vmem>>, vector<8x1xf32>
    tpu.vector_store %arg10[%c0_124, %c3_125], %150 {strides = array<i32>} : memref<8x4xf32, #tpu.memory_space<vmem>>, vector<8x1xf32>,
    %152 = arith.truncf %145 : vector<8x8xf32> to vector<8x8xbf16>
    %cst_126 = arith.constant dense<0.000000e+00> : vector<8x8xf32>
    %153 = tpu.matmul %152, %131, %cst_126 {dimension_numbers = #tpu.dot_dimension_numbers<[1], [0], [0], [1], [0, 0, 1, 1], [], []>} : vector<8x8xbf16>, vector<8x8xbf16>, vector<8x8xf32> -> vector<8x8xf32>
    %c0_127 = arith.constant 0 : index
    %c24 = arith.constant 24 : index
    %154 = vector.load %arg11[%c0_127, %c24] : memref<8x32xf32, #tpu.memory_space<vmem>>, vector<8x8xf32>
    %155 = vector.broadcast %142 : vector<8x1xf32> to vector<8x8xf32>
    %156 = arith.mulf %155, %154 : vector<8x8xf32>
    %157 = arith.addf %156, %153 : vector<8x8xf32>
    %c0_128 = arith.constant 0 : index
    %c24_129 = arith.constant 24 : index
    %158 = vector.load %arg11[%c0_128, %c24_129] : memref<8x32xf32, #tpu.memory_space<vmem>>, vector<8x8xf32>
    tpu.vector_store %arg11[%c0_128, %c24_129], %157 {strides = array<i32>} : memref<8x32xf32, #tpu.memory_space<vmem>>, vector<8x8xf32>,
    %c0_130 = arith.constant 0 : index
    %c3_131 = arith.constant 3 : index
    %159 = vector.load %arg9[%c0_130, %c3_131] : memref<8x4xf32, #tpu.memory_space<vmem>>, vector<8x1xf32>
    tpu.vector_store %arg9[%c0_130, %c3_131], %140 {strides = array<i32>} : memref<8x4xf32, #tpu.memory_space<vmem>>, vector<8x1xf32>,
    %c0_i32_132 = arith.constant 0 : i32
    %160 = arith.cmpi eq, %arg2, %c0_i32_132 : i32
    %161 = arith.extui %160 : i1 to i32
    %c0_i32_133 = arith.constant 0 : i32
    %162 = arith.cmpi ne, %161, %c0_i32_133 : i32
    scf.if %162 {
      %c0_134 = arith.constant 0 : index
      %c0_135 = arith.constant 0 : index
      %163 = vector.load %arg11[%c0_134, %c0_135] : memref<8x32xf32, #tpu.memory_space<vmem>>, vector<8x8xf32>
      %c0_136 = arith.constant 0 : index
      %c0_137 = arith.constant 0 : index
      %164 = vector.load %arg10[%c0_136, %c0_137] : memref<8x4xf32, #tpu.memory_space<vmem>>, vector<8x1xf32>
      %165 = vector.broadcast %164 : vector<8x1xf32> to vector<8x8xf32>
      %166 = arith.divf %163, %165 : vector<8x8xf32>
      %c0_138 = arith.constant 0 : index
      %c0_139 = arith.constant 0 : index
      %c0_140 = arith.constant 0 : index
      %167 = vector.load %arg8[%c0_138, %c0_139, %c0_140] : memref<1x8x32xf32, #tpu.memory_space<vmem>>, vector<1x8x8xf32>
      %168 = vector.shape_cast %167 : vector<1x8x8xf32> to vector<8x8xf32>
      %169 = vector.shape_cast %166 : vector<8x8xf32> to vector<1x8x8xf32>
      tpu.vector_store %arg8[%c0_138, %c0_139, %c0_140], %169 {strides = array<i32>} : memref<1x8x32xf32, #tpu.memory_space<vmem>>, vector<1x8x8xf32>,
      %c0_141 = arith.constant 0 : index
      %c8_142 = arith.constant 8 : index
      %170 = vector.load %arg11[%c0_141, %c8_142] : memref<8x32xf32, #tpu.memory_space<vmem>>, vector<8x8xf32>
      %c0_143 = arith.constant 0 : index
      %c1_144 = arith.constant 1 : index
      %171 = vector.load %arg10[%c0_143, %c1_144] : memref<8x4xf32, #tpu.memory_space<vmem>>, vector<8x1xf32>
      %172 = vector.broadcast %171 : vector<8x1xf32> to vector<8x8xf32>
      %173 = arith.divf %170, %172 : vector<8x8xf32>
      %c0_145 = arith.constant 0 : index
      %c0_146 = arith.constant 0 : index
      %c8_147 = arith.constant 8 : index
      %174 = vector.load %arg8[%c0_145, %c0_146, %c8_147] : memref<1x8x32xf32, #tpu.memory_space<vmem>>, vector<1x8x8xf32>
      %175 = vector.shape_cast %174 : vector<1x8x8xf32> to vector<8x8xf32>
      %176 = vector.shape_cast %173 : vector<8x8xf32> to vector<1x8x8xf32>
      tpu.vector_store %arg8[%c0_145, %c0_146, %c8_147], %176 {strides = array<i32>} : memref<1x8x32xf32, #tpu.memory_space<vmem>>, vector<1x8x8xf32>,
      %c0_148 = arith.constant 0 : index
      %c16_149 = arith.constant 16 : index
      %177 = vector.load %arg11[%c0_148, %c16_149] : memref<8x32xf32, #tpu.memory_space<vmem>>, vector<8x8xf32>
      %c0_150 = arith.constant 0 : index
      %c2_151 = arith.constant 2 : index
      %178 = vector.load %arg10[%c0_150, %c2_151] : memref<8x4xf32, #tpu.memory_space<vmem>>, vector<8x1xf32>
      %179 = vector.broadcast %178 : vector<8x1xf32> to vector<8x8xf32>
      %180 = arith.divf %177, %179 : vector<8x8xf32>
      %c0_152 = arith.constant 0 : index
      %c0_153 = arith.constant 0 : index
      %c16_154 = arith.constant 16 : index
      %181 = vector.load %arg8[%c0_152, %c0_153, %c16_154] : memref<1x8x32xf32, #tpu.memory_space<vmem>>, vector<1x8x8xf32>
      %182 = vector.shape_cast %181 : vector<1x8x8xf32> to vector<8x8xf32>
      %183 = vector.shape_cast %180 : vector<8x8xf32> to vector<1x8x8xf32>
      tpu.vector_store %arg8[%c0_152, %c0_153, %c16_154], %183 {strides = array<i32>} : memref<1x8x32xf32, #tpu.memory_space<vmem>>, vector<1x8x8xf32>,
      %c0_155 = arith.constant 0 : index
      %c24_156 = arith.constant 24 : index
      %184 = vector.load %arg11[%c0_155, %c24_156] : memref<8x32xf32, #tpu.memory_space<vmem>>, vector<8x8xf32>
      %c0_157 = arith.constant 0 : index
      %c3_158 = arith.constant 3 : index
      %185 = vector.load %arg10[%c0_157, %c3_158] : memref<8x4xf32, #tpu.memory_space<vmem>>, vector<8x1xf32>
      %186 = vector.broadcast %185 : vector<8x1xf32> to vector<8x8xf32>
      %187 = arith.divf %184, %186 : vector<8x8xf32>
      %c0_159 = arith.constant 0 : index
      %c0_160 = arith.constant 0 : index
      %c24_161 = arith.constant 24 : index
      %188 = vector.load %arg8[%c0_159, %c0_160, %c24_161] : memref<1x8x32xf32, #tpu.memory_space<vmem>>, vector<1x8x8xf32>
      %189 = vector.shape_cast %188 : vector<1x8x8xf32> to vector<8x8xf32>
      %190 = vector.shape_cast %187 : vector<8x8xf32> to vector<1x8x8xf32>
      tpu.vector_store %arg8[%c0_159, %c0_160, %c24_161], %190 {strides = array<i32>} : memref<1x8x32xf32, #tpu.memory_space<vmem>>, vector<1x8x8xf32>,
    } else {
    }
    return
  }
  func.func @transform_0(%arg0: i32, %arg1: i32, %arg2: i32) -> (i32, i32, i32, i32, i32) {
    %c0_i32 = arith.constant 0 : i32
    %c0_i32_0 = arith.constant 0 : i32
    %c0_i32_1 = arith.constant 0 : i32
    %c0_i32_2 = arith.constant 0 : i32
    return %arg0, %arg1, %c0_i32, %c0_i32_0, %c0_i32_1 : i32, i32, i32, i32, i32
  }
  func.func @transform_1(%arg0: i32, %arg1: i32, %arg2: i32) -> (i32, i32, i32, i32, i32) {
    %c1_i32 = arith.constant 1 : i32
    %c0_i32 = arith.constant 0 : i32
    %c0_i32_0 = arith.constant 0 : i32
    %c0_i32_1 = arith.constant 0 : i32
    return %arg0, %arg2, %c1_i32, %c0_i32, %c0_i32_0 : i32, i32, i32, i32, i32
  }
  func.func @transform_2(%arg0: i32, %arg1: i32, %arg2: i32) -> (i32, i32, i32, i32, i32) {
    %c2_i32 = arith.constant 2 : i32
    %c0_i32 = arith.constant 0 : i32
    %c0_i32_0 = arith.constant 0 : i32
    %c0_i32_1 = arith.constant 0 : i32
    return %arg0, %arg2, %c2_i32, %c0_i32, %c0_i32_0 : i32, i32, i32, i32, i32
  }
  func.func @transform_3(%arg0: i32, %arg1: i32, %arg2: i32) -> (i32, i32, i32) {
    %c0_i32 = arith.constant 0 : i32
    %c0_i32_0 = arith.constant 0 : i32
    return %arg0, %arg1, %c0_i32 : i32, i32, i32
  }
  func.func @transform_4(%arg0: i32, %arg1: i32, %arg2: i32) -> (i32, i32, i32) {
    %c0_i32 = arith.constant 0 : i32
    %c0_i32_0 = arith.constant 0 : i32
    return %arg0, %c0_i32, %arg2 : i32, i32, i32
  }
  func.func @transform_5(%arg0: i32, %arg1: i32, %arg2: i32) -> (i32, i32, i32) {
    %c0_i32 = arith.constant 0 : i32
    %c0_i32_0 = arith.constant 0 : i32
    return %arg0, %arg1, %c0_i32 : i32, i32, i32
  }
}

module attributes {stable_mosaic.version = 11 : i64} {
  func.func @_ffn_kernel(%arg0: i32, %arg1: i32, %arg2: memref<16x32xf32, #tpu.memory_space<vmem>>, %arg3: memref<32x64xf32, #tpu.memory_space<vmem>>, %arg4: memref<1x64xf32, #tpu.memory_space<vmem>>, %arg5: memref<64x32xf32, #tpu.memory_space<vmem>>, %arg6: memref<1x32xf32, #tpu.memory_space<vmem>>, %arg7: memref<16x32xf32, #tpu.memory_space<vmem>>, %arg8: memref<16x32xf32, #tpu.memory_space<vmem>>) attributes {dimension_semantics = [#tpu.dimension_semantics<parallel>, #tpu.dimension_semantics<arbitrary>], iteration_bounds = array<i64: 1, 1>, scalar_prefetch = 0 : i64, scratch_operands = 1 : i64, tpu.core_type = #tpu.core_type<tc>, window_params = [{transform_indices = @transform_0, window_bounds = array<i64: 16, 32>}, {transform_indices = @transform_1, window_bounds = array<i64: 32, 64>}, {transform_indices = @transform_2, window_bounds = array<i64: 1, 64>}, {transform_indices = @transform_3, window_bounds = array<i64: 64, 32>}, {pipeline_mode = #tpu.pipeline_mode<synchronous>, transform_indices = @transform_4, window_bounds = array<i64: 1, 32>}, {transform_indices = @transform_5, window_bounds = array<i64: 16, 32>}]} {
    %c0_i32 = arith.constant 0 : i32
    %0 = arith.cmpi eq, %arg1, %c0_i32 : i32
    %1 = arith.extui %0 : i1 to i32
    %c0_i32_0 = arith.constant 0 : i32
    %2 = arith.cmpi ne, %1, %c0_i32_0 : i32
    scf.if %2 {
      %cst_16 = arith.constant 0.000000e+00 : f32
      %23 = vector.broadcast %cst_16 : f32 to vector<16x32xf32>
      %c0_17 = arith.constant 0 : index
      %c0_18 = arith.constant 0 : index
      %24 = vector.load %arg8[%c0_17, %c0_18] : memref<16x32xf32, #tpu.memory_space<vmem>>, vector<16x32xf32>
      tpu.vector_store %arg8[%c0_17, %c0_18], %23 {strides = array<i32>} : memref<16x32xf32, #tpu.memory_space<vmem>>, vector<16x32xf32>,
    } else {
    }
    %c0 = arith.constant 0 : index
    %c0_1 = arith.constant 0 : index
    %3 = vector.load %arg2[%c0, %c0_1] : memref<16x32xf32, #tpu.memory_space<vmem>>, vector<16x32xf32>
    %4 = arith.truncf %3 : vector<16x32xf32> to vector<16x32xbf16>
    %c0_2 = arith.constant 0 : index
    %c0_3 = arith.constant 0 : index
    %5 = vector.load %arg3[%c0_2, %c0_3] : memref<32x64xf32, #tpu.memory_space<vmem>>, vector<32x64xf32>
    %6 = arith.truncf %5 : vector<32x64xf32> to vector<32x64xbf16>
    %cst = arith.constant dense<0.000000e+00> : vector<16x64xf32>
    %7 = tpu.matmul %4, %6, %cst {dimension_numbers = #tpu.dot_dimension_numbers<[1], [0], [0], [1], [0, 0, 1, 1], [], []>} : vector<16x32xbf16>, vector<32x64xbf16>, vector<16x64xf32> -> vector<16x64xf32>
    %c0_4 = arith.constant 0 : index
    %c0_5 = arith.constant 0 : index
    %8 = vector.load %arg4[%c0_4, %c0_5] : memref<1x64xf32, #tpu.memory_space<vmem>>, vector<1x64xf32>
    %9 = vector.broadcast %8 : vector<1x64xf32> to vector<16x64xf32>
    %10 = arith.addf %7, %9 : vector<16x64xf32>
    %cst_6 = arith.constant 0.000000e+00 : f32
    %11 = vector.broadcast %cst_6 : f32 to vector<16x64xf32>
    %12 = arith.maximumf %10, %11 : vector<16x64xf32>
    %c0_7 = arith.constant 0 : index
    %c0_8 = arith.constant 0 : index
    %13 = vector.load %arg8[%c0_7, %c0_8] : memref<16x32xf32, #tpu.memory_space<vmem>>, vector<16x32xf32>
    %14 = arith.truncf %12 : vector<16x64xf32> to vector<16x64xbf16>
    %c0_9 = arith.constant 0 : index
    %c0_10 = arith.constant 0 : index
    %15 = vector.load %arg5[%c0_9, %c0_10] : memref<64x32xf32, #tpu.memory_space<vmem>>, vector<64x32xf32>
    %16 = arith.truncf %15 : vector<64x32xf32> to vector<64x32xbf16>
    %cst_11 = arith.constant dense<0.000000e+00> : vector<16x32xf32>
    %17 = tpu.matmul %14, %16, %cst_11 {dimension_numbers = #tpu.dot_dimension_numbers<[1], [0], [0], [1], [0, 0, 1, 1], [], []>} : vector<16x64xbf16>, vector<64x32xbf16>, vector<16x32xf32> -> vector<16x32xf32>
    %18 = arith.addf %13, %17 : vector<16x32xf32>
    %c0_12 = arith.constant 0 : index
    %c0_13 = arith.constant 0 : index
    %19 = vector.load %arg8[%c0_12, %c0_13] : memref<16x32xf32, #tpu.memory_space<vmem>>, vector<16x32xf32>
    tpu.vector_store %arg8[%c0_12, %c0_13], %18 {strides = array<i32>} : memref<16x32xf32, #tpu.memory_space<vmem>>, vector<16x32xf32>,
    %c0_i32_14 = arith.constant 0 : i32
    %20 = arith.cmpi eq, %arg1, %c0_i32_14 : i32
    %21 = arith.extui %20 : i1 to i32
    %c0_i32_15 = arith.constant 0 : i32
    %22 = arith.cmpi ne, %21, %c0_i32_15 : i32
    scf.if %22 {
      %c0_16 = arith.constant 0 : index
      %c0_17 = arith.constant 0 : index
      %23 = vector.load %arg8[%c0_16, %c0_17] : memref<16x32xf32, #tpu.memory_space<vmem>>, vector<16x32xf32>
      %c0_18 = arith.constant 0 : index
      %c0_19 = arith.constant 0 : index
      %24 = vector.load %arg6[%c0_18, %c0_19] : memref<1x32xf32, #tpu.memory_space<vmem>>, vector<1x32xf32>
      %25 = vector.broadcast %24 : vector<1x32xf32> to vector<16x32xf32>
      %26 = arith.addf %23, %25 : vector<16x32xf32>
      %c0_20 = arith.constant 0 : index
      %c0_21 = arith.constant 0 : index
      %27 = vector.load %arg7[%c0_20, %c0_21] : memref<16x32xf32, #tpu.memory_space<vmem>>, vector<16x32xf32>
      tpu.vector_store %arg7[%c0_20, %c0_21], %26 {strides = array<i32>} : memref<16x32xf32, #tpu.memory_space<vmem>>, vector<16x32xf32>,
    } else {
    }
    return
  }
  func.func @transform_0(%arg0: i32, %arg1: i32) -> (i32, i32) {
    %c0_i32 = arith.constant 0 : i32
    %c0_i32_0 = arith.constant 0 : i32
    return %arg0, %c0_i32 : i32, i32
  }
  func.func @transform_1(%arg0: i32, %arg1: i32) -> (i32, i32) {
    %c0_i32 = arith.constant 0 : i32
    %c0_i32_0 = arith.constant 0 : i32
    return %c0_i32, %arg1 : i32, i32
  }
  func.func @transform_2(%arg0: i32, %arg1: i32) -> (i32, i32) {
    %c0_i32 = arith.constant 0 : i32
    %c0_i32_0 = arith.constant 0 : i32
    return %c0_i32, %arg1 : i32, i32
  }
  func.func @transform_3(%arg0: i32, %arg1: i32) -> (i32, i32) {
    %c0_i32 = arith.constant 0 : i32
    %c0_i32_0 = arith.constant 0 : i32
    return %arg1, %c0_i32 : i32, i32
  }
  func.func @transform_4(%arg0: i32, %arg1: i32) -> (i32, i32) {
    %c0_i32 = arith.constant 0 : i32
    %c0_i32_0 = arith.constant 0 : i32
    %c0_i32_1 = arith.constant 0 : i32
    return %c0_i32, %c0_i32_0 : i32, i32
  }
  func.func @transform_5(%arg0: i32, %arg1: i32) -> (i32, i32) {
    %c0_i32 = arith.constant 0 : i32
    %c0_i32_0 = arith.constant 0 : i32
    return %arg0, %c0_i32 : i32, i32
  }
}

module attributes {stable_mosaic.version = 11 : i64} {
  func.func @_linear_kernel(%arg0: i32, %arg1: i32, %arg2: i32, %arg3: memref<16x32xf32, #tpu.memory_space<vmem>>, %arg4: memref<32x64xf32, #tpu.memory_space<vmem>>, %arg5: memref<1x64xf32, #tpu.memory_space<vmem>>, %arg6: memref<16x64xf32, #tpu.memory_space<vmem>>, %arg7: memref<16x64xf32, #tpu.memory_space<vmem>>) attributes {dimension_semantics = [#tpu.dimension_semantics<parallel>, #tpu.dimension_semantics<parallel>, #tpu.dimension_semantics<arbitrary>], iteration_bounds = array<i64: 1, 1, 1>, scalar_prefetch = 0 : i64, scratch_operands = 1 : i64, tpu.core_type = #tpu.core_type<tc>, window_params = [{transform_indices = @transform_0, window_bounds = array<i64: 16, 32>}, {transform_indices = @transform_1, window_bounds = array<i64: 32, 64>}, {transform_indices = @transform_2, window_bounds = array<i64: 1, 64>}, {transform_indices = @transform_3, window_bounds = array<i64: 16, 64>}]} {
    %c0_i32 = arith.constant 0 : i32
    %0 = arith.cmpi eq, %arg2, %c0_i32 : i32
    %1 = arith.extui %0 : i1 to i32
    %c0_i32_0 = arith.constant 0 : i32
    %2 = arith.cmpi ne, %1, %c0_i32_0 : i32
    scf.if %2 {
      %cst_10 = arith.constant 0.000000e+00 : f32
      %14 = vector.broadcast %cst_10 : f32 to vector<16x64xf32>
      %c0_11 = arith.constant 0 : index
      %c0_12 = arith.constant 0 : index
      %15 = vector.load %arg7[%c0_11, %c0_12] : memref<16x64xf32, #tpu.memory_space<vmem>>, vector<16x64xf32>
      tpu.vector_store %arg7[%c0_11, %c0_12], %14 {strides = array<i32>} : memref<16x64xf32, #tpu.memory_space<vmem>>, vector<16x64xf32>,
    } else {
    }
    %c0 = arith.constant 0 : index
    %c0_1 = arith.constant 0 : index
    %3 = vector.load %arg7[%c0, %c0_1] : memref<16x64xf32, #tpu.memory_space<vmem>>, vector<16x64xf32>
    %c0_2 = arith.constant 0 : index
    %c0_3 = arith.constant 0 : index
    %4 = vector.load %arg3[%c0_2, %c0_3] : memref<16x32xf32, #tpu.memory_space<vmem>>, vector<16x32xf32>
    %5 = arith.truncf %4 : vector<16x32xf32> to vector<16x32xbf16>
    %c0_4 = arith.constant 0 : index
    %c0_5 = arith.constant 0 : index
    %6 = vector.load %arg4[%c0_4, %c0_5] : memref<32x64xf32, #tpu.memory_space<vmem>>, vector<32x64xf32>
    %7 = arith.truncf %6 : vector<32x64xf32> to vector<32x64xbf16>
    %cst = arith.constant dense<0.000000e+00> : vector<16x64xf32>
    %8 = tpu.matmul %5, %7, %cst {dimension_numbers = #tpu.dot_dimension_numbers<[1], [0], [0], [1], [0, 0, 1, 1], [], []>} : vector<16x32xbf16>, vector<32x64xbf16>, vector<16x64xf32> -> vector<16x64xf32>
    %9 = arith.addf %3, %8 : vector<16x64xf32>
    %c0_6 = arith.constant 0 : index
    %c0_7 = arith.constant 0 : index
    %10 = vector.load %arg7[%c0_6, %c0_7] : memref<16x64xf32, #tpu.memory_space<vmem>>, vector<16x64xf32>
    tpu.vector_store %arg7[%c0_6, %c0_7], %9 {strides = array<i32>} : memref<16x64xf32, #tpu.memory_space<vmem>>, vector<16x64xf32>,
    %c0_i32_8 = arith.constant 0 : i32
    %11 = arith.cmpi eq, %arg2, %c0_i32_8 : i32
    %12 = arith.extui %11 : i1 to i32
    %c0_i32_9 = arith.constant 0 : i32
    %13 = arith.cmpi ne, %12, %c0_i32_9 : i32
    scf.if %13 {
      %c0_10 = arith.constant 0 : index
      %c0_11 = arith.constant 0 : index
      %14 = vector.load %arg7[%c0_10, %c0_11] : memref<16x64xf32, #tpu.memory_space<vmem>>, vector<16x64xf32>
      %c0_12 = arith.constant 0 : index
      %c0_13 = arith.constant 0 : index
      %15 = vector.load %arg5[%c0_12, %c0_13] : memref<1x64xf32, #tpu.memory_space<vmem>>, vector<1x64xf32>
      %16 = vector.broadcast %15 : vector<1x64xf32> to vector<16x64xf32>
      %17 = arith.addf %14, %16 : vector<16x64xf32>
      %c0_14 = arith.constant 0 : index
      %c0_15 = arith.constant 0 : index
      %18 = vector.load %arg6[%c0_14, %c0_15] : memref<16x64xf32, #tpu.memory_space<vmem>>, vector<16x64xf32>
      tpu.vector_store %arg6[%c0_14, %c0_15], %17 {strides = array<i32>} : memref<16x64xf32, #tpu.memory_space<vmem>>, vector<16x64xf32>,
    } else {
    }
    return
  }
  func.func @transform_0(%arg0: i32, %arg1: i32, %arg2: i32) -> (i32, i32) {
    %c0_i32 = arith.constant 0 : i32
    return %arg0, %arg2 : i32, i32
  }
  func.func @transform_1(%arg0: i32, %arg1: i32, %arg2: i32) -> (i32, i32) {
    %c0_i32 = arith.constant 0 : i32
    return %arg2, %arg1 : i32, i32
  }
  func.func @transform_2(%arg0: i32, %arg1: i32, %arg2: i32) -> (i32, i32) {
    %c0_i32 = arith.constant 0 : i32
    %c0_i32_0 = arith.constant 0 : i32
    return %c0_i32, %arg1 : i32, i32
  }
  func.func @transform_3(%arg0: i32, %arg1: i32, %arg2: i32) -> (i32, i32) {
    %c0_i32 = arith.constant 0 : i32
    return %arg0, %arg1 : i32, i32
  }
}

module attributes {stable_mosaic.version = 11 : i64} {
  func.func @_flash_kernel(%arg0: i32, %arg1: i32, %arg2: i32, %arg3: memref<1x8x1x4x8xf32, #tpu.memory_space<vmem>>, %arg4: memref<1x8x1x4x8xf32, #tpu.memory_space<vmem>>, %arg5: memref<1x8x1x4x8xf32, #tpu.memory_space<vmem>>, %arg6: memref<1x8x1xf32, #tpu.memory_space<vmem>>, %arg7: memref<1x1x8xf32, #tpu.memory_space<vmem>>, %arg8: memref<1x8x32xf32, #tpu.memory_space<vmem>>, %arg9: memref<8x4xf32, #tpu.memory_space<vmem>>, %arg10: memref<8x4xf32, #tpu.memory_space<vmem>>, %arg11: memref<8x32xf32, #tpu.memory_space<vmem>>) attributes {dimension_semantics = [#tpu.dimension_semantics<parallel>, #tpu.dimension_semantics<parallel>, #tpu.dimension_semantics<arbitrary>], iteration_bounds = array<i64: 2, 1, 1>, scalar_prefetch = 0 : i64, scratch_operands = 3 : i64, tpu.core_type = #tpu.core_type<tc>, window_params = [{transform_indices = @transform_0, window_bounds = array<i64: 1, 8, 1, 4, 8>}, {transform_indices = @transform_1, window_bounds = array<i64: 1, 8, 1, 4, 8>}, {transform_indices = @transform_2, window_bounds = array<i64: 1, 8, 1, 4, 8>}, {transform_indices = @transform_3, window_bounds = array<i64: 1, 8, 1>}, {transform_indices = @transform_4, window_bounds = array<i64: 1, 1, 8>}, {transform_indices = @transform_5, window_bounds = array<i64: 1, 8, 32>}]} {
    %c0_i32 = arith.constant 0 : i32
    %0 = arith.cmpi eq, %arg2, %c0_i32 : i32
    %1 = arith.extui %0 : i1 to i32
    %c0_i32_0 = arith.constant 0 : i32
    %2 = arith.cmpi ne, %1, %c0_i32_0 : i32
    scf.if %2 {
      %cst_134 = arith.constant -1.000000e+30 : f32
      %163 = vector.broadcast %cst_134 : f32 to vector<8x4xf32>
      %c0_135 = arith.constant 0 : index
      %c0_136 = arith.constant 0 : index
      %164 = vector.load %arg9[%c0_135, %c0_136] : memref<8x4xf32, #tpu.memory_space<vmem>>, vector<8x4xf32>
      tpu.vector_store %arg9[%c0_135, %c0_136], %163 {strides = array<i32>} : memref<8x4xf32, #tpu.memory_space<vmem>>, vector<8x4xf32>,
      %cst_137 = arith.constant 0.000000e+00 : f32
      %165 = vector.broadcast %cst_137 : f32 to vector<8x4xf32>
      %c0_138 = arith.constant 0 : index
      %c0_139 = arith.constant 0 : index
      %166 = vector.load %arg10[%c0_138, %c0_139] : memref<8x4xf32, #tpu.memory_space<vmem>>, vector<8x4xf32>
      tpu.vector_store %arg10[%c0_138, %c0_139], %165 {strides = array<i32>} : memref<8x4xf32, #tpu.memory_space<vmem>>, vector<8x4xf32>,
      %cst_140 = arith.constant 0.000000e+00 : f32
      %167 = vector.broadcast %cst_140 : f32 to vector<8x32xf32>
      %c0_141 = arith.constant 0 : index
      %c0_142 = arith.constant 0 : index
      %168 = vector.load %arg11[%c0_141, %c0_142] : memref<8x32xf32, #tpu.memory_space<vmem>>, vector<8x32xf32>
      tpu.vector_store %arg11[%c0_141, %c0_142], %167 {strides = array<i32>} : memref<8x32xf32, #tpu.memory_space<vmem>>, vector<8x32xf32>,
    } else {
    }
    %c0 = arith.constant 0 : index
    %c0_1 = arith.constant 0 : index
    %c0_2 = arith.constant 0 : index
    %3 = vector.load %arg6[%c0, %c0_1, %c0_2] : memref<1x8x1xf32, #tpu.memory_space<vmem>>, vector<1x8x1xf32>
    %4 = vector.shape_cast %3 : vector<1x8x1xf32> to vector<8x1xf32>
    %c0_3 = arith.constant 0 : index
    %c0_4 = arith.constant 0 : index
    %c0_5 = arith.constant 0 : index
    %5 = vector.load %arg7[%c0_3, %c0_4, %c0_5] : memref<1x1x8xf32, #tpu.memory_space<vmem>>, vector<1x1x8xf32>
    %6 = vector.shape_cast %5 : vector<1x1x8xf32> to vector<1x8xf32>
    %7 = vector.broadcast %4 : vector<8x1xf32> to vector<8x8xf32>
    %8 = vector.broadcast %6 : vector<1x8xf32> to vector<8x8xf32>
    %9 = arith.mulf %7, %8 : vector<8x8xf32>
    %cst = arith.constant 0.000000e+00 : f32
    %10 = vector.broadcast %cst : f32 to vector<8x8xf32>
    %11 = arith.cmpf ogt, %9, %10 : vector<8x8xf32>
    %c0_6 = arith.constant 0 : index
    %c0_7 = arith.constant 0 : index
    %c0_8 = arith.constant 0 : index
    %c0_9 = arith.constant 0 : index
    %c0_10 = arith.constant 0 : index
    %12 = vector.load %arg3[%c0_6, %c0_7, %c0_8, %c0_9, %c0_10] : memref<1x8x1x4x8xf32, #tpu.memory_space<vmem>>, vector<1x8x1x1x8xf32>
    %13 = vector.shape_cast %12 : vector<1x8x1x1x8xf32> to vector<8x8xf32>
    %14 = arith.truncf %13 : vector<8x8xf32> to vector<8x8xbf16>
    %c0_11 = arith.constant 0 : index
    %c0_12 = arith.constant 0 : index
    %c0_13 = arith.constant 0 : index
    %c0_14 = arith.constant 0 : index
    %c0_15 = arith.constant 0 : index
    %15 = vector.load %arg4[%c0_11, %c0_12, %c0_13, %c0_14, %c0_15] : memref<1x8x1x4x8xf32, #tpu.memory_space<vmem>>, vector<1x8x1x1x8xf32>
    %16 = vector.shape_cast %15 : vector<1x8x1x1x8xf32> to vector<8x8xf32>
    %17 = arith.truncf %16 : vector<8x8xf32> to vector<8x8xbf16>
    %c0_16 = arith.constant 0 : index
    %c0_17 = arith.constant 0 : index
    %c0_18 = arith.constant 0 : index
    %c0_19 = arith.constant 0 : index
    %c0_20 = arith.constant 0 : index
    %18 = vector.load %arg5[%c0_16, %c0_17, %c0_18, %c0_19, %c0_20] : memref<1x8x1x4x8xf32, #tpu.memory_space<vmem>>, vector<1x8x1x1x8xf32>
    %19 = vector.shape_cast %18 : vector<1x8x1x1x8xf32> to vector<8x8xf32>
    %20 = arith.truncf %19 : vector<8x8xf32> to vector<8x8xbf16>
    %cst_21 = arith.constant dense<0.000000e+00> : vector<8x8xf32>
    %21 = tpu.matmul %14, %17, %cst_21 {dimension_numbers = #tpu.dot_dimension_numbers<[1], [1], [0], [0], [0, 0, 1, 0], [], []>} : vector<8x8xbf16>, vector<8x8xbf16>, vector<8x8xf32> -> vector<8x8xf32>
    %cst_22 = arith.constant 0.353553385 : f32
    %22 = vector.broadcast %cst_22 : f32 to vector<8x8xf32>
    %23 = arith.mulf %21, %22 : vector<8x8xf32>
    %cst_23 = arith.constant -1.000000e+09 : f32
    %24 = vector.broadcast %cst_23 : f32 to vector<8x8xf32>
    %25 = arith.select %11, %23, %24 : vector<8x8xi1>, vector<8x8xf32>
    %c0_24 = arith.constant 0 : index
    %c0_25 = arith.constant 0 : index
    %26 = vector.load %arg9[%c0_24, %c0_25] : memref<8x4xf32, #tpu.memory_space<vmem>>, vector<8x1xf32>
    %cst_26 = arith.constant dense<0xFF800000> : vector<8xf32>
    %27 = vector.multi_reduction <maximumf>, %25, %cst_26 [1] : vector<8x8xf32> to vector<8xf32>
    %28 = vector.shape_cast %27 : vector<8xf32> to vector<8x1xf32>
    %29 = arith.maximumf %26, %28 : vector<8x1xf32>
    %30 = arith.subf %26, %29 : vector<8x1xf32>
    %31 = math.exp %30 : vector<8x1xf32>
    %32 = vector.broadcast %29 : vector<8x1xf32> to vector<8x8xf32>
    %33 = arith.subf %25, %32 : vector<8x8xf32>
    %34 = math.exp %33 : vector<8x8xf32>
    %c0_27 = arith.constant 0 : index
    %c0_28 = arith.constant 0 : index
    %35 = vector.load %arg10[%c0_27, %c0_28] : memref<8x4xf32, #tpu.memory_space<vmem>>, vector<8x1xf32>
    %36 = arith.mulf %31, %35 : vector<8x1xf32>
    %cst_29 = arith.constant dense<0.000000e+00> : vector<8xf32>
    %37 = vector.multi_reduction <add>, %34, %cst_29 [1] : vector<8x8xf32> to vector<8xf32>
    %38 = vector.shape_cast %37 : vector<8xf32> to vector<8x1xf32>
    %39 = arith.addf %36, %38 : vector<8x1xf32>
    %c0_30 = arith.constant 0 : index
    %c0_31 = arith.constant 0 : index
    %40 = vector.load %arg10[%c0_30, %c0_31] : memref<8x4xf32, #tpu.memory_space<vmem>>, vector<8x1xf32>
    tpu.vector_store %arg10[%c0_30, %c0_31], %39 {strides = array<i32>} : memref<8x4xf32, #tpu.memory_space<vmem>>, vector<8x1xf32>,
    %41 = arith.truncf %34 : vector<8x8xf32> to vector<8x8xbf16>
    %cst_32 = arith.constant dense<0.000000e+00> : vector<8x8xf32>
    %42 = tpu.matmul %41, %20, %cst_32 {dimension_numbers = #tpu.dot_dimension_numbers<[1], [0], [0], [1], [0, 0, 1, 1], [], []>} : vector<8x8xbf16>, vector<8x8xbf16>, vector<8x8xf32> -> vector<8x8xf32>
    %c0_33 = arith.constant 0 : index
    %c0_34 = arith.constant 0 : index
    %43 = vector.load %arg11[%c0_33, %c0_34] : memref<8x32xf32, #tpu.memory_space<vmem>>, vector<8x8xf32>
    %44 = vector.broadcast %31 : vector<8x1xf32> to vector<8x8xf32>
    %45 = arith.mulf %44, %43 : vector<8x8xf32>
    %46 = arith.addf %45, %42 : vector<8x8xf32>
    %c0_35 = arith.constant 0 : index
    %c0_36 = arith.constant 0 : index
    %47 = vector.load %arg11[%c0_35, %c0_36] : memref<8x32xf32, #tpu.memory_space<vmem>>, vector<8x8xf32>
    tpu.vector_store %arg11[%c0_35, %c0_36], %46 {strides = array<i32>} : memref<8x32xf32, #tpu.memory_space<vmem>>, vector<8x8xf32>,
    %c0_37 = arith.constant 0 : index
    %c0_38 = arith.constant 0 : index
    %48 = vector.load %arg9[%c0_37, %c0_38] : memref<8x4xf32, #tpu.memory_space<vmem>>, vector<8x1xf32>
    tpu.vector_store %arg9[%c0_37, %c0_38], %29 {strides = array<i32>} : memref<8x4xf32, #tpu.memory_space<vmem>>, vector<8x1xf32>,
    %c0_39 = arith.constant 0 : index
    %c0_40 = arith.constant 0 : index
    %c0_41 = arith.constant 0 : index
    %c1 = arith.constant 1 : index
    %c0_42 = arith.constant 0 : index
    %49 = vector.load %arg3[%c0_39, %c0_40, %c0_41, %c1, %c0_42] : memref<1x8x1x4x8xf32, #tpu.memory_space<vmem>>, vector<1x8x1x1x8xf32>
    %50 = vector.shape_cast %49 : vector<1x8x1x1x8xf32> to vector<8x8xf32>
    %51 = arith.truncf %50 : vector<8x8xf32> to vector<8x8xbf16>
    %c0_43 = arith.constant 0 : index
    %c0_44 = arith.constant 0 : index
    %c0_45 = arith.constant 0 : index
    %c1_46 = arith.constant 1 : index
    %c0_47 = arith.constant 0 : index
    %52 = vector.load %arg4[%c0_43, %c0_44, %c0_45, %c1_46, %c0_47] : memref<1x8x1x4x8xf32, #tpu.memory_space<vmem>>, vector<1x8x1x1x8xf32>
    %53 = vector.shape_cast %52 : vector<1x8x1x1x8xf32> to vector<8x8xf32>
    %54 = arith.truncf %53 : vector<8x8xf32> to vector<8x8xbf16>
    %c0_48 = arith.constant 0 : index
    %c0_49 = arith.constant 0 : index
    %c0_50 = arith.constant 0 : index
    %c1_51 = arith.constant 1 : index
    %c0_52 = arith.constant 0 : index
    %55 = vector.load %arg5[%c0_48, %c0_49, %c0_50, %c1_51, %c0_52] : memref<1x8x1x4x8xf32, #tpu.memory_space<vmem>>, vector<1x8x1x1x8xf32>
    %56 = vector.shape_cast %55 : vector<1x8x1x1x8xf32> to vector<8x8xf32>
    %57 = arith.truncf %56 : vector<8x8xf32> to vector<8x8xbf16>
    %cst_53 = arith.constant dense<0.000000e+00> : vector<8x8xf32>
    %58 = tpu.matmul %51, %54, %cst_53 {dimension_numbers = #tpu.dot_dimension_numbers<[1], [1], [0], [0], [0, 0, 1, 0], [], []>} : vector<8x8xbf16>, vector<8x8xbf16>, vector<8x8xf32> -> vector<8x8xf32>
    %cst_54 = arith.constant 0.353553385 : f32
    %59 = vector.broadcast %cst_54 : f32 to vector<8x8xf32>
    %60 = arith.mulf %58, %59 : vector<8x8xf32>
    %cst_55 = arith.constant -1.000000e+09 : f32
    %61 = vector.broadcast %cst_55 : f32 to vector<8x8xf32>
    %62 = arith.select %11, %60, %61 : vector<8x8xi1>, vector<8x8xf32>
    %c0_56 = arith.constant 0 : index
    %c1_57 = arith.constant 1 : index
    %63 = vector.load %arg9[%c0_56, %c1_57] : memref<8x4xf32, #tpu.memory_space<vmem>>, vector<8x1xf32>
    %cst_58 = arith.constant dense<0xFF800000> : vector<8xf32>
    %64 = vector.multi_reduction <maximumf>, %62, %cst_58 [1] : vector<8x8xf32> to vector<8xf32>
    %65 = vector.shape_cast %64 : vector<8xf32> to vector<8x1xf32>
    %66 = arith.maximumf %63, %65 : vector<8x1xf32>
    %67 = arith.subf %63, %66 : vector<8x1xf32>
    %68 = math.exp %67 : vector<8x1xf32>
    %69 = vector.broadcast %66 : vector<8x1xf32> to vector<8x8xf32>
    %70 = arith.subf %62, %69 : vector<8x8xf32>
    %71 = math.exp %70 : vector<8x8xf32>
    %c0_59 = arith.constant 0 : index
    %c1_60 = arith.constant 1 : index
    %72 = vector.load %arg10[%c0_59, %c1_60] : memref<8x4xf32, #tpu.memory_space<vmem>>, vector<8x1xf32>
    %73 = arith.mulf %68, %72 : vector<8x1xf32>
    %cst_61 = arith.constant dense<0.000000e+00> : vector<8xf32>
    %74 = vector.multi_reduction <add>, %71, %cst_61 [1] : vector<8x8xf32> to vector<8xf32>
    %75 = vector.shape_cast %74 : vector<8xf32> to vector<8x1xf32>
    %76 = arith.addf %73, %75 : vector<8x1xf32>
    %c0_62 = arith.constant 0 : index
    %c1_63 = arith.constant 1 : index
    %77 = vector.load %arg10[%c0_62, %c1_63] : memref<8x4xf32, #tpu.memory_space<vmem>>, vector<8x1xf32>
    tpu.vector_store %arg10[%c0_62, %c1_63], %76 {strides = array<i32>} : memref<8x4xf32, #tpu.memory_space<vmem>>, vector<8x1xf32>,
    %78 = arith.truncf %71 : vector<8x8xf32> to vector<8x8xbf16>
    %cst_64 = arith.constant dense<0.000000e+00> : vector<8x8xf32>
    %79 = tpu.matmul %78, %57, %cst_64 {dimension_numbers = #tpu.dot_dimension_numbers<[1], [0], [0], [1], [0, 0, 1, 1], [], []>} : vector<8x8xbf16>, vector<8x8xbf16>, vector<8x8xf32> -> vector<8x8xf32>
    %c0_65 = arith.constant 0 : index
    %c8 = arith.constant 8 : index
    %80 = vector.load %arg11[%c0_65, %c8] : memref<8x32xf32, #tpu.memory_space<vmem>>, vector<8x8xf32>
    %81 = vector.broadcast %68 : vector<8x1xf32> to vector<8x8xf32>
    %82 = arith.mulf %81, %80 : vector<8x8xf32>
    %83 = arith.addf %82, %79 : vector<8x8xf32>
    %c0_66 = arith.constant 0 : index
    %c8_67 = arith.constant 8 : index
    %84 = vector.load %arg11[%c0_66, %c8_67] : memref<8x32xf32, #tpu.memory_space<vmem>>, vector<8x8xf32>
    tpu.vector_store %arg11[%c0_66, %c8_67], %83 {strides = array<i32>} : memref<8x32xf32, #tpu.memory_space<vmem>>, vector<8x8xf32>,
    %c0_68 = arith.constant 0 : index
    %c1_69 = arith.constant 1 : index
    %85 = vector.load %arg9[%c0_68, %c1_69] : memref<8x4xf32, #tpu.memory_space<vmem>>, vector<8x1xf32>
    tpu.vector_store %arg9[%c0_68, %c1_69], %66 {strides = array<i32>} : memref<8x4xf32, #tpu.memory_space<vmem>>, vector<8x1xf32>,
    %c0_70 = arith.constant 0 : index
    %c0_71 = arith.constant 0 : index
    %c0_72 = arith.constant 0 : index
    %c2 = arith.constant 2 : index
    %c0_73 = arith.constant 0 : index
    %86 = vector.load %arg3[%c0_70, %c0_71, %c0_72, %c2, %c0_73] : memref<1x8x1x4x8xf32, #tpu.memory_space<vmem>>, vector<1x8x1x1x8xf32>
    %87 = vector.shape_cast %86 : vector<1x8x1x1x8xf32> to vector<8x8xf32>
    %88 = arith.truncf %87 : vector<8x8xf32> to vector<8x8xbf16>
    %c0_74 = arith.constant 0 : index
    %c0_75 = arith.constant 0 : index
    %c0_76 = arith.constant 0 : index
    %c2_77 = arith.constant 2 : index
    %c0_78 = arith.constant 0 : index
    %89 = vector.load %arg4[%c0_74, %c0_75, %c0_76, %c2_77, %c0_78] : memref<1x8x1x4x8xf32, #tpu.memory_space<vmem>>, vector<1x8x1x1x8xf32>
    %90 = vector.shape_cast %89 : vector<1x8x1x1x8xf32> to vector<8x8xf32>
    %91 = arith.truncf %90 : vector<8x8xf32> to vector<8x8xbf16>
    %c0_79 = arith.constant 0 : index
    %c0_80 = arith.constant 0 : index
    %c0_81 = arith.constant 0 : index
    %c2_82 = arith.constant 2 : index
    %c0_83 = arith.constant 0 : index
    %92 = vector.load %arg5[%c0_79, %c0_80, %c0_81, %c2_82, %c0_83] : memref<1x8x1x4x8xf32, #tpu.memory_space<vmem>>, vector<1x8x1x1x8xf32>
    %93 = vector.shape_cast %92 : vector<1x8x1x1x8xf32> to vector<8x8xf32>
    %94 = arith.truncf %93 : vector<8x8xf32> to vector<8x8xbf16>
    %cst_84 = arith.constant dense<0.000000e+00> : vector<8x8xf32>
    %95 = tpu.matmul %88, %91, %cst_84 {dimension_numbers = #tpu.dot_dimension_numbers<[1], [1], [0], [0], [0, 0, 1, 0], [], []>} : vector<8x8xbf16>, vector<8x8xbf16>, vector<8x8xf32> -> vector<8x8xf32>
    %cst_85 = arith.constant 0.353553385 : f32
    %96 = vector.broadcast %cst_85 : f32 to vector<8x8xf32>
    %97 = arith.mulf %95, %96 : vector<8x8xf32>
    %cst_86 = arith.constant -1.000000e+09 : f32
    %98 = vector.broadcast %cst_86 : f32 to vector<8x8xf32>
    %99 = arith.select %11, %97, %98 : vector<8x8xi1>, vector<8x8xf32>
    %c0_87 = arith.constant 0 : index
    %c2_88 = arith.constant 2 : index
    %100 = vector.load %arg9[%c0_87, %c2_88] : memref<8x4xf32, #tpu.memory_space<vmem>>, vector<8x1xf32>
    %cst_89 = arith.constant dense<0xFF800000> : vector<8xf32>
    %101 = vector.multi_reduction <maximumf>, %99, %cst_89 [1] : vector<8x8xf32> to vector<8xf32>
    %102 = vector.shape_cast %101 : vector<8xf32> to vector<8x1xf32>
    %103 = arith.maximumf %100, %102 : vector<8x1xf32>
    %104 = arith.subf %100, %103 : vector<8x1xf32>
    %105 = math.exp %104 : vector<8x1xf32>
    %106 = vector.broadcast %103 : vector<8x1xf32> to vector<8x8xf32>
    %107 = arith.subf %99, %106 : vector<8x8xf32>
    %108 = math.exp %107 : vector<8x8xf32>
    %c0_90 = arith.constant 0 : index
    %c2_91 = arith.constant 2 : index
    %109 = vector.load %arg10[%c0_90, %c2_91] : memref<8x4xf32, #tpu.memory_space<vmem>>, vector<8x1xf32>
    %110 = arith.mulf %105, %109 : vector<8x1xf32>
    %cst_92 = arith.constant dense<0.000000e+00> : vector<8xf32>
    %111 = vector.multi_reduction <add>, %108, %cst_92 [1] : vector<8x8xf32> to vector<8xf32>
    %112 = vector.shape_cast %111 : vector<8xf32> to vector<8x1xf32>
    %113 = arith.addf %110, %112 : vector<8x1xf32>
    %c0_93 = arith.constant 0 : index
    %c2_94 = arith.constant 2 : index
    %114 = vector.load %arg10[%c0_93, %c2_94] : memref<8x4xf32, #tpu.memory_space<vmem>>, vector<8x1xf32>
    tpu.vector_store %arg10[%c0_93, %c2_94], %113 {strides = array<i32>} : memref<8x4xf32, #tpu.memory_space<vmem>>, vector<8x1xf32>,
    %115 = arith.truncf %108 : vector<8x8xf32> to vector<8x8xbf16>
    %cst_95 = arith.constant dense<0.000000e+00> : vector<8x8xf32>
    %116 = tpu.matmul %115, %94, %cst_95 {dimension_numbers = #tpu.dot_dimension_numbers<[1], [0], [0], [1], [0, 0, 1, 1], [], []>} : vector<8x8xbf16>, vector<8x8xbf16>, vector<8x8xf32> -> vector<8x8xf32>
    %c0_96 = arith.constant 0 : index
    %c16 = arith.constant 16 : index
    %117 = vector.load %arg11[%c0_96, %c16] : memref<8x32xf32, #tpu.memory_space<vmem>>, vector<8x8xf32>
    %118 = vector.broadcast %105 : vector<8x1xf32> to vector<8x8xf32>
    %119 = arith.mulf %118, %117 : vector<8x8xf32>
    %120 = arith.addf %119, %116 : vector<8x8xf32>
    %c0_97 = arith.constant 0 : index
    %c16_98 = arith.constant 16 : index
    %121 = vector.load %arg11[%c0_97, %c16_98] : memref<8x32xf32, #tpu.memory_space<vmem>>, vector<8x8xf32>
    tpu.vector_store %arg11[%c0_97, %c16_98], %120 {strides = array<i32>} : memref<8x32xf32, #tpu.memory_space<vmem>>, vector<8x8xf32>,
    %c0_99 = arith.constant 0 : index
    %c2_100 = arith.constant 2 : index
    %122 = vector.load %arg9[%c0_99, %c2_100] : memref<8x4xf32, #tpu.memory_space<vmem>>, vector<8x1xf32>
    tpu.vector_store %arg9[%c0_99, %c2_100], %103 {strides = array<i32>} : memref<8x4xf32, #tpu.memory_space<vmem>>, vector<8x1xf32>,
    %c0_101 = arith.constant 0 : index
    %c0_102 = arith.constant 0 : index
    %c0_103 = arith.constant 0 : index
    %c3 = arith.constant 3 : index
    %c0_104 = arith.constant 0 : index
    %123 = vector.load %arg3[%c0_101, %c0_102, %c0_103, %c3, %c0_104] : memref<1x8x1x4x8xf32, #tpu.memory_space<vmem>>, vector<1x8x1x1x8xf32>
    %124 = vector.shape_cast %123 : vector<1x8x1x1x8xf32> to vector<8x8xf32>
    %125 = arith.truncf %124 : vector<8x8xf32> to vector<8x8xbf16>
    %c0_105 = arith.constant 0 : index
    %c0_106 = arith.constant 0 : index
    %c0_107 = arith.constant 0 : index
    %c3_108 = arith.constant 3 : index
    %c0_109 = arith.constant 0 : index
    %126 = vector.load %arg4[%c0_105, %c0_106, %c0_107, %c3_108, %c0_109] : memref<1x8x1x4x8xf32, #tpu.memory_space<vmem>>, vector<1x8x1x1x8xf32>
    %127 = vector.shape_cast %126 : vector<1x8x1x1x8xf32> to vector<8x8xf32>
    %128 = arith.truncf %127 : vector<8x8xf32> to vector<8x8xbf16>
    %c0_110 = arith.constant 0 : index
    %c0_111 = arith.constant 0 : index
    %c0_112 = arith.constant 0 : index
    %c3_113 = arith.constant 3 : index
    %c0_114 = arith.constant 0 : index
    %129 = vector.load %arg5[%c0_110, %c0_111, %c0_112, %c3_113, %c0_114] : memref<1x8x1x4x8xf32, #tpu.memory_space<vmem>>, vector<1x8x1x1x8xf32>
    %130 = vector.shape_cast %129 : vector<1x8x1x1x8xf32> to vector<8x8xf32>
    %131 = arith.truncf %130 : vector<8x8xf32> to vector<8x8xbf16>
    %cst_115 = arith.constant dense<0.000000e+00> : vector<8x8xf32>
    %132 = tpu.matmul %125, %128, %cst_115 {dimension_numbers = #tpu.dot_dimension_numbers<[1], [1], [0], [0], [0, 0, 1, 0], [], []>} : vector<8x8xbf16>, vector<8x8xbf16>, vector<8x8xf32> -> vector<8x8xf32>
    %cst_116 = arith.constant 0.353553385 : f32
    %133 = vector.broadcast %cst_116 : f32 to vector<8x8xf32>
    %134 = arith.mulf %132, %133 : vector<8x8xf32>
    %cst_117 = arith.constant -1.000000e+09 : f32
    %135 = vector.broadcast %cst_117 : f32 to vector<8x8xf32>
    %136 = arith.select %11, %134, %135 : vector<8x8xi1>, vector<8x8xf32>
    %c0_118 = arith.constant 0 : index
    %c3_119 = arith.constant 3 : index
    %137 = vector.load %arg9[%c0_118, %c3_119] : memref<8x4xf32, #tpu.memory_space<vmem>>, vector<8x1xf32>
    %cst_120 = arith.constant dense<0xFF800000> : vector<8xf32>
    %138 = vector.multi_reduction <maximumf>, %136, %cst_120 [1] : vector<8x8xf32> to vector<8xf32>
    %139 = vector.shape_cast %138 : vector<8xf32> to vector<8x1xf32>
    %140 = arith.maximumf %137, %139 : vector<8x1xf32>
    %141 = arith.subf %137, %140 : vector<8x1xf32>
    %142 = math.exp %141 : vector<8x1xf32>
    %143 = vector.broadcast %140 : vector<8x1xf32> to vector<8x8xf32>
    %144 = arith.subf %136, %143 : vector<8x8xf32>
    %145 = math.exp %144 : vector<8x8xf32>
    %c0_121 = arith.constant 0 : index
    %c3_122 = arith.constant 3 : index
    %146 = vector.load %arg10[%c0_121, %c3_122] : memref<8x4xf32, #tpu.memory_space<vmem>>, vector<8x1xf32>
    %147 = arith.mulf %142, %146 : vector<8x1xf32>
    %cst_123 = arith.constant dense<0.000000e+00> : vector<8xf32>
    %148 = vector.multi_reduction <add>, %145, %cst_123 [1] : vector<8x8xf32> to vector<8xf32>
    %149 = vector.shape_cast %148 : vector<8xf32> to vector<8x1xf32>
    %150 = arith.addf %147, %149 : vector<8x1xf32>
    %c0_124 = arith.constant 0 : index
    %c3_125 = arith.constant 3 : index
    %151 = vector.load %arg10[%c0_124, %c3_125] : memref<8x4xf32, #tpu.memory_space<vmem>>, vector<8x1xf32>
    tpu.vector_store %arg10[%c0_124, %c3_125], %150 {strides = array<i32>} : memref<8x4xf32, #tpu.memory_space<vmem>>, vector<8x1xf32>,
    %152 = arith.truncf %145 : vector<8x8xf32> to vector<8x8xbf16>
    %cst_126 = arith.constant dense<0.000000e+00> : vector<8x8xf32>
    %153 = tpu.matmul %152, %131, %cst_126 {dimension_numbers = #tpu.dot_dimension_numbers<[1], [0], [0], [1], [0, 0, 1, 1], [], []>} : vector<8x8xbf16>, vector<8x8xbf16>, vector<8x8xf32> -> vector<8x8xf32>
    %c0_127 = arith.constant 0 : index
    %c24 = arith.constant 24 : index
    %154 = vector.load %arg11[%c0_127, %c24] : memref<8x32xf32, #tpu.memory_space<vmem>>, vector<8x8xf32>
    %155 = vector.broadcast %142 : vector<8x1xf32> to vector<8x8xf32>
    %156 = arith.mulf %155, %154 : vector<8x8xf32>
    %157 = arith.addf %156, %153 : vector<8x8xf32>
    %c0_128 = arith.constant 0 : index
    %c24_129 = arith.constant 24 : index
    %158 = vector.load %arg11[%c0_128, %c24_129] : memref<8x32xf32, #tpu.memory_space<vmem>>, vector<8x8xf32>
    tpu.vector_store %arg11[%c0_128, %c24_129], %157 {strides = array<i32>} : memref<8x32xf32, #tpu.memory_space<vmem>>, vector<8x8xf32>,
    %c0_130 = arith.constant 0 : index
    %c3_131 = arith.constant 3 : index
    %159 = vector.load %arg9[%c0_130, %c3_131] : memref<8x4xf32, #tpu.memory_space<vmem>>, vector<8x1xf32>
    tpu.vector_store %arg9[%c0_130, %c3_131], %140 {strides = array<i32>} : memref<8x4xf32, #tpu.memory_space<vmem>>, vector<8x1xf32>,
    %c0_i32_132 = arith.constant 0 : i32
    %160 = arith.cmpi eq, %arg2, %c0_i32_132 : i32
    %161 = arith.extui %160 : i1 to i32
    %c0_i32_133 = arith.constant 0 : i32
    %162 = arith.cmpi ne, %161, %c0_i32_133 : i32
    scf.if %162 {
      %c0_134 = arith.constant 0 : index
      %c0_135 = arith.constant 0 : index
      %163 = vector.load %arg11[%c0_134, %c0_135] : memref<8x32xf32, #tpu.memory_space<vmem>>, vector<8x8xf32>
      %c0_136 = arith.constant 0 : index
      %c0_137 = arith.constant 0 : index
      %164 = vector.load %arg10[%c0_136, %c0_137] : memref<8x4xf32, #tpu.memory_space<vmem>>, vector<8x1xf32>
      %165 = vector.broadcast %164 : vector<8x1xf32> to vector<8x8xf32>
      %166 = arith.divf %163, %165 : vector<8x8xf32>
      %c0_138 = arith.constant 0 : index
      %c0_139 = arith.constant 0 : index
      %c0_140 = arith.constant 0 : index
      %167 = vector.load %arg8[%c0_138, %c0_139, %c0_140] : memref<1x8x32xf32, #tpu.memory_space<vmem>>, vector<1x8x8xf32>
      %168 = vector.shape_cast %167 : vector<1x8x8xf32> to vector<8x8xf32>
      %169 = vector.shape_cast %166 : vector<8x8xf32> to vector<1x8x8xf32>
      tpu.vector_store %arg8[%c0_138, %c0_139, %c0_140], %169 {strides = array<i32>} : memref<1x8x32xf32, #tpu.memory_space<vmem>>, vector<1x8x8xf32>,
      %c0_141 = arith.constant 0 : index
      %c8_142 = arith.constant 8 : index
      %170 = vector.load %arg11[%c0_141, %c8_142] : memref<8x32xf32, #tpu.memory_space<vmem>>, vector<8x8xf32>
      %c0_143 = arith.constant 0 : index
      %c1_144 = arith.constant 1 : index
      %171 = vector.load %arg10[%c0_143, %c1_144] : memref<8x4xf32, #tpu.memory_space<vmem>>, vector<8x1xf32>
      %172 = vector.broadcast %171 : vector<8x1xf32> to vector<8x8xf32>
      %173 = arith.divf %170, %172 : vector<8x8xf32>
      %c0_145 = arith.constant 0 : index
      %c0_146 = arith.constant 0 : index
      %c8_147 = arith.constant 8 : index
      %174 = vector.load %arg8[%c0_145, %c0_146, %c8_147] : memref<1x8x32xf32, #tpu.memory_space<vmem>>, vector<1x8x8xf32>
      %175 = vector.shape_cast %174 : vector<1x8x8xf32> to vector<8x8xf32>
      %176 = vector.shape_cast %173 : vector<8x8xf32> to vector<1x8x8xf32>
      tpu.vector_store %arg8[%c0_145, %c0_146, %c8_147], %176 {strides = array<i32>} : memref<1x8x32xf32, #tpu.memory_space<vmem>>, vector<1x8x8xf32>,
      %c0_148 = arith.constant 0 : index
      %c16_149 = arith.constant 16 : index
      %177 = vector.load %arg11[%c0_148, %c16_149] : memref<8x32xf32, #tpu.memory_space<vmem>>, vector<8x8xf32>
      %c0_150 = arith.constant 0 : index
      %c2_151 = arith.constant 2 : index
      %178 = vector.load %arg10[%c0_150, %c2_151] : memref<8x4xf32, #tpu.memory_space<vmem>>, vector<8x1xf32>
      %179 = vector.broadcast %178 : vector<8x1xf32> to vector<8x8xf32>
      %180 = arith.divf %177, %179 : vector<8x8xf32>
      %c0_152 = arith.constant 0 : index
      %c0_153 = arith.constant 0 : index
      %c16_154 = arith.constant 16 : index
      %181 = vector.load %arg8[%c0_152, %c0_153, %c16_154] : memref<1x8x32xf32, #tpu.memory_space<vmem>>, vector<1x8x8xf32>
      %182 = vector.shape_cast %181 : vector<1x8x8xf32> to vector<8x8xf32>
      %183 = vector.shape_cast %180 : vector<8x8xf32> to vector<1x8x8xf32>
      tpu.vector_store %arg8[%c0_152, %c0_153, %c16_154], %183 {strides = array<i32>} : memref<1x8x32xf32, #tpu.memory_space<vmem>>, vector<1x8x8xf32>,
      %c0_155 = arith.constant 0 : index
      %c24_156 = arith.constant 24 : index
      %184 = vector.load %arg11[%c0_155, %c24_156] : memref<8x32xf32, #tpu.memory_space<vmem>>, vector<8x8xf32>
      %c0_157 = arith.constant 0 : index
      %c3_158 = arith.constant 3 : index
      %185 = vector.load %arg10[%c0_157, %c3_158] : memref<8x4xf32, #tpu.memory_space<vmem>>, vector<8x1xf32>
      %186 = vector.broadcast %185 : vector<8x1xf32> to vector<8x8xf32>
      %187 = arith.divf %184, %186 : vector<8x8xf32>
      %c0_159 = arith.constant 0 : index
      %c0_160 = arith.constant 0 : index
      %c24_161 = arith.constant 24 : index
      %188 = vector.load %arg8[%c0_159, %c0_160, %c24_161] : memref<1x8x32xf32, #tpu.memory_space<vmem>>, vector<1x8x8xf32>
      %189 = vector.shape_cast %188 : vector<1x8x8xf32> to vector<8x8xf32>
      %190 = vector.shape_cast %187 : vector<8x8xf32> to vector<1x8x8xf32>
      tpu.vector_store %arg8[%c0_159, %c0_160, %c24_161], %190 {strides = array<i32>} : memref<1x8x32xf32, #tpu.memory_space<vmem>>, vector<1x8x8xf32>,
    } else {
    }
    return
  }
  func.func @transform_0(%arg0: i32, %arg1: i32, %arg2: i32) -> (i32, i32, i32, i32, i32) {
    %c0_i32 = arith.constant 0 : i32
    %c0_i32_0 = arith.constant 0 : i32
    %c0_i32_1 = arith.constant 0 : i32
    %c0_i32_2 = arith.constant 0 : i32
    return %arg0, %arg1, %c0_i32, %c0_i32_0, %c0_i32_1 : i32, i32, i32, i32, i32
  }
  func.func @transform_1(%arg0: i32, %arg1: i32, %arg2: i32) -> (i32, i32, i32, i32, i32) {
    %c0_i32 = arith.constant 0 : i32
    %c0_i32_0 = arith.constant 0 : i32
    %c0_i32_1 = arith.constant 0 : i32
    %c0_i32_2 = arith.constant 0 : i32
    return %arg0, %arg2, %c0_i32, %c0_i32_0, %c0_i32_1 : i32, i32, i32, i32, i32
  }
  func.func @transform_2(%arg0: i32, %arg1: i32, %arg2: i32) -> (i32, i32, i32, i32, i32) {
    %c1_i32 = arith.constant 1 : i32
    %c0_i32 = arith.constant 0 : i32
    %c0_i32_0 = arith.constant 0 : i32
    %c0_i32_1 = arith.constant 0 : i32
    return %arg0, %arg2, %c1_i32, %c0_i32, %c0_i32_0 : i32, i32, i32, i32, i32
  }
  func.func @transform_3(%arg0: i32, %arg1: i32, %arg2: i32) -> (i32, i32, i32) {
    %c0_i32 = arith.constant 0 : i32
    %c0_i32_0 = arith.constant 0 : i32
    return %arg0, %arg1, %c0_i32 : i32, i32, i32
  }
  func.func @transform_4(%arg0: i32, %arg1: i32, %arg2: i32) -> (i32, i32, i32) {
    %c0_i32 = arith.constant 0 : i32
    %c0_i32_0 = arith.constant 0 : i32
    return %arg0, %c0_i32, %arg2 : i32, i32, i32
  }
  func.func @transform_5(%arg0: i32, %arg1: i32, %arg2: i32) -> (i32, i32, i32) {
    %c0_i32 = arith.constant 0 : i32
    %c0_i32_0 = arith.constant 0 : i32
    return %arg0, %arg1, %c0_i32 : i32, i32, i32
  }
}

module attributes {stable_mosaic.version = 11 : i64} {
  func.func @_linear_kernel(%arg0: i32, %arg1: i32, %arg2: i32, %arg3: memref<16x32xf32, #tpu.memory_space<vmem>>, %arg4: memref<32x100xf32, #tpu.memory_space<vmem>>, %arg5: memref<1x100xf32, #tpu.memory_space<vmem>>, %arg6: memref<16x100xf32, #tpu.memory_space<vmem>>, %arg7: memref<16x100xf32, #tpu.memory_space<vmem>>) attributes {dimension_semantics = [#tpu.dimension_semantics<parallel>, #tpu.dimension_semantics<parallel>, #tpu.dimension_semantics<arbitrary>], iteration_bounds = array<i64: 1, 1, 1>, scalar_prefetch = 0 : i64, scratch_operands = 1 : i64, tpu.core_type = #tpu.core_type<tc>, window_params = [{transform_indices = @transform_0, window_bounds = array<i64: 16, 32>}, {transform_indices = @transform_1, window_bounds = array<i64: 32, 100>}, {transform_indices = @transform_2, window_bounds = array<i64: 1, 100>}, {transform_indices = @transform_3, window_bounds = array<i64: 16, 100>}]} {
    %c0_i32 = arith.constant 0 : i32
    %0 = arith.cmpi eq, %arg2, %c0_i32 : i32
    %1 = arith.extui %0 : i1 to i32
    %c0_i32_0 = arith.constant 0 : i32
    %2 = arith.cmpi ne, %1, %c0_i32_0 : i32
    scf.if %2 {
      %cst_10 = arith.constant 0.000000e+00 : f32
      %14 = vector.broadcast %cst_10 : f32 to vector<16x100xf32>
      %c0_11 = arith.constant 0 : index
      %c0_12 = arith.constant 0 : index
      %15 = vector.load %arg7[%c0_11, %c0_12] : memref<16x100xf32, #tpu.memory_space<vmem>>, vector<16x100xf32>
      tpu.vector_store %arg7[%c0_11, %c0_12], %14 {strides = array<i32>} : memref<16x100xf32, #tpu.memory_space<vmem>>, vector<16x100xf32>,
    } else {
    }
    %c0 = arith.constant 0 : index
    %c0_1 = arith.constant 0 : index
    %3 = vector.load %arg7[%c0, %c0_1] : memref<16x100xf32, #tpu.memory_space<vmem>>, vector<16x100xf32>
    %c0_2 = arith.constant 0 : index
    %c0_3 = arith.constant 0 : index
    %4 = vector.load %arg3[%c0_2, %c0_3] : memref<16x32xf32, #tpu.memory_space<vmem>>, vector<16x32xf32>
    %5 = arith.truncf %4 : vector<16x32xf32> to vector<16x32xbf16>
    %c0_4 = arith.constant 0 : index
    %c0_5 = arith.constant 0 : index
    %6 = vector.load %arg4[%c0_4, %c0_5] : memref<32x100xf32, #tpu.memory_space<vmem>>, vector<32x100xf32>
    %7 = arith.truncf %6 : vector<32x100xf32> to vector<32x100xbf16>
    %cst = arith.constant dense<0.000000e+00> : vector<16x100xf32>
    %8 = tpu.matmul %5, %7, %cst {dimension_numbers = #tpu.dot_dimension_numbers<[1], [0], [0], [1], [0, 0, 1, 1], [], []>} : vector<16x32xbf16>, vector<32x100xbf16>, vector<16x100xf32> -> vector<16x100xf32>
    %9 = arith.addf %3, %8 : vector<16x100xf32>
    %c0_6 = arith.constant 0 : index
    %c0_7 = arith.constant 0 : index
    %10 = vector.load %arg7[%c0_6, %c0_7] : memref<16x100xf32, #tpu.memory_space<vmem>>, vector<16x100xf32>
    tpu.vector_store %arg7[%c0_6, %c0_7], %9 {strides = array<i32>} : memref<16x100xf32, #tpu.memory_space<vmem>>, vector<16x100xf32>,
    %c0_i32_8 = arith.constant 0 : i32
    %11 = arith.cmpi eq, %arg2, %c0_i32_8 : i32
    %12 = arith.extui %11 : i1 to i32
    %c0_i32_9 = arith.constant 0 : i32
    %13 = arith.cmpi ne, %12, %c0_i32_9 : i32
    scf.if %13 {
      %c0_10 = arith.constant 0 : index
      %c0_11 = arith.constant 0 : index
      %14 = vector.load %arg7[%c0_10, %c0_11] : memref<16x100xf32, #tpu.memory_space<vmem>>, vector<16x100xf32>
      %c0_12 = arith.constant 0 : index
      %c0_13 = arith.constant 0 : index
      %15 = vector.load %arg5[%c0_12, %c0_13] : memref<1x100xf32, #tpu.memory_space<vmem>>, vector<1x100xf32>
      %16 = vector.broadcast %15 : vector<1x100xf32> to vector<16x100xf32>
      %17 = arith.addf %14, %16 : vector<16x100xf32>
      %c0_14 = arith.constant 0 : index
      %c0_15 = arith.constant 0 : index
      %18 = vector.load %arg6[%c0_14, %c0_15] : memref<16x100xf32, #tpu.memory_space<vmem>>, vector<16x100xf32>
      tpu.vector_store %arg6[%c0_14, %c0_15], %17 {strides = array<i32>} : memref<16x100xf32, #tpu.memory_space<vmem>>, vector<16x100xf32>,
    } else {
    }
    return
  }
  func.func @transform_0(%arg0: i32, %arg1: i32, %arg2: i32) -> (i32, i32) {
    %c0_i32 = arith.constant 0 : i32
    return %arg0, %arg2 : i32, i32
  }
  func.func @transform_1(%arg0: i32, %arg1: i32, %arg2: i32) -> (i32, i32) {
    %c0_i32 = arith.constant 0 : i32
    return %arg2, %arg1 : i32, i32
  }
  func.func @transform_2(%arg0: i32, %arg1: i32, %arg2: i32) -> (i32, i32) {
    %c0_i32 = arith.constant 0 : i32
    %c0_i32_0 = arith.constant 0 : i32
    return %c0_i32, %arg1 : i32, i32
  }
  func.func @transform_3(%arg0: i32, %arg1: i32, %arg2: i32) -> (i32, i32) {
    %c0_i32 = arith.constant 0 : i32
    return %arg0, %arg1 : i32, i32
  }
}

</mosaic_0001>

<bundles_post_ra>
// kernel: transformer_forward.47
= control target key start
LH: loop header
LB: loop body
LE: loop exit
PB: predicated region body
PF: predicated region fallthrough
CT: control target
= control target key end

     0   :  { %vm19_vm0 = vcmask 785408   ;;  %v118_v0 = vmov 0.0   ;;  %vm119_vm1 = vmmov 0   ;;  %vm33_vm2 = vcmask 261120   ;;  %s173_s1 = inlined_call_operand.vmem [shape: f32[32,96], index: 1, kind: input, shape index: {}]   ;;  %s174_s0 = inlined_call_operand.vmem [shape: f32[16,32], index: 0, kind: input, shape index: {}]   ;;  %s175_s2 = inlined_call_operand.vmem [shape: f32[1,96], index: 2, kind: input, shape index: {}]   ;;  %s176_s3 = inlined_call_operand.vmem [shape: f32[16,96], index: 3, kind: output, shape index: {}]  }
   0x1   :  { %108 = vmatprep.subr.bf16.mxu0 %v118_v0  ;;  %v27_v1 = vld [vmem:[%s173_s1] sm:$0xff]  ;;  %v28_v2 = vld [vmem:[%s173_s1 + $0x8] sm:$0xff]  ;;  %v29_v3 = vld [vmem:[%s173_s1 + $0x10] sm:$0xff]  ;;  %112 = vmatprep.mubr.msk.bf16.mxu0 %vm119_vm1, %v118_v0  ;;  %20 = vst.msk [vmem:[#allocation2] sm:$0xff] %vm19_vm0, %v118_v0 }
   0x2   :  { %21 = vst.msk [vmem:[#allocation2 + $0x8] sm:$0xff] %vm19_vm0, %v118_v0  ;;  %v31_v4 = vpack.c.bf16 %v28_v2, %v27_v1  ;;  %v30_v5 = vld [vmem:[%s173_s1 + $0x18] sm:$0xff]  ;;  %v24_v7 = vld [vmem:[%s174_s0] sm:$0xff]  ;;  %v25_v8 = vld [vmem:[%s174_s0 + $0x8] sm:$0xff] }
   0x3   :  { %v32_v6 = vpack.c.bf16 %v30_v5, %v29_v3  ;;  %v26_v9 = vpack.c.bf16 %v25_v8, %v24_v7  ;;  %v104_v18 = vld [vmem:[%s175_s2] ss:$0 sm:$0xff] }
   0x4   :  { %109 = vmatpush3.bf16.msra.mxu0 %v31_v4 }
   0x5   :  { %110 = vmatprep.subr.bf16.mxu0 %v118_v0 }
   0x8   :  { %111 = vmatpush3.bf16.msra.mxu0 %v32_v6  ;;  %v22_v10 = vld [vmem:[#allocation2] sm:$0xff] }
   0x9   :  { %v23_v12 = vld [vmem:[#allocation2 + $0x8] sm:$0xff] }
   0xb   :  { %113 = vmatmul.mubr.msk.bf16.vlgmr.msra.gmra.mrb[0].mxu0 %vm33_vm2, %v26_v9 }
  0xde   :  { %v71_v11 = vpop.f32.mrb[0].mxu0 }
  0xdf   :  { %v78_v13 = vadd.f32 %v71_v11, %v22_v10  ;;  %v114_v14 = vpop.f32.mrb[1].mxu0 }
  0xe0   :  { %v74_v15 = vpop.f32.mrb[2].mxu0 }
  0xe1   :  { %81 = vst.msk [vmem:[#allocation2] sm:$0xff] %vm19_vm0, %v78_v13  ;;  %v79_v16 = vadd.f32 %v74_v15, %v23_v12  ;;  %v115_v17 = vpop.f32.mrb[3].mxu0 }
  0xe3   :  { %82 = vst.msk [vmem:[#allocation2 + $0x8] sm:$0xff] %vm19_vm0, %v79_v16 }
  0xe8   :  { %v86_v19 = vld [vmem:[#allocation2] sm:$0xff] }
  0xe9   :  { %v95_v20 = vadd.f32 %v104_v18, %v86_v19 }
  0xea   :  { %v87_v21 = vld [vmem:[#allocation2 + $0x8] sm:$0xff] }
  0xeb   :  { %97 = vst.msk [vmem:[%s176_s3] sm:$0xff] %vm19_vm0, %v95_v20  ;;  %v96_v22 = vadd.f32 %v104_v18, %v87_v21 }
  0xed   :  { %98 = vst.msk [vmem:[%s176_s3 + $0x8] sm:$0xff] %vm19_vm0, %v96_v22 }

// kernel: transformer_forward.50
= control target key start
LH: loop header
LB: loop body
LE: loop exit
PB: predicated region body
PF: predicated region fallthrough
CT: control target
= control target key end

     0   :  { %vm23_vm0 = vcmask 261120   ;;  %s136_s0 = inlined_call_operand.vmem [shape: f32[16,32], index: 0, kind: input, shape index: {}]   ;;  %s137_s1 = inlined_call_operand.vmem [shape: f32[16,32], index: 1, kind: input, shape index: {}]   ;;  %s138_s2 = inlined_call_operand.vmem [shape: f32[1,32], index: 2, kind: input, shape index: {}]   ;;  %s139_s3 = inlined_call_operand.vmem [shape: f32[1,32], index: 3, kind: input, shape index: {}]   ;;  %s140_s4 = inlined_call_operand.vmem [shape: f32[16,32], index: 4, kind: output, shape index: {}]  }
   0x1   :  { %v17_v0 = vld [vmem:[%s136_s0] sm:$0xff]  ;;  %v18_v2 = vld [vmem:[%s136_s0 + $0x8] sm:$0xff] }
   0x2   :  { %v19_v1 = vld [vmem:[%s137_s1] sm:$0xff]  ;;  %v20_v4 = vld [vmem:[%s137_s1 + $0x8] sm:$0xff] }
   0x3   :  { %v21_v3 = vadd.f32 %v19_v1, %v17_v0  ;;  %v22_v5 = vadd.f32 %v20_v4, %v18_v2  ;;  %v75_v25 = vld [vmem:[%s138_s2] ss:$0 sm:$0xff] }
   0x4   :  { %v76_v27 = vld [vmem:[%s139_s3] ss:$0 sm:$0xff] }
   0x5   :  { %v24_v6 = vsel %vm23_vm0, %v21_v3, 0.0  ;;  %v27_v7 = vsel %vm23_vm0, %v22_v5, 0.0 }
   0x6   :  { %25 = vadd.xlane.f32.xlu0 %v24_v6 }
   0xa   :  { %28 = vadd.xlane.f32.xlu0 %v27_v7 }
  0x93   :  { %v26_v8 = vpop.xlane.xlu0 %25 }
  0x94   :  { %v31_v9 = vmul.f32 0.03125, %v26_v8 }
  0x96   :  { %v33_v10 = vsub.f32 %v21_v3, %v31_v9 }
  0x97   :  { %v29_v11 = vpop.xlane.xlu0 %28 }
  0x98   :  { %v32_v12 = vmul.f32 0.03125, %v29_v11  ;;  %v35_v13 = vmul.f32 %v33_v10, %v33_v10 }
  0x9a   :  { %v34_v14 = vsub.f32 %v22_v5, %v32_v12  ;;  %v37_v15 = vsel %vm23_vm0, %v35_v13, 0.0 }
  0x9b   :  { %38 = vadd.xlane.f32.xlu1 %v37_v15 }
  0x9c   :  { %v36_v16 = vmul.f32 %v34_v14, %v34_v14 }
  0x9e   :  { %v40_v17 = vsel %vm23_vm0, %v36_v16, 0.0 }
  0x9f   :  { %41 = vadd.xlane.f32.xlu1 %v40_v17 }
 0x128   :  { %v39_v18 = vpop.xlane.xlu1 %38 }
 0x129   :  { %v43_v19 = vmul.f32 0.03125, %v39_v18 }
 0x12b   :  { %v45_v20 = vadd.f32 1e-05, %v43_v19 }
 0x12c   :  { %v42_v21 = vpop.xlane.xlu1 %41 }
 0x12d   :  { %77 = vrsqrt.f32 %v45_v20  ;;  %v44_v22 = vmul.f32 0.03125, %v42_v21 }
 0x12f   :  { %v46_v23 = vadd.f32 1e-05, %v44_v22 }
 0x131   :  { %79 = vrsqrt.f32 %v46_v23 }
 0x137   :  { %v78_v24 = vpop.eup %77 }
 0x138   :  { %v49_v26 = vmul.f32 %v78_v24, %v33_v10 }
 0x13a   :  { %v58_v28 = vmul.f32 %v75_v25, %v49_v26 }
 0x13b   :  { %v80_v29 = vpop.eup %79 }
 0x13c   :  { %v67_v30 = vadd.f32 %v76_v27, %v58_v28  ;;  %v50_v31 = vmul.f32 %v80_v29, %v34_v14 }
 0x13e   :  { %69 = vst.msk [vmem:[%s140_s4] sm:$0xff] %vm23_vm0, %v67_v30  ;;  %v59_v32 = vmul.f32 %v75_v25, %v50_v31 }
 0x140   :  { %v68_v33 = vadd.f32 %v76_v27, %v59_v32 }
 0x142   :  { %70 = vst.msk [vmem:[%s140_s4 + $0x8] sm:$0xff] %vm23_vm0, %v68_v33 }

// kernel: transformer_forward.49
= control target key start
LH: loop header
LB: loop body
LE: loop exit
PB: predicated region body
PF: predicated region fallthrough
CT: control target
= control target key end

     0   :  { %vm19_vm0 = vcmask 261120   ;;  %v117_v0 = vmov 0.0   ;;  %vm118_vm1 = vmmov 0   ;;  %s173_s1 = inlined_call_operand.vmem [shape: f32[32,32], index: 1, kind: input, shape index: {}]   ;;  %s174_s0 = inlined_call_operand.vmem [shape: f32[16,32], index: 0, kind: input, shape index: {}]   ;;  %s175_s2 = inlined_call_operand.vmem [shape: f32[1,32], index: 2, kind: input, shape index: {}]   ;;  %s176_s3 = inlined_call_operand.vmem [shape: f32[16,32], index: 3, kind: output, shape index: {}]  }
   0x1   :  { %107 = vmatprep.subr.bf16.mxu0 %v117_v0  ;;  %v27_v1 = vld [vmem:[%s173_s1] sm:$0xff]  ;;  %v28_v2 = vld [vmem:[%s173_s1 + $0x8] sm:$0xff]  ;;  %v29_v3 = vld [vmem:[%s173_s1 + $0x10] sm:$0xff]  ;;  %111 = vmatprep.mubr.msk.bf16.mxu0 %vm118_vm1, %v117_v0  ;;  %20 = vst.msk [vmem:[#allocation2] sm:$0xff] %vm19_vm0, %v117_v0 }
   0x2   :  { %21 = vst.msk [vmem:[#allocation2 + $0x8] sm:$0xff] %vm19_vm0, %v117_v0  ;;  %v31_v4 = vpack.c.bf16 %v28_v2, %v27_v1  ;;  %v30_v5 = vld [vmem:[%s173_s1 + $0x18] sm:$0xff]  ;;  %v24_v7 = vld [vmem:[%s174_s0] sm:$0xff]  ;;  %v25_v8 = vld [vmem:[%s174_s0 + $0x8] sm:$0xff] }
   0x3   :  { %v32_v6 = vpack.c.bf16 %v30_v5, %v29_v3  ;;  %v26_v9 = vpack.c.bf16 %v25_v8, %v24_v7  ;;  %v103_v18 = vld [vmem:[%s175_s2] ss:$0 sm:$0xff] }
   0x4   :  { %108 = vmatpush3.bf16.msra.mxu0 %v31_v4 }
   0x5   :  { %109 = vmatprep.subr.bf16.mxu0 %v117_v0 }
   0x8   :  { %110 = vmatpush3.bf16.msra.mxu0 %v32_v6  ;;  %v22_v10 = vld [vmem:[#allocation2] sm:$0xff] }
   0x9   :  { %v23_v12 = vld [vmem:[#allocation2 + $0x8] sm:$0xff] }
   0xb   :  { %112 = vmatmul.mubr.msk.bf16.vlgmr.msra.gmra.mrb[0].mxu0 %vm19_vm0, %v26_v9 }
  0xde   :  { %v71_v11 = vpop.f32.mrb[0].mxu0 }
  0xdf   :  { %v78_v13 = vadd.f32 %v71_v11, %v22_v10  ;;  %v113_v14 = vpop.f32.mrb[1].mxu0 }
  0xe0   :  { %v74_v15 = vpop.f32.mrb[2].mxu0 }
  0xe1   :  { %80 = vst.msk [vmem:[#allocation2] sm:$0xff] %vm19_vm0, %v78_v13  ;;  %v79_v16 = vadd.f32 %v74_v15, %v23_v12  ;;  %v114_v17 = vpop.f32.mrb[3].mxu0 }
  0xe3   :  { %81 = vst.msk [vmem:[#allocation2 + $0x8] sm:$0xff] %vm19_vm0, %v79_v16 }
  0xe8   :  { %v85_v19 = vld [vmem:[#allocation2] sm:$0xff] }
  0xe9   :  { %v94_v20 = vadd.f32 %v103_v18, %v85_v19 }
  0xea   :  { %v86_v21 = vld [vmem:[#allocation2 + $0x8] sm:$0xff] }
  0xeb   :  { %96 = vst.msk [vmem:[%s176_s3] sm:$0xff] %vm19_vm0, %v94_v20  ;;  %v95_v22 = vadd.f32 %v103_v18, %v86_v21 }
  0xed   :  { %97 = vst.msk [vmem:[%s176_s3 + $0x8] sm:$0xff] %vm19_vm0, %v95_v22 }

// kernel: transformer_forward.39
= control target key start
LH: loop header
LB: loop body
LE: loop exit
PB: predicated region body
PF: predicated region fallthrough
CT: control target
= control target key end

     0   :  { %vm25_vm0 = vcmask 261120   ;;  %v209_v0 = vmov 0.0   ;;  %vm210_vm1 = vmmov 0   ;;  %vm106_vm2 = vcmask 523264   ;;  %s302_s1 = inlined_call_operand.vmem [shape: f32[32,64], index: 1, kind: input, shape index: {}]   ;;  %s303_s3 = inlined_call_operand.vmem [shape: f32[64,32], index: 3, kind: input, shape index: {}]   ;;  %s304_s0 = inlined_call_operand.vmem [shape: f32[16,32], index: 0, kind: input, shape index: {}]   ;;  %s305_s2 = inlined_call_operand.vmem [shape: f32[1,64], index: 2, kind: input, shape index: {}]   ;;  %s306_s4 = inlined_call_operand.vmem [shape: f32[1,32], index: 4, kind: input, shape index: {}]   ;;  %s307_s5 = inlined_call_operand.vmem [shape: f32[16,32], index: 5, kind: output, shape index: {}]  }
   0x1   :  { %187 = vmatprep.subr.bf16.mxu0 %v209_v0  ;;  %v31_v1 = vld [vmem:[%s302_s1] sm:$0xff]  ;;  %v32_v2 = vld [vmem:[%s302_s1 + $0x8] sm:$0xff]  ;;  %v33_v3 = vld [vmem:[%s302_s1 + $0x10] sm:$0xff]  ;;  %191 = vmatprep.mubr.msk.bf16.mxu0 %vm210_vm1, %v209_v0  ;;  %26 = vst.msk [vmem:[#allocation2] sm:$0xff] %vm25_vm0, %v209_v0 }
   0x2   :  { %27 = vst.msk [vmem:[#allocation2 + $0x8] sm:$0xff] %vm25_vm0, %v209_v0  ;;  %v35_v4 = vpack.c.bf16 %v32_v2, %v31_v1  ;;  %v34_v5 = vld [vmem:[%s302_s1 + $0x18] sm:$0xff]  ;;  %195 = vmatprep.subr.bf16.mxu1 %v209_v0  ;;  %203 = vmatprep.mubr.msk.bf16.mxu1 %vm210_vm1, %v209_v0  ;;  %v94_v6 = vld [vmem:[%s303_s3] sm:$0xff]  ;;  %v95_v7 = vld [vmem:[%s303_s3 + $0x8] sm:$0xff] }
   0x3   :  { %v96_v8 = vld [vmem:[%s303_s3 + $0x10] sm:$0xff]  ;;  %v36_v9 = vpack.c.bf16 %v34_v5, %v33_v3  ;;  %v28_v10 = vld [vmem:[%s304_s0] sm:$0xff]  ;;  %v29_v11 = vld [vmem:[%s304_s0 + $0x8] sm:$0xff]  ;;  %v102_v12 = vpack.c.bf16 %v95_v7, %v94_v6 }
   0x4   :  { %188 = vmatpush3.bf16.msra.mxu0 %v35_v4  ;;  %v97_v13 = vld [vmem:[%s303_s3 + $0x18] sm:$0xff]  ;;  %v30_v15 = vpack.c.bf16 %v29_v11, %v28_v10  ;;  %v98_v16 = vld [vmem:[%s303_s3 + $0x20] sm:$0xff]  ;;  %v99_v17 = vld [vmem:[%s303_s3 + $0x28] sm:$0xff] }
   0x5   :  { %189 = vmatprep.subr.bf16.mxu0 %v209_v0  ;;  %196 = vmatpush3.bf16.msra.mxu1 %v102_v12  ;;  %v103_v14 = vpack.c.bf16 %v97_v13, %v96_v8  ;;  %v104_v18 = vpack.c.bf16 %v99_v17, %v98_v16  ;;  %v100_v19 = vld [vmem:[%s303_s3 + $0x30] sm:$0xff]  ;;  %v101_v20 = vld [vmem:[%s303_s3 + $0x38] sm:$0xff]  ;;  %v175_v22 = vld [vmem:[%s305_s2] ss:$0 sm:$0xff] }
   0x6   :  { %197 = vmatprep.subr.bf16.mxu1 %v209_v0  ;;  %v105_v21 = vpack.c.bf16 %v101_v20, %v100_v19  ;;  %v178_v40 = vld [vmem:[%s306_s4] ss:$0 sm:$0xff] }
   0x8   :  { %190 = vmatpush3.bf16.msra.mxu0 %v36_v9  ;;  %v91_v32 = vld [vmem:[#allocation2] sm:$0xff] }
   0x9   :  { %198 = vmatpush3.bf16.msra.mxu1 %v103_v14  ;;  %v92_v34 = vld [vmem:[#allocation2 + $0x8] sm:$0xff] }
   0xa   :  { %199 = vmatprep.subr.bf16.mxu1 %v209_v0 }
   0xb   :  { %192 = vmatmul.mubr.msk.bf16.vlgmr.msra.gmra.mrb[0].mxu0 %vm25_vm0, %v30_v15 }
   0xd   :  { %200 = vmatpush3.bf16.msra.mxu1 %v104_v18 }
   0xe   :  { %201 = vmatprep.subr.bf16.mxu1 %v209_v0 }
  0x11   :  { %202 = vmatpush3.bf16.msra.mxu1 %v105_v21 }
  0xde   :  { %v82_v23 = vpop.f32.mrb[0].mxu0 }
  0xdf   :  { %v83_v24 = vadd.f32 %v175_v22, %v82_v23  ;;  %v193_v25 = vpop.f32.mrb[1].mxu0 }
  0xe0   :  { %v85_v26 = vpop.f32.mrb[2].mxu0 }
  0xe1   :  { %v86_v27 = vadd.f32 %v175_v22, %v85_v26  ;;  %v194_v28 = vpop.f32.mrb[3].mxu0  ;;  %v89_v29 = vmax.f32 %v83_v24, 0.0 }
  0xe3   :  { %v90_v30 = vmax.f32 %v86_v27, 0.0 }
  0xe5   :  { %v93_v31 = vpack.c.bf16 %v90_v30, %v89_v29 }
  0xe7   :  { %204 = vmatmul.mubr.msk.bf16.vlgmr.msra.gmra.mrb[0].mxu1 %vm106_vm2, %v93_v31 }
 0x1ba   :  { %v144_v33 = vpop.f32.mrb[0].mxu1 }
 0x1bb   :  { %v151_v35 = vadd.f32 %v144_v33, %v91_v32  ;;  %v205_v36 = vpop.f32.mrb[1].mxu1 }
 0x1bc   :  { %v147_v37 = vpop.f32.mrb[2].mxu1 }
 0x1bd   :  { %153 = vst.msk [vmem:[#allocation2] sm:$0xff] %vm25_vm0, %v151_v35  ;;  %v152_v38 = vadd.f32 %v147_v37, %v92_v34  ;;  %v206_v39 = vpop.f32.mrb[3].mxu1 }
 0x1bf   :  { %154 = vst.msk [vmem:[#allocation2 + $0x8] sm:$0xff] %vm25_vm0, %v152_v38 }
 0x1c4   :  { %v158_v41 = vld [vmem:[#allocation2] sm:$0xff] }
 0x1c5   :  { %v167_v42 = vadd.f32 %v178_v40, %v158_v41 }
 0x1c6   :  { %v159_v43 = vld [vmem:[#allocation2 + $0x8] sm:$0xff] }
 0x1c7   :  { %169 = vst.msk [vmem:[%s307_s5] sm:$0xff] %vm25_vm0, %v167_v42  ;;  %v168_v44 = vadd.f32 %v178_v40, %v159_v43 }
 0x1c9   :  { %170 = vst.msk [vmem:[%s307_s5 + $0x8] sm:$0xff] %vm25_vm0, %v168_v44 }

// kernel: transformer_forward.52
= control target key start
LH: loop header
LB: loop body
LE: loop exit
PB: predicated region body
PF: predicated region fallthrough
CT: control target
= control target key end

     0   :  { %vm19_vm0 = vcmask 523264   ;;  %v118_v0 = vmov 0.0   ;;  %vm119_vm1 = vmmov 0   ;;  %vm33_vm2 = vcmask 261120   ;;  %s173_s1 = inlined_call_operand.vmem [shape: f32[32,64], index: 1, kind: input, shape index: {}]   ;;  %s174_s0 = inlined_call_operand.vmem [shape: f32[16,32], index: 0, kind: input, shape index: {}]   ;;  %s175_s2 = inlined_call_operand.vmem [shape: f32[1,64], index: 2, kind: input, shape index: {}]   ;;  %s176_s3 = inlined_call_operand.vmem [shape: f32[16,64], index: 3, kind: output, shape index: {}]  }
   0x1   :  { %108 = vmatprep.subr.bf16.mxu0 %v118_v0  ;;  %v27_v1 = vld [vmem:[%s173_s1] sm:$0xff]  ;;  %v28_v2 = vld [vmem:[%s173_s1 + $0x8] sm:$0xff]  ;;  %v29_v3 = vld [vmem:[%s173_s1 + $0x10] sm:$0xff]  ;;  %112 = vmatprep.mubr.msk.bf16.mxu0 %vm119_vm1, %v118_v0  ;;  %20 = vst.msk [vmem:[#allocation2] sm:$0xff] %vm19_vm0, %v118_v0 }
   0x2   :  { %21 = vst.msk [vmem:[#allocation2 + $0x8] sm:$0xff] %vm19_vm0, %v118_v0  ;;  %v31_v4 = vpack.c.bf16 %v28_v2, %v27_v1  ;;  %v30_v5 = vld [vmem:[%s173_s1 + $0x18] sm:$0xff]  ;;  %v24_v7 = vld [vmem:[%s174_s0] sm:$0xff]  ;;  %v25_v8 = vld [vmem:[%s174_s0 + $0x8] sm:$0xff] }
   0x3   :  { %v32_v6 = vpack.c.bf16 %v30_v5, %v29_v3  ;;  %v26_v9 = vpack.c.bf16 %v25_v8, %v24_v7  ;;  %v104_v18 = vld [vmem:[%s175_s2] ss:$0 sm:$0xff] }
   0x4   :  { %109 = vmatpush3.bf16.msra.mxu0 %v31_v4 }
   0x5   :  { %110 = vmatprep.subr.bf16.mxu0 %v118_v0 }
   0x8   :  { %111 = vmatpush3.bf16.msra.mxu0 %v32_v6  ;;  %v22_v10 = vld [vmem:[#allocation2] sm:$0xff] }
   0x9   :  { %v23_v12 = vld [vmem:[#allocation2 + $0x8] sm:$0xff] }
   0xb   :  { %113 = vmatmul.mubr.msk.bf16.vlgmr.msra.gmra.mrb[0].mxu0 %vm33_vm2, %v26_v9 }
  0xde   :  { %v71_v11 = vpop.f32.mrb[0].mxu0 }
  0xdf   :  { %v78_v13 = vadd.f32 %v71_v11, %v22_v10  ;;  %v114_v14 = vpop.f32.mrb[1].mxu0 }
  0xe0   :  { %v74_v15 = vpop.f32.mrb[2].mxu0 }
  0xe1   :  { %81 = vst.msk [vmem:[#allocation2] sm:$0xff] %vm19_vm0, %v78_v13  ;;  %v79_v16 = vadd.f32 %v74_v15, %v23_v12  ;;  %v115_v17 = vpop.f32.mrb[3].mxu0 }
  0xe3   :  { %82 = vst.msk [vmem:[#allocation2 + $0x8] sm:$0xff] %vm19_vm0, %v79_v16 }
  0xe8   :  { %v86_v19 = vld [vmem:[#allocation2] sm:$0xff] }
  0xe9   :  { %v95_v20 = vadd.f32 %v104_v18, %v86_v19 }
  0xea   :  { %v87_v21 = vld [vmem:[#allocation2 + $0x8] sm:$0xff] }
  0xeb   :  { %97 = vst.msk [vmem:[%s176_s3] sm:$0xff] %vm19_vm0, %v95_v20  ;;  %v96_v22 = vadd.f32 %v104_v18, %v87_v21 }
  0xed   :  { %98 = vst.msk [vmem:[%s176_s3 + $0x8] sm:$0xff] %vm19_vm0, %v96_v22 }

// kernel: transformer_forward.48
= control target key start
LH: loop header
LB: loop body
LE: loop exit
PB: predicated region body
PF: predicated region fallthrough
CT: control target
= control target key end

     0   :  { %s2196_s18 = smov 0   ;;  %s2198_s19 = smov 0   ;;  %s2672_s0 = inlined_call_operand.vmem [shape: f32[2,8,3,4,8], index: 0, kind: input, shape index: {}, may-alias: {0,1,2}]   ;;  %s2673_s1 = inlined_call_operand.vmem [shape: f32[2,8,3,4,8], index: 1, kind: input, shape index: {}, may-alias: {0,1,2}]   ;;  %s2674_s2 = inlined_call_operand.vmem [shape: f32[2,8,3,4,8], index: 2, kind: input, shape index: {}, may-alias: {0,1,2}]   ;;  %s2675_s3 = inlined_call_operand.vmem [shape: f32[2,8,1], index: 3, kind: input, shape index: {}]   ;;  %s2676_s4 = inlined_call_operand.vmem [shape: f32[2,1,8], index: 4, kind: input, shape index: {}]   ;;  %s2677_s5 = inlined_call_operand.vmem [shape: f32[2,8,32], index: 5, kind: output, shape index: {}]  }
   0x1   :  { %s2200_s20 = smov 0   ;;  %s2202_s21 = smov 0  }
   0x2   :  { %s2204_s22 = smov 0  }
   0x3 LB: > { %s34_s23 = sadd.s32 1, %s2150_s21  ;;  %p50_p1 = scmp.ne.s32.totalorder %s2142_s19, %s2138_s18  ;;  %s2154_s22 = sphi %s2204_s22, %s15_s22   ;;  %s2150_s21 = sphi %s2202_s21, %s2684_s21   ;;  %s2146_s20 = sphi %s2200_s20, %s2683_s20   ;;  %s2142_s19 = sphi %s2198_s19, %s2682_s19   ;;  %s2138_s18 = sphi %s2196_s18, %s2681_s18  }
   0x4   : > { %p36_p0 = scmp.ge.s32.totalorder %s34_s23, 2  ;;  %p51_p2 = scmp.eq.s32.totalorder %s2154_s22, 0 }
   0x5   : > { %s43_s26 = sadd.s32 1, %s2142_s19  ;;  %p1923_p5 = scmp.ge.s32.totalorder %s2154_s22, 2 }
   0x6   : > { %s2686_s23 = smov (%p36_p0, %s34_s23), 0  ;;  %p2227_p3 = por %p51_p2, %p50_p1 }
   0x7   : > { %s38_s25 = ssub.s32 %s2150_s21, %s2686_s23  ;;  %216 = sbr.rel (%p1923_p5) target bundleno = 44 (0x2c), region = 16 }
   0x8   : > { %p41_p4 = scmp.eq.s32.totalorder %s38_s25, 0 }
   0xa   : > { %s2235_s27 = scalar_select %p41_p4, %s2142_s19, %s43_s26  }
   0xe   : > { %219 = sbr.rel (!%p2227_p3) target bundleno = 24 (0x18), region = 20  ;;  %s221_s28 = sand.u32 (%p2227_p3), 1, %s2142_s19  }
   0xf   : > { %s2027_s29 = smul.u32 (%p2227_p3), 96, %s2150_s21  ;;  %s1924_s30 = sshll.u32 (%p2227_p3), %s221_s28, 5 }
  0x10   : > { %s223_s9 = scalar_lea.vmem (%p2227_p3), [#allocation5], %s1924_s30 }
  0x11   : > { %s229_s8 = scalar_lea.vmem (%p2227_p3), %s2672_s0, %s2027_s29 }
  0x12   : > { %v245_v0 = vld [vmem:[%s229_s8] sm:$0xf] (%p2227_p3)  ;;  %v247_v1 = vld [vmem:[%s229_s8 + $0xc] sm:$0xf] (%p2227_p3)  ;;  %v249_v2 = vld [vmem:[%s229_s8 + $0x18] sm:$0xf] (%p2227_p3) }
  0x13   : > { %246 = vst [vmem:[%s223_s9] sm:$0xf] (%p2227_p3), %v245_v0  ;;  %248 = vst [vmem:[%s223_s9 + $0x4] sm:$0xf] (%p2227_p3), %v247_v1  ;;  %v251_v3 = vld [vmem:[%s229_s8 + $0x24] sm:$0xf] (%p2227_p3) }
  0x14   : > { %250 = vst [vmem:[%s223_s9 + $0x8] sm:$0xf] (%p2227_p3), %v249_v2  ;;  %v253_v4 = vld [vmem:[%s229_s8 + $0x30] sm:$0xf] (%p2227_p3)  ;;  %v255_v5 = vld [vmem:[%s229_s8 + $0x3c] sm:$0xf] (%p2227_p3) }
  0x15   : > { %252 = vst [vmem:[%s223_s9 + $0xc] sm:$0xf] %v251_v3  ;;  %254 = vst [vmem:[%s223_s9 + $0x10] sm:$0xf] %v253_v4  ;;  %v257_v6 = vld [vmem:[%s229_s8 + $0x48] sm:$0xf] }
  0x16   : > { %256 = vst [vmem:[%s223_s9 + $0x14] sm:$0xf] %v255_v5  ;;  %v259_v7 = vld [vmem:[%s229_s8 + $0x54] sm:$0xf]  ;;  %258 = vst [vmem:[%s223_s9 + $0x18] sm:$0xf] %v257_v6 }
  0x17   : > { %260 = vst [vmem:[%s223_s9 + $0x1c] sm:$0xf] %v259_v7 }
  0x18 PF: > { %299 = sbr.rel (!%p2227_p3) target bundleno = 34 (0x22), region = 61  ;;  %s301_s10 = sand.u32 (%p2227_p3), 1, %s2142_s19  }
  0x19   : > { %s1927_s11 = smul.u32 (%p2227_p3), 96, %s2150_s21  ;;  %s1926_s12 = sshll.u32 (%p2227_p3), %s301_s10, 5 }
  0x1a   : > { %s303_s16 = scalar_lea.vmem (%p2227_p3), [#allocation6], %s1926_s12 }
  0x1b   : > { %s1804_s15 = scalar_lea.vmem (%p2227_p3), %s2673_s1, %s1927_s11 }
  0x1c   : > { %v1928_v8 = vld [vmem:[%s1804_s15 + $0x4] sm:$0xf] (%p2227_p3)  ;;  %v1929_v9 = vld [vmem:[%s1804_s15 + $0x10] sm:$0xf] (%p2227_p3)  ;;  %v1930_v10 = vld [vmem:[%s1804_s15 + $0x1c] sm:$0xf] (%p2227_p3) }
  0x1d   : > { %327 = vst [vmem:[%s303_s16] sm:$0xf] (%p2227_p3), %v1928_v8  ;;  %329 = vst [vmem:[%s303_s16 + $0x4] sm:$0xf] (%p2227_p3), %v1929_v9  ;;  %v1931_v11 = vld [vmem:[%s1804_s15 + $0x28] sm:$0xf] (%p2227_p3) }
  0x1e   : > { %331 = vst [vmem:[%s303_s16 + $0x8] sm:$0xf] (%p2227_p3), %v1930_v10  ;;  %v1932_v12 = vld [vmem:[%s1804_s15 + $0x34] sm:$0xf] (%p2227_p3)  ;;  %v1933_v13 = vld [vmem:[%s1804_s15 + $0x40] sm:$0xf] (%p2227_p3) }
  0x1f   : > { %333 = vst [vmem:[%s303_s16 + $0xc] sm:$0xf] %v1931_v11  ;;  %335 = vst [vmem:[%s303_s16 + $0x10] sm:$0xf] %v1932_v12  ;;  %v1934_v14 = vld [vmem:[%s1804_s15 + $0x4c] sm:$0xf] }
  0x20   : > { %337 = vst [vmem:[%s303_s16 + $0x14] sm:$0xf] %v1933_v13  ;;  %v1935_v15 = vld [vmem:[%s1804_s15 + $0x58] sm:$0xf]  ;;  %339 = vst [vmem:[%s303_s16 + $0x18] sm:$0xf] %v1934_v14 }
  0x21   : > { %341 = vst [vmem:[%s303_s16 + $0x1c] sm:$0xf] %v1935_v15 }
  0x22 PF: > { %380 = sbr.rel (!%p2227_p3) target bundleno = 44 (0x2c), region = 102  ;;  %s382_s17 = sand.u32 (%p2227_p3), 1, %s2142_s19  }
  0x23   : > { %s1937_s25 = smul.u32 (%p2227_p3), 96, %s2150_s21  ;;  %s1936_s26 = sshll.u32 (%p2227_p3), %s382_s17, 5 }
  0x24   : > { %s384_s6 = scalar_lea.vmem (%p2227_p3), [#allocation7], %s1936_s26 }
  0x25   : > { %s1812_s30 = scalar_lea.vmem (%p2227_p3), %s2674_s2, %s1937_s25 }
  0x26   : > { %v1938_v16 = vld [vmem:[%s1812_s30 + $0x8] sm:$0xf] (%p2227_p3)  ;;  %v1939_v17 = vld [vmem:[%s1812_s30 + $0x14] sm:$0xf] (%p2227_p3)  ;;  %v1940_v18 = vld [vmem:[%s1812_s30 + $0x20] sm:$0xf] (%p2227_p3) }
  0x27   : > { %408 = vst [vmem:[%s384_s6] sm:$0xf] (%p2227_p3), %v1938_v16  ;;  %410 = vst [vmem:[%s384_s6 + $0x4] sm:$0xf] (%p2227_p3), %v1939_v17  ;;  %v1941_v19 = vld [vmem:[%s1812_s30 + $0x2c] sm:$0xf] (%p2227_p3) }
  0x28   : > { %412 = vst [vmem:[%s384_s6 + $0x8] sm:$0xf] (%p2227_p3), %v1940_v18  ;;  %v1942_v20 = vld [vmem:[%s1812_s30 + $0x38] sm:$0xf] (%p2227_p3)  ;;  %v1943_v21 = vld [vmem:[%s1812_s30 + $0x44] sm:$0xf] (%p2227_p3) }
  0x29   : > { %414 = vst [vmem:[%s384_s6 + $0xc] sm:$0xf] %v1941_v19  ;;  %416 = vst [vmem:[%s384_s6 + $0x10] sm:$0xf] %v1942_v20  ;;  %v1944_v22 = vld [vmem:[%s1812_s30 + $0x50] sm:$0xf] }
  0x2a   : > { %418 = vst [vmem:[%s384_s6 + $0x14] sm:$0xf] %v1943_v21  ;;  %v1945_v23 = vld [vmem:[%s1812_s30 + $0x5c] sm:$0xf]  ;;  %420 = vst [vmem:[%s384_s6 + $0x18] sm:$0xf] %v1944_v22 }
  0x2b   : > { %422 = vst [vmem:[%s384_s6 + $0x1c] sm:$0xf] %v1945_v23 }
  0x2c PF: > { %p1946_p6 = scmp.ge.s32.totalorder %s2154_s22, 1  ;;  %p479_p7 = scmp.lt.s32.totalorder %s2154_s22, 3 }
  0x2e   : > { %p480_p8 = pnand %p1946_p6, %p479_p7 }
  0x2f   : > { %s486_s24 = sand.u32 (!%p480_p8), 1, %s2138_s18   ;;  %v2156_v24 = vmov (!%p480_p8), 0.0   ;;  %vm680_vm0 = vcmask (!%p480_p8), 1041409   ;;  %vm683_vm1 = vcmask (!%p480_p8), 1042434   ;;  %p553_p9 = scmp.lt.s32.totalorder (!%p480_p8), %s2146_s20, 1  ;;  %vm686_vm2 = vcmask (!%p480_p8), 1043459  }
  0x30   : > { %483 = sbr.rel (%p480_p8) target bundleno = 1472 (0x5c0), region = 151  ;;  %1979 = vmatprep.subr.bf16.mxu0 (!%p480_p8), %v2156_v24  ;;  %s2263_s7 = sshll.u32 (!%p480_p8), %s486_s24, 5  ;;  %1985 = vmatprep.subr.bf16.mxu1 (!%p480_p8), %v2156_v24  ;;  %vm689_vm3 = vcmask (!%p480_p8), 1044484   ;;  %vm692_vm4 = vcmask (!%p480_p8), 1045509   ;;  %vm2157_vm5 = vmmov (!%p480_p8), 0   ;;  %v2158_v28 = vmov (!%p480_p8), 0  }
  0x31   : > { %s2268_s8 = scalar_lea.vmem (!%p480_p8), [#allocation6], %s2263_s7  ;;  %1981 = vmatprep.mubr.msk.bf16.mxu0 (!%p480_p8), %vm2157_vm5, %v2156_v24  ;;  %2078 = vset.pattern.permute.xlu0 (!%p480_p8), %v2158_v28  ;;  %vm695_vm6 = vcmask (!%p480_p8), 1046534   ;;  %vm698_vm7 = vcmask (!%p480_p8), 1047559   ;;  %s2285_s18 = scalar_lea.vmem (!%p480_p8), [#allocation5], %s2263_s7  ;;  %vm732_vm8 = vcmask (!%p480_p8), 64512   ;;  %vm578_vm9 = vcmask (!%p480_p8), 31744  }
  0x32   : > { %v631_v25 = vld [vmem:[%s2268_s8] sm:$0x1] (!%p480_p8)  ;;  %v632_v26 = vld [vmem:[%s2268_s8 + $0x4] sm:$0x1] (!%p480_p8)  ;;  %v633_v27 = vld [vmem:[%s2268_s8 + $0x8] sm:$0x1] (!%p480_p8)  ;;  %2079 = vset.pattern.permute.xlu1 (!%p480_p8), %v2158_v28  ;;  %1987 = vmatprep.mubr.msk.bf16.mxu1 (!%p480_p8), %vm2157_vm5, %v2156_v24 }
  0x33   : > { %v634_v29 = vld [vmem:[%s2268_s8 + $0xc] sm:$0x1] (!%p480_p8)  ;;  %v635_v30 = vld [vmem:[%s2268_s8 + $0x10] sm:$0x1] (!%p480_p8)  ;;  %v636_v31 = vld [vmem:[%s2268_s8 + $0x14] sm:$0x1] (!%p480_p8)  ;;  %v639_v32 = vpack.c.bf16 (!%p480_p8), %v631_v25, %v631_v25  ;;  %v640_v33 = vpack.c.bf16 (!%p480_p8), %v632_v26, %v632_v26  ;;  %v641_v34 = vpack.c.bf16 (!%p480_p8), %v633_v27, %v633_v27 }
  0x34   : > { %v637_v35 = vld [vmem:[%s2268_s8 + $0x18] sm:$0x1] (!%p480_p8)  ;;  %v638_v36 = vld [vmem:[%s2268_s8 + $0x1c] sm:$0x1] (!%p480_p8)  ;;  %v642_v37 = vpack.c.bf16 (!%p480_p8), %v634_v29, %v634_v29  ;;  %v643_v38 = vpack.c.bf16 (!%p480_p8), %v635_v30, %v635_v30  ;;  %v644_v39 = vpack.c.bf16 (!%p480_p8), %v636_v31, %v636_v31  ;;  %v615_v40 = vld [vmem:[%s2285_s18] sm:$0x1] (!%p480_p8) }
  0x35   : > { %v645_v41 = vpack.c.bf16 (!%p480_p8), %v637_v35, %v637_v35  ;;  %v646_v42 = vpack.c.bf16 (!%p480_p8), %v638_v36, %v638_v36  ;;  %v709_v43 = vunpack.c.l.b16 (!%p480_p8), %v639_v32  ;;  %v710_v44 = vunpack.c.l.b16 (!%p480_p8), %v640_v33  ;;  %v616_v45 = vld [vmem:[%s2285_s18 + $0x4] sm:$0x1] (!%p480_p8)  ;;  %v617_v50 = vld [vmem:[%s2285_s18 + $0x8] sm:$0x1] (!%p480_p8)  ;;  %v618_v51 = vld [vmem:[%s2285_s18 + $0xc] sm:$0x1] (!%p480_p8) }
  0x36   : > { %v711_v46 = vunpack.c.l.b16 (!%p480_p8), %v641_v34  ;;  %v712_v47 = vunpack.c.l.b16 (!%p480_p8), %v642_v37  ;;  %v713_v48 = vunpack.c.l.b16 (!%p480_p8), %v643_v38  ;;  %v714_v49 = vunpack.c.l.b16 (!%p480_p8), %v644_v39  ;;  %v619_v52 = vld [vmem:[%s2285_s18 + $0x10] sm:$0x1] (!%p480_p8)  ;;  %v620_v56 = vld [vmem:[%s2285_s18 + $0x14] sm:$0x1] (!%p480_p8)  ;;  %v621_v57 = vld [vmem:[%s2285_s18 + $0x18] sm:$0x1] (!%p480_p8) }
  0x37   : > { %v715_v53 = vunpack.c.l.b16 %v645_v41  ;;  %v716_v54 = vunpack.c.l.b16 %v646_v42  ;;  %v717_v55 = vrot.slane %v710_v44, 7  ;;  %v623_v58 = vpack.c.bf16 %v615_v40, %v615_v40  ;;  %s2688_s20 = smov (!%p553_p9, %s2146_s20), 1  ;;  %v622_v63 = vld [vmem:[%s2285_s18 + $0x1c] sm:$0x1]  ;;  %580 = vst.msk [vmem:[#allocation3] sm:$0xff] %vm578_vm9, %v2156_v24  ;;  %s2341_s16 = scalar_lea.vmem [#allocation7], %s2263_s7 }
  0x38   : > { %v719_v59 = vrot.slane %v711_v46, 6  ;;  %v721_v60 = vrot.slane %v712_v47, 5  ;;  %v723_v61 = vrot.slane %v713_v48, 4  ;;  %v725_v62 = vrot.slane %v714_v49, 3  ;;  %s1950_s9 = sshll.u32 %s2688_s20, 3  ;;  %s565_s15 = scalar_lea.vmem %s2676_s4, %s2688_s20 }
  0x39   : > { %v718_v0 = vsel %vm680_vm0, %v717_v55, %v709_v43  ;;  %v727_v1 = vrot.slane %v715_v53, 2  ;;  %v729_v2 = vrot.slane %v716_v54, 1  ;;  %v624_v3 = vpack.c.bf16 %v616_v45, %v616_v45  ;;  %s559_s12 = scalar_lea.vmem %s2675_s3, %s1950_s9  ;;  %v1952_v46 = vld [vmem:[%s565_s15] ss:$0 sm:$0xff]  ;;  %s2163_s17 = smov 8  }
  0x3a   : > { %v720_v4 = vsel %vm683_vm1, %v719_v59, %v718_v0  ;;  %v625_v5 = vpack.c.bf16 %v617_v50, %v617_v50  ;;  %v626_v6 = vpack.c.bf16 %v618_v51, %v618_v51  ;;  %v627_v7 = vpack.c.bf16 %v619_v52, %v619_v52  ;;  %v590_v12 = vld [vmem:[%s559_s12] sm:$0xff]  ;;  %v648_v59 = vld [vmem:[%s2341_s16 + $0x4] sm:$0x1]  ;;  %v927_v51 = vld [vmem:[%s2341_s16 + $0x5] sm:$0x1]  ;;  %s2164_s25 = smov 16   ;;  %s572_s30 = scalar_lea.vmem %s2677_s5, %s1950_s9 }
  0x3b   : > { %v722_v8 = vsel %vm686_vm2, %v721_v60, %v720_v4  ;;  %v628_v9 = vpack.c.bf16 %v620_v56, %v620_v56  ;;  %v629_v10 = vpack.c.bf16 %v621_v57, %v621_v57  ;;  %v630_v11 = vpack.c.bf16 %v622_v63, %v622_v63  ;;  %594 = vperm.xlu0 %2078, %v590_v12   ;;  %v649_v60 = vld [vmem:[%s2341_s16 + $0x8] sm:$0x1]  ;;  %v650_v63 = vld [vmem:[%s2341_s16 + $0xc] sm:$0x1]  ;;  %s2165_s26 = smov 24  }
  0x3c   : > { %v724_v13 = vsel %vm689_vm3, %v723_v61, %v722_v8  ;;  %v671_v14 = vunpack.c.l.b16 %v623_v58  ;;  %v672_v15 = vunpack.c.l.b16 %v624_v3  ;;  %v673_v16 = vunpack.c.l.b16 %v625_v5 }
  0x3d   : > { %v726_v17 = vsel %vm692_vm4, %v725_v62, %v724_v13  ;;  %v674_v18 = vunpack.c.l.b16 %v626_v6  ;;  %v675_v19 = vunpack.c.l.b16 %v627_v7  ;;  %v676_v20 = vunpack.c.l.b16 %v628_v9  ;;  %v647_v62 = vld [vmem:[%s2341_s16] sm:$0x1]  ;;  %v652_v6 = vld [vmem:[%s2341_s16 + $0x14] sm:$0x1] }
  0x3e   : > { %v728_v21 = vsel %vm695_vm6, %v727_v1, %v726_v17  ;;  %v677_v22 = vunpack.c.l.b16 %v629_v10  ;;  %v678_v23 = vunpack.c.l.b16 %v630_v11  ;;  %v679_v25 = vrot.slane %v672_v15, 7  ;;  %v653_v10 = vld [vmem:[%s2341_s16 + $0x18] sm:$0x1] }
  0x3f   : > { %v730_v26 = vsel %vm698_vm7, %v729_v2, %v728_v21  ;;  %v682_v27 = vrot.slane %v673_v16, 6  ;;  %v685_v29 = vrot.slane %v674_v18, 5  ;;  %v688_v30 = vrot.slane %v675_v19, 4  ;;  %v651_v2 = vld [vmem:[%s2341_s16 + $0x10] sm:$0x1] }
  0x40   : > { %v731_v31 = vpack.c.b16 %v730_v26, %v730_v26  ;;  %v681_v32 = vsel %vm680_vm0, %v679_v25, %v671_v14  ;;  %v691_v33 = vrot.slane %v676_v20, 3  ;;  %v694_v35 = vrot.slane %v677_v22, 2  ;;  %v654_v16 = vld [vmem:[%s2341_s16 + $0x1c] sm:$0x1] }
  0x41   : > { %v684_v34 = vsel %vm683_vm1, %v682_v27, %v681_v32  ;;  %v697_v38 = vrot.slane %v678_v23, 1  ;;  %v2159_v44 = vmov -1e+30   ;;  %v605_v45 = vlaneseq }
  0x42   : > { %v737_v36 = vsel %vm732_vm8, %v731_v31, 0  ;;  %v687_v37 = vsel %vm686_vm2, %v685_v29, %v684_v34  ;;  %579 = vst.msk [vmem:[#allocation2] sm:$0xff] %vm578_vm9, %v2159_v44  ;;  %v656_v61 = vpack.c.bf16 %v648_v59, %v648_v59  ;;  %v657_v0 = vpack.c.bf16 %v649_v60, %v649_v60  ;;  %v910_v44 = vld [vmem:[%s2268_s8 + $0x1] sm:$0x1] }
  0x43   : > { %1980 = vmatpush3.bf16.xpose.msra.mxu0 %v737_v36  ;;  %v690_v39 = vsel %vm689_vm3, %v688_v30, %v687_v37  ;;  %v606_v48 = vshrl.u32 %v605_v45, 7  ;;  %v610_v49 = vand.u32 127, %v605_v45  ;;  %v655_v3 = vpack.c.bf16 %v647_v62, %v647_v62  ;;  %v913_v45 = vld [vmem:[%s2268_s8 + $0xd] sm:$0x1] }
  0x44   : > { %v693_v40 = vsel %vm692_vm4, %v691_v33, %v690_v39  ;;  %1997 = vmatprep.subr.bf16.mxu0 %v2156_v24  ;;  %v658_v4 = vpack.c.bf16 %v650_v63, %v650_v63  ;;  %v815_v5 = vunpack.c.l.b16 %v656_v61  ;;  %vm803_vm13 = vcmask 7168   ;;  %v896_v61 = vld [vmem:[%s2285_s18 + $0x9] sm:$0x1]  ;;  %v916_v63 = vld [vmem:[%s2268_s8 + $0x19] sm:$0x1] }
  0x45   : > { %v696_v41 = vsel %vm695_vm6, %v694_v35, %v693_v40  ;;  %vm613_vm10 = vcmp.ge.s32.totalorder %v606_v48, %v610_v49  ;;  %v659_v7 = vpack.c.bf16 %v651_v2, %v651_v2  ;;  %v816_v8 = vunpack.c.l.b16 %v657_v0  ;;  %v914_v49 = vld [vmem:[%s2268_s8 + $0x11] sm:$0x1] }
  0x46   : > { %v699_v42 = vsel %vm698_vm7, %v697_v38, %v696_v41  ;;  %v660_v11 = vpack.c.bf16 %v652_v6, %v652_v6  ;;  %v814_v12 = vunpack.c.l.b16 %v655_v3  ;;  %v817_v13 = vunpack.c.l.b16 %v658_v4  ;;  %v911_v41 = vld [vmem:[%s2268_s8 + $0x5] sm:$0x1]  ;;  %v894_v3 = vld [vmem:[%s2285_s18 + $0x1] sm:$0x1]  ;;  %v897_v6 = vld [vmem:[%s2285_s18 + $0xd] sm:$0x1] }
  0x47   : > { %v700_v43 = vpack.c.b16 %v699_v42, %v699_v42  ;;  %v822_v14 = vrot.slane %v815_v5, 7  ;;  %v661_v17 = vpack.c.bf16 %v653_v10, %v653_v10  ;;  %v818_v18 = vunpack.c.l.b16 %v659_v7  ;;  %v912_v42 = vld [vmem:[%s2268_s8 + $0x9] sm:$0x1] }
  0x48   : > { %v824_v19 = vrot.slane %v816_v8, 6  ;;  %v662_v20 = vpack.c.bf16 %v654_v16, %v654_v16  ;;  %v819_v21 = vunpack.c.l.b16 %v660_v11  ;;  %v826_v23 = vrot.slane %v817_v13, 5  ;;  %v917_v8 = vld [vmem:[%s2268_s8 + $0x1d] sm:$0x1]  ;;  %v898_v16 = vld [vmem:[%s2285_s18 + $0x11] sm:$0x1] }
  0x49   : > { %v2347_v1 = vld [vmem:[#allocation2] sm:$0xff]  ;;  %v823_v22 = vsel %vm680_vm0, %v822_v14, %v814_v12  ;;  %v820_v26 = vunpack.c.l.b16 %v661_v17  ;;  %v828_v29 = vrot.slane %v818_v18, 4  ;;  %vm840_vm14 = vcmask 1043456  }
  0x4a   : > { %1982 = vmatmul.mubr.msk.bf16.vlgmr.msra.gmra.mrb[0].mxu0 %vm732_vm8, %v700_v43  ;;  %v825_v27 = vsel %vm683_vm1, %v824_v19, %v823_v22  ;;  %v821_v30 = vunpack.c.l.b16 %v662_v20  ;;  %v830_v32 = vrot.slane %v819_v21, 3  ;;  %v919_v43 = vpack.c.bf16 %v911_v41, %v911_v41  ;;  %v1186_v21 = vld [vmem:[%s2268_s8 + $0x6] sm:$0x1] }
  0x4b   : > { %1999 = vmatprep.mubr.msk.bf16.mxu0 %vm2157_vm5, %v2156_v24  ;;  %v827_v31 = vsel %vm686_vm2, %v826_v23, %v825_v27  ;;  %v832_v34 = vrot.slane %v820_v26, 2  ;;  %v904_v7 = vpack.c.bf16 %v896_v61, %v896_v61  ;;  %v902_v11 = vpack.c.bf16 %v894_v3, %v894_v3 }
  0x4c   : > { %v829_v33 = vsel %vm689_vm3, %v828_v29, %v827_v31  ;;  %v834_v36 = vrot.slane %v821_v30, 1  ;;  %v982_v48 = vunpack.c.l.b16 %v919_v43  ;;  %v905_v17 = vpack.c.bf16 %v897_v6, %v897_v6  ;;  %v899_v29 = vld [vmem:[%s2285_s18 + $0x15] sm:$0x1]  ;;  %v1461_v6 = vld [vmem:[%s2268_s8 + $0x7] sm:$0x1] }
  0x4d   : > { %v831_v35 = vsel %vm692_vm4, %v830_v32, %v829_v33  ;;  %v925_v18 = vpack.c.bf16 %v917_v8, %v917_v8  ;;  %v952_v20 = vunpack.c.l.b16 %v904_v7  ;;  %v950_v23 = vunpack.c.l.b16 %v902_v11  ;;  %v1187_v33 = vld [vmem:[%s2268_s8 + $0xa] sm:$0x1] }
  0x4e   : > { %v833_v37 = vsel %vm695_vm6, %v832_v34, %v831_v35  ;;  %v906_v30 = vpack.c.bf16 %v898_v16, %v898_v16  ;;  %v953_v32 = vunpack.c.l.b16 %v905_v17  ;;  %v1194_v34 = vpack.c.bf16 %v1186_v21, %v1186_v21  ;;  %v1192_v17 = vld [vmem:[%s2268_s8 + $0x1e] sm:$0x1] }
  0x4f   : > { %v835_v38 = vsel %vm698_vm7, %v834_v36, %v833_v37  ;;  %v988_v35 = vunpack.c.l.b16 %v925_v18  ;;  %v960_v36 = vrot.slane %v952_v20, 6  ;;  %v1185_v37 = vld [vmem:[%s2268_s8 + $0x2] sm:$0x1]  ;;  %v1469_v20 = vpack.c.bf16 %v1461_v6, %v1461_v6 }
  0x50   : > { %v836_v39 = vpack.c.b16 %v835_v38, %v835_v38  ;;  %v954_v43 = vunpack.c.l.b16 %v906_v30  ;;  %v1169_v30 = vld [vmem:[%s2285_s18 + $0x2] sm:$0x1]  ;;  %vm1074_vm15 = vcmask 15368   ;;  %vm581_vm9 = vcmask 261120  }
  0x51   : > { %582 = vst.msk [vmem:[#allocation4] sm:$0xff] %vm581_vm9, %v2156_v24 }
  0x52   : > { %v842_v40 = vsel %vm840_vm14, %v836_v39, 0  ;;  %v900_v39 = vld [vmem:[%s2285_s18 + $0x19] sm:$0x1] }
  0x53   : > { %1986 = vmatpush3.bf16.msra.mxu1 %v842_v40  ;;  %v907_v40 = vpack.c.bf16 %v899_v29, %v899_v29 }
  0x54   : > { %1991 = vmatprep.subr.bf16.mxu1 %v2156_v24 }
  0xba   : > { %v595_v47 = vpop.permute.xlu0 %594 }
  0xbb   : > { %v603_v50 = vmul.f32 %v1952_v46, %v595_v47  ;;  %v920_v46 = vpack.c.bf16 %v912_v42, %v912_v42  ;;  %v918_v47 = vpack.c.bf16 %v910_v44, %v910_v44  ;;  %v1188_v44 = vld [vmem:[%s2268_s8 + $0xe] sm:$0x1] }
  0xbd   : > { %vm604_vm11 = vcmp.gt.f32.partialorder %v603_v50, 0.0  ;;  %v921_v50 = vpack.c.bf16 %v913_v45, %v913_v45  ;;  %v1195_v45 = vpack.c.bf16 %v1187_v33, %v1187_v33  ;;  %v1200_v33 = vpack.c.bf16 %v1192_v17, %v1192_v17  ;;  %v1444_v17 = vld [vmem:[%s2285_s18 + $0x3] sm:$0x1] }
  0xbe   : > { %vm2330_vm12 = vmand %vm604_vm11, %vm613_vm10  ;;  %vm1349_vm10 = vcmask 23568   ;;  %vm1624_vm11 = vcmask 31768  }
  0xbf   : > { %v984_v59 = vunpack.c.l.b16 %v921_v50  ;;  %v901_v50 = vld [vmem:[%s2285_s18 + $0x1d] sm:$0x1] }
  0xc0   : > { %v909_v61 = vpack.c.bf16 %v901_v50, %v901_v50 }
  0xc1   : > { %v993_v5 = vrot.slane %v984_v59, 5  ;;  %v964_v59 = vrot.slane %v954_v43, 4 }
  0xc2   : > { %v2406_v16 = vunpack.c.l.b16 %v909_v61  ;;  %v1173_v61 = vld [vmem:[%s2285_s18 + $0x12] sm:$0x1] }
 0x11d   : > { %v773_v52 = vpop.f32.mrb[0].mxu0 }
 0x11e   : > { %v779_v53 = vmul.f32 0.35355338, %v773_v52  ;;  %v1983_v54 = vpop.f32.mrb[1].mxu0  ;;  %v983_v52 = vunpack.c.l.b16 %v920_v46  ;;  %v962_v46 = vrot.slane %v953_v32, 5 }
 0x11f   : > { %v776_v55 = vpop.f32.mrb[2].mxu0  ;;  %v989_v54 = vrot.slane %v982_v48, 7  ;;  %v1257_v48 = vunpack.c.l.b16 %v1194_v34 }
 0x120   : > { %v1984_v56 = vpop.f32.mrb[3].mxu0  ;;  %v2336_v57 = vsel %vm2330_vm12, %v779_v53, -1e+09  ;;  %v981_v53 = vunpack.c.l.b16 %v918_v47  ;;  %v895_v55 = vld [vmem:[%s2285_s18 + $0x5] sm:$0x1]  ;;  %v991_v60 = vrot.slane %v983_v52, 6  ;;  %v1193_v47 = vpack.c.bf16 %v1185_v37, %v1185_v37 }
 0x121   : > { %v782_v58 = vsel %vm732_vm8, %v2336_v57, -inf  ;;  %v915_v56 = vld [vmem:[%s2268_s8 + $0x15] sm:$0x1]  ;;  %v903_v62 = vpack.c.bf16 %v895_v55, %v895_v55  ;;  %v908_v52 = vpack.c.bf16 %v900_v39, %v900_v39  ;;  %v955_v55 = vunpack.c.l.b16 %v907_v40 }
 0x122   : > { %783 = vmax.xlane.f32.xlu0 %v782_v58  ;;  %v922_v58 = vpack.c.bf16 %v914_v49, %v914_v49  ;;  %v923_v0 = vpack.c.bf16 %v915_v56, %v915_v56  ;;  %v990_v2 = vsel %vm680_vm0, %v989_v54, %v981_v53  ;;  %v1001_v49 = vrot.slane %v988_v35, 1  ;;  %v1189_v56 = vld [vmem:[%s2268_s8 + $0x12] sm:$0x1] }
 0x123   : > { %v992_v10 = vsel %vm683_vm1, %v991_v60, %v990_v2  ;;  %v951_v12 = vunpack.c.l.b16 %v903_v62  ;;  %v1258_v60 = vunpack.c.l.b16 %v1195_v45  ;;  %v1264_v2 = vrot.slane %v1257_v48, 7  ;;  %v1172_v45 = vld [vmem:[%s2285_s18 + $0xe] sm:$0x1] }
 0x124   : > { %v985_v4 = vunpack.c.l.b16 %v922_v58  ;;  %v986_v13 = vunpack.c.l.b16 %v923_v0  ;;  %v994_v19 = vsel %vm686_vm2, %v993_v5, %v992_v10  ;;  %v1196_v58 = vpack.c.bf16 %v1188_v44, %v1188_v44  ;;  %v1191_v10 = vld [vmem:[%s2268_s8 + $0x1a] sm:$0x1] }
 0x125   : > { %v958_v26 = vrot.slane %v951_v12, 7  ;;  %v1256_v0 = vunpack.c.l.b16 %v1193_v47  ;;  %v1197_v5 = vpack.c.bf16 %v1189_v56, %v1189_v56  ;;  %v966_v7 = vrot.slane %v955_v55, 3 }
 0x126   : > { %v995_v14 = vrot.slane %v985_v4, 4  ;;  %v997_v27 = vrot.slane %v986_v13, 3  ;;  %v956_v4 = vunpack.c.l.b16 %v908_v52  ;;  %v1259_v8 = vunpack.c.l.b16 %v1196_v58  ;;  %v1170_v13 = vld [vmem:[%s2285_s18 + $0x6] sm:$0x1]  ;;  %v1464_v52 = vld [vmem:[%s2268_s8 + $0x13] sm:$0x1] }
 0x127   : > { %v959_v41 = vsel %vm680_vm0, %v958_v26, %v950_v23  ;;  %v1266_v12 = vrot.slane %v1258_v60, 6  ;;  %v1265_v18 = vsel %vm680_vm0, %v1264_v2, %v1256_v0  ;;  %v1460_v23 = vld [vmem:[%s2268_s8 + $0x3] sm:$0x1]  ;;  %v1178_v32 = vpack.c.bf16 %v1170_v13, %v1170_v13  ;;  %v1174_v2 = vld [vmem:[%s2285_s18 + $0x16] sm:$0x1] }
 0x128   : > { %v996_v31 = vsel %vm689_vm3, %v995_v14, %v994_v19  ;;  %v961_v53 = vsel %vm683_vm1, %v960_v36, %v959_v41  ;;  %v1462_v19 = vld [vmem:[%s2268_s8 + $0xb] sm:$0x1]  ;;  %v968_v21 = vrot.slane %v956_v4, 2  ;;  %v1268_v29 = vrot.slane %v1259_v8, 5  ;;  %v1463_v36 = vld [vmem:[%s2268_s8 + $0xf] sm:$0x1] }
 0x129   : > { %v998_v42 = vsel %vm692_vm4, %v997_v27, %v996_v31  ;;  %v963_v62 = vsel %vm686_vm2, %v962_v46, %v961_v53  ;;  %v1199_v27 = vpack.c.bf16 %v1191_v10, %v1191_v10  ;;  %v1171_v31 = vld [vmem:[%s2285_s18 + $0xa] sm:$0x1]  ;;  %v1267_v35 = vsel %vm683_vm1, %v1266_v12, %v1265_v18  ;;  %v1175_v18 = vld [vmem:[%s2285_s18 + $0x1a] sm:$0x1] }
 0x12a   : > { %v1470_v37 = vpack.c.bf16 %v1462_v19, %v1462_v19  ;;  %v970_v39 = vrot.slane %v2406_v16, 1  ;;  %v1468_v40 = vpack.c.bf16 %v1460_v23, %v1460_v23  ;;  %v1532_v41 = vunpack.c.l.b16 %v1469_v20 }
 0x12b   : > { %v1177_v46 = vpack.c.bf16 %v1169_v30, %v1169_v30  ;;  %v1179_v47 = vpack.c.bf16 %v1171_v31, %v1171_v31  ;;  %v1226_v50 = vunpack.c.l.b16 %v1178_v32  ;;  %v1471_v53 = vpack.c.bf16 %v1463_v36, %v1463_v36  ;;  %v1447_v30 = vld [vmem:[%s2285_s18 + $0xf] sm:$0x1] }
 0x12c   : > { %v2428_v55 = vunpack.c.l.b16 %v1200_v33  ;;  %v1533_v58 = vunpack.c.l.b16 %v1470_v37  ;;  %v1539_v0 = vrot.slane %v1532_v41, 7  ;;  %v1472_v6 = vpack.c.bf16 %v1464_v52, %v1464_v52 }
 0x12d   : > { %v1227_v4 = vunpack.c.l.b16 %v1179_v47  ;;  %v1534_v8 = vunpack.c.l.b16 %v1471_v53  ;;  %v1181_v13 = vpack.c.bf16 %v1173_v61, %v1173_v61  ;;  %v1182_v19 = vpack.c.bf16 %v1174_v2, %v1174_v2 }
 0x12e   : > { %v1276_v12 = vrot.slane %v2428_v55, 1  ;;  %v1183_v36 = vpack.c.bf16 %v1175_v18, %v1175_v18 }
 0x12f   : > { %v1543_v33 = vrot.slane %v1534_v8, 5  ;;  %v1229_v37 = vunpack.c.l.b16 %v1181_v13  ;;  %v1450_v13 = vld [vmem:[%s2285_s18 + $0x1b] sm:$0x1] }
 0x130   : > { %v1231_v2 = vunpack.c.l.b16 %v1183_v36 }
 0x131   : > { %v1239_v61 = vrot.slane %v1229_v37, 4 }
 0x1af   : > { %v784_v9 = vpop.xlane.xlu0 %783 }
 0x1b0   : > { %v2353_v15 = vmax.f32 %v2347_v1, %v784_v9  ;;  %v924_v9 = vpack.c.bf16 %v916_v63, %v916_v63  ;;  %v1190_v63 = vld [vmem:[%s2268_s8 + $0x16] sm:$0x1] }
 0x1b1   : > { %v1198_v11 = vpack.c.bf16 %v1190_v63, %v1190_v63  ;;  %v1531_v63 = vunpack.c.l.b16 %v1468_v40  ;;  %v1467_v40 = vld [vmem:[%s2268_s8 + $0x1f] sm:$0x1] }
 0x1b2   : > { %v786_v25 = vsub.f32 %v2347_v1, %v2353_v15  ;;  %893 = vst.msk [vmem:[#allocation2] sm:$0xff] %vm803_vm13, %v2353_v15  ;;  %791 = vperm.xlu1 %2079, %v2353_v15   ;;  %v987_v22 = vunpack.c.l.b16 %v924_v9  ;;  %v965_v9 = vsel %vm689_vm3, %v964_v59, %v963_v62  ;;  %v1445_v59 = vld [vmem:[%s2285_s18 + $0x7] sm:$0x1]  ;;  %v1180_v62 = vpack.c.bf16 %v1172_v45, %v1172_v45  ;;  %v1176_v45 = vld [vmem:[%s2285_s18 + $0x1e] sm:$0x1] }
 0x1b3   : > { %v967_v26 = vsel %vm692_vm4, %v966_v7, %v965_v9  ;;  %v1261_v34 = vunpack.c.l.b16 %v1198_v11  ;;  %v1233_v7 = vrot.slane %v1226_v50, 7  ;;  %v1446_v9 = vld [vmem:[%s2285_s18 + $0xb] sm:$0x1]  ;;  %v1453_v10 = vpack.c.bf16 %v1445_v59, %v1445_v59 }
 0x1b4   : > { %v999_v38 = vrot.slane %v987_v22, 2  ;;  %v1260_v22 = vunpack.c.l.b16 %v1197_v5  ;;  %v2422_v43 = vsel %vm695_vm6, %v968_v21, %v967_v26  ;;  %v1465_v5 = vld [vmem:[%s2268_s8 + $0x17] sm:$0x1]  ;;  %v1228_v20 = vunpack.c.l.b16 %v1180_v62  ;;  %v1466_v21 = vld [vmem:[%s2268_s8 + $0x1b] sm:$0x1] }
 0x1b5   : > { %v1272_v56 = vrot.slane %v1261_v34, 3  ;;  %v1540_v23 = vsel %vm680_vm0, %v1539_v0, %v1531_v63  ;;  %v1454_v31 = vpack.c.bf16 %v1446_v9, %v1446_v9  ;;  %v1452_v34 = vpack.c.bf16 %v1444_v17, %v1444_v17  ;;  %v1449_v63 = vld [vmem:[%s2285_s18 + $0x17] sm:$0x1] }
 0x1b6   : > { %v1000_v54 = vsel %vm695_vm6, %v999_v38, %v998_v42  ;;  %v1270_v44 = vrot.slane %v1260_v22, 4  ;;  %v1473_v22 = vpack.c.bf16 %v1465_v5, %v1465_v5  ;;  %v1474_v41 = vpack.c.bf16 %v1466_v21, %v1466_v21 }
 0x1b7   : > { %v1002_v3 = vsel %vm698_vm7, %v1001_v49, %v1000_v54  ;;  %v1269_v49 = vsel %vm686_vm2, %v1268_v29, %v1267_v35  ;;  %v1262_v54 = vunpack.c.l.b16 %v1199_v27  ;;  %v1235_v27 = vrot.slane %v1227_v4, 6 }
 0x1b8   : > { %v1003_v14 = vpack.c.b16 %v1002_v3, %v1002_v3  ;;  %v1225_v3 = vunpack.c.l.b16 %v1177_v46  ;;  %v1535_v29 = vunpack.c.l.b16 %v1472_v6  ;;  %v1501_v35 = vunpack.c.l.b16 %v1453_v10 }
 0x1b9   : > { %v1274_v11 = vrot.slane %v1262_v54, 2  ;;  %v1237_v46 = vrot.slane %v1228_v20, 5  ;;  %v1536_v47 = vunpack.c.l.b16 %v1473_v22  ;;  %v1230_v50 = vunpack.c.l.b16 %v1182_v19 }
 0x1ba   : > { %v2418_v38 = vsel %vm732_vm8, %v1003_v14, 0  ;;  %v1541_v14 = vrot.slane %v1533_v58, 6  ;;  %v1234_v32 = vsel %vm680_vm0, %v1233_v7, %v1225_v3  ;;  %v1545_v53 = vrot.slane %v1535_v29, 4  ;;  %v1451_v29 = vld [vmem:[%s2285_s18 + $0x1f] sm:$0x1] }
 0x1bb   : > { %v1236_v52 = vsel %vm683_vm1, %v1235_v27, %v1234_v32  ;;  %v1502_v54 = vunpack.c.l.b16 %v1454_v31  ;;  %v1475_v55 = vpack.c.bf16 %v1467_v40, %v1467_v40  ;;  %v1500_v58 = vunpack.c.l.b16 %v1452_v34 }
 0x1bc   : > { %v1508_v59 = vrot.slane %v1501_v35, 7  ;;  %v1537_v62 = vunpack.c.l.b16 %v1474_v41  ;;  %v1238_v3 = vsel %vm686_vm2, %v1237_v46, %v1236_v52  ;;  %v1547_v4 = vrot.slane %v1536_v47, 3 }
 0x1bd   : > { %v1510_v9 = vrot.slane %v1502_v54, 6  ;;  %v1241_v10 = vrot.slane %v1230_v50, 3  ;;  %v1240_v18 = vsel %vm689_vm3, %v1239_v61, %v1238_v3  ;;  %v1243_v27 = vrot.slane %v1231_v2, 2 }
 0x1be   : > { %v1509_v17 = vsel %vm680_vm0, %v1508_v59, %v1500_v58  ;;  %v1549_v19 = vrot.slane %v1537_v62, 2  ;;  %v1459_v35 = vpack.c.bf16 %v1451_v29, %v1451_v29  ;;  %v2516_v29 = vld [vmem:[#allocation2] sm:$0xff] }
 0x1bf   : > { %v1242_v31 = vsel %vm692_vm4, %v1241_v10, %v1240_v18 }
 0x1c0   : > { %v1244_v40 = vsel %vm695_vm6, %v1243_v27, %v1242_v31  ;;  %v1507_v47 = vunpack.c.l.b16 %v1459_v35  ;;  %v935_v31 = vpack.c.bf16 %v927_v51, %v927_v51 }
 0x231   : > { %v792_v42 = vpop.permute.xlu1 %791 }
 0x232   : > { %v794_v48 = vsub.f32 %v2336_v57, %v792_v42  ;;  %v1271_v57 = vsel %vm689_vm3, %v1270_v44, %v1269_v49  ;;  %v1542_v42 = vsel %vm683_vm1, %v1541_v14, %v1540_v23  ;;  %v1455_v49 = vpack.c.bf16 %v1447_v30, %v1447_v30 }
 0x233   : > { %v1273_v26 = vsel %vm692_vm4, %v1272_v56, %v1271_v57  ;;  %v1544_v56 = vsel %vm686_vm2, %v1543_v33, %v1542_v42  ;;  %v1457_v14 = vpack.c.bf16 %v1449_v63, %v1449_v63  ;;  %v1458_v30 = vpack.c.bf16 %v1450_v13, %v1450_v13 }
 0x234   : > { %v795_v60 = vmul.f32 1.442695, %v794_v48  ;;  %v1275_v44 = vsel %vm695_vm6, %v1274_v11, %v1273_v26  ;;  %v1448_v48 = vld [vmem:[%s2285_s18 + $0x13] sm:$0x1]  ;;  %v1503_v5 = vunpack.c.l.b16 %v1455_v49  ;;  %v1546_v8 = vsel %vm689_vm3, %v1545_v53, %v1544_v56 }
 0x235   : > { %v1456_v0 = vpack.c.bf16 %v1448_v48, %v1448_v48  ;;  %v1277_v7 = vsel %vm698_vm7, %v1276_v12, %v1275_v44  ;;  %v1538_v11 = vunpack.c.l.b16 %v1475_v55  ;;  %v971_v12 = vsel %vm698_vm7, %v970_v39, %v2422_v43 }
 0x236   : > { %2092 = vpow2.f32 %v795_v60  ;;  %v1184_v60 = vpack.c.bf16 %v1176_v45, %v1176_v45  ;;  %v1548_v22 = vsel %vm692_vm4, %v1547_v4, %v1546_v8  ;;  %v1512_v23 = vrot.slane %v1503_v5, 5 }
 0x237   : > { %v1504_v20 = vunpack.c.l.b16 %v1456_v0  ;;  %v1278_v26 = vpack.c.b16 %v1277_v7, %v1277_v7  ;;  %v1551_v32 = vrot.slane %v1538_v11, 1  ;;  %v1505_v33 = vunpack.c.l.b16 %v1457_v14 }
 0x238   : > { %v1232_v21 = vunpack.c.l.b16 %v1184_v60  ;;  %v972_v34 = vpack.c.b16 %v971_v12, %v971_v12  ;;  %v1550_v16 = vsel %vm695_vm6, %v1549_v19, %v1548_v22  ;;  %v1506_v41 = vunpack.c.l.b16 %v1458_v30 }
 0x239   : > { %v1514_v39 = vrot.slane %v1504_v20, 4  ;;  %v1283_v37 = vsel %vm732_vm8, %v1278_v26, 0  ;;  %v1552_v42 = vsel %vm698_vm7, %v1551_v32, %v1550_v16  ;;  %v1516_v44 = vrot.slane %v1505_v33, 3  ;;  %v926_v32 = vld [vmem:[%s2341_s16 + $0x1] sm:$0x1] }
 0x23a   : > { %v1245_v43 = vrot.slane %v1232_v21, 1  ;;  %v1553_v48 = vpack.c.b16 %v1552_v42, %v1552_v42  ;;  %v1518_v49 = vrot.slane %v1506_v41, 2  ;;  %v1520_v53 = vrot.slane %v1507_v47, 1  ;;  %v929_v33 = vld [vmem:[%s2341_s16 + $0xd] sm:$0x1] }
 0x23b   : > { %v2161_v26 = vmov 2   ;;  %v787_v16 = vmul.f32 1.442695, %v786_v25  ;;  %v937_v35 = vpack.c.bf16 %v929_v33, %v929_v33  ;;  %v932_v42 = vld [vmem:[%s2341_s16 + $0x19] sm:$0x1] }
 0x23c   : > { %v1246_v46 = vsel %vm698_vm7, %v1245_v43, %v1244_v40  ;;  %v1558_v54 = vsel %vm732_vm8, %v1553_v48, 0  ;;  %2081 = vset.pattern.permute.xlu0 %v2161_v26  ;;  %v934_v43 = vpack.c.bf16 %v926_v32, %v926_v32  ;;  %v933_v47 = vld [vmem:[%s2341_s16 + $0x1d] sm:$0x1]  ;;  %v940_v48 = vpack.c.bf16 %v932_v42, %v932_v42  ;;  %v1203_v32 = vld [vmem:[%s2341_s16 + $0xa] sm:$0x1] }
 0x23d   : > { %v1247_v52 = vpack.c.b16 %v1246_v46, %v1246_v46  ;;  %v1088_v46 = vunpack.c.l.b16 %v937_v35  ;;  %2094 = vpow2.f32 %v787_v16 }
 0x240   : > { %v2452_v57 = vpop.eup %2092 }
 0x241   : > { %v805_v6 = vpack.c.bf16 %v2452_v57, %v2452_v57 }
 0x243   : > { %1988 = vmatmul.mubr.msk.bf16.vlgmr.msra.gmra.mrb[0].mxu1 %vm732_vm8, %v805_v6 }
 0x244   : > { %1992 = vmatpush3.bf16.xpose.msra.mxu1 %v2418_v38  ;;  %1993 = vmatprep.mubr.msk.bf16.mxu1 %vm2157_vm5, %v2156_v24  ;;  %v1511_v38 = vsel %vm683_vm1, %v1510_v9, %v1509_v17 }
 0x245   : > { %2003 = vmatprep.subr.bf16.mxu1 %v2156_v24  ;;  %v1513_v36 = vsel %vm686_vm2, %v1512_v23, %v1511_v38  ;;  %v2160_v23 = vmov 1   ;;  %v928_v38 = vld [vmem:[%s2341_s16 + $0x9] sm:$0x1] }
 0x246   : > { %v1515_v45 = vsel %vm689_vm3, %v1514_v39, %v1513_v36  ;;  %2080 = vset.pattern.permute.xlu1 %v2160_v23  ;;  %v930_v39 = vld [vmem:[%s2341_s16 + $0x11] sm:$0x1]  ;;  %v1086_v36 = vunpack.c.l.b16 %v935_v31  ;;  %v1202_v31 = vld [vmem:[%s2341_s16 + $0x6] sm:$0x1] }
 0x247   : > { %v1517_v50 = vsel %vm692_vm4, %v1516_v44, %v1515_v45  ;;  %v938_v40 = vpack.c.bf16 %v930_v39, %v930_v39  ;;  %v1085_v45 = vunpack.c.l.b16 %v934_v43  ;;  %v1210_v33 = vpack.c.bf16 %v1202_v31, %v1202_v31  ;;  %v1205_v39 = vld [vmem:[%s2341_s16 + $0x12] sm:$0x1] }
 0x248   : > { %v1519_v55 = vsel %vm695_vm6, %v1518_v49, %v1517_v50  ;;  %v1093_v15 = vrot.slane %v1086_v36, 7  ;;  %v2162_v49 = vmov 3   ;;  %v941_v50 = vpack.c.bf16 %v933_v47, %v933_v47 }
 0x249   : > { %v1521_v56 = vsel %vm698_vm7, %v1520_v53, %v1519_v55  ;;  %v1089_v1 = vunpack.c.l.b16 %v938_v40  ;;  %v1097_v53 = vrot.slane %v1088_v46, 5  ;;  %v1361_v16 = vunpack.c.l.b16 %v1210_v33  ;;  %v1477_v40 = vld [vmem:[%s2341_s16 + $0x7] sm:$0x1]  ;;  %v1478_v46 = vld [vmem:[%s2341_s16 + $0xb] sm:$0x1] }
 0x24a   : > { %v1522_v58 = vpack.c.b16 %v1521_v56, %v1521_v56  ;;  %v1094_v55 = vsel %vm680_vm0, %v1093_v15, %v1085_v45  ;;  %v1213_v42 = vpack.c.bf16 %v1205_v39, %v1205_v39  ;;  %v1485_v47 = vpack.c.bf16 %v1477_v40, %v1477_v40 }
 0x24b   : > { %1994 = vmatmul.mubr.msk.bf16.vlgmr.msra.gmra.mrb[4].mxu1 %vm732_vm8, %v972_v34  ;;  %v936_v34 = vpack.c.bf16 %v928_v38, %v928_v38  ;;  %v1099_v56 = vrot.slane %v1089_v1, 4 }
 0x24c   : > { %2004 = vmatpush3.bf16.xpose.msra.mxu1 %v1283_v37  ;;  %2005 = vmatprep.mubr.msk.bf16.mxu1 %vm2157_vm5, %v2156_v24  ;;  %v931_v37 = vld [vmem:[%s2341_s16 + $0x15] sm:$0x1] }
 0x24d   : > { %2015 = vmatprep.subr.bf16.mxu1 %v2156_v24  ;;  %v1087_v41 = vunpack.c.l.b16 %v936_v34  ;;  %v939_v44 = vpack.c.bf16 %v931_v37, %v931_v37  ;;  %v1211_v34 = vpack.c.bf16 %v1203_v32, %v1203_v32  ;;  %v1368_v37 = vrot.slane %v1361_v16, 7 }
 0x24f   : > { %v1095_v25 = vrot.slane %v1087_v41, 6  ;;  %v1362_v35 = vunpack.c.l.b16 %v1211_v34  ;;  %v1206_v41 = vld [vmem:[%s2341_s16 + $0x16] sm:$0x1] }
 0x250   : > { %v1214_v1 = vpack.c.bf16 %v1206_v41, %v1206_v41  ;;  %v1483_v41 = vld [vmem:[%s2341_s16 + $0x1f] sm:$0x1] }
 0x251   : > { %v1370_v45 = vrot.slane %v1362_v35, 6 }
 0x253   : > { %2006 = vmatmul.mubr.msk.bf16.vlgmr.msra.gmra.mrb[8].mxu1 %vm732_vm8, %v1247_v52  ;;  %v1090_v52 = vunpack.c.l.b16 %v939_v44 }
 0x254   : > { %2016 = vmatpush3.bf16.xpose.msra.mxu1 %v1558_v54  ;;  %2017 = vmatprep.mubr.msk.bf16.mxu1 %vm2157_vm5, %v2156_v24  ;;  %v1091_v54 = vunpack.c.l.b16 %v940_v48  ;;  %v1207_v48 = vld [vmem:[%s2341_s16 + $0x1a] sm:$0x1] }
 0x25b   : > { %2018 = vmatmul.mubr.msk.bf16.vlgmr.msra.gmra.mrb[12].mxu1 %vm732_vm8, %v1522_v58  ;;  %v1092_v58 = vunpack.c.l.b16 %v941_v50  ;;  %v1364_v50 = vunpack.c.l.b16 %v1213_v42 }
 0x316   : > { %v2494_v59 = vpop.f32.mrb[0].mxu1 }
 0x317   : > { %v1989_v60 = vpop.f32.mrb[1].mxu1 }
 0x318   : > { %v881_v61 = vpop.f32.mrb[2].mxu1  ;;  %v1096_v60 = vsel %vm683_vm1, %v1095_v25, %v1094_v55  ;;  %v1476_v25 = vld [vmem:[%s2341_s16 + $0x3] sm:$0x1]  ;;  %v1208_v55 = vld [vmem:[%s2341_s16 + $0x1e] sm:$0x1] }
 0x319   : > { %v1990_v62 = vpop.f32.mrb[3].mxu1  ;;  %v1101_v61 = vrot.slane %v1090_v52, 3 }
 0x31e   : > { %v1044_v63 = vpop.f32.mrb[4].mxu1 }
 0x31f   : > { %v1050_v0 = vmul.f32 0.35355338, %v1044_v63  ;;  %v1995_v2 = vpop.f32.mrb[5].mxu1 }
 0x320   : > { %v1047_v3 = vpop.f32.mrb[6].mxu1  ;;  %v1103_v2 = vrot.slane %v1091_v54, 2  ;;  %v1486_v54 = vpack.c.bf16 %v1478_v46, %v1478_v46 }
 0x321   : > { %v1996_v4 = vpop.f32.mrb[7].mxu1  ;;  %v2498_v5 = vsel %vm2330_vm12, %v1050_v0, -1e+09  ;;  %v1098_v0 = vsel %vm686_vm2, %v1097_v53, %v1096_v60  ;;  %v1479_v53 = vld [vmem:[%s2341_s16 + $0xf] sm:$0x1]  ;;  %v1484_v60 = vpack.c.bf16 %v1476_v25, %v1476_v25 }
 0x322   : > { %v1053_v6 = vsel %vm732_vm8, %v2498_v5, -inf  ;;  %v1100_v4 = vsel %vm689_vm3, %v1099_v56, %v1098_v0  ;;  %v1215_v56 = vpack.c.bf16 %v1207_v48, %v1207_v48  ;;  %v1374_v0 = vrot.slane %v1364_v50, 4 }
 0x323   : > { %1054 = vmax.xlane.f32.xlu1 %v1053_v6  ;;  %v1105_v6 = vrot.slane %v1092_v58, 1 }
 0x326   : > { %v1319_v7 = vpop.f32.mrb[8].mxu1 }
 0x327   : > { %v1325_v8 = vmul.f32 0.35355338, %v1319_v7  ;;  %v2007_v9 = vpop.f32.mrb[9].mxu1  ;;  %v1102_v7 = vsel %vm692_vm4, %v1101_v61, %v1100_v4  ;;  %v1636_v61 = vunpack.c.l.b16 %v1485_v47  ;;  %v1487_v4 = vpack.c.bf16 %v1479_v53, %v1479_v53 }
 0x328   : > { %v1322_v10 = vpop.f32.mrb[10].mxu1  ;;  %v1104_v9 = vsel %vm695_vm6, %v1103_v2, %v1102_v7  ;;  %v1480_v2 = vld [vmem:[%s2341_s16 + $0x13] sm:$0x1]  ;;  %v1491_v47 = vpack.c.bf16 %v1483_v41, %v1483_v41 }
 0x329   : > { %v2008_v11 = vpop.f32.mrb[11].mxu1  ;;  %v2504_v13 = vsel %vm2330_vm12, %v1325_v8, -1e+09  ;;  %v1106_v10 = vsel %vm698_vm7, %v1105_v6, %v1104_v9  ;;  %v1216_v6 = vpack.c.bf16 %v1208_v55, %v1208_v55  ;;  %v1637_v9 = vunpack.c.l.b16 %v1486_v54 }
 0x32a   : > { %v1328_v14 = vsel %vm732_vm8, %v2504_v13, -inf  ;;  %v1107_v11 = vpack.c.b16 %v1106_v10, %v1106_v10  ;;  %v1366_v10 = vunpack.c.l.b16 %v1215_v56  ;;  %v1638_v31 = vunpack.c.l.b16 %v1487_v4 }
 0x32b   : > { %1329 = vmax.xlane.f32.xlu0 %v1328_v14  ;;  %v2554_v14 = vpop.eup %2094  ;;  %v1367_v33 = vunpack.c.l.b16 %v1216_v6  ;;  %v1642_v55 = vunpack.c.l.b16 %v1491_v47 }
 0x32c   : > { %v1378_v34 = vrot.slane %v1366_v10, 2 }
 0x32d   : > { %v1380_v40 = vrot.slane %v1367_v33, 1  ;;  %v1655_v4 = vrot.slane %v1642_v55, 1 }
 0x32e   : > { %v1594_v17 = vpop.f32.mrb[12].mxu1 }
 0x32f   : > { %v1600_v18 = vmul.f32 0.35355338, %v1594_v17  ;;  %v2019_v19 = vpop.f32.mrb[13].mxu1  ;;  %v1112_v17 = vsel %vm840_vm14, %v1107_v11, 0  ;;  %v1635_v11 = vunpack.c.l.b16 %v1484_v60  ;;  %v884_v60 = vld [vmem:[#allocation4] sm:$0xff] }
 0x330   : > { %v1597_v20 = vpop.f32.mrb[14].mxu1  ;;  %1998 = vmatpush3.bf16.msra.mxu0 %v1112_v17  ;;  %v1643_v17 = vrot.slane %v1636_v61, 7 }
 0x331   : > { %v2020_v12 = vpop.f32.mrb[15].mxu1  ;;  %v2510_v21 = vsel %vm2330_vm12, %v1600_v18, -1e+09  ;;  %2009 = vmatprep.subr.bf16.mxu0 %v2156_v24 }
 0x332   : > { %v1603_v22 = vsel %vm732_vm8, %v2510_v21, -inf  ;;  %v1644_v39 = vsel %vm680_vm0, %v1643_v17, %v1635_v11 }
 0x333   : > { %1604 = vmax.xlane.f32.xlu0 %v1603_v22 }
 0x3b0   : > { %v1055_v27 = vpop.xlane.xlu1 %1054 }
 0x3b1   : > { %v2520_v30 = vmax.f32 %v2516_v29, %v1055_v27  ;;  %v799_v27 = vsel %vm732_vm8, %v2452_v57, 0.0 }
 0x3b3   : > { %1168 = vst.msk [vmem:[#allocation2] sm:$0xff] %vm1074_vm15, %v2520_v30  ;;  %1062 = vperm.xlu1 %2080, %v2520_v30   ;;  %v1057_v22 = vsub.f32 %v2516_v29, %v2520_v30  ;;  %v1201_v29 = vld [vmem:[%s2341_s16 + $0x2] sm:$0x1]  ;;  %v1204_v30 = vld [vmem:[%s2341_s16 + $0xe] sm:$0x1] }
 0x3b4   : > { %v1209_v57 = vpack.c.bf16 %v1201_v29, %v1201_v29  ;;  %v1212_v43 = vpack.c.bf16 %v1204_v30, %v1204_v30  ;;  %v1645_v29 = vrot.slane %v1637_v9, 6 }
 0x3b5   : > { %v1058_v51 = vmul.f32 1.442695, %v1057_v22  ;;  %v1481_v22 = vld [vmem:[%s2341_s16 + $0x17] sm:$0x1] }
 0x3b6   : > { %v1360_v36 = vunpack.c.l.b16 %v1209_v57  ;;  %v1363_v44 = vunpack.c.l.b16 %v1212_v43  ;;  %v1482_v57 = vld [vmem:[%s2341_s16 + $0x1b] sm:$0x1]  ;;  %v1489_v16 = vpack.c.bf16 %v1481_v22, %v1481_v22 }
 0x3b7   : > { %2082 = vset.pattern.permute.xlu1 %v2162_v49  ;;  %2096 = vpow2.f32 %v1058_v51  ;;  %v1490_v42 = vpack.c.bf16 %v1482_v57, %v1482_v57  ;;  %v797_v57 = vld [vmem:[#allocation3] sm:$0xff] }
 0x3b8   : > { %v1330_v62 = vpop.xlane.xlu0 %1329  ;;  %v1369_v15 = vsel %vm680_vm0, %v1368_v37, %v1360_v36  ;;  %v1372_v52 = vrot.slane %v1363_v44, 5  ;;  %v1647_v37 = vrot.slane %v1638_v31, 5  ;;  %v1646_v44 = vsel %vm683_vm1, %v1645_v29, %v1644_v39 }
 0x3b9   : > { %v1371_v58 = vsel %vm683_vm1, %v1370_v45, %v1369_v15  ;;  %v1640_v46 = vunpack.c.l.b16 %v1489_v16  ;;  %v1641_v15 = vunpack.c.l.b16 %v1490_v42  ;;  %vm1166_vm0 = vcmask 130112  }
 0x3ba   : > { %v2538_v63 = vld [vmem:[#allocation2] sm:$0xff]  ;;  %v1373_v7 = vsel %vm686_vm2, %v1372_v52, %v1371_v58  ;;  %v1648_v48 = vsel %vm686_vm2, %v1647_v37, %v1646_v44  ;;  %vm1441_vm1 = vcmask 195712   ;;  %vm1716_vm2 = vcmask 261312  }
 0x3bb   : > { %v2543_v3 = vmax.f32 %v2538_v63, %v1330_v62  ;;  %v1365_v62 = vunpack.c.l.b16 %v1214_v1  ;;  %v1375_v51 = vsel %vm689_vm3, %v1374_v0, %v1373_v7  ;;  %v1651_v25 = vrot.slane %v1640_v46, 3 }
 0x3bc   : > { %v1653_v56 = vrot.slane %v1641_v15, 2 }
 0x3bd   : > { %v1332_v8 = vsub.f32 %v2538_v63, %v2543_v3  ;;  %1443 = vst.msk [vmem:[#allocation2] sm:$0xff] %vm1349_vm10, %v2543_v3  ;;  %1337 = vperm.xlu0 %2081, %v2543_v3   ;;  %v798_v63 = vmul.f32 %v2554_v14, %v797_v57 }
 0x3bf   : > { %v1333_v33 = vmul.f32 1.442695, %v1332_v8 }
 0x3c0   : > { %v1605_v18 = vpop.xlane.xlu0 %1604 }
 0x3c1   : > { %2083 = vset.pattern.permute.xlu0 %v2158_v28  ;;  %v2576_v38 = vpop.eup %2096 }
 0x3c2   : > { %887 = vperm.xlu0 %2083, %v2554_v14  }
 0x3c4   : > { %v2560_v19 = vld [vmem:[#allocation2] sm:$0xff] }
 0x3c5   : > { %v2563_v20 = vmax.f32 %v2560_v19, %v1605_v18  ;;  %v1376_v18 = vrot.slane %v1365_v62, 3 }
 0x3c6   : > { %2086 = vset.pattern.permute.xlu0 %v2162_v49 }
 0x3c7   : > { %v1607_v12 = vsub.f32 %v2560_v19, %v2563_v20  ;;  %1718 = vst.msk [vmem:[#allocation2] sm:$0xff] %vm1624_vm11, %v2563_v20  ;;  %1612 = vperm.xlu1 %2082, %v2563_v20   ;;  %v1377_v43 = vsel %vm692_vm4, %v1376_v18, %v1375_v51 }
 0x3c8   : > { %v1379_v45 = vsel %vm695_vm6, %v1378_v34, %v1377_v43 }
 0x3c9   : > { %v1381_v1 = vsel %vm698_vm7, %v1380_v40, %v1379_v45 }
 0x3ca   : > { %v1382_v54 = vpack.c.b16 %v1381_v1, %v1381_v1 }
 0x3cb   : > { %2084 = vset.pattern.permute.xlu1 %v2160_v23 }
 0x3eb   : > { %800 = vadd.xlane.f32.xlu1 %v799_v27  ;;  %v1488_v27 = vpack.c.bf16 %v1480_v2, %v1480_v2  ;;  %v1387_v2 = vsel %vm840_vm14, %v1382_v54, 0 }
 0x3ed   : > { %v1639_v35 = vunpack.c.l.b16 %v1488_v27 }
 0x3fc   : > { %1157 = vperm.xlu1 %2084, %v2576_v38  }
 0x400   : > { %2085 = vset.pattern.permute.xlu1 %v2161_v26 }
 0x432   : > { %v1063_v32 = vpop.permute.xlu1 %1062 }
 0x433   : > { %v1065_v30 = vsub.f32 %v2498_v5, %v1063_v32  ;;  %v1649_v5 = vrot.slane %v1639_v35, 4  ;;  %v1608_v35 = vmul.f32 1.442695, %v1607_v12 }
 0x435   : > { %v1066_v36 = vmul.f32 1.442695, %v1065_v30  ;;  %v1650_v52 = vsel %vm689_vm3, %v1649_v5, %v1648_v48 }
 0x436   : > { %v1652_v61 = vsel %vm692_vm4, %v1651_v25, %v1650_v52 }
 0x437   : > { %2098 = vpow2.f32 %v1066_v36  ;;  %v1654_v10 = vsel %vm695_vm6, %v1653_v56, %v1652_v61 }
 0x438   : > { %v1656_v11 = vsel %vm698_vm7, %v1655_v4, %v1654_v10 }
 0x439   : > { %v1657_v22 = vpack.c.b16 %v1656_v11, %v1656_v11 }
 0x43b   : > { %v1662_v32 = vsel %vm840_vm14, %v1657_v22, 0 }
 0x43c   : > { %v1338_v50 = vpop.permute.xlu0 %1337 }
 0x43d   : > { %v1340_v53 = vsub.f32 %v2504_v13, %v1338_v50 }
 0x43f   : > { %v1341_v58 = vmul.f32 1.442695, %v1340_v53 }
 0x441   : > { %v2099_v62 = vpop.eup %2098  ;;  %2100 = vpow2.f32 %v1341_v58  ;;  %v888_v0 = vpop.permute.xlu0 %887 }
 0x442   : > { %v890_v6 = vmul.f32 %v888_v0, %v884_v60  ;;  %v1070_v7 = vsel %vm732_vm8, %v2099_v62, 0.0  ;;  %v1076_v9 = vpack.c.bf16 %v2099_v62, %v2099_v62 }
 0x443   : > { %1071 = vadd.xlane.f32.xlu0 %v1070_v7 }
 0x444   : > { %v891_v13 = vadd.f32 %v890_v6, %v2494_v59  ;;  %2000 = vmatmul.mubr.msk.bf16.vlgmr.msra.gmra.mrb[4].mxu0 %vm732_vm8, %v1076_v9 }
 0x445   : > { %2010 = vmatpush3.bf16.msra.mxu0 %v1387_v2  ;;  %2011 = vmatprep.mubr.msk.bf16.mxu0 %vm2157_vm5, %v2156_v24 }
 0x446   : > { %892 = vst.msk [vmem:[#allocation4] sm:$0xff] %vm732_vm8, %v891_v13  ;;  %v1613_v17 = vpop.permute.xlu1 %1612  ;;  %2021 = vmatprep.subr.bf16.mxu0 %v2156_v24 }
 0x447   : > { %v1615_v18 = vsub.f32 %v2510_v21, %v1613_v17 }
 0x449   : > { %v1616_v27 = vmul.f32 1.442695, %v1615_v18 }
 0x44b   : > { %v2101_v51 = vpop.eup %2100  ;;  %2102 = vpow2.f32 %v1616_v27 }
 0x44c   : > { %v1345_v59 = vsel %vm732_vm8, %v2101_v51, 0.0  ;;  %v1351_v31 = vpack.c.bf16 %v2101_v51, %v2101_v51  ;;  %2104 = vpow2.f32 %v1333_v33 }
 0x44d   : > { %1346 = vadd.xlane.f32.xlu1 %v1345_v59  ;;  %2106 = vpow2.f32 %v1608_v35  ;;  %v1154_v53 = vld [vmem:[#allocation4] sm:$0xff] }
 0x44e   : > { %2012 = vmatmul.mubr.msk.bf16.vlgmr.msra.gmra.mrb[8].mxu0 %vm732_vm8, %v1351_v31 }
 0x44f   : > { %2022 = vmatpush3.bf16.msra.mxu0 %v1662_v32  ;;  %2023 = vmatprep.mubr.msk.bf16.mxu0 %vm2157_vm5, %v2156_v24 }
 0x455   : > { %v2103_v21 = vpop.eup %2102 }
 0x456   : > { %v1620_v29 = vsel %vm732_vm8, %v2103_v21, 0.0  ;;  %v1626_v30 = vpack.c.bf16 %v2103_v21, %v2103_v21  ;;  %v2105_v34 = vpop.eup %2104 }
 0x457   : > { %1621 = vadd.xlane.f32.xlu0 %v1620_v29  ;;  %v2107_v41 = vpop.eup %2106 }
 0x458   : > { %2024 = vmatmul.mubr.msk.bf16.vlgmr.msra.gmra.mrb[12].mxu0 %vm732_vm8, %v1626_v30 }
 0x45e   : > { %1432 = vperm.xlu1 %2085, %v2105_v34  }
 0x462   : > { %2087 = vset.pattern.permute.xlu1 %v2158_v28 }
 0x478   : > { %v801_v3 = vpop.xlane.xlu1 %800 }
 0x479   : > { %v802_v8 = vadd.f32 %v801_v3, %v798_v63 }
 0x47b   : > { %804 = vst.msk [vmem:[#allocation3] sm:$0xff] %vm803_vm13, %v802_v8 }
 0x47c   : > { %v1158_v36 = vpop.permute.xlu1 %1157 }
 0x47d   : > { %v1160_v54 = vmul.f32 %v1158_v36, %v1154_v53 }
 0x482   : > { %v1068_v24 = vld [vmem:[#allocation3] sm:$0xff] }
 0x483   : > { %v1069_v16 = vmul.f32 %v2576_v38, %v1068_v24 }
 0x4d0   : > { %v1072_v39 = vpop.xlane.xlu0 %1071 }
 0x4d1   : > { %v1073_v43 = vadd.f32 %v1072_v39, %v1069_v16 }
 0x4d3   : > { %1075 = vst.msk [vmem:[#allocation3] sm:$0xff] %vm1074_vm15, %v1073_v43 }
 0x4da   : > { %v1343_v28 = vld [vmem:[#allocation3] sm:$0xff]  ;;  %v1347_v14 = vpop.xlane.xlu1 %1346 }
 0x4db   : > { %v1344_v37 = vmul.f32 %v2105_v34, %v1343_v28 }
 0x4dd   : > { %v1348_v40 = vadd.f32 %v1347_v14, %v1344_v37 }
 0x4de   : > { %v1433_v60 = vpop.permute.xlu1 %1432 }
 0x4df   : > { %1350 = vst.msk [vmem:[#allocation3] sm:$0xff] %vm1349_vm10, %v1348_v40 }
 0x4e4   : > { %v1622_v38 = vpop.xlane.xlu0 %1621 }
 0x4e6   : > { %v1618_v42 = vld [vmem:[#allocation3] sm:$0xff] }
 0x4e7   : > { %v1619_v44 = vmul.f32 %v2107_v41, %v1618_v42 }
 0x4e9   : > { %v1623_v45 = vadd.f32 %v1622_v38, %v1619_v44 }
 0x4eb   : > { %1625 = vst.msk [vmem:[#allocation3] sm:$0xff] %vm1624_vm11, %v1623_v45 }
 0x4f2   : > { %v1723_v46 = vld [vmem:[#allocation3] sm:$0xff] }
 0x4f3   : > { %1726 = vperm.xlu1 %2087, %v1723_v46  }
 0x4f7   : > { %2089 = vset.pattern.permute.xlu1 %v2161_v26 }
 0x4f8   : > { %1748 = vperm.xlu1 %2089, %v1723_v46  }
 0x4fc   : > { %2090 = vset.pattern.permute.xlu1 %v2162_v49 }
 0x4fd   : > { %1759 = vperm.xlu1 %2090, %v1723_v46  }
 0x517   : > { %v1148_v19 = vpop.f32.mrb[4].mxu0 }
 0x518   : > { %1162 = vrot.lane.b32.xlu0 %v1148_v19, %s2163_s17  ;;  %v2001_v20 = vpop.f32.mrb[5].mxu0 }
 0x519   : > { %v1151_v12 = vpop.f32.mrb[6].mxu0 }
 0x51a   : > { %v2002_v5 = vpop.f32.mrb[7].mxu0 }
 0x51c   : > { %1707 = vperm.xlu0 %2086, %v2107_v41  }
 0x520   : > { %2088 = vset.pattern.permute.xlu0 %v2160_v23 }
 0x521   : > { %v1423_v47 = vpop.f32.mrb[8].mxu0 }
 0x522   : > { %1437 = vrot.lane.b32.xlu0 %v1423_v47, %s2164_s25  ;;  %v2013_v48 = vpop.f32.mrb[9].mxu0 }
 0x523   : > { %v1426_v1 = vpop.f32.mrb[10].mxu0 }
 0x524   : > { %v2014_v15 = vpop.f32.mrb[11].mxu0 }
 0x52b   : > { %v1698_v26 = vpop.f32.mrb[12].mxu0 }
 0x52c   : > { %1712 = vrot.lane.b32.xlu0 %v1698_v26, %s2165_s26  ;;  %v2025_v25 = vpop.f32.mrb[13].mxu0 }
 0x52d   : > { %v1701_v50 = vpop.f32.mrb[14].mxu0 }
 0x52e   : > { %v2026_v52 = vpop.f32.mrb[15].mxu0 }
 0x530   : > { %1737 = vperm.xlu0 %2088, %v1723_v46  }
 0x534   : > { %2091 = vset.pattern.permute.xlu0 %v2162_v49 }
 0x572   : > { %v1727_v2 = vpop.permute.xlu1 %1726 }
 0x573   : > { %2108 = vrcp.f32 %v1727_v2 }
 0x577   : > { %v1749_v4 = vpop.permute.xlu1 %1748 }
 0x57c   : > { %v1760_v10 = vpop.permute.xlu1 %1759 }
 0x57d   : > { %v2109_v11 = vpop.eup %2108 }
 0x58a   : > { %v1163_v55 = vpop.permute.xlu0 %1162 }
 0x58b   : > { %v1165_v23 = vadd.f32 %v1163_v55, %v1160_v54 }
 0x58d   : > { %1167 = vst.msk [vmem:[#allocation4] sm:$0xff] %vm1166_vm0, %v1165_v23 }
 0x594   : > { %v1429_v58 = vld [vmem:[#allocation4] sm:$0xff] }
 0x595   : > { %v1435_v61 = vmul.f32 %v1433_v60, %v1429_v58 }
 0x59b   : > { %v1708_v56 = vpop.permute.xlu0 %1707 }
 0x59f   : > { %v1438_v62 = vpop.permute.xlu0 %1437 }
 0x5a0   : > { %v1440_v0 = vadd.f32 %v1438_v62, %v1435_v61 }
 0x5a2   : > { %1442 = vst.msk [vmem:[#allocation4] sm:$0xff] %vm1441_vm1, %v1440_v0 }
 0x5a3   : > { %v1713_v7 = vpop.permute.xlu0 %1712 }
 0x5a9   : > { %v1704_v49 = vld [vmem:[#allocation4] sm:$0xff] }
 0x5aa   : > { %v1710_v6 = vmul.f32 %v1708_v56, %v1704_v49 }
 0x5ac   : > { %v1715_v9 = vadd.f32 %v1713_v7, %v1710_v6 }
 0x5ae   : > { %1717 = vst.msk [vmem:[#allocation4] sm:$0xff] %vm1716_vm2, %v1715_v9 }
 0x5af   : > { %v1738_v13 = vpop.permute.xlu0 %1737 }
 0x5b0   : > { %2110 = vrcp.f32 %v1738_v13 }
 0x5b1   : > { %2112 = vrcp.f32 %v1749_v4 }
 0x5b2   : > { %2114 = vrcp.f32 %v1760_v10 }
 0x5b5   : > { %v1722_v17 = vld [vmem:[#allocation4] sm:$0xff] }
 0x5b6   : > { %v1730_v18 = vmul.f32 %v2109_v11, %v1722_v17 }
 0x5b8   : > { %1732 = vst.msk [vmem:[%s572_s30] sm:$0xff] %vm732_vm8, %v1730_v18 }
 0x5ba   : > { %v2111_v22 = vpop.eup %2110 }
 0x5bb   : > { %v2113_v27 = vpop.eup %2112  ;;  %v1741_v51 = vmul.f32 %v2111_v22, %v1722_v17 }
 0x5bc   : > { %v2115_v59 = vpop.eup %2114  ;;  %v1752_v31 = vmul.f32 %v2113_v27, %v1722_v17 }
 0x5bd   : > { %v1763_v32 = vmul.f32 %v2115_v59, %v1722_v17  ;;  %1743 = vst.msk [vmem:[%s572_s30] sm:$0xff] %vm1166_vm0, %v1741_v51 }
 0x5be   : > { %1754 = vst.msk [vmem:[%s572_s30] sm:$0xff] %vm1441_vm1, %v1752_v31 }
 0x5bf   : > { %1765 = vst.msk [vmem:[%s572_s30] sm:$0xff] %vm1716_vm2, %v1763_v32 }
 0x5c0 PF: > { %s15_s22 = sadd.s32 1, %s2154_s22   ;;  %s2681_s18 = smov %s2142_s19 }
 0x5c1   : > { %p12_p10 = scmp.ge.s32.totalorder %s15_s22, 4   ;;  %s2682_s19 = smov %s2235_s27 }
 0x5c2   : > { %s2683_s20 = smov %s2150_s21  ;;  %s2684_s21 = smov %s2686_s23 }
 0x5c3   :  { %14 = sbr.rel (!%p12_p10) target bundleno = 3 (0x3), region = 232 }

// kernel: transformer_forward.69
= control target key start
LH: loop header
LB: loop body
LE: loop exit
PB: predicated region body
PF: predicated region fallthrough
CT: control target
= control target key end

     0   :  { %v158_v3 = vmov 0.0   ;;  %vm159_vm0 = vmmov 0   ;;  %vm20_vm1 = vcmask 818176   ;;  %s222_s0 = inlined_call_operand.vmem [shape: f32[16,32], index: 0, kind: input, shape index: {}]   ;;  %s223_s1 = inlined_call_operand.vmem [shape: f32[32,100], index: 1, kind: input, shape index: {}]   ;;  %s224_s2 = inlined_call_operand.vmem [shape: f32[1,100], index: 2, kind: input, shape index: {}]   ;;  %s225_s3 = inlined_call_operand.hbm [shape: f32[16,100], index: 3, kind: output, shape index: {}]  }
   0x1   :  { %v28_v0 = vld [vmem:[%s223_s1] sm:$0xff]  ;;  %v29_v1 = vld [vmem:[%s223_s1 + $0x8] sm:$0xff]  ;;  %v30_v2 = vld [vmem:[%s223_s1 + $0x10] sm:$0xff]  ;;  %121 = vmatprep.subr.bf16.mxu0 %v158_v3  ;;  %125 = vmatprep.mubr.msk.bf16.mxu0 %vm159_vm0, %v158_v3  ;;  %21 = vst.msk [vmem:[#allocation2] sm:$0xff] %vm20_vm1, %v158_v3 }
   0x2   :  { %v32_v4 = vpack.c.bf16 %v29_v1, %v28_v0  ;;  %v31_v5 = vld [vmem:[%s223_s1 + $0x18] sm:$0xff]  ;;  %22 = vst.msk [vmem:[#allocation2 + $0x8] sm:$0xff] %vm20_vm1, %v158_v3 }
   0x3   :  { %8 = vsyncpa [#allocation4], 0  ;;  %v33_v6 = vpack.c.bf16 %v31_v5, %v30_v2  ;;  %v25_v7 = vld [vmem:[%s222_s0] sm:$0xff]  ;;  %v26_v8 = vld [vmem:[%s222_s0 + $0x8] sm:$0xff]  ;;  %vm34_vm2 = vcmask 261120   ;;  %s160_s0 = smov [#allocation3]  }
   0x4   :  { %122 = vmatpush3.bf16.msra.mxu0 %v32_v4  ;;  %v27_v9 = vpack.c.bf16 %v26_v8, %v25_v7  ;;  %v117_v18 = vld [vmem:[%s224_s2] ss:$0 sm:$0xff]  ;;  %s105_s25 = sshll.u32 %s160_s0, 4  ;;  %s106_s25 = int_to_ptr.vmem [resolvable:$true] %s105_s25 }
   0x5   :  { %123 = vmatprep.subr.bf16.mxu0 %v158_v3  ;;  %s134_s26 = scalar_lea.vmem %s106_s25, 256  ;;  %p139_p1 = scmp.lt.s32.totalorder %s106_s25, %s106_s25 }
   0x6   :  { %p135_p0 = scmp.ne.s32.totalorder %s106_s25, %s134_s26  ;;  %p140_p2 = scmp.lt.s32.totalorder %s134_s26, %s134_s26 }
   0x8   :  { %124 = vmatpush3.bf16.msra.mxu0 %v33_v6  ;;  %v23_v10 = vld [vmem:[#allocation2] sm:$0xff]  ;;  %p141_p3 = por %p140_p2, %p139_p1 }
   0x9   :  { %v24_v12 = vld [vmem:[#allocation2 + $0x8] sm:$0xff] }
   0xa   :  { %p142_p4 = pnand %p141_p3, %p135_p0 }
   0xb   :  { %126 = vmatmul.mubr.msk.bf16.vlgmr.msra.gmra.mrb[0].mxu0 %vm34_vm2, %v27_v9 }
  0xde   :  { %v72_v11 = vpop.f32.mrb[0].mxu0 }
  0xdf   :  { %v79_v13 = vadd.f32 %v72_v11, %v23_v10  ;;  %v127_v14 = vpop.f32.mrb[1].mxu0 }
  0xe0   :  { %v75_v15 = vpop.f32.mrb[2].mxu0 }
  0xe1   :  { %82 = vst.msk [vmem:[#allocation2] sm:$0xff] %vm20_vm1, %v79_v13  ;;  %v80_v16 = vadd.f32 %v75_v15, %v24_v12  ;;  %v128_v17 = vpop.f32.mrb[3].mxu0 }
  0xe3   :  { %83 = vst.msk [vmem:[#allocation2 + $0x8] sm:$0xff] %vm20_vm1, %v80_v16 }
  0xe8   :  { %v87_v19 = vld [vmem:[#allocation2] sm:$0xff] }
  0xe9   :  { %v96_v20 = vadd.f32 %v117_v18, %v87_v19 }
  0xea   :  { %v88_v21 = vld [vmem:[#allocation2 + $0x8] sm:$0xff] }
  0xeb   :  { %v97_v22 = vadd.f32 %v117_v18, %v88_v21  ;;  %98 = vst.msk [vmem:[#allocation3] sm:$0xff] %vm20_vm1, %v96_v20 }
  0xed   :  { %99 = vst.msk [vmem:[#allocation3 + $0x8] sm:$0xff] %vm20_vm1, %v97_v22 }
  0xee   :  { %145 = shalt.err (!%p142_p4)
}
  0xef   :  { %s146_s28 = scalar_lea.hbm %s225_s3, 256 }
  0xf0   :  { %p147_p5 = scmp.ne.s32.totalorder %s225_s3, %s146_s28  ;;  %p150_p6 = scmp.lt.u32.totalorder %s146_s28, %s225_s3 }
  0xf2   :  { %p152_p7 = pnand %p150_p6, %p147_p5 }
  0xf4   :  { %155 = shalt.err (!%p152_p7)
}
  0xf5   :  { %s161_s6 = smov 128   ;;  %s162_s7 = smov 8  }
  0xf6   :  { %111 = dma.vmem_to_hbm [thread:$0]  %s106_s25, 256, %s225_s3, [#allocation4], %s161_s6, %s161_s6, %s162_s7  }
  0xf7   :  { %156 = dma.done.wait [#allocation4], 256  }
  0xf8   :  { %157 = vsyncadd [#allocation4], 4294967040 }
  0xf9   :  { %115 = vsyncpa [#allocation4], 1 }

// kernel: transformer_forward.36
= control target key start
LH: loop header
LB: loop body
LE: loop exit
PB: predicated region body
PF: predicated region fallthrough
CT: control target
= control target key end

     0   :  { %s2175_s18 = smov 0   ;;  %s2177_s19 = smov 0   ;;  %s2650_s0 = inlined_call_operand.vmem [shape: f32[2,8,3,4,8], index: 0, kind: input, shape index: {}, may-alias: {0,1,2}]   ;;  %s2651_s1 = inlined_call_operand.vmem [shape: f32[2,8,3,4,8], index: 1, kind: input, shape index: {}, may-alias: {0,1,2}]   ;;  %s2652_s2 = inlined_call_operand.vmem [shape: f32[2,8,3,4,8], index: 2, kind: input, shape index: {}, may-alias: {0,1,2}]   ;;  %s2653_s3 = inlined_call_operand.vmem [shape: f32[2,8,1], index: 3, kind: input, shape index: {}]   ;;  %s2654_s4 = inlined_call_operand.vmem [shape: f32[2,1,8], index: 4, kind: input, shape index: {}]   ;;  %s2655_s5 = inlined_call_operand.vmem [shape: f32[2,8,32], index: 5, kind: output, shape index: {}]  }
   0x1   :  { %s2179_s20 = smov 0   ;;  %s2181_s21 = smov 0  }
   0x2   :  { %s2183_s22 = smov 0  }
   0x3 LB: > { %s34_s23 = sadd.s32 1, %s2129_s21  ;;  %p50_p1 = scmp.ne.s32.totalorder %s2121_s19, %s2117_s18  ;;  %s2133_s22 = sphi %s2183_s22, %s15_s22   ;;  %s2129_s21 = sphi %s2181_s21, %s2660_s21   ;;  %s2125_s20 = sphi %s2179_s20, %s2659_s20   ;;  %s2121_s19 = sphi %s2177_s19, %s2658_s19   ;;  %s2117_s18 = sphi %s2175_s18, %s2657_s18  }
   0x4   : > { %p36_p0 = scmp.ge.s32.totalorder %s34_s23, 2  ;;  %p51_p2 = scmp.eq.s32.totalorder %s2133_s22, 0 }
   0x5   : > { %s43_s26 = sadd.s32 1, %s2121_s19  ;;  %p1902_p5 = scmp.ge.s32.totalorder %s2133_s22, 2 }
   0x6   : > { %s2662_s23 = smov (%p36_p0, %s34_s23), 0  ;;  %p2206_p3 = por %p51_p2, %p50_p1 }
   0x7   : > { %s38_s25 = ssub.s32 %s2129_s21, %s2662_s23  ;;  %216 = sbr.rel (%p1902_p5) target bundleno = 44 (0x2c), region = 16 }
   0x8   : > { %p41_p4 = scmp.eq.s32.totalorder %s38_s25, 0 }
   0xa   : > { %s2214_s27 = scalar_select %p41_p4, %s2121_s19, %s43_s26  }
   0xe   : > { %219 = sbr.rel (!%p2206_p3) target bundleno = 24 (0x18), region = 20  ;;  %s221_s28 = sand.u32 (%p2206_p3), 1, %s2121_s19  }
   0xf   : > { %s2006_s29 = smul.u32 (%p2206_p3), 96, %s2129_s21  ;;  %s1903_s30 = sshll.u32 (%p2206_p3), %s221_s28, 5 }
  0x10   : > { %s223_s9 = scalar_lea.vmem (%p2206_p3), [#allocation5], %s1903_s30 }
  0x11   : > { %s229_s8 = scalar_lea.vmem (%p2206_p3), %s2650_s0, %s2006_s29 }
  0x12   : > { %v245_v0 = vld [vmem:[%s229_s8] sm:$0xf] (%p2206_p3)  ;;  %v247_v1 = vld [vmem:[%s229_s8 + $0xc] sm:$0xf] (%p2206_p3)  ;;  %v249_v2 = vld [vmem:[%s229_s8 + $0x18] sm:$0xf] (%p2206_p3) }
  0x13   : > { %246 = vst [vmem:[%s223_s9] sm:$0xf] (%p2206_p3), %v245_v0  ;;  %248 = vst [vmem:[%s223_s9 + $0x4] sm:$0xf] (%p2206_p3), %v247_v1  ;;  %v251_v3 = vld [vmem:[%s229_s8 + $0x24] sm:$0xf] (%p2206_p3) }
  0x14   : > { %250 = vst [vmem:[%s223_s9 + $0x8] sm:$0xf] (%p2206_p3), %v249_v2  ;;  %v253_v4 = vld [vmem:[%s229_s8 + $0x30] sm:$0xf] (%p2206_p3)  ;;  %v255_v5 = vld [vmem:[%s229_s8 + $0x3c] sm:$0xf] (%p2206_p3) }
  0x15   : > { %252 = vst [vmem:[%s223_s9 + $0xc] sm:$0xf] %v251_v3  ;;  %254 = vst [vmem:[%s223_s9 + $0x10] sm:$0xf] %v253_v4  ;;  %v257_v6 = vld [vmem:[%s229_s8 + $0x48] sm:$0xf] }
  0x16   : > { %256 = vst [vmem:[%s223_s9 + $0x14] sm:$0xf] %v255_v5  ;;  %v259_v7 = vld [vmem:[%s229_s8 + $0x54] sm:$0xf]  ;;  %258 = vst [vmem:[%s223_s9 + $0x18] sm:$0xf] %v257_v6 }
  0x17   : > { %260 = vst [vmem:[%s223_s9 + $0x1c] sm:$0xf] %v259_v7 }
  0x18 PF: > { %299 = sbr.rel (!%p2206_p3) target bundleno = 34 (0x22), region = 61  ;;  %s301_s10 = sand.u32 (%p2206_p3), 1, %s2121_s19  }
  0x19   : > { %s1906_s11 = smul.u32 (%p2206_p3), 96, %s2129_s21  ;;  %s1905_s12 = sshll.u32 (%p2206_p3), %s301_s10, 5 }
  0x1a   : > { %s303_s16 = scalar_lea.vmem (%p2206_p3), [#allocation6], %s1905_s12 }
  0x1b   : > { %s1783_s15 = scalar_lea.vmem (%p2206_p3), %s2651_s1, %s1906_s11 }
  0x1c   : > { %v1907_v8 = vld [vmem:[%s1783_s15 + $0x4] sm:$0xf] (%p2206_p3)  ;;  %v1908_v9 = vld [vmem:[%s1783_s15 + $0x10] sm:$0xf] (%p2206_p3)  ;;  %v1909_v10 = vld [vmem:[%s1783_s15 + $0x1c] sm:$0xf] (%p2206_p3) }
  0x1d   : > { %327 = vst [vmem:[%s303_s16] sm:$0xf] (%p2206_p3), %v1907_v8  ;;  %329 = vst [vmem:[%s303_s16 + $0x4] sm:$0xf] (%p2206_p3), %v1908_v9  ;;  %v1910_v11 = vld [vmem:[%s1783_s15 + $0x28] sm:$0xf] (%p2206_p3) }
  0x1e   : > { %331 = vst [vmem:[%s303_s16 + $0x8] sm:$0xf] (%p2206_p3), %v1909_v10  ;;  %v1911_v12 = vld [vmem:[%s1783_s15 + $0x34] sm:$0xf] (%p2206_p3)  ;;  %v1912_v13 = vld [vmem:[%s1783_s15 + $0x40] sm:$0xf] (%p2206_p3) }
  0x1f   : > { %333 = vst [vmem:[%s303_s16 + $0xc] sm:$0xf] %v1910_v11  ;;  %335 = vst [vmem:[%s303_s16 + $0x10] sm:$0xf] %v1911_v12  ;;  %v1913_v14 = vld [vmem:[%s1783_s15 + $0x4c] sm:$0xf] }
  0x20   : > { %337 = vst [vmem:[%s303_s16 + $0x14] sm:$0xf] %v1912_v13  ;;  %v1914_v15 = vld [vmem:[%s1783_s15 + $0x58] sm:$0xf]  ;;  %339 = vst [vmem:[%s303_s16 + $0x18] sm:$0xf] %v1913_v14 }
  0x21   : > { %341 = vst [vmem:[%s303_s16 + $0x1c] sm:$0xf] %v1914_v15 }
  0x22 PF: > { %380 = sbr.rel (!%p2206_p3) target bundleno = 44 (0x2c), region = 102  ;;  %s382_s17 = sand.u32 (%p2206_p3), 1, %s2121_s19  }
  0x23   : > { %s1916_s25 = smul.u32 (%p2206_p3), 96, %s2129_s21  ;;  %s1915_s26 = sshll.u32 (%p2206_p3), %s382_s17, 5 }
  0x24   : > { %s384_s6 = scalar_lea.vmem (%p2206_p3), [#allocation7], %s1915_s26 }
  0x25   : > { %s1791_s30 = scalar_lea.vmem (%p2206_p3), %s2652_s2, %s1916_s25 }
  0x26   : > { %v1917_v16 = vld [vmem:[%s1791_s30 + $0x8] sm:$0xf] (%p2206_p3)  ;;  %v1918_v17 = vld [vmem:[%s1791_s30 + $0x14] sm:$0xf] (%p2206_p3)  ;;  %v1919_v18 = vld [vmem:[%s1791_s30 + $0x20] sm:$0xf] (%p2206_p3) }
  0x27   : > { %408 = vst [vmem:[%s384_s6] sm:$0xf] (%p2206_p3), %v1917_v16  ;;  %410 = vst [vmem:[%s384_s6 + $0x4] sm:$0xf] (%p2206_p3), %v1918_v17  ;;  %v1920_v19 = vld [vmem:[%s1791_s30 + $0x2c] sm:$0xf] (%p2206_p3) }
  0x28   : > { %412 = vst [vmem:[%s384_s6 + $0x8] sm:$0xf] (%p2206_p3), %v1919_v18  ;;  %v1921_v20 = vld [vmem:[%s1791_s30 + $0x38] sm:$0xf] (%p2206_p3)  ;;  %v1922_v21 = vld [vmem:[%s1791_s30 + $0x44] sm:$0xf] (%p2206_p3) }
  0x29   : > { %414 = vst [vmem:[%s384_s6 + $0xc] sm:$0xf] %v1920_v19  ;;  %416 = vst [vmem:[%s384_s6 + $0x10] sm:$0xf] %v1921_v20  ;;  %v1923_v22 = vld [vmem:[%s1791_s30 + $0x50] sm:$0xf] }
  0x2a   : > { %418 = vst [vmem:[%s384_s6 + $0x14] sm:$0xf] %v1922_v21  ;;  %v1924_v23 = vld [vmem:[%s1791_s30 + $0x5c] sm:$0xf]  ;;  %420 = vst [vmem:[%s384_s6 + $0x18] sm:$0xf] %v1923_v22 }
  0x2b   : > { %422 = vst [vmem:[%s384_s6 + $0x1c] sm:$0xf] %v1924_v23 }
  0x2c PF: > { %p1925_p6 = scmp.ge.s32.totalorder %s2133_s22, 1  ;;  %p479_p7 = scmp.lt.s32.totalorder %s2133_s22, 3 }
  0x2e   : > { %p480_p8 = pnand %p1925_p6, %p479_p7 }
  0x2f   : > { %s486_s24 = sand.u32 (!%p480_p8), 1, %s2117_s18   ;;  %v2135_v24 = vmov (!%p480_p8), 0.0   ;;  %vm663_vm0 = vcmask (!%p480_p8), 1041409   ;;  %vm666_vm1 = vcmask (!%p480_p8), 1042434   ;;  %p553_p9 = scmp.lt.s32.totalorder (!%p480_p8), %s2125_s20, 1  ;;  %vm669_vm2 = vcmask (!%p480_p8), 1043459  }
  0x30   : > { %483 = sbr.rel (%p480_p8) target bundleno = 1472 (0x5c0), region = 151  ;;  %1958 = vmatprep.subr.bf16.mxu0 (!%p480_p8), %v2135_v24  ;;  %s2242_s7 = sshll.u32 (!%p480_p8), %s486_s24, 5  ;;  %1964 = vmatprep.subr.bf16.mxu1 (!%p480_p8), %v2135_v24  ;;  %vm672_vm3 = vcmask (!%p480_p8), 1044484   ;;  %vm675_vm4 = vcmask (!%p480_p8), 1045509   ;;  %vm2136_vm5 = vmmov (!%p480_p8), 0   ;;  %v2137_v28 = vmov (!%p480_p8), 0  }
  0x31   : > { %s2247_s8 = scalar_lea.vmem (!%p480_p8), [#allocation6], %s2242_s7  ;;  %1960 = vmatprep.mubr.msk.bf16.mxu0 (!%p480_p8), %vm2136_vm5, %v2135_v24  ;;  %2057 = vset.pattern.permute.xlu0 (!%p480_p8), %v2137_v28  ;;  %vm678_vm6 = vcmask (!%p480_p8), 1046534   ;;  %vm681_vm7 = vcmask (!%p480_p8), 1047559   ;;  %s2264_s18 = scalar_lea.vmem (!%p480_p8), [#allocation5], %s2242_s7  ;;  %vm715_vm8 = vcmask (!%p480_p8), 64512   ;;  %vm578_vm9 = vcmask (!%p480_p8), 31744  }
  0x32   : > { %v614_v25 = vld [vmem:[%s2247_s8] sm:$0x1] (!%p480_p8)  ;;  %v615_v26 = vld [vmem:[%s2247_s8 + $0x4] sm:$0x1] (!%p480_p8)  ;;  %v616_v27 = vld [vmem:[%s2247_s8 + $0x8] sm:$0x1] (!%p480_p8)  ;;  %2058 = vset.pattern.permute.xlu1 (!%p480_p8), %v2137_v28  ;;  %1966 = vmatprep.mubr.msk.bf16.mxu1 (!%p480_p8), %vm2136_vm5, %v2135_v24 }
  0x33   : > { %v617_v29 = vld [vmem:[%s2247_s8 + $0xc] sm:$0x1] (!%p480_p8)  ;;  %v618_v30 = vld [vmem:[%s2247_s8 + $0x10] sm:$0x1] (!%p480_p8)  ;;  %v619_v31 = vld [vmem:[%s2247_s8 + $0x14] sm:$0x1] (!%p480_p8)  ;;  %v622_v32 = vpack.c.bf16 (!%p480_p8), %v614_v25, %v614_v25  ;;  %v623_v33 = vpack.c.bf16 (!%p480_p8), %v615_v26, %v615_v26  ;;  %v624_v34 = vpack.c.bf16 (!%p480_p8), %v616_v27, %v616_v27 }
  0x34   : > { %v620_v35 = vld [vmem:[%s2247_s8 + $0x18] sm:$0x1] (!%p480_p8)  ;;  %v621_v36 = vld [vmem:[%s2247_s8 + $0x1c] sm:$0x1] (!%p480_p8)  ;;  %v625_v37 = vpack.c.bf16 (!%p480_p8), %v617_v29, %v617_v29  ;;  %v626_v38 = vpack.c.bf16 (!%p480_p8), %v618_v30, %v618_v30  ;;  %v627_v39 = vpack.c.bf16 (!%p480_p8), %v619_v31, %v619_v31  ;;  %v598_v40 = vld [vmem:[%s2264_s18] sm:$0x1] (!%p480_p8) }
  0x35   : > { %v628_v41 = vpack.c.bf16 (!%p480_p8), %v620_v35, %v620_v35  ;;  %v629_v42 = vpack.c.bf16 (!%p480_p8), %v621_v36, %v621_v36  ;;  %v692_v43 = vunpack.c.l.b16 (!%p480_p8), %v622_v32  ;;  %v693_v44 = vunpack.c.l.b16 (!%p480_p8), %v623_v33  ;;  %v599_v45 = vld [vmem:[%s2264_s18 + $0x4] sm:$0x1] (!%p480_p8)  ;;  %v600_v50 = vld [vmem:[%s2264_s18 + $0x8] sm:$0x1] (!%p480_p8)  ;;  %v601_v51 = vld [vmem:[%s2264_s18 + $0xc] sm:$0x1] (!%p480_p8) }
  0x36   : > { %v694_v46 = vunpack.c.l.b16 (!%p480_p8), %v624_v34  ;;  %v695_v47 = vunpack.c.l.b16 (!%p480_p8), %v625_v37  ;;  %v696_v48 = vunpack.c.l.b16 (!%p480_p8), %v626_v38  ;;  %v697_v49 = vunpack.c.l.b16 (!%p480_p8), %v627_v39  ;;  %v602_v52 = vld [vmem:[%s2264_s18 + $0x10] sm:$0x1] (!%p480_p8)  ;;  %v603_v56 = vld [vmem:[%s2264_s18 + $0x14] sm:$0x1] (!%p480_p8)  ;;  %v604_v57 = vld [vmem:[%s2264_s18 + $0x18] sm:$0x1] (!%p480_p8) }
  0x37   : > { %v698_v53 = vunpack.c.l.b16 %v628_v41  ;;  %v699_v54 = vunpack.c.l.b16 %v629_v42  ;;  %v700_v55 = vrot.slane %v693_v44, 7  ;;  %v606_v58 = vpack.c.bf16 %v598_v40, %v598_v40  ;;  %s2664_s20 = smov (!%p553_p9, %s2125_s20), 1  ;;  %v605_v63 = vld [vmem:[%s2264_s18 + $0x1c] sm:$0x1]  ;;  %580 = vst.msk [vmem:[#allocation3] sm:$0xff] %vm578_vm9, %v2135_v24  ;;  %s2319_s16 = scalar_lea.vmem [#allocation7], %s2242_s7 }
  0x38   : > { %v702_v59 = vrot.slane %v694_v46, 6  ;;  %v704_v60 = vrot.slane %v695_v47, 5  ;;  %v706_v61 = vrot.slane %v696_v48, 4  ;;  %v708_v62 = vrot.slane %v697_v49, 3  ;;  %s1929_s9 = sshll.u32 %s2664_s20, 3  ;;  %s565_s15 = scalar_lea.vmem %s2654_s4, %s2664_s20 }
  0x39   : > { %v701_v0 = vsel %vm663_vm0, %v700_v55, %v692_v43  ;;  %v710_v1 = vrot.slane %v698_v53, 2  ;;  %v712_v2 = vrot.slane %v699_v54, 1  ;;  %v607_v3 = vpack.c.bf16 %v599_v45, %v599_v45  ;;  %s559_s12 = scalar_lea.vmem %s2653_s3, %s1929_s9  ;;  %v1931_v45 = vld [vmem:[%s565_s15] ss:$0 sm:$0xff]  ;;  %v631_v55 = vld [vmem:[%s2319_s16 + $0x4] sm:$0x1]  ;;  %s572_s30 = scalar_lea.vmem %s2655_s5, %s1929_s9 }
  0x3a   : > { %v703_v4 = vsel %vm666_vm1, %v702_v59, %v701_v0  ;;  %v608_v5 = vpack.c.bf16 %v600_v50, %v600_v50  ;;  %v609_v6 = vpack.c.bf16 %v601_v51, %v601_v51  ;;  %v610_v7 = vpack.c.bf16 %v602_v52, %v602_v52  ;;  %v583_v12 = vld [vmem:[%s559_s12] sm:$0xff]  ;;  %s2142_s17 = smov 8   ;;  %s2143_s25 = smov 16  }
  0x3b   : > { %v705_v8 = vsel %vm669_vm2, %v704_v60, %v703_v4  ;;  %v611_v9 = vpack.c.bf16 %v603_v56, %v603_v56  ;;  %v612_v10 = vpack.c.bf16 %v604_v57, %v604_v57  ;;  %v613_v11 = vpack.c.bf16 %v605_v63, %v605_v63  ;;  %587 = vperm.xlu0 %2057, %v583_v12   ;;  %v632_v56 = vld [vmem:[%s2319_s16 + $0x8] sm:$0x1]  ;;  %v633_v59 = vld [vmem:[%s2319_s16 + $0xc] sm:$0x1]  ;;  %v637_v12 = vld [vmem:[%s2319_s16 + $0x1c] sm:$0x1] }
  0x3c   : > { %v707_v13 = vsel %vm672_vm3, %v706_v61, %v705_v8  ;;  %v654_v14 = vunpack.c.l.b16 %v606_v58  ;;  %v655_v15 = vunpack.c.l.b16 %v607_v3  ;;  %v656_v16 = vunpack.c.l.b16 %v608_v5  ;;  %v630_v58 = vld [vmem:[%s2319_s16] sm:$0x1]  ;;  %s2144_s26 = smov 24  }
  0x3d   : > { %v709_v17 = vsel %vm675_vm4, %v708_v62, %v707_v13  ;;  %v657_v18 = vunpack.c.l.b16 %v609_v6  ;;  %v658_v19 = vunpack.c.l.b16 %v610_v7  ;;  %v659_v20 = vunpack.c.l.b16 %v611_v9  ;;  %v634_v62 = vld [vmem:[%s2319_s16 + $0x10] sm:$0x1]  ;;  %v636_v6 = vld [vmem:[%s2319_s16 + $0x18] sm:$0x1] }
  0x3e   : > { %v711_v21 = vsel %vm678_vm6, %v710_v1, %v709_v17  ;;  %v660_v22 = vunpack.c.l.b16 %v612_v10  ;;  %v661_v23 = vunpack.c.l.b16 %v613_v11  ;;  %v662_v25 = vrot.slane %v655_v15, 7 }
  0x3f   : > { %v713_v26 = vsel %vm681_vm7, %v712_v2, %v711_v21  ;;  %v665_v27 = vrot.slane %v656_v16, 6  ;;  %v668_v29 = vrot.slane %v657_v18, 5  ;;  %v671_v30 = vrot.slane %v658_v19, 4  ;;  %v635_v2 = vld [vmem:[%s2319_s16 + $0x14] sm:$0x1] }
  0x40   : > { %v714_v31 = vpack.c.b16 %v713_v26, %v713_v26  ;;  %v664_v32 = vsel %vm663_vm0, %v662_v25, %v654_v14  ;;  %v674_v33 = vrot.slane %v659_v20, 3  ;;  %v677_v35 = vrot.slane %v660_v22, 2 }
  0x41   : > { %v667_v34 = vsel %vm666_vm1, %v665_v27, %v664_v32  ;;  %v680_v38 = vrot.slane %v661_v23, 1  ;;  %v2138_v44 = vmov -1e+30   ;;  %v639_v57 = vpack.c.bf16 %v631_v55, %v631_v55 }
  0x42   : > { %v720_v36 = vsel %vm715_vm8, %v714_v31, 0  ;;  %v670_v37 = vsel %vm669_vm2, %v668_v29, %v667_v34  ;;  %579 = vst.msk [vmem:[#allocation2] sm:$0xff] %vm578_vm9, %v2138_v44  ;;  %v640_v60 = vpack.c.bf16 %v632_v56, %v632_v56  ;;  %v638_v63 = vpack.c.bf16 %v630_v58, %v630_v58 }
  0x43   : > { %1959 = vmatpush3.bf16.xpose.msra.mxu0 %v720_v36  ;;  %v673_v39 = vsel %vm672_vm3, %v671_v30, %v670_v37  ;;  %v641_v0 = vpack.c.bf16 %v633_v59, %v633_v59  ;;  %v798_v1 = vunpack.c.l.b16 %v639_v57  ;;  %vm786_vm11 = vcmask 7168   ;;  %v894_v37 = vld [vmem:[%s2247_s8 + $0x5] sm:$0x1]  ;;  %v879_v57 = vld [vmem:[%s2264_s18 + $0x9] sm:$0x1] }
  0x44   : > { %v676_v40 = vsel %vm675_vm4, %v674_v33, %v673_v39  ;;  %1976 = vmatprep.subr.bf16.mxu0 %v2135_v24  ;;  %v642_v3 = vpack.c.bf16 %v634_v62, %v634_v62  ;;  %v799_v4 = vunpack.c.l.b16 %v640_v60  ;;  %v643_v7 = vpack.c.bf16 %v635_v2, %v635_v2  ;;  %v899_v59 = vld [vmem:[%s2247_s8 + $0x19] sm:$0x1]  ;;  %v880_v2 = vld [vmem:[%s2264_s18 + $0xd] sm:$0x1] }
  0x45   : > { %v679_v41 = vsel %vm678_vm6, %v677_v35, %v676_v40  ;;  %v797_v8 = vunpack.c.l.b16 %v638_v63  ;;  %v800_v9 = vunpack.c.l.b16 %v641_v0  ;;  %v805_v10 = vrot.slane %v798_v1, 7  ;;  %v893_v40 = vld [vmem:[%s2247_s8 + $0x1] sm:$0x1] }
  0x46   : > { %v682_v42 = vsel %vm681_vm7, %v680_v38, %v679_v41  ;;  %v644_v13 = vpack.c.bf16 %v636_v6, %v636_v6  ;;  %v801_v14 = vunpack.c.l.b16 %v642_v3  ;;  %v807_v15 = vrot.slane %v799_v4, 6  ;;  %v895_v38 = vld [vmem:[%s2247_s8 + $0x9] sm:$0x1]  ;;  %v896_v41 = vld [vmem:[%s2247_s8 + $0xd] sm:$0x1] }
  0x47   : > { %v683_v43 = vpack.c.b16 %v682_v42, %v682_v42  ;;  %v645_v16 = vpack.c.bf16 %v637_v12, %v637_v12  ;;  %v802_v17 = vunpack.c.l.b16 %v643_v7  ;;  %v806_v18 = vsel %vm663_vm0, %v805_v10, %v797_v8  ;;  %v877_v63 = vld [vmem:[%s2264_s18 + $0x1] sm:$0x1]  ;;  %v900_v4 = vld [vmem:[%s2247_s8 + $0x1d] sm:$0x1]  ;;  %v881_v12 = vld [vmem:[%s2264_s18 + $0x11] sm:$0x1] }
  0x48   : > { %v809_v19 = vrot.slane %v800_v9, 5  ;;  %v803_v21 = vunpack.c.l.b16 %v644_v13  ;;  %v808_v22 = vsel %vm666_vm1, %v807_v15, %v806_v18  ;;  %v811_v23 = vrot.slane %v801_v14, 4 }
  0x49   : > { %v2325_v61 = vld [vmem:[#allocation2] sm:$0xff]  ;;  %v804_v25 = vunpack.c.l.b16 %v645_v16  ;;  %v813_v27 = vrot.slane %v802_v17, 3  ;;  %vm823_vm12 = vcmask 1043456   ;;  %v902_v39 = vpack.c.bf16 %v894_v37, %v894_v37  ;;  %v1169_v17 = vld [vmem:[%s2247_s8 + $0x6] sm:$0x1] }
  0x4a   : > { %1961 = vmatmul.mubr.msk.bf16.vlgmr.msra.gmra.mrb[0].mxu0 %vm715_vm8, %v683_v43  ;;  %v810_v26 = vsel %vm669_vm2, %v809_v19, %v808_v22  ;;  %v815_v30 = vrot.slane %v803_v21, 2  ;;  %v903_v42 = vpack.c.bf16 %v895_v38, %v895_v38  ;;  %v901_v43 = vpack.c.bf16 %v893_v40, %v893_v40  ;;  %v1171_v40 = vld [vmem:[%s2247_s8 + $0xe] sm:$0x1] }
  0x4b   : > { %1978 = vmatprep.mubr.msk.bf16.mxu0 %vm2136_vm5, %v2135_v24  ;;  %v812_v29 = vsel %vm672_vm3, %v811_v23, %v810_v26  ;;  %v817_v32 = vrot.slane %v804_v25, 1  ;;  %v965_v44 = vunpack.c.l.b16 %v902_v39  ;;  %v887_v3 = vpack.c.bf16 %v879_v57, %v879_v57  ;;  %v882_v23 = vld [vmem:[%s2264_s18 + $0x15] sm:$0x1] }
  0x4c   : > { %v814_v31 = vsel %vm675_vm4, %v813_v27, %v812_v29  ;;  %v885_v7 = vpack.c.bf16 %v877_v63, %v877_v63  ;;  %v888_v13 = vpack.c.bf16 %v880_v2, %v880_v2  ;;  %v908_v14 = vpack.c.bf16 %v900_v4, %v900_v4  ;;  %v1170_v29 = vld [vmem:[%s2247_s8 + $0xa] sm:$0x1]  ;;  %v1444_v2 = vld [vmem:[%s2247_s8 + $0x7] sm:$0x1] }
  0x4d   : > { %v816_v33 = vsel %vm678_vm6, %v815_v30, %v814_v31  ;;  %v935_v16 = vunpack.c.l.b16 %v887_v3  ;;  %v889_v25 = vpack.c.bf16 %v881_v12, %v881_v12  ;;  %v1177_v30 = vpack.c.bf16 %v1169_v17, %v1169_v17 }
  0x4e   : > { %v818_v34 = vsel %vm681_vm7, %v817_v32, %v816_v33  ;;  %v933_v19 = vunpack.c.l.b16 %v885_v7  ;;  %v936_v27 = vunpack.c.l.b16 %v888_v13  ;;  %v971_v31 = vunpack.c.l.b16 %v908_v14  ;;  %v1168_v33 = vld [vmem:[%s2247_s8 + $0x2] sm:$0x1]  ;;  %v1175_v13 = vld [vmem:[%s2247_s8 + $0x1e] sm:$0x1] }
  0x4f   : > { %v819_v35 = vpack.c.b16 %v818_v34, %v818_v34  ;;  %v943_v32 = vrot.slane %v935_v16, 6  ;;  %v937_v39 = vunpack.c.l.b16 %v889_v25  ;;  %v1452_v16 = vpack.c.bf16 %v1444_v2, %v1444_v2  ;;  %v1152_v25 = vld [vmem:[%s2264_s18 + $0x2] sm:$0x1] }
  0x50   : > { %vm1057_vm13 = vcmask 15368   ;;  %vm581_vm14 = vcmask 261120   ;;  %vm1332_vm15 = vcmask 23568   ;;  %vm1607_vm9 = vcmask 31768  }
  0x51   : > { %v825_v36 = vsel %vm823_vm12, %v819_v35, 0  ;;  %v883_v35 = vld [vmem:[%s2264_s18 + $0x19] sm:$0x1]  ;;  %582 = vst.msk [vmem:[#allocation4] sm:$0xff] %vm581_vm14, %v2135_v24 }
  0x52   : > { %1965 = vmatpush3.bf16.msra.mxu1 %v825_v36  ;;  %v890_v36 = vpack.c.bf16 %v882_v23, %v882_v23 }
  0x53   : > { %1970 = vmatprep.subr.bf16.mxu1 %v2135_v24 }
  0xba   : > { %v588_v46 = vpop.permute.xlu0 %587 }
  0xbb   : > { %v2309_v47 = vmul.f32 %v1931_v45, %v588_v46  ;;  %v897_v45 = vld [vmem:[%s2247_s8 + $0x11] sm:$0x1]  ;;  %v904_v46 = vpack.c.bf16 %v896_v41, %v896_v41  ;;  %v1178_v41 = vpack.c.bf16 %v1170_v29, %v1170_v29  ;;  %v1183_v29 = vpack.c.bf16 %v1175_v13, %v1175_v13  ;;  %v1427_v13 = vld [vmem:[%s2264_s18 + $0x3] sm:$0x1] }
  0xbd   : > { %vm597_vm10 = vcmp.gt.f32.partialorder %v2309_v47, 0.0  ;;  %v967_v55 = vunpack.c.l.b16 %v904_v46  ;;  %v884_v46 = vld [vmem:[%s2264_s18 + $0x1d] sm:$0x1]  ;;  %v910_v47 = vld [vmem:[%s2319_s16 + $0x5] sm:$0x1] }
  0xbe   : > { %v892_v57 = vpack.c.bf16 %v884_v46, %v884_v46 }
  0xbf   : > { %v976_v1 = vrot.slane %v967_v55, 5  ;;  %v947_v55 = vrot.slane %v937_v39, 4 }
  0xc0   : > { %v2384_v12 = vunpack.c.l.b16 %v892_v57  ;;  %v1156_v57 = vld [vmem:[%s2264_s18 + $0x12] sm:$0x1] }
 0x11d   : > { %v756_v48 = vpop.f32.mrb[0].mxu0 }
 0x11e   : > { %v762_v49 = vmul.f32 0.35355338, %v756_v48  ;;  %v1962_v50 = vpop.f32.mrb[1].mxu0  ;;  %v966_v48 = vunpack.c.l.b16 %v903_v42  ;;  %v945_v42 = vrot.slane %v936_v27, 5 }
 0x11f   : > { %v759_v51 = vpop.f32.mrb[2].mxu0  ;;  %v972_v50 = vrot.slane %v965_v44, 7  ;;  %v1240_v44 = vunpack.c.l.b16 %v1177_v30 }
 0x120   : > { %v1963_v52 = vpop.f32.mrb[3].mxu0  ;;  %v2314_v53 = vsel %vm597_vm10, %v762_v49, -1e+09  ;;  %v964_v49 = vunpack.c.l.b16 %v901_v43  ;;  %v878_v51 = vld [vmem:[%s2264_s18 + $0x5] sm:$0x1]  ;;  %v974_v56 = vrot.slane %v966_v48, 6  ;;  %v1176_v43 = vpack.c.bf16 %v1168_v33, %v1168_v33 }
 0x121   : > { %v765_v54 = vsel %vm715_vm8, %v2314_v53, -inf  ;;  %v898_v52 = vld [vmem:[%s2247_s8 + $0x15] sm:$0x1]  ;;  %v886_v58 = vpack.c.bf16 %v878_v51, %v878_v51  ;;  %v891_v48 = vpack.c.bf16 %v883_v35, %v883_v35  ;;  %v938_v51 = vunpack.c.l.b16 %v890_v36 }
 0x122   : > { %766 = vmax.xlane.f32.xlu0 %v765_v54  ;;  %v905_v54 = vpack.c.bf16 %v897_v45, %v897_v45  ;;  %v906_v60 = vpack.c.bf16 %v898_v52, %v898_v52  ;;  %v973_v62 = vsel %vm663_vm0, %v972_v50, %v964_v49  ;;  %v984_v45 = vrot.slane %v971_v31, 1  ;;  %v1172_v52 = vld [vmem:[%s2247_s8 + $0x12] sm:$0x1] }
 0x123   : > { %v975_v6 = vsel %vm666_vm1, %v974_v56, %v973_v62  ;;  %v934_v8 = vunpack.c.l.b16 %v886_v58  ;;  %v1241_v56 = vunpack.c.l.b16 %v1178_v41  ;;  %v1247_v62 = vrot.slane %v1240_v44, 7  ;;  %v1155_v41 = vld [vmem:[%s2264_s18 + $0xe] sm:$0x1] }
 0x124   : > { %v968_v0 = vunpack.c.l.b16 %v905_v54  ;;  %v969_v9 = vunpack.c.l.b16 %v906_v60  ;;  %v977_v15 = vsel %vm669_vm2, %v976_v1, %v975_v6  ;;  %v1179_v54 = vpack.c.bf16 %v1171_v40, %v1171_v40  ;;  %v1174_v6 = vld [vmem:[%s2247_s8 + $0x1a] sm:$0x1] }
 0x125   : > { %v941_v21 = vrot.slane %v934_v8, 7  ;;  %v1239_v60 = vunpack.c.l.b16 %v1176_v43  ;;  %v1180_v1 = vpack.c.bf16 %v1172_v52, %v1172_v52  ;;  %v949_v3 = vrot.slane %v938_v51, 3 }
 0x126   : > { %v978_v10 = vrot.slane %v968_v0, 4  ;;  %v980_v22 = vrot.slane %v969_v9, 3  ;;  %v939_v0 = vunpack.c.l.b16 %v891_v48  ;;  %v1242_v4 = vunpack.c.l.b16 %v1179_v54  ;;  %v1153_v9 = vld [vmem:[%s2264_s18 + $0x6] sm:$0x1]  ;;  %v1447_v48 = vld [vmem:[%s2247_s8 + $0x13] sm:$0x1] }
 0x127   : > { %v942_v37 = vsel %vm663_vm0, %v941_v21, %v933_v19  ;;  %v1249_v8 = vrot.slane %v1241_v56, 6  ;;  %v1248_v14 = vsel %vm663_vm0, %v1247_v62, %v1239_v60  ;;  %v1443_v19 = vld [vmem:[%s2247_s8 + $0x3] sm:$0x1]  ;;  %v1161_v27 = vpack.c.bf16 %v1153_v9, %v1153_v9  ;;  %v1157_v62 = vld [vmem:[%s2264_s18 + $0x16] sm:$0x1] }
 0x128   : > { %v979_v26 = vsel %vm672_vm3, %v978_v10, %v977_v15  ;;  %v944_v49 = vsel %vm666_vm1, %v943_v32, %v942_v37  ;;  %v1445_v15 = vld [vmem:[%s2247_s8 + $0xb] sm:$0x1]  ;;  %v951_v17 = vrot.slane %v939_v0, 2  ;;  %v1251_v23 = vrot.slane %v1242_v4, 5  ;;  %v1446_v32 = vld [vmem:[%s2247_s8 + $0xf] sm:$0x1] }
 0x129   : > { %v981_v38 = vsel %vm675_vm4, %v980_v22, %v979_v26  ;;  %v946_v58 = vsel %vm669_vm2, %v945_v42, %v944_v49  ;;  %v1182_v22 = vpack.c.bf16 %v1174_v6, %v1174_v6  ;;  %v1154_v26 = vld [vmem:[%s2264_s18 + $0xa] sm:$0x1]  ;;  %v1250_v31 = vsel %vm666_vm1, %v1249_v8, %v1248_v14  ;;  %v1158_v14 = vld [vmem:[%s2264_s18 + $0x1a] sm:$0x1] }
 0x12a   : > { %v1453_v33 = vpack.c.bf16 %v1445_v15, %v1445_v15  ;;  %v953_v35 = vrot.slane %v2384_v12, 1  ;;  %v1451_v36 = vpack.c.bf16 %v1443_v19, %v1443_v19  ;;  %v1515_v37 = vunpack.c.l.b16 %v1452_v16 }
 0x12b   : > { %v1160_v42 = vpack.c.bf16 %v1152_v25, %v1152_v25  ;;  %v1162_v43 = vpack.c.bf16 %v1154_v26, %v1154_v26  ;;  %v1209_v46 = vunpack.c.l.b16 %v1161_v27  ;;  %v1454_v49 = vpack.c.bf16 %v1446_v32, %v1446_v32  ;;  %v1430_v25 = vld [vmem:[%s2264_s18 + $0xf] sm:$0x1] }
 0x12c   : > { %v2406_v51 = vunpack.c.l.b16 %v1183_v29  ;;  %v1516_v54 = vunpack.c.l.b16 %v1453_v33  ;;  %v1522_v60 = vrot.slane %v1515_v37, 7  ;;  %v1455_v2 = vpack.c.bf16 %v1447_v48, %v1447_v48 }
 0x12d   : > { %v1210_v0 = vunpack.c.l.b16 %v1162_v43  ;;  %v1517_v4 = vunpack.c.l.b16 %v1454_v49  ;;  %v1164_v9 = vpack.c.bf16 %v1156_v57, %v1156_v57  ;;  %v1165_v15 = vpack.c.bf16 %v1157_v62, %v1157_v62 }
 0x12e   : > { %v1259_v8 = vrot.slane %v2406_v51, 1  ;;  %v1166_v32 = vpack.c.bf16 %v1158_v14, %v1158_v14 }
 0x12f   : > { %v1526_v29 = vrot.slane %v1517_v4, 5  ;;  %v1212_v33 = vunpack.c.l.b16 %v1164_v9  ;;  %v1433_v9 = vld [vmem:[%s2264_s18 + $0x1b] sm:$0x1] }
 0x130   : > { %v1214_v62 = vunpack.c.l.b16 %v1166_v32 }
 0x131   : > { %v1222_v57 = vrot.slane %v1212_v33, 4 }
 0x1af   : > { %v767_v5 = vpop.xlane.xlu0 %766 }
 0x1b0   : > { %v2331_v11 = vmax.f32 %v2325_v61, %v767_v5  ;;  %v907_v5 = vpack.c.bf16 %v899_v59, %v899_v59  ;;  %v1173_v59 = vld [vmem:[%s2247_s8 + $0x16] sm:$0x1] }
 0x1b1   : > { %v1181_v7 = vpack.c.bf16 %v1173_v59, %v1173_v59  ;;  %v1514_v59 = vunpack.c.l.b16 %v1451_v36  ;;  %v1450_v36 = vld [vmem:[%s2247_s8 + $0x1f] sm:$0x1] }
 0x1b2   : > { %v769_v20 = vsub.f32 %v2325_v61, %v2331_v11  ;;  %876 = vst.msk [vmem:[#allocation2] sm:$0xff] %vm786_vm11, %v2331_v11  ;;  %774 = vperm.xlu1 %2058, %v2331_v11   ;;  %v970_v18 = vunpack.c.l.b16 %v907_v5  ;;  %v948_v5 = vsel %vm672_vm3, %v947_v55, %v946_v58  ;;  %v1428_v55 = vld [vmem:[%s2264_s18 + $0x7] sm:$0x1]  ;;  %v1163_v58 = vpack.c.bf16 %v1155_v41, %v1155_v41  ;;  %v1159_v41 = vld [vmem:[%s2264_s18 + $0x1e] sm:$0x1] }
 0x1b3   : > { %v950_v21 = vsel %vm675_vm4, %v949_v3, %v948_v5  ;;  %v1244_v30 = vunpack.c.l.b16 %v1181_v7  ;;  %v1216_v3 = vrot.slane %v1209_v46, 7  ;;  %v1429_v5 = vld [vmem:[%s2264_s18 + $0xb] sm:$0x1]  ;;  %v1436_v6 = vpack.c.bf16 %v1428_v55, %v1428_v55 }
 0x1b4   : > { %v982_v34 = vrot.slane %v970_v18, 2  ;;  %v1243_v18 = vunpack.c.l.b16 %v1180_v1  ;;  %v2400_v39 = vsel %vm678_vm6, %v951_v17, %v950_v21  ;;  %v1448_v1 = vld [vmem:[%s2247_s8 + $0x17] sm:$0x1]  ;;  %v1211_v16 = vunpack.c.l.b16 %v1163_v58  ;;  %v1449_v17 = vld [vmem:[%s2247_s8 + $0x1b] sm:$0x1] }
 0x1b5   : > { %v1255_v52 = vrot.slane %v1244_v30, 3  ;;  %v1523_v19 = vsel %vm663_vm0, %v1522_v60, %v1514_v59  ;;  %v1437_v26 = vpack.c.bf16 %v1429_v5, %v1429_v5  ;;  %v1435_v30 = vpack.c.bf16 %v1427_v13, %v1427_v13  ;;  %v1432_v59 = vld [vmem:[%s2264_s18 + $0x17] sm:$0x1] }
 0x1b6   : > { %v983_v50 = vsel %vm678_vm6, %v982_v34, %v981_v38  ;;  %v1253_v40 = vrot.slane %v1243_v18, 4  ;;  %v1456_v18 = vpack.c.bf16 %v1448_v1, %v1448_v1  ;;  %v1457_v37 = vpack.c.bf16 %v1449_v17, %v1449_v17 }
 0x1b7   : > { %v985_v63 = vsel %vm681_vm7, %v984_v45, %v983_v50  ;;  %v1252_v45 = vsel %vm669_vm2, %v1251_v23, %v1250_v31  ;;  %v1245_v50 = vunpack.c.l.b16 %v1182_v22  ;;  %v1218_v22 = vrot.slane %v1210_v0, 6 }
 0x1b8   : > { %v986_v10 = vpack.c.b16 %v985_v63, %v985_v63  ;;  %v1208_v63 = vunpack.c.l.b16 %v1160_v42  ;;  %v1518_v23 = vunpack.c.l.b16 %v1455_v2  ;;  %v1484_v31 = vunpack.c.l.b16 %v1436_v6 }
 0x1b9   : > { %v1257_v7 = vrot.slane %v1245_v50, 2  ;;  %v1220_v42 = vrot.slane %v1211_v16, 5  ;;  %v1519_v43 = vunpack.c.l.b16 %v1456_v18  ;;  %v1213_v46 = vunpack.c.l.b16 %v1165_v15 }
 0x1ba   : > { %v2396_v34 = vsel %vm715_vm8, %v986_v10, 0  ;;  %v1524_v10 = vrot.slane %v1516_v54, 6  ;;  %v1217_v27 = vsel %vm663_vm0, %v1216_v3, %v1208_v63  ;;  %v1528_v49 = vrot.slane %v1518_v23, 4  ;;  %v1434_v23 = vld [vmem:[%s2264_s18 + $0x1f] sm:$0x1] }
 0x1bb   : > { %v1219_v48 = vsel %vm666_vm1, %v1218_v22, %v1217_v27  ;;  %v1485_v50 = vunpack.c.l.b16 %v1437_v26  ;;  %v1458_v51 = vpack.c.bf16 %v1450_v36, %v1450_v36  ;;  %v1483_v54 = vunpack.c.l.b16 %v1435_v30 }
 0x1bc   : > { %v1491_v55 = vrot.slane %v1484_v31, 7  ;;  %v1520_v58 = vunpack.c.l.b16 %v1457_v37  ;;  %v1221_v63 = vsel %vm669_vm2, %v1220_v42, %v1219_v48  ;;  %v1530_v0 = vrot.slane %v1519_v43, 3 }
 0x1bd   : > { %v1493_v5 = vrot.slane %v1485_v50, 6  ;;  %v1224_v6 = vrot.slane %v1213_v46, 3  ;;  %v1223_v14 = vsel %vm672_vm3, %v1222_v57, %v1221_v63  ;;  %v1226_v22 = vrot.slane %v1214_v62, 2 }
 0x1be   : > { %v1492_v13 = vsel %vm663_vm0, %v1491_v55, %v1483_v54  ;;  %v1532_v15 = vrot.slane %v1520_v58, 2  ;;  %v1442_v31 = vpack.c.bf16 %v1434_v23, %v1434_v23  ;;  %v2494_v23 = vld [vmem:[#allocation2] sm:$0xff] }
 0x1bf   : > { %v1225_v26 = vsel %vm675_vm4, %v1224_v6, %v1223_v14 }
 0x1c0   : > { %v1227_v36 = vsel %vm678_vm6, %v1226_v22, %v1225_v26  ;;  %v1490_v43 = vunpack.c.l.b16 %v1442_v31  ;;  %v918_v26 = vpack.c.bf16 %v910_v47, %v910_v47 }
 0x231   : > { %v775_v38 = vpop.permute.xlu1 %774 }
 0x232   : > { %v777_v44 = vsub.f32 %v2314_v53, %v775_v38  ;;  %v1254_v53 = vsel %vm672_vm3, %v1253_v40, %v1252_v45  ;;  %v1525_v38 = vsel %vm666_vm1, %v1524_v10, %v1523_v19  ;;  %v1438_v45 = vpack.c.bf16 %v1430_v25, %v1430_v25 }
 0x233   : > { %v1256_v21 = vsel %vm675_vm4, %v1255_v52, %v1254_v53  ;;  %v1527_v52 = vsel %vm669_vm2, %v1526_v29, %v1525_v38  ;;  %v1440_v10 = vpack.c.bf16 %v1432_v59, %v1432_v59  ;;  %v1441_v25 = vpack.c.bf16 %v1433_v9, %v1433_v9 }
 0x234   : > { %v778_v56 = vmul.f32 1.442695, %v777_v44  ;;  %v1258_v40 = vsel %vm678_vm6, %v1257_v7, %v1256_v21  ;;  %v1431_v44 = vld [vmem:[%s2264_s18 + $0x13] sm:$0x1]  ;;  %v1486_v1 = vunpack.c.l.b16 %v1438_v45  ;;  %v1529_v4 = vsel %vm672_vm3, %v1528_v49, %v1527_v52 }
 0x235   : > { %v1439_v60 = vpack.c.bf16 %v1431_v44, %v1431_v44  ;;  %v1260_v3 = vsel %vm681_vm7, %v1259_v8, %v1258_v40  ;;  %v1521_v7 = vunpack.c.l.b16 %v1458_v51  ;;  %v954_v8 = vsel %vm681_vm7, %v953_v35, %v2400_v39 }
 0x236   : > { %2071 = vpow2.f32 %v778_v56  ;;  %v1167_v56 = vpack.c.bf16 %v1159_v41, %v1159_v41  ;;  %v1531_v18 = vsel %vm675_vm4, %v1530_v0, %v1529_v4  ;;  %v1495_v19 = vrot.slane %v1486_v1, 5 }
 0x237   : > { %v1487_v16 = vunpack.c.l.b16 %v1439_v60  ;;  %v1261_v21 = vpack.c.b16 %v1260_v3, %v1260_v3  ;;  %v1534_v27 = vrot.slane %v1521_v7, 1  ;;  %v1488_v29 = vunpack.c.l.b16 %v1440_v10 }
 0x238   : > { %v1215_v17 = vunpack.c.l.b16 %v1167_v56  ;;  %v955_v30 = vpack.c.b16 %v954_v8, %v954_v8  ;;  %v1533_v12 = vsel %vm678_vm6, %v1532_v15, %v1531_v18  ;;  %v1489_v37 = vunpack.c.l.b16 %v1441_v25 }
 0x239   : > { %v1497_v35 = vrot.slane %v1487_v16, 4  ;;  %v1266_v33 = vsel %vm715_vm8, %v1261_v21, 0  ;;  %v1535_v38 = vsel %vm681_vm7, %v1534_v27, %v1533_v12  ;;  %v1499_v40 = vrot.slane %v1488_v29, 3  ;;  %v909_v27 = vld [vmem:[%s2319_s16 + $0x1] sm:$0x1] }
 0x23a   : > { %v1228_v39 = vrot.slane %v1215_v17, 1  ;;  %v1536_v44 = vpack.c.b16 %v1535_v38, %v1535_v38  ;;  %v1501_v45 = vrot.slane %v1489_v37, 2  ;;  %v1503_v49 = vrot.slane %v1490_v43, 1  ;;  %v912_v29 = vld [vmem:[%s2319_s16 + $0xd] sm:$0x1] }
 0x23b   : > { %v2140_v21 = vmov 2   ;;  %v770_v12 = vmul.f32 1.442695, %v769_v20  ;;  %v920_v31 = vpack.c.bf16 %v912_v29, %v912_v29  ;;  %v915_v38 = vld [vmem:[%s2319_s16 + $0x19] sm:$0x1] }
 0x23c   : > { %v1229_v42 = vsel %vm681_vm7, %v1228_v39, %v1227_v36  ;;  %v1541_v50 = vsel %vm715_vm8, %v1536_v44, 0  ;;  %2060 = vset.pattern.permute.xlu0 %v2140_v21  ;;  %v917_v39 = vpack.c.bf16 %v909_v27, %v909_v27  ;;  %v916_v43 = vld [vmem:[%s2319_s16 + $0x1d] sm:$0x1]  ;;  %v923_v44 = vpack.c.bf16 %v915_v38, %v915_v38  ;;  %v1186_v27 = vld [vmem:[%s2319_s16 + $0xa] sm:$0x1] }
 0x23d   : > { %v1230_v48 = vpack.c.b16 %v1229_v42, %v1229_v42  ;;  %v1071_v42 = vunpack.c.l.b16 %v920_v31  ;;  %2073 = vpow2.f32 %v770_v12 }
 0x240   : > { %v2430_v53 = vpop.eup %2071 }
 0x241   : > { %v788_v2 = vpack.c.bf16 %v2430_v53, %v2430_v53 }
 0x243   : > { %1967 = vmatmul.mubr.msk.bf16.vlgmr.msra.gmra.mrb[0].mxu1 %vm715_vm8, %v788_v2 }
 0x244   : > { %1971 = vmatpush3.bf16.xpose.msra.mxu1 %v2396_v34  ;;  %1972 = vmatprep.mubr.msk.bf16.mxu1 %vm2136_vm5, %v2135_v24  ;;  %v1494_v34 = vsel %vm666_vm1, %v1493_v5, %v1492_v13 }
 0x245   : > { %1982 = vmatprep.subr.bf16.mxu1 %v2135_v24  ;;  %v1496_v32 = vsel %vm669_vm2, %v1495_v19, %v1494_v34  ;;  %v2139_v19 = vmov 1   ;;  %v911_v34 = vld [vmem:[%s2319_s16 + $0x9] sm:$0x1] }
 0x246   : > { %v1498_v41 = vsel %vm672_vm3, %v1497_v35, %v1496_v32  ;;  %2059 = vset.pattern.permute.xlu1 %v2139_v19  ;;  %v913_v35 = vld [vmem:[%s2319_s16 + $0x11] sm:$0x1]  ;;  %v1069_v32 = vunpack.c.l.b16 %v918_v26  ;;  %v1185_v26 = vld [vmem:[%s2319_s16 + $0x6] sm:$0x1] }
 0x247   : > { %v1500_v46 = vsel %vm675_vm4, %v1499_v40, %v1498_v41  ;;  %v921_v36 = vpack.c.bf16 %v913_v35, %v913_v35  ;;  %v1068_v41 = vunpack.c.l.b16 %v917_v39  ;;  %v1193_v29 = vpack.c.bf16 %v1185_v26, %v1185_v26  ;;  %v1188_v35 = vld [vmem:[%s2319_s16 + $0x12] sm:$0x1] }
 0x248   : > { %v1502_v51 = vsel %vm678_vm6, %v1501_v45, %v1500_v46  ;;  %v1076_v11 = vrot.slane %v1069_v32, 7  ;;  %v2141_v45 = vmov 3   ;;  %v924_v46 = vpack.c.bf16 %v916_v43, %v916_v43 }
 0x249   : > { %v1504_v52 = vsel %vm681_vm7, %v1503_v49, %v1502_v51  ;;  %v1072_v61 = vunpack.c.l.b16 %v921_v36  ;;  %v1080_v49 = vrot.slane %v1071_v42, 5  ;;  %v1344_v12 = vunpack.c.l.b16 %v1193_v29  ;;  %v1460_v36 = vld [vmem:[%s2319_s16 + $0x7] sm:$0x1]  ;;  %v1461_v42 = vld [vmem:[%s2319_s16 + $0xb] sm:$0x1] }
 0x24a   : > { %v1505_v54 = vpack.c.b16 %v1504_v52, %v1504_v52  ;;  %v1077_v51 = vsel %vm663_vm0, %v1076_v11, %v1068_v41  ;;  %v1196_v38 = vpack.c.bf16 %v1188_v35, %v1188_v35  ;;  %v1468_v43 = vpack.c.bf16 %v1460_v36, %v1460_v36 }
 0x24b   : > { %1973 = vmatmul.mubr.msk.bf16.vlgmr.msra.gmra.mrb[4].mxu1 %vm715_vm8, %v955_v30  ;;  %v919_v30 = vpack.c.bf16 %v911_v34, %v911_v34  ;;  %v1082_v52 = vrot.slane %v1072_v61, 4 }
 0x24c   : > { %1983 = vmatpush3.bf16.xpose.msra.mxu1 %v1266_v33  ;;  %1984 = vmatprep.mubr.msk.bf16.mxu1 %vm2136_vm5, %v2135_v24  ;;  %v914_v33 = vld [vmem:[%s2319_s16 + $0x15] sm:$0x1] }
 0x24d   : > { %1994 = vmatprep.subr.bf16.mxu1 %v2135_v24  ;;  %v1070_v37 = vunpack.c.l.b16 %v919_v30  ;;  %v922_v40 = vpack.c.bf16 %v914_v33, %v914_v33  ;;  %v1194_v30 = vpack.c.bf16 %v1186_v27, %v1186_v27  ;;  %v1351_v33 = vrot.slane %v1344_v12, 7 }
 0x24f   : > { %v1078_v20 = vrot.slane %v1070_v37, 6  ;;  %v1345_v31 = vunpack.c.l.b16 %v1194_v30  ;;  %v1189_v37 = vld [vmem:[%s2319_s16 + $0x16] sm:$0x1] }
 0x250   : > { %v1197_v61 = vpack.c.bf16 %v1189_v37, %v1189_v37  ;;  %v1466_v37 = vld [vmem:[%s2319_s16 + $0x1f] sm:$0x1] }
 0x251   : > { %v1353_v41 = vrot.slane %v1345_v31, 6 }
 0x253   : > { %1985 = vmatmul.mubr.msk.bf16.vlgmr.msra.gmra.mrb[8].mxu1 %vm715_vm8, %v1230_v48  ;;  %v1073_v48 = vunpack.c.l.b16 %v922_v40 }
 0x254   : > { %1995 = vmatpush3.bf16.xpose.msra.mxu1 %v1541_v50  ;;  %1996 = vmatprep.mubr.msk.bf16.mxu1 %vm2136_vm5, %v2135_v24  ;;  %v1074_v50 = vunpack.c.l.b16 %v923_v44  ;;  %v1190_v44 = vld [vmem:[%s2319_s16 + $0x1a] sm:$0x1] }
 0x25b   : > { %1997 = vmatmul.mubr.msk.bf16.vlgmr.msra.gmra.mrb[12].mxu1 %vm715_vm8, %v1505_v54  ;;  %v1075_v54 = vunpack.c.l.b16 %v924_v46  ;;  %v1347_v46 = vunpack.c.l.b16 %v1196_v38 }
 0x316   : > { %v2472_v55 = vpop.f32.mrb[0].mxu1 }
 0x317   : > { %v1968_v56 = vpop.f32.mrb[1].mxu1 }
 0x318   : > { %v864_v57 = vpop.f32.mrb[2].mxu1  ;;  %v1079_v56 = vsel %vm666_vm1, %v1078_v20, %v1077_v51  ;;  %v1459_v20 = vld [vmem:[%s2319_s16 + $0x3] sm:$0x1]  ;;  %v1191_v51 = vld [vmem:[%s2319_s16 + $0x1e] sm:$0x1] }
 0x319   : > { %v1969_v58 = vpop.f32.mrb[3].mxu1  ;;  %v1084_v57 = vrot.slane %v1073_v48, 3 }
 0x31e   : > { %v1027_v59 = vpop.f32.mrb[4].mxu1 }
 0x31f   : > { %v1033_v60 = vmul.f32 0.35355338, %v1027_v59  ;;  %v1974_v62 = vpop.f32.mrb[5].mxu1 }
 0x320   : > { %v1030_v63 = vpop.f32.mrb[6].mxu1  ;;  %v1086_v62 = vrot.slane %v1074_v50, 2  ;;  %v1469_v50 = vpack.c.bf16 %v1461_v42, %v1461_v42 }
 0x321   : > { %v1975_v0 = vpop.f32.mrb[7].mxu1  ;;  %v2476_v1 = vsel %vm597_vm10, %v1033_v60, -1e+09  ;;  %v1081_v60 = vsel %vm669_vm2, %v1080_v49, %v1079_v56  ;;  %v1462_v49 = vld [vmem:[%s2319_s16 + $0xf] sm:$0x1]  ;;  %v1467_v56 = vpack.c.bf16 %v1459_v20, %v1459_v20 }
 0x322   : > { %v1036_v2 = vsel %vm715_vm8, %v2476_v1, -inf  ;;  %v1083_v0 = vsel %vm672_vm3, %v1082_v52, %v1081_v60  ;;  %v1198_v52 = vpack.c.bf16 %v1190_v44, %v1190_v44  ;;  %v1357_v60 = vrot.slane %v1347_v46, 4 }
 0x323   : > { %1037 = vmax.xlane.f32.xlu1 %v1036_v2  ;;  %v1088_v2 = vrot.slane %v1075_v54, 1 }
 0x326   : > { %v1302_v3 = vpop.f32.mrb[8].mxu1 }
 0x327   : > { %v1308_v4 = vmul.f32 0.35355338, %v1302_v3  ;;  %v1986_v5 = vpop.f32.mrb[9].mxu1  ;;  %v1085_v3 = vsel %vm675_vm4, %v1084_v57, %v1083_v0  ;;  %v1619_v57 = vunpack.c.l.b16 %v1468_v43  ;;  %v1470_v0 = vpack.c.bf16 %v1462_v49, %v1462_v49 }
 0x328   : > { %v1305_v6 = vpop.f32.mrb[10].mxu1  ;;  %v1087_v5 = vsel %vm678_vm6, %v1086_v62, %v1085_v3  ;;  %v1463_v62 = vld [vmem:[%s2319_s16 + $0x13] sm:$0x1]  ;;  %v1474_v43 = vpack.c.bf16 %v1466_v37, %v1466_v37 }
 0x329   : > { %v1987_v7 = vpop.f32.mrb[11].mxu1  ;;  %v2482_v9 = vsel %vm597_vm10, %v1308_v4, -1e+09  ;;  %v1089_v6 = vsel %vm681_vm7, %v1088_v2, %v1087_v5  ;;  %v1199_v2 = vpack.c.bf16 %v1191_v51, %v1191_v51  ;;  %v1620_v5 = vunpack.c.l.b16 %v1469_v50 }
 0x32a   : > { %v1311_v10 = vsel %vm715_vm8, %v2482_v9, -inf  ;;  %v1090_v7 = vpack.c.b16 %v1089_v6, %v1089_v6  ;;  %v1349_v6 = vunpack.c.l.b16 %v1198_v52  ;;  %v1621_v26 = vunpack.c.l.b16 %v1470_v0 }
 0x32b   : > { %1312 = vmax.xlane.f32.xlu0 %v1311_v10  ;;  %v2532_v10 = vpop.eup %2073  ;;  %v1350_v29 = vunpack.c.l.b16 %v1199_v2  ;;  %v1625_v51 = vunpack.c.l.b16 %v1474_v43 }
 0x32c   : > { %v1361_v30 = vrot.slane %v1349_v6, 2 }
 0x32d   : > { %v1363_v36 = vrot.slane %v1350_v29, 1  ;;  %v1638_v0 = vrot.slane %v1625_v51, 1 }
 0x32e   : > { %v1577_v13 = vpop.f32.mrb[12].mxu1 }
 0x32f   : > { %v1583_v14 = vmul.f32 0.35355338, %v1577_v13  ;;  %v1998_v15 = vpop.f32.mrb[13].mxu1  ;;  %v1095_v13 = vsel %vm823_vm12, %v1090_v7, 0  ;;  %v1618_v7 = vunpack.c.l.b16 %v1467_v56  ;;  %v867_v56 = vld [vmem:[#allocation4] sm:$0xff] }
 0x330   : > { %v1580_v16 = vpop.f32.mrb[14].mxu1  ;;  %1977 = vmatpush3.bf16.msra.mxu0 %v1095_v13  ;;  %v1626_v13 = vrot.slane %v1619_v57, 7 }
 0x331   : > { %v1999_v8 = vpop.f32.mrb[15].mxu1  ;;  %v2488_v17 = vsel %vm597_vm10, %v1583_v14, -1e+09  ;;  %1988 = vmatprep.subr.bf16.mxu0 %v2135_v24 }
 0x332   : > { %v1586_v18 = vsel %vm715_vm8, %v2488_v17, -inf  ;;  %v1627_v35 = vsel %vm663_vm0, %v1626_v13, %v1618_v7 }
 0x333   : > { %1587 = vmax.xlane.f32.xlu0 %v1586_v18 }
 0x3b0   : > { %v1038_v22 = vpop.xlane.xlu1 %1037 }
 0x3b1   : > { %v2498_v25 = vmax.f32 %v2494_v23, %v1038_v22  ;;  %v782_v22 = vsel %vm715_vm8, %v2430_v53, 0.0 }
 0x3b3   : > { %1151 = vst.msk [vmem:[#allocation2] sm:$0xff] %vm1057_vm13, %v2498_v25  ;;  %1045 = vperm.xlu1 %2059, %v2498_v25   ;;  %v1040_v18 = vsub.f32 %v2494_v23, %v2498_v25  ;;  %v1184_v23 = vld [vmem:[%s2319_s16 + $0x2] sm:$0x1]  ;;  %v1187_v25 = vld [vmem:[%s2319_s16 + $0xe] sm:$0x1] }
 0x3b4   : > { %v1192_v53 = vpack.c.bf16 %v1184_v23, %v1184_v23  ;;  %v1195_v39 = vpack.c.bf16 %v1187_v25, %v1187_v25  ;;  %v1628_v23 = vrot.slane %v1620_v5, 6 }
 0x3b5   : > { %v1041_v47 = vmul.f32 1.442695, %v1040_v18  ;;  %v1464_v18 = vld [vmem:[%s2319_s16 + $0x17] sm:$0x1] }
 0x3b6   : > { %v1343_v32 = vunpack.c.l.b16 %v1192_v53  ;;  %v1346_v40 = vunpack.c.l.b16 %v1195_v39  ;;  %v1465_v53 = vld [vmem:[%s2319_s16 + $0x1b] sm:$0x1]  ;;  %v1472_v12 = vpack.c.bf16 %v1464_v18, %v1464_v18 }
 0x3b7   : > { %2061 = vset.pattern.permute.xlu1 %v2141_v45  ;;  %2075 = vpow2.f32 %v1041_v47  ;;  %v1473_v38 = vpack.c.bf16 %v1465_v53, %v1465_v53  ;;  %v780_v53 = vld [vmem:[#allocation3] sm:$0xff] }
 0x3b8   : > { %v1313_v58 = vpop.xlane.xlu0 %1312  ;;  %v1352_v11 = vsel %vm663_vm0, %v1351_v33, %v1343_v32  ;;  %v1355_v48 = vrot.slane %v1346_v40, 5  ;;  %v1630_v33 = vrot.slane %v1621_v26, 5  ;;  %v1629_v40 = vsel %vm666_vm1, %v1628_v23, %v1627_v35 }
 0x3b9   : > { %v1354_v54 = vsel %vm666_vm1, %v1353_v41, %v1352_v11  ;;  %v1623_v42 = vunpack.c.l.b16 %v1472_v12  ;;  %v1624_v11 = vunpack.c.l.b16 %v1473_v38  ;;  %vm1149_vm0 = vcmask 130112  }
 0x3ba   : > { %v2516_v59 = vld [vmem:[#allocation2] sm:$0xff]  ;;  %v1356_v3 = vsel %vm669_vm2, %v1355_v48, %v1354_v54  ;;  %v1631_v44 = vsel %vm669_vm2, %v1630_v33, %v1629_v40  ;;  %vm1424_vm1 = vcmask 195712   ;;  %vm1699_vm2 = vcmask 261312  }
 0x3bb   : > { %v2521_v63 = vmax.f32 %v2516_v59, %v1313_v58  ;;  %v1348_v58 = vunpack.c.l.b16 %v1197_v61  ;;  %v1358_v47 = vsel %vm672_vm3, %v1357_v60, %v1356_v3  ;;  %v1634_v20 = vrot.slane %v1623_v42, 3 }
 0x3bc   : > { %v1636_v52 = vrot.slane %v1624_v11, 2 }
 0x3bd   : > { %v1315_v4 = vsub.f32 %v2516_v59, %v2521_v63  ;;  %1426 = vst.msk [vmem:[#allocation2] sm:$0xff] %vm1332_vm15, %v2521_v63  ;;  %1320 = vperm.xlu0 %2060, %v2521_v63   ;;  %v781_v59 = vmul.f32 %v2532_v10, %v780_v53 }
 0x3bf   : > { %v1316_v29 = vmul.f32 1.442695, %v1315_v4 }
 0x3c0   : > { %v1588_v14 = vpop.xlane.xlu0 %1587 }
 0x3c1   : > { %2062 = vset.pattern.permute.xlu0 %v2137_v28  ;;  %v2554_v34 = vpop.eup %2075 }
 0x3c2   : > { %870 = vperm.xlu0 %2062, %v2532_v10  }
 0x3c4   : > { %v2538_v15 = vld [vmem:[#allocation2] sm:$0xff] }
 0x3c5   : > { %v2541_v16 = vmax.f32 %v2538_v15, %v1588_v14  ;;  %v1359_v14 = vrot.slane %v1348_v58, 3 }
 0x3c6   : > { %2065 = vset.pattern.permute.xlu0 %v2141_v45 }
 0x3c7   : > { %v1590_v8 = vsub.f32 %v2538_v15, %v2541_v16  ;;  %1701 = vst.msk [vmem:[#allocation2] sm:$0xff] %vm1607_vm9, %v2541_v16  ;;  %1595 = vperm.xlu1 %2061, %v2541_v16   ;;  %v1360_v39 = vsel %vm675_vm4, %v1359_v14, %v1358_v47 }
 0x3c8   : > { %v1362_v41 = vsel %vm678_vm6, %v1361_v30, %v1360_v39 }
 0x3c9   : > { %v1364_v61 = vsel %vm681_vm7, %v1363_v36, %v1362_v41 }
 0x3ca   : > { %v1365_v50 = vpack.c.b16 %v1364_v61, %v1364_v61 }
 0x3cb   : > { %2063 = vset.pattern.permute.xlu1 %v2139_v19 }
 0x3eb   : > { %783 = vadd.xlane.f32.xlu1 %v782_v22  ;;  %v1471_v22 = vpack.c.bf16 %v1463_v62, %v1463_v62  ;;  %v1370_v62 = vsel %vm823_vm12, %v1365_v50, 0 }
 0x3ed   : > { %v1622_v31 = vunpack.c.l.b16 %v1471_v22 }
 0x3fc   : > { %1140 = vperm.xlu1 %2063, %v2554_v34  }
 0x400   : > { %2064 = vset.pattern.permute.xlu1 %v2140_v21 }
 0x432   : > { %v1046_v27 = vpop.permute.xlu1 %1045 }
 0x433   : > { %v1048_v25 = vsub.f32 %v2476_v1, %v1046_v27  ;;  %v1632_v1 = vrot.slane %v1622_v31, 4  ;;  %v1591_v31 = vmul.f32 1.442695, %v1590_v8 }
 0x435   : > { %v1049_v32 = vmul.f32 1.442695, %v1048_v25  ;;  %v1633_v48 = vsel %vm672_vm3, %v1632_v1, %v1631_v44 }
 0x436   : > { %v1635_v57 = vsel %vm675_vm4, %v1634_v20, %v1633_v48 }
 0x437   : > { %2077 = vpow2.f32 %v1049_v32  ;;  %v1637_v6 = vsel %vm678_vm6, %v1636_v52, %v1635_v57 }
 0x438   : > { %v1639_v7 = vsel %vm681_vm7, %v1638_v0, %v1637_v6 }
 0x439   : > { %v1640_v18 = vpack.c.b16 %v1639_v7, %v1639_v7 }
 0x43b   : > { %v1645_v27 = vsel %vm823_vm12, %v1640_v18, 0 }
 0x43c   : > { %v1321_v46 = vpop.permute.xlu0 %1320 }
 0x43d   : > { %v1323_v49 = vsub.f32 %v2482_v9, %v1321_v46 }
 0x43f   : > { %v1324_v54 = vmul.f32 1.442695, %v1323_v49 }
 0x441   : > { %v2078_v58 = vpop.eup %2077  ;;  %2079 = vpow2.f32 %v1324_v54  ;;  %v871_v60 = vpop.permute.xlu0 %870 }
 0x442   : > { %v873_v2 = vmul.f32 %v871_v60, %v867_v56  ;;  %v1053_v3 = vsel %vm715_vm8, %v2078_v58, 0.0  ;;  %v1059_v5 = vpack.c.bf16 %v2078_v58, %v2078_v58 }
 0x443   : > { %1054 = vadd.xlane.f32.xlu0 %v1053_v3 }
 0x444   : > { %v874_v9 = vadd.f32 %v873_v2, %v2472_v55  ;;  %1979 = vmatmul.mubr.msk.bf16.vlgmr.msra.gmra.mrb[4].mxu0 %vm715_vm8, %v1059_v5 }
 0x445   : > { %1989 = vmatpush3.bf16.msra.mxu0 %v1370_v62  ;;  %1990 = vmatprep.mubr.msk.bf16.mxu0 %vm2136_vm5, %v2135_v24 }
 0x446   : > { %875 = vst.msk [vmem:[#allocation4] sm:$0xff] %vm715_vm8, %v874_v9  ;;  %v1596_v13 = vpop.permute.xlu1 %1595  ;;  %2000 = vmatprep.subr.bf16.mxu0 %v2135_v24 }
 0x447   : > { %v1598_v14 = vsub.f32 %v2488_v17, %v1596_v13 }
 0x449   : > { %v1599_v22 = vmul.f32 1.442695, %v1598_v14 }
 0x44b   : > { %v2080_v47 = vpop.eup %2079  ;;  %2081 = vpow2.f32 %v1599_v22 }
 0x44c   : > { %v1328_v55 = vsel %vm715_vm8, %v2080_v47, 0.0  ;;  %v1334_v26 = vpack.c.bf16 %v2080_v47, %v2080_v47  ;;  %2083 = vpow2.f32 %v1316_v29 }
 0x44d   : > { %1329 = vadd.xlane.f32.xlu1 %v1328_v55  ;;  %2085 = vpow2.f32 %v1591_v31  ;;  %v1137_v49 = vld [vmem:[#allocation4] sm:$0xff] }
 0x44e   : > { %1991 = vmatmul.mubr.msk.bf16.vlgmr.msra.gmra.mrb[8].mxu0 %vm715_vm8, %v1334_v26 }
 0x44f   : > { %2001 = vmatpush3.bf16.msra.mxu0 %v1645_v27  ;;  %2002 = vmatprep.mubr.msk.bf16.mxu0 %vm2136_vm5, %v2135_v24 }
 0x455   : > { %v2082_v17 = vpop.eup %2081 }
 0x456   : > { %v1603_v23 = vsel %vm715_vm8, %v2082_v17, 0.0  ;;  %v1609_v25 = vpack.c.bf16 %v2082_v17, %v2082_v17  ;;  %v2084_v30 = vpop.eup %2083 }
 0x457   : > { %1604 = vadd.xlane.f32.xlu0 %v1603_v23  ;;  %v2086_v37 = vpop.eup %2085 }
 0x458   : > { %2003 = vmatmul.mubr.msk.bf16.vlgmr.msra.gmra.mrb[12].mxu0 %vm715_vm8, %v1609_v25 }
 0x45e   : > { %1415 = vperm.xlu1 %2064, %v2084_v30  }
 0x462   : > { %2066 = vset.pattern.permute.xlu1 %v2137_v28 }
 0x478   : > { %v784_v63 = vpop.xlane.xlu1 %783 }
 0x479   : > { %v785_v4 = vadd.f32 %v784_v63, %v781_v59 }
 0x47b   : > { %787 = vst.msk [vmem:[#allocation3] sm:$0xff] %vm786_vm11, %v785_v4 }
 0x47c   : > { %v1141_v32 = vpop.permute.xlu1 %1140 }
 0x47d   : > { %v1143_v50 = vmul.f32 %v1141_v32, %v1137_v49 }
 0x482   : > { %v1051_v24 = vld [vmem:[#allocation3] sm:$0xff] }
 0x483   : > { %v1052_v12 = vmul.f32 %v2554_v34, %v1051_v24 }
 0x4d0   : > { %v1055_v35 = vpop.xlane.xlu0 %1054 }
 0x4d1   : > { %v1056_v39 = vadd.f32 %v1055_v35, %v1052_v12 }
 0x4d3   : > { %1058 = vst.msk [vmem:[#allocation3] sm:$0xff] %vm1057_vm13, %v1056_v39 }
 0x4da   : > { %v1326_v28 = vld [vmem:[#allocation3] sm:$0xff]  ;;  %v1330_v10 = vpop.xlane.xlu1 %1329 }
 0x4db   : > { %v1327_v33 = vmul.f32 %v2084_v30, %v1326_v28 }
 0x4dd   : > { %v1331_v36 = vadd.f32 %v1330_v10, %v1327_v33 }
 0x4de   : > { %v1416_v56 = vpop.permute.xlu1 %1415 }
 0x4df   : > { %1333 = vst.msk [vmem:[#allocation3] sm:$0xff] %vm1332_vm15, %v1331_v36 }
 0x4e4   : > { %v1605_v34 = vpop.xlane.xlu0 %1604 }
 0x4e6   : > { %v1601_v38 = vld [vmem:[#allocation3] sm:$0xff] }
 0x4e7   : > { %v1602_v40 = vmul.f32 %v2086_v37, %v1601_v38 }
 0x4e9   : > { %v1606_v41 = vadd.f32 %v1605_v34, %v1602_v40 }
 0x4eb   : > { %1608 = vst.msk [vmem:[#allocation3] sm:$0xff] %vm1607_vm9, %v1606_v41 }
 0x4f2   : > { %v1706_v42 = vld [vmem:[#allocation3] sm:$0xff] }
 0x4f3   : > { %1709 = vperm.xlu1 %2066, %v1706_v42  }
 0x4f7   : > { %2068 = vset.pattern.permute.xlu1 %v2140_v21 }
 0x4f8   : > { %1729 = vperm.xlu1 %2068, %v1706_v42  }
 0x4fc   : > { %2069 = vset.pattern.permute.xlu1 %v2141_v45 }
 0x4fd   : > { %1739 = vperm.xlu1 %2069, %v1706_v42  }
 0x517   : > { %v1131_v15 = vpop.f32.mrb[4].mxu0 }
 0x518   : > { %1145 = vrot.lane.b32.xlu0 %v1131_v15, %s2142_s17  ;;  %v1980_v16 = vpop.f32.mrb[5].mxu0 }
 0x519   : > { %v1134_v8 = vpop.f32.mrb[6].mxu0 }
 0x51a   : > { %v1981_v1 = vpop.f32.mrb[7].mxu0 }
 0x51c   : > { %1690 = vperm.xlu0 %2065, %v2086_v37  }
 0x520   : > { %2067 = vset.pattern.permute.xlu0 %v2139_v19 }
 0x521   : > { %v1406_v43 = vpop.f32.mrb[8].mxu0 }
 0x522   : > { %1420 = vrot.lane.b32.xlu0 %v1406_v43, %s2143_s25  ;;  %v1992_v44 = vpop.f32.mrb[9].mxu0 }
 0x523   : > { %v1409_v61 = vpop.f32.mrb[10].mxu0 }
 0x524   : > { %v1993_v11 = vpop.f32.mrb[11].mxu0 }
 0x52b   : > { %v1681_v21 = vpop.f32.mrb[12].mxu0 }
 0x52c   : > { %1695 = vrot.lane.b32.xlu0 %v1681_v21, %s2144_s26  ;;  %v2004_v20 = vpop.f32.mrb[13].mxu0 }
 0x52d   : > { %v1684_v46 = vpop.f32.mrb[14].mxu0 }
 0x52e   : > { %v2005_v48 = vpop.f32.mrb[15].mxu0 }
 0x530   : > { %1719 = vperm.xlu0 %2067, %v1706_v42  }
 0x534   : > { %2070 = vset.pattern.permute.xlu0 %v2141_v45 }
 0x572   : > { %v1710_v62 = vpop.permute.xlu1 %1709 }
 0x573   : > { %2087 = vrcp.f32 %v1710_v62 }
 0x577   : > { %v1730_v0 = vpop.permute.xlu1 %1729 }
 0x57c   : > { %v1740_v6 = vpop.permute.xlu1 %1739 }
 0x57d   : > { %v2088_v7 = vpop.eup %2087 }
 0x58a   : > { %v1146_v51 = vpop.permute.xlu0 %1145 }
 0x58b   : > { %v1148_v19 = vadd.f32 %v1146_v51, %v1143_v50 }
 0x58d   : > { %1150 = vst.msk [vmem:[#allocation4] sm:$0xff] %vm1149_vm0, %v1148_v19 }
 0x594   : > { %v1412_v54 = vld [vmem:[#allocation4] sm:$0xff] }
 0x595   : > { %v1418_v57 = vmul.f32 %v1416_v56, %v1412_v54 }
 0x59b   : > { %v1691_v52 = vpop.permute.xlu0 %1690 }
 0x59f   : > { %v1421_v58 = vpop.permute.xlu0 %1420 }
 0x5a0   : > { %v1423_v60 = vadd.f32 %v1421_v58, %v1418_v57 }
 0x5a2   : > { %1425 = vst.msk [vmem:[#allocation4] sm:$0xff] %vm1424_vm1, %v1423_v60 }
 0x5a3   : > { %v1696_v3 = vpop.permute.xlu0 %1695 }
 0x5a9   : > { %v1687_v45 = vld [vmem:[#allocation4] sm:$0xff] }
 0x5aa   : > { %v1693_v2 = vmul.f32 %v1691_v52, %v1687_v45 }
 0x5ac   : > { %v1698_v5 = vadd.f32 %v1696_v3, %v1693_v2 }
 0x5ae   : > { %1700 = vst.msk [vmem:[#allocation4] sm:$0xff] %vm1699_vm2, %v1698_v5 }
 0x5af   : > { %v1720_v9 = vpop.permute.xlu0 %1719 }
 0x5b0   : > { %2089 = vrcp.f32 %v1720_v9 }
 0x5b1   : > { %2091 = vrcp.f32 %v1730_v0 }
 0x5b2   : > { %2093 = vrcp.f32 %v1740_v6 }
 0x5b5   : > { %v1705_v13 = vld [vmem:[#allocation4] sm:$0xff] }
 0x5b6   : > { %v1713_v14 = vmul.f32 %v2088_v7, %v1705_v13 }
 0x5b8   : > { %1714 = vst.msk [vmem:[%s572_s30] sm:$0xff] %vm715_vm8, %v1713_v14 }
 0x5ba   : > { %v2090_v18 = vpop.eup %2089 }
 0x5bb   : > { %v2092_v22 = vpop.eup %2091  ;;  %v1723_v47 = vmul.f32 %v2090_v18, %v1705_v13 }
 0x5bc   : > { %v2094_v55 = vpop.eup %2093  ;;  %v1733_v26 = vmul.f32 %v2092_v22, %v1705_v13 }
 0x5bd   : > { %v1743_v27 = vmul.f32 %v2094_v55, %v1705_v13  ;;  %1724 = vst.msk [vmem:[%s572_s30] sm:$0xff] %vm1149_vm0, %v1723_v47 }
 0x5be   : > { %1734 = vst.msk [vmem:[%s572_s30] sm:$0xff] %vm1424_vm1, %v1733_v26 }
 0x5bf   : > { %1744 = vst.msk [vmem:[%s572_s30] sm:$0xff] %vm1699_vm2, %v1743_v27 }
 0x5c0 PF: > { %s15_s22 = sadd.s32 1, %s2133_s22   ;;  %s2657_s18 = smov %s2121_s19 }
 0x5c1   : > { %p12_p10 = scmp.ge.s32.totalorder %s15_s22, 4   ;;  %s2658_s19 = smov %s2214_s27 }
 0x5c2   : > { %s2659_s20 = smov %s2129_s21  ;;  %s2660_s21 = smov %s2662_s23 }
 0x5c3   :  { %14 = sbr.rel (!%p12_p10) target bundleno = 3 (0x3), region = 228 }

// kernel: transformer_forward.53
= control target key start
LH: loop header
LB: loop body
LE: loop exit
PB: predicated region body
PF: predicated region fallthrough
CT: control target
= control target key end

     0   :  { %s2105_s18 = smov 0   ;;  %s2107_s19 = smov 0   ;;  %s2576_s0 = inlined_call_operand.vmem [shape: f32[2,8,1,4,8], index: 0, kind: input, shape index: {}]   ;;  %s2577_s1 = inlined_call_operand.vmem [shape: f32[2,8,2,4,8], index: 1, kind: input, shape index: {}, may-alias: {1,2}]   ;;  %s2578_s2 = inlined_call_operand.vmem [shape: f32[2,8,2,4,8], index: 2, kind: input, shape index: {}, may-alias: {1,2}]   ;;  %s2579_s3 = inlined_call_operand.vmem [shape: f32[2,8,1], index: 3, kind: input, shape index: {}]   ;;  %s2580_s4 = inlined_call_operand.vmem [shape: f32[2,1,8], index: 4, kind: input, shape index: {}]   ;;  %s2581_s5 = inlined_call_operand.vmem [shape: f32[2,8,32], index: 5, kind: output, shape index: {}]  }
   0x1   :  { %s2109_s20 = smov 0   ;;  %s2111_s21 = smov 0  }
   0x2   :  { %s2113_s22 = smov 0  }
   0x3 LB: > { %s34_s23 = sadd.s32 1, %s2059_s21  ;;  %p78_p1 = scmp.ne.s32.totalorder %s2051_s19, %s2047_s18  ;;  %s2063_s22 = sphi %s2113_s22, %s15_s22   ;;  %s2059_s21 = sphi %s2111_s21, %s2586_s21   ;;  %s2055_s20 = sphi %s2109_s20, %s2585_s20   ;;  %s2051_s19 = sphi %s2107_s19, %s2584_s19   ;;  %s2047_s18 = sphi %s2105_s18, %s2583_s18  }
   0x4   : > { %p36_p0 = scmp.ge.s32.totalorder %s34_s23, 2  ;;  %p79_p2 = scmp.eq.s32.totalorder %s2063_s22, 0 }
   0x5   : > { %s71_s26 = sadd.s32 1, %s2051_s19  ;;  %p1837_p5 = scmp.ge.s32.totalorder %s2063_s22, 2 }
   0x6   : > { %s2588_s23 = smov (%p36_p0, %s34_s23), 0  ;;  %p2136_p3 = por %p79_p2, %p78_p1 }
   0x7   : > { %s66_s25 = ssub.s32 %s2059_s21, %s2588_s23  ;;  %216 = sbr.rel (%p1837_p5) target bundleno = 32 (0x20), region = 16 }
   0x8   : > { %p69_p4 = scmp.eq.s32.totalorder %s66_s25, 0 }
   0xa   : > { %s2144_s27 = scalar_select %p69_p4, %s2051_s19, %s71_s26  }
   0xe   : > { %232 = sbr.rel (!%p2136_p3) target bundleno = 23 (0x17), region = 24  ;;  %s234_s28 = sand.u32 (%p2136_p3), 1, %s2051_s19  }
   0xf   : > { %s1870_s29 = sshll.u32 (%p2136_p3), %s2059_s21, 6  ;;  %s1838_s30 = sshll.u32 (%p2136_p3), %s234_s28, 5 }
  0x10   : > { %s242_s8 = scalar_lea.vmem (%p2136_p3), %s2577_s1, %s1870_s29  ;;  %s236_s9 = scalar_lea.vmem (%p2136_p3), [#allocation5], %s1838_s30 }
  0x11   : > { %v258_v0 = vld [vmem:[%s242_s8] sm:$0xf] (%p2136_p3)  ;;  %v260_v1 = vld [vmem:[%s242_s8 + $0x8] sm:$0xf] (%p2136_p3)  ;;  %v262_v2 = vld [vmem:[%s242_s8 + $0x10] sm:$0xf] (%p2136_p3) }
  0x12   : > { %259 = vst [vmem:[%s236_s9] sm:$0xf] (%p2136_p3), %v258_v0  ;;  %261 = vst [vmem:[%s236_s9 + $0x4] sm:$0xf] (%p2136_p3), %v260_v1  ;;  %v264_v3 = vld [vmem:[%s242_s8 + $0x18] sm:$0xf] (%p2136_p3) }
  0x13   : > { %v266_v4 = vld [vmem:[%s242_s8 + $0x20] sm:$0xf] (%p2136_p3)  ;;  %263 = vst [vmem:[%s236_s9 + $0x8] sm:$0xf] (%p2136_p3), %v262_v2  ;;  %265 = vst [vmem:[%s236_s9 + $0xc] sm:$0xf] (%p2136_p3), %v264_v3 }
  0x14   : > { %267 = vst [vmem:[%s236_s9 + $0x10] sm:$0xf] (%p2136_p3), %v266_v4  ;;  %v268_v5 = vld [vmem:[%s242_s8 + $0x28] sm:$0xf] (%p2136_p3)  ;;  %v270_v6 = vld [vmem:[%s242_s8 + $0x30] sm:$0xf] (%p2136_p3) }
  0x15   : > { %v272_v7 = vld [vmem:[%s242_s8 + $0x38] sm:$0xf]  ;;  %269 = vst [vmem:[%s236_s9 + $0x14] sm:$0xf] %v268_v5  ;;  %271 = vst [vmem:[%s236_s9 + $0x18] sm:$0xf] %v270_v6 }
  0x16   : > { %273 = vst [vmem:[%s236_s9 + $0x1c] sm:$0xf] %v272_v7 }
  0x17 PF: > { %312 = sbr.rel (!%p2136_p3) target bundleno = 32 (0x20), region = 65  ;;  %s314_s10 = sand.u32 (%p2136_p3), 1, %s2051_s19  }
  0x18   : > { %s1871_s11 = sshll.u32 (%p2136_p3), %s2059_s21, 6  ;;  %s1841_s12 = sshll.u32 (%p2136_p3), %s314_s10, 5 }
  0x19   : > { %s1726_s15 = scalar_lea.vmem (%p2136_p3), %s2578_s2, %s1871_s11  ;;  %s316_s16 = scalar_lea.vmem (%p2136_p3), [#allocation6], %s1841_s12 }
  0x1a   : > { %v1844_v8 = vld [vmem:[%s1726_s15 + $0x4] sm:$0xf] (%p2136_p3)  ;;  %v1845_v9 = vld [vmem:[%s1726_s15 + $0xc] sm:$0xf] (%p2136_p3)  ;;  %v1846_v10 = vld [vmem:[%s1726_s15 + $0x14] sm:$0xf] (%p2136_p3) }
  0x1b   : > { %340 = vst [vmem:[%s316_s16] sm:$0xf] (%p2136_p3), %v1844_v8  ;;  %342 = vst [vmem:[%s316_s16 + $0x4] sm:$0xf] (%p2136_p3), %v1845_v9  ;;  %v1847_v11 = vld [vmem:[%s1726_s15 + $0x1c] sm:$0xf] (%p2136_p3) }
  0x1c   : > { %v1848_v12 = vld [vmem:[%s1726_s15 + $0x24] sm:$0xf] (%p2136_p3)  ;;  %344 = vst [vmem:[%s316_s16 + $0x8] sm:$0xf] (%p2136_p3), %v1846_v10  ;;  %346 = vst [vmem:[%s316_s16 + $0xc] sm:$0xf] (%p2136_p3), %v1847_v11 }
  0x1d   : > { %348 = vst [vmem:[%s316_s16 + $0x10] sm:$0xf] (%p2136_p3), %v1848_v12  ;;  %v1849_v13 = vld [vmem:[%s1726_s15 + $0x2c] sm:$0xf] (%p2136_p3)  ;;  %v1850_v14 = vld [vmem:[%s1726_s15 + $0x34] sm:$0xf] (%p2136_p3) }
  0x1e   : > { %v1851_v15 = vld [vmem:[%s1726_s15 + $0x3c] sm:$0xf]  ;;  %350 = vst [vmem:[%s316_s16 + $0x14] sm:$0xf] %v1849_v13  ;;  %352 = vst [vmem:[%s316_s16 + $0x18] sm:$0xf] %v1850_v14 }
  0x1f   : > { %354 = vst [vmem:[%s316_s16 + $0x1c] sm:$0xf] %v1851_v15 }
  0x20 PF: > { %p1852_p6 = scmp.ge.s32.totalorder %s2063_s22, 1  ;;  %p411_p7 = scmp.lt.s32.totalorder %s2063_s22, 3 }
  0x22   : > { %p412_p8 = pnand %p1852_p6, %p411_p7 }
  0x23   : > { %s418_s17 = sand.u32 (!%p412_p8), 1, %s2047_s18   ;;  %v2065_v16 = vmov (!%p412_p8), 0.0   ;;  %vm602_vm0 = vcmask (!%p412_p8), 1041409   ;;  %vm605_vm1 = vcmask (!%p412_p8), 1042434   ;;  %p481_p9 = scmp.lt.s32.totalorder (!%p412_p8), %s2055_s20, 1  ;;  %vm608_vm2 = vcmask (!%p412_p8), 1043459  }
  0x24   : > { %415 = sbr.rel (%p412_p8) target bundleno = 1461 (0x5b5), region = 114  ;;  %1889 = vmatprep.subr.bf16.mxu0 (!%p412_p8), %v2065_v16  ;;  %s2165_s24 = sshll.u32 (!%p412_p8), %s418_s17, 5  ;;  %1895 = vmatprep.subr.bf16.mxu1 (!%p412_p8), %v2065_v16  ;;  %vm611_vm3 = vcmask (!%p412_p8), 1044484   ;;  %vm614_vm4 = vcmask (!%p412_p8), 1045509   ;;  %vm2066_vm5 = vmmov (!%p412_p8), 0   ;;  %v2067_v20 = vmov (!%p412_p8), 0  }
  0x25   : > { %s2170_s25 = scalar_lea.vmem (!%p412_p8), [#allocation5], %s2165_s24  ;;  %1891 = vmatprep.mubr.msk.bf16.mxu0 (!%p412_p8), %vm2066_vm5, %v2065_v16  ;;  %1987 = vset.pattern.permute.xlu0 (!%p412_p8), %v2067_v20  ;;  %vm617_vm6 = vcmask (!%p412_p8), 1046534   ;;  %vm620_vm7 = vcmask (!%p412_p8), 1047559   ;;  %vm654_vm8 = vcmask (!%p412_p8), 64512   ;;  %vm517_vm9 = vcmask (!%p412_p8), 31744   ;;  %s2245_s12 = scalar_lea.vmem (!%p412_p8), [#allocation6], %s2165_s24 }
  0x26   : > { %v553_v17 = vld [vmem:[%s2170_s25] sm:$0x1] (!%p412_p8)  ;;  %v554_v18 = vld [vmem:[%s2170_s25 + $0x4] sm:$0x1] (!%p412_p8)  ;;  %v555_v19 = vld [vmem:[%s2170_s25 + $0x8] sm:$0x1] (!%p412_p8)  ;;  %1988 = vset.pattern.permute.xlu1 (!%p412_p8), %v2067_v20  ;;  %1897 = vmatprep.mubr.msk.bf16.mxu1 (!%p412_p8), %vm2066_vm5, %v2065_v16 }
  0x27   : > { %v556_v21 = vld [vmem:[%s2170_s25 + $0xc] sm:$0x1] (!%p412_p8)  ;;  %v557_v22 = vld [vmem:[%s2170_s25 + $0x10] sm:$0x1] (!%p412_p8)  ;;  %v558_v23 = vld [vmem:[%s2170_s25 + $0x14] sm:$0x1] (!%p412_p8)  ;;  %v561_v24 = vpack.c.bf16 (!%p412_p8), %v553_v17, %v553_v17  ;;  %v562_v25 = vpack.c.bf16 (!%p412_p8), %v554_v18, %v554_v18  ;;  %v563_v26 = vpack.c.bf16 (!%p412_p8), %v555_v19, %v555_v19 }
  0x28   : > { %v559_v27 = vld [vmem:[%s2170_s25 + $0x18] sm:$0x1] (!%p412_p8)  ;;  %v560_v28 = vld [vmem:[%s2170_s25 + $0x1c] sm:$0x1] (!%p412_p8)  ;;  %v564_v29 = vpack.c.bf16 (!%p412_p8), %v556_v21, %v556_v21  ;;  %v565_v30 = vpack.c.bf16 (!%p412_p8), %v557_v22, %v557_v22  ;;  %v566_v31 = vpack.c.bf16 (!%p412_p8), %v558_v23, %v558_v23  ;;  %519 = vst.msk [vmem:[#allocation3] sm:$0xff] (!%p412_p8), %vm517_vm9, %v2065_v16  ;;  %vm725_vm11 = vcmask (!%p412_p8), 7168  }
  0x29   : > { %v567_v32 = vpack.c.bf16 (!%p412_p8), %v559_v27, %v559_v27  ;;  %v568_v33 = vpack.c.bf16 (!%p412_p8), %v560_v28, %v560_v28  ;;  %v631_v34 = vunpack.c.l.b16 (!%p412_p8), %v561_v24  ;;  %v632_v35 = vunpack.c.l.b16 (!%p412_p8), %v562_v25  ;;  %s2072_s13 = smov (!%p412_p8), 8   ;;  %s2073_s14 = smov (!%p412_p8), 16  }
  0x2a   : > { %v633_v36 = vunpack.c.l.b16 (!%p412_p8), %v563_v26  ;;  %v634_v37 = vunpack.c.l.b16 (!%p412_p8), %v564_v29  ;;  %v635_v38 = vunpack.c.l.b16 (!%p412_p8), %v565_v30  ;;  %v636_v39 = vunpack.c.l.b16 (!%p412_p8), %v566_v31  ;;  %s2074_s15 = smov (!%p412_p8), 24  }
  0x2b   : > { %s2590_s20 = smov (!%p481_p9, %s2055_s20), 1  ;;  %v637_v40 = vunpack.c.l.b16 %v567_v32  ;;  %v638_v41 = vunpack.c.l.b16 %v568_v33  ;;  %v639_v42 = vrot.slane %v632_v35, 7  ;;  %vm762_vm12 = vcmask 1043456  }
  0x2c   : > { %s1872_s18 = sshll.u32 %s2590_s20, 5  ;;  %s1857_s26 = sshll.u32 %s2590_s20, 3  ;;  %v641_v43 = vrot.slane %v633_v36, 6  ;;  %v643_v44 = vrot.slane %v634_v37, 5  ;;  %v645_v45 = vrot.slane %v635_v38, 4  ;;  %v647_v46 = vrot.slane %v636_v39, 3 }
  0x2d   : > { %s2196_s30 = scalar_lea.vmem %s2576_s0, %s1872_s18  ;;  %s498_s8 = scalar_lea.vmem %s2579_s3, %s1857_s26  ;;  %v640_v48 = vsel %vm602_vm0, %v639_v42, %v631_v34  ;;  %v649_v49 = vrot.slane %v637_v40, 2  ;;  %v651_v50 = vrot.slane %v638_v41, 1  ;;  %v2068_v36 = vmov -1e+30  }
  0x2e   : > { %v537_v47 = vld [vmem:[%s2196_s30] sm:$0x1]  ;;  %v538_v51 = vld [vmem:[%s2196_s30 + $0x4] sm:$0x1]  ;;  %v539_v52 = vld [vmem:[%s2196_s30 + $0x8] sm:$0x1]  ;;  %v642_v54 = vsel %vm605_vm1, %v641_v43, %v640_v48  ;;  %s504_s11 = scalar_lea.vmem %s2580_s4, %s2590_s20  ;;  %s511_s24 = scalar_lea.vmem %s2581_s5, %s1857_s26 }
  0x2f   : > { %v545_v53 = vpack.c.bf16 %v537_v47, %v537_v47  ;;  %v540_v55 = vld [vmem:[%s2196_s30 + $0xc] sm:$0x1]  ;;  %v541_v56 = vld [vmem:[%s2196_s30 + $0x10] sm:$0x1]  ;;  %v542_v57 = vld [vmem:[%s2196_s30 + $0x14] sm:$0x1]  ;;  %v546_v58 = vpack.c.bf16 %v538_v51, %v538_v51  ;;  %v547_v59 = vpack.c.bf16 %v539_v52, %v539_v52  ;;  %v644_v60 = vsel %vm608_vm2, %v643_v44, %v642_v54 }
  0x30   : > { %v543_v61 = vld [vmem:[%s2196_s30 + $0x18] sm:$0x1]  ;;  %v544_v62 = vld [vmem:[%s2196_s30 + $0x1c] sm:$0x1]  ;;  %v548_v63 = vpack.c.bf16 %v540_v55, %v540_v55  ;;  %v549_v0 = vpack.c.bf16 %v541_v56, %v541_v56  ;;  %v550_v1 = vpack.c.bf16 %v542_v57, %v542_v57  ;;  %v522_v2 = vld [vmem:[%s498_s8] sm:$0xff]  ;;  %v646_v3 = vsel %vm611_vm3, %v645_v45, %v644_v60  ;;  %518 = vst.msk [vmem:[#allocation2] sm:$0xff] %vm517_vm9, %v2068_v36 }
  0x31   : > { %v551_v4 = vpack.c.bf16 %v543_v61, %v543_v61  ;;  %v552_v5 = vpack.c.bf16 %v544_v62, %v544_v62  ;;  %v593_v6 = vunpack.c.l.b16 %v545_v53  ;;  %526 = vperm.xlu0 %1987, %v522_v2   ;;  %v648_v7 = vsel %vm614_vm4, %v647_v46, %v646_v3  ;;  %v1859_v37 = vld [vmem:[%s504_s11] ss:$0 sm:$0xff]  ;;  %v570_v47 = vld [vmem:[%s2245_s12 + $0x4] sm:$0x1]  ;;  %v572_v51 = vld [vmem:[%s2245_s12 + $0xc] sm:$0x1] }
  0x32   : > { %v594_v8 = vunpack.c.l.b16 %v546_v58  ;;  %v595_v9 = vunpack.c.l.b16 %v547_v59  ;;  %v596_v10 = vunpack.c.l.b16 %v548_v63  ;;  %v650_v11 = vsel %vm617_vm6, %v649_v49, %v648_v7  ;;  %v571_v48 = vld [vmem:[%s2245_s12 + $0x8] sm:$0x1]  ;;  %v573_v54 = vld [vmem:[%s2245_s12 + $0x10] sm:$0x1]  ;;  %v574_v58 = vld [vmem:[%s2245_s12 + $0x14] sm:$0x1] }
  0x33   : > { %v597_v12 = vunpack.c.l.b16 %v549_v0  ;;  %v598_v13 = vunpack.c.l.b16 %v550_v1  ;;  %v599_v14 = vunpack.c.l.b16 %v551_v4  ;;  %v652_v15 = vsel %vm620_vm7, %v651_v50, %v650_v11  ;;  %v569_v50 = vld [vmem:[%s2245_s12] sm:$0x1]  ;;  %v575_v62 = vld [vmem:[%s2245_s12 + $0x18] sm:$0x1]  ;;  %v576_v4 = vld [vmem:[%s2245_s12 + $0x1c] sm:$0x1] }
  0x34   : > { %v600_v17 = vunpack.c.l.b16 %v552_v5  ;;  %v601_v18 = vrot.slane %v594_v8, 7  ;;  %v604_v19 = vrot.slane %v595_v9, 6  ;;  %v653_v21 = vpack.c.b16 %v652_v15, %v652_v15 }
  0x35   : > { %v607_v22 = vrot.slane %v596_v10, 5  ;;  %v610_v23 = vrot.slane %v597_v12, 4  ;;  %v613_v25 = vrot.slane %v598_v13, 3  ;;  %v616_v28 = vrot.slane %v599_v14, 2 }
  0x36   : > { %v603_v24 = vsel %vm602_vm0, %v601_v18, %v593_v6  ;;  %v659_v26 = vsel %vm654_vm8, %v653_v21, 0  ;;  %v619_v30 = vrot.slane %v600_v17, 1  ;;  %v578_v49 = vpack.c.bf16 %v570_v47, %v570_v47 }
  0x37   : > { %v606_v27 = vsel %vm605_vm1, %v604_v19, %v603_v24  ;;  %1890 = vmatpush3.bf16.xpose.msra.mxu0 %v659_v26  ;;  %v579_v52 = vpack.c.bf16 %v571_v48, %v571_v48  ;;  %v2251_v53 = vld [vmem:[#allocation2] sm:$0xff]  ;;  %v577_v55 = vpack.c.bf16 %v569_v50, %v569_v50  ;;  %v580_v56 = vpack.c.bf16 %v572_v51, %v572_v51  ;;  %v838_v51 = vld [vmem:[%s2170_s25 + $0x19] sm:$0x1] }
  0x38   : > { %v609_v29 = vsel %vm608_vm2, %v607_v22, %v606_v27  ;;  %1907 = vmatprep.subr.bf16.mxu0 %v2065_v16  ;;  %v737_v57 = vunpack.c.l.b16 %v578_v49  ;;  %v581_v59 = vpack.c.bf16 %v573_v54, %v573_v54  ;;  %v582_v63 = vpack.c.bf16 %v574_v58, %v574_v58  ;;  %v818_v49 = vld [vmem:[%s2196_s30 + $0x9] sm:$0x1]  ;;  %v819_v58 = vld [vmem:[%s2196_s30 + $0xd] sm:$0x1] }
  0x39   : > { %v612_v31 = vsel %vm611_vm3, %v610_v23, %v609_v29  ;;  %v738_v60 = vunpack.c.l.b16 %v579_v52  ;;  %v736_v0 = vunpack.c.l.b16 %v577_v55  ;;  %v739_v1 = vunpack.c.l.b16 %v580_v56  ;;  %v833_v29 = vld [vmem:[%s2170_s25 + $0x5] sm:$0x1]  ;;  %v816_v55 = vld [vmem:[%s2196_s30 + $0x1] sm:$0x1] }
  0x3a   : > { %v615_v32 = vsel %vm614_vm4, %v613_v25, %v612_v31  ;;  %v744_v2 = vrot.slane %v737_v57, 7  ;;  %v583_v5 = vpack.c.bf16 %v575_v62, %v575_v62  ;;  %v740_v6 = vunpack.c.l.b16 %v581_v59 }
  0x3b   : > { %v618_v33 = vsel %vm617_vm6, %v616_v28, %v615_v32  ;;  %v746_v7 = vrot.slane %v738_v60, 6  ;;  %v584_v8 = vpack.c.bf16 %v576_v4, %v576_v4  ;;  %v741_v9 = vunpack.c.l.b16 %v582_v63  ;;  %v832_v32 = vld [vmem:[%s2170_s25 + $0x1] sm:$0x1]  ;;  %v839_v60 = vld [vmem:[%s2170_s25 + $0x1d] sm:$0x1] }
  0x3c   : > { %v621_v34 = vsel %vm620_vm7, %v619_v30, %v618_v33  ;;  %v745_v10 = vsel %vm602_vm0, %v744_v2, %v736_v0  ;;  %v748_v11 = vrot.slane %v739_v1, 5  ;;  %v742_v13 = vunpack.c.l.b16 %v583_v5  ;;  %v834_v30 = vld [vmem:[%s2170_s25 + $0x9] sm:$0x1]  ;;  %v835_v33 = vld [vmem:[%s2170_s25 + $0xd] sm:$0x1] }
  0x3d   : > { %v622_v35 = vpack.c.b16 %v621_v34, %v621_v34  ;;  %v747_v14 = vsel %vm605_vm1, %v746_v7, %v745_v10  ;;  %v750_v15 = vrot.slane %v740_v6, 4  ;;  %v743_v17 = vunpack.c.l.b16 %v584_v8  ;;  %v820_v4 = vld [vmem:[%s2196_s30 + $0x11] sm:$0x1] }
  0x3e   : > { %v749_v18 = vsel %vm608_vm2, %v748_v11, %v747_v14  ;;  %v752_v19 = vrot.slane %v741_v9, 3  ;;  %v754_v22 = vrot.slane %v742_v13, 2  ;;  %v841_v31 = vpack.c.bf16 %v833_v29, %v833_v29  ;;  %v1108_v9 = vld [vmem:[%s2170_s25 + $0x6] sm:$0x1] }
  0x3f   : > { %1892 = vmatmul.mubr.msk.bf16.vlgmr.msra.gmra.mrb[0].mxu0 %vm654_vm8, %v622_v35  ;;  %v751_v21 = vsel %vm611_vm3, %v750_v15, %v749_v18  ;;  %v756_v24 = vrot.slane %v743_v17, 1  ;;  %v842_v34 = vpack.c.bf16 %v834_v30, %v834_v30  ;;  %v840_v35 = vpack.c.bf16 %v832_v32, %v832_v32  ;;  %v821_v15 = vld [vmem:[%s2196_s30 + $0x15] sm:$0x1]  ;;  %v1110_v32 = vld [vmem:[%s2170_s25 + $0xe] sm:$0x1] }
  0x40   : > { %1909 = vmatprep.mubr.msk.bf16.mxu0 %vm2066_vm5, %v2065_v16  ;;  %v753_v23 = vsel %vm614_vm4, %v752_v19, %v751_v21  ;;  %v904_v36 = vunpack.c.l.b16 %v841_v31  ;;  %v826_v59 = vpack.c.bf16 %v818_v49, %v818_v49  ;;  %v824_v63 = vpack.c.bf16 %v816_v55, %v816_v55  ;;  %v1109_v21 = vld [vmem:[%s2170_s25 + $0xa] sm:$0x1] }
  0x41   : > { %v755_v25 = vsel %vm617_vm6, %v754_v22, %v753_v23  ;;  %v827_v5 = vpack.c.bf16 %v819_v58, %v819_v58  ;;  %v847_v6 = vpack.c.bf16 %v839_v60, %v839_v60  ;;  %v828_v17 = vpack.c.bf16 %v820_v4, %v820_v4  ;;  %v1383_v58 = vld [vmem:[%s2170_s25 + $0x7] sm:$0x1] }
  0x42   : > { %v757_v26 = vsel %vm620_vm7, %v756_v24, %v755_v25  ;;  %v874_v8 = vunpack.c.l.b16 %v826_v59  ;;  %v872_v11 = vunpack.c.l.b16 %v824_v63  ;;  %v1116_v22 = vpack.c.bf16 %v1108_v9, %v1108_v9  ;;  %v1107_v25 = vld [vmem:[%s2170_s25 + $0x2] sm:$0x1] }
  0x43   : > { %v758_v27 = vpack.c.b16 %v757_v26, %v757_v26  ;;  %v875_v19 = vunpack.c.l.b16 %v827_v5  ;;  %v910_v23 = vunpack.c.l.b16 %v847_v6  ;;  %v876_v31 = vunpack.c.l.b16 %v828_v17  ;;  %v1114_v5 = vld [vmem:[%s2170_s25 + $0x1e] sm:$0x1]  ;;  %v1091_v17 = vld [vmem:[%s2196_s30 + $0x2] sm:$0x1] }
  0x44   : > { %v882_v24 = vrot.slane %v874_v8, 6  ;;  %v1391_v8 = vpack.c.bf16 %v1383_v58, %v1383_v58  ;;  %vm996_vm13 = vcmask 15368   ;;  %vm520_vm14 = vcmask 261120  }
  0x45   : > { %v764_v28 = vsel %vm762_vm12, %v758_v27, 0  ;;  %v822_v27 = vld [vmem:[%s2196_s30 + $0x19] sm:$0x1]  ;;  %vm1271_vm15 = vcmask 23568   ;;  %521 = vst.msk [vmem:[#allocation4] sm:$0xff] %vm520_vm14, %v2065_v16  ;;  %vm1546_vm9 = vcmask 31768  }
  0x46   : > { %1896 = vmatpush3.bf16.msra.mxu1 %v764_v28  ;;  %v829_v28 = vpack.c.bf16 %v821_v15, %v821_v15 }
  0x47   : > { %1901 = vmatprep.subr.bf16.mxu1 %v2065_v16 }
  0xb0   : > { %v527_v38 = vpop.permute.xlu0 %526 }
  0xb1   : > { %v2235_v39 = vmul.f32 %v1859_v37, %v527_v38  ;;  %v836_v37 = vld [vmem:[%s2170_s25 + $0x11] sm:$0x1]  ;;  %v843_v38 = vpack.c.bf16 %v835_v33, %v835_v33  ;;  %v1117_v33 = vpack.c.bf16 %v1109_v21, %v1109_v21  ;;  %v1122_v21 = vpack.c.bf16 %v1114_v5, %v1114_v5  ;;  %v1366_v5 = vld [vmem:[%s2196_s30 + $0x3] sm:$0x1] }
  0xb3   : > { %vm536_vm10 = vcmp.gt.f32.partialorder %v2235_v39, 0.0  ;;  %v906_v47 = vunpack.c.l.b16 %v843_v38  ;;  %v823_v38 = vld [vmem:[%s2196_s30 + $0x1d] sm:$0x1] }
  0xb4   : > { %v831_v49 = vpack.c.bf16 %v823_v38, %v823_v38  ;;  %v849_v39 = vld [vmem:[%s2245_s12 + $0x5] sm:$0x1] }
  0xb5   : > { %v915_v57 = vrot.slane %v906_v47, 5  ;;  %v886_v47 = vrot.slane %v876_v31, 4 }
  0xb6   : > { %v2310_v4 = vunpack.c.l.b16 %v831_v49  ;;  %v1095_v49 = vld [vmem:[%s2196_s30 + $0x12] sm:$0x1] }
 0x112   : > { %v695_v40 = vpop.f32.mrb[0].mxu0 }
 0x113   : > { %v701_v41 = vmul.f32 0.35355338, %v695_v40  ;;  %v1893_v42 = vpop.f32.mrb[1].mxu0  ;;  %v905_v40 = vunpack.c.l.b16 %v842_v34  ;;  %v884_v34 = vrot.slane %v875_v19, 5 }
 0x114   : > { %v698_v43 = vpop.f32.mrb[2].mxu0  ;;  %v911_v42 = vrot.slane %v904_v36, 7  ;;  %v1179_v36 = vunpack.c.l.b16 %v1116_v22 }
 0x115   : > { %v1894_v44 = vpop.f32.mrb[3].mxu0  ;;  %v2240_v45 = vsel %vm536_vm10, %v701_v41, -1e+09  ;;  %v903_v41 = vunpack.c.l.b16 %v840_v35  ;;  %v817_v43 = vld [vmem:[%s2196_s30 + $0x5] sm:$0x1]  ;;  %v913_v48 = vrot.slane %v905_v40, 6  ;;  %v1115_v35 = vpack.c.bf16 %v1107_v25, %v1107_v25 }
 0x116   : > { %v704_v46 = vsel %vm654_vm8, %v2240_v45, -inf  ;;  %v837_v44 = vld [vmem:[%s2170_s25 + $0x15] sm:$0x1]  ;;  %v825_v50 = vpack.c.bf16 %v817_v43, %v817_v43  ;;  %v830_v40 = vpack.c.bf16 %v822_v27, %v822_v27  ;;  %v877_v43 = vunpack.c.l.b16 %v829_v28 }
 0x117   : > { %705 = vmax.xlane.f32.xlu0 %v704_v46  ;;  %v844_v46 = vpack.c.bf16 %v836_v37, %v836_v37  ;;  %v845_v52 = vpack.c.bf16 %v837_v44, %v837_v44  ;;  %v912_v54 = vsel %vm602_vm0, %v911_v42, %v903_v41  ;;  %v923_v37 = vrot.slane %v910_v23, 1  ;;  %v1111_v44 = vld [vmem:[%s2170_s25 + $0x12] sm:$0x1] }
 0x118   : > { %v914_v62 = vsel %vm605_vm1, %v913_v48, %v912_v54  ;;  %v873_v0 = vunpack.c.l.b16 %v825_v50  ;;  %v1180_v48 = vunpack.c.l.b16 %v1117_v33  ;;  %v1186_v54 = vrot.slane %v1179_v36, 7  ;;  %v1094_v33 = vld [vmem:[%s2196_s30 + $0xe] sm:$0x1] }
 0x119   : > { %v907_v56 = vunpack.c.l.b16 %v844_v46  ;;  %v908_v1 = vunpack.c.l.b16 %v845_v52  ;;  %v916_v7 = vsel %vm608_vm2, %v915_v57, %v914_v62  ;;  %v1118_v46 = vpack.c.bf16 %v1110_v32, %v1110_v32  ;;  %v1113_v62 = vld [vmem:[%s2170_s25 + $0x1a] sm:$0x1] }
 0x11a   : > { %v880_v13 = vrot.slane %v873_v0, 7  ;;  %v1178_v52 = vunpack.c.l.b16 %v1115_v35  ;;  %v1119_v57 = vpack.c.bf16 %v1111_v44, %v1111_v44  ;;  %v888_v59 = vrot.slane %v877_v43, 3 }
 0x11b   : > { %v917_v2 = vrot.slane %v907_v56, 4  ;;  %v919_v14 = vrot.slane %v908_v1, 3  ;;  %v878_v56 = vunpack.c.l.b16 %v830_v40  ;;  %v1181_v60 = vunpack.c.l.b16 %v1118_v46  ;;  %v1092_v1 = vld [vmem:[%s2196_s30 + $0x6] sm:$0x1]  ;;  %v1386_v40 = vld [vmem:[%s2170_s25 + $0x13] sm:$0x1] }
 0x11c   : > { %v881_v29 = vsel %vm602_vm0, %v880_v13, %v872_v11  ;;  %v1188_v0 = vrot.slane %v1180_v48, 6  ;;  %v1187_v6 = vsel %vm602_vm0, %v1186_v54, %v1178_v52  ;;  %v1382_v11 = vld [vmem:[%s2170_s25 + $0x3] sm:$0x1]  ;;  %v1100_v19 = vpack.c.bf16 %v1092_v1, %v1092_v1  ;;  %v1096_v54 = vld [vmem:[%s2196_s30 + $0x16] sm:$0x1] }
 0x11d   : > { %v918_v18 = vsel %vm611_vm3, %v917_v2, %v916_v7  ;;  %v883_v41 = vsel %vm605_vm1, %v882_v24, %v881_v29  ;;  %v1384_v7 = vld [vmem:[%s2170_s25 + $0xb] sm:$0x1]  ;;  %v890_v9 = vrot.slane %v878_v56, 2  ;;  %v1190_v15 = vrot.slane %v1181_v60, 5  ;;  %v1385_v24 = vld [vmem:[%s2170_s25 + $0xf] sm:$0x1] }
 0x11e   : > { %v920_v30 = vsel %vm614_vm4, %v919_v14, %v918_v18  ;;  %v885_v50 = vsel %vm608_vm2, %v884_v34, %v883_v41  ;;  %v1121_v14 = vpack.c.bf16 %v1113_v62, %v1113_v62  ;;  %v1093_v18 = vld [vmem:[%s2196_s30 + $0xa] sm:$0x1]  ;;  %v1189_v23 = vsel %vm605_vm1, %v1188_v0, %v1187_v6  ;;  %v1097_v6 = vld [vmem:[%s2196_s30 + $0x1a] sm:$0x1] }
 0x11f   : > { %v1392_v25 = vpack.c.bf16 %v1384_v7, %v1384_v7  ;;  %v892_v27 = vrot.slane %v2310_v4, 1  ;;  %v1390_v28 = vpack.c.bf16 %v1382_v11, %v1382_v11  ;;  %v1454_v29 = vunpack.c.l.b16 %v1391_v8 }
 0x120   : > { %v1099_v34 = vpack.c.bf16 %v1091_v17, %v1091_v17  ;;  %v1101_v35 = vpack.c.bf16 %v1093_v18, %v1093_v18  ;;  %v1148_v38 = vunpack.c.l.b16 %v1100_v19  ;;  %v1393_v41 = vpack.c.bf16 %v1385_v24, %v1385_v24  ;;  %v1369_v17 = vld [vmem:[%s2196_s30 + $0xf] sm:$0x1] }
 0x121   : > { %v2332_v43 = vunpack.c.l.b16 %v1122_v21  ;;  %v1455_v46 = vunpack.c.l.b16 %v1392_v25  ;;  %v1461_v52 = vrot.slane %v1454_v29, 7  ;;  %v1394_v58 = vpack.c.bf16 %v1386_v40, %v1386_v40 }
 0x122   : > { %v1149_v56 = vunpack.c.l.b16 %v1101_v35  ;;  %v1456_v60 = vunpack.c.l.b16 %v1393_v41  ;;  %v1103_v1 = vpack.c.bf16 %v1095_v49, %v1095_v49  ;;  %v1104_v7 = vpack.c.bf16 %v1096_v54, %v1096_v54 }
 0x123   : > { %v1198_v0 = vrot.slane %v2332_v43, 1  ;;  %v1105_v24 = vpack.c.bf16 %v1097_v6, %v1097_v6 }
 0x124   : > { %v1465_v21 = vrot.slane %v1456_v60, 5  ;;  %v1151_v25 = vunpack.c.l.b16 %v1103_v1  ;;  %v1372_v1 = vld [vmem:[%s2196_s30 + $0x1b] sm:$0x1] }
 0x125   : > { %v1153_v54 = vunpack.c.l.b16 %v1105_v24 }
 0x126   : > { %v1161_v49 = vrot.slane %v1151_v25, 4 }
 0x1a4   : > { %v706_v61 = vpop.xlane.xlu0 %705 }
 0x1a5   : > { %v2257_v3 = vmax.f32 %v2251_v53, %v706_v61  ;;  %v846_v61 = vpack.c.bf16 %v838_v51, %v838_v51  ;;  %v1112_v51 = vld [vmem:[%s2170_s25 + $0x16] sm:$0x1] }
 0x1a6   : > { %v1120_v63 = vpack.c.bf16 %v1112_v51, %v1112_v51  ;;  %v1453_v51 = vunpack.c.l.b16 %v1390_v28  ;;  %v1389_v28 = vld [vmem:[%s2170_s25 + $0x1f] sm:$0x1] }
 0x1a7   : > { %v708_v12 = vsub.f32 %v2251_v53, %v2257_v3  ;;  %815 = vst.msk [vmem:[#allocation2] sm:$0xff] %vm725_vm11, %v2257_v3  ;;  %713 = vperm.xlu1 %1988, %v2257_v3   ;;  %v909_v10 = vunpack.c.l.b16 %v846_v61  ;;  %v887_v61 = vsel %vm611_vm3, %v886_v47, %v885_v50  ;;  %v1367_v47 = vld [vmem:[%s2196_s30 + $0x7] sm:$0x1]  ;;  %v1102_v50 = vpack.c.bf16 %v1094_v33, %v1094_v33  ;;  %v1098_v33 = vld [vmem:[%s2196_s30 + $0x1e] sm:$0x1] }
 0x1a8   : > { %v889_v13 = vsel %vm614_vm4, %v888_v59, %v887_v61  ;;  %v1183_v22 = vunpack.c.l.b16 %v1120_v63  ;;  %v1155_v59 = vrot.slane %v1148_v38, 7  ;;  %v1368_v61 = vld [vmem:[%s2196_s30 + $0xb] sm:$0x1]  ;;  %v1375_v62 = vpack.c.bf16 %v1367_v47, %v1367_v47 }
 0x1a9   : > { %v921_v26 = vrot.slane %v909_v10, 2  ;;  %v1182_v10 = vunpack.c.l.b16 %v1119_v57  ;;  %v2326_v31 = vsel %vm617_vm6, %v890_v9, %v889_v13  ;;  %v1387_v57 = vld [vmem:[%s2170_s25 + $0x17] sm:$0x1]  ;;  %v1150_v8 = vunpack.c.l.b16 %v1102_v50  ;;  %v1388_v9 = vld [vmem:[%s2170_s25 + $0x1b] sm:$0x1] }
 0x1aa   : > { %v1194_v44 = vrot.slane %v1183_v22, 3  ;;  %v1462_v11 = vsel %vm602_vm0, %v1461_v52, %v1453_v51  ;;  %v1376_v18 = vpack.c.bf16 %v1368_v61, %v1368_v61  ;;  %v1374_v22 = vpack.c.bf16 %v1366_v5, %v1366_v5  ;;  %v1371_v51 = vld [vmem:[%s2196_s30 + $0x17] sm:$0x1] }
 0x1ab   : > { %v922_v42 = vsel %vm617_vm6, %v921_v26, %v920_v30  ;;  %v1192_v32 = vrot.slane %v1182_v10, 4  ;;  %v1395_v10 = vpack.c.bf16 %v1387_v57, %v1387_v57  ;;  %v1396_v29 = vpack.c.bf16 %v1388_v9, %v1388_v9 }
 0x1ac   : > { %v924_v55 = vsel %vm620_vm7, %v923_v37, %v922_v42  ;;  %v1191_v37 = vsel %vm608_vm2, %v1190_v15, %v1189_v23  ;;  %v1184_v42 = vunpack.c.l.b16 %v1121_v14  ;;  %v1157_v14 = vrot.slane %v1149_v56, 6 }
 0x1ad   : > { %v925_v2 = vpack.c.b16 %v924_v55, %v924_v55  ;;  %v1147_v55 = vunpack.c.l.b16 %v1099_v34  ;;  %v1457_v15 = vunpack.c.l.b16 %v1394_v58  ;;  %v1423_v23 = vunpack.c.l.b16 %v1375_v62 }
 0x1ae   : > { %v1196_v63 = vrot.slane %v1184_v42, 2  ;;  %v1159_v34 = vrot.slane %v1150_v8, 5  ;;  %v1458_v35 = vunpack.c.l.b16 %v1395_v10  ;;  %v1152_v38 = vunpack.c.l.b16 %v1104_v7 }
 0x1af   : > { %v2322_v26 = vsel %vm654_vm8, %v925_v2, 0  ;;  %v1463_v2 = vrot.slane %v1455_v46, 6  ;;  %v1156_v19 = vsel %vm602_vm0, %v1155_v59, %v1147_v55  ;;  %v1467_v41 = vrot.slane %v1457_v15, 4  ;;  %v1373_v15 = vld [vmem:[%s2196_s30 + $0x1f] sm:$0x1] }
 0x1b0   : > { %v1158_v40 = vsel %vm605_vm1, %v1157_v14, %v1156_v19  ;;  %v1424_v42 = vunpack.c.l.b16 %v1376_v18  ;;  %v1397_v43 = vpack.c.bf16 %v1389_v28, %v1389_v28  ;;  %v1422_v46 = vunpack.c.l.b16 %v1374_v22 }
 0x1b1   : > { %v1430_v47 = vrot.slane %v1423_v23, 7  ;;  %v1459_v50 = vunpack.c.l.b16 %v1396_v29  ;;  %v1160_v55 = vsel %vm608_vm2, %v1159_v34, %v1158_v40  ;;  %v1469_v56 = vrot.slane %v1458_v35, 3 }
 0x1b2   : > { %v1432_v61 = vrot.slane %v1424_v42, 6  ;;  %v1163_v62 = vrot.slane %v1152_v38, 3  ;;  %v1162_v6 = vsel %vm611_vm3, %v1161_v49, %v1160_v55  ;;  %v1165_v14 = vrot.slane %v1153_v54, 2 }
 0x1b3   : > { %v1431_v5 = vsel %vm602_vm0, %v1430_v47, %v1422_v46  ;;  %v1471_v7 = vrot.slane %v1459_v50, 2  ;;  %v1381_v23 = vpack.c.bf16 %v1373_v15, %v1373_v15  ;;  %v2420_v15 = vld [vmem:[#allocation2] sm:$0xff] }
 0x1b4   : > { %v1164_v18 = vsel %vm614_vm4, %v1163_v62, %v1162_v6 }
 0x1b5   : > { %v1166_v28 = vsel %vm617_vm6, %v1165_v14, %v1164_v18  ;;  %v1429_v35 = vunpack.c.l.b16 %v1381_v23  ;;  %v857_v18 = vpack.c.bf16 %v849_v39, %v849_v39 }
 0x226   : > { %v714_v30 = vpop.permute.xlu1 %713 }
 0x227   : > { %v716_v36 = vsub.f32 %v2240_v45, %v714_v30  ;;  %v1193_v45 = vsel %vm611_vm3, %v1192_v32, %v1191_v37  ;;  %v1464_v30 = vsel %vm605_vm1, %v1463_v2, %v1462_v11  ;;  %v1377_v37 = vpack.c.bf16 %v1369_v17, %v1369_v17 }
 0x228   : > { %v1195_v13 = vsel %vm614_vm4, %v1194_v44, %v1193_v45  ;;  %v1466_v44 = vsel %vm608_vm2, %v1465_v21, %v1464_v30  ;;  %v1379_v2 = vpack.c.bf16 %v1371_v51, %v1371_v51  ;;  %v1380_v17 = vpack.c.bf16 %v1372_v1, %v1372_v1 }
 0x229   : > { %v717_v48 = vmul.f32 1.442695, %v716_v36  ;;  %v1197_v32 = vsel %vm617_vm6, %v1196_v63, %v1195_v13  ;;  %v1370_v36 = vld [vmem:[%s2196_s30 + $0x13] sm:$0x1]  ;;  %v1425_v57 = vunpack.c.l.b16 %v1377_v37  ;;  %v1468_v60 = vsel %vm611_vm3, %v1467_v41, %v1466_v44 }
 0x22a   : > { %v1378_v52 = vpack.c.bf16 %v1370_v36, %v1370_v36  ;;  %v1199_v59 = vsel %vm620_vm7, %v1198_v0, %v1197_v32  ;;  %v1460_v63 = vunpack.c.l.b16 %v1397_v43  ;;  %v893_v0 = vsel %vm620_vm7, %v892_v27, %v2326_v31 }
 0x22b   : > { %2001 = vpow2.f32 %v717_v48  ;;  %v1106_v48 = vpack.c.bf16 %v1098_v33, %v1098_v33  ;;  %v1470_v10 = vsel %vm614_vm4, %v1469_v56, %v1468_v60  ;;  %v1434_v11 = vrot.slane %v1425_v57, 5 }
 0x22c   : > { %v1426_v8 = vunpack.c.l.b16 %v1378_v52  ;;  %v1200_v13 = vpack.c.b16 %v1199_v59, %v1199_v59  ;;  %v1473_v19 = vrot.slane %v1460_v63, 1  ;;  %v1427_v21 = vunpack.c.l.b16 %v1379_v2 }
 0x22d   : > { %v1154_v9 = vunpack.c.l.b16 %v1106_v48  ;;  %v894_v22 = vpack.c.b16 %v893_v0, %v893_v0  ;;  %v1472_v4 = vsel %vm617_vm6, %v1471_v7, %v1470_v10  ;;  %v1428_v29 = vunpack.c.l.b16 %v1380_v17 }
 0x22e   : > { %v1436_v27 = vrot.slane %v1426_v8, 4  ;;  %v1205_v25 = vsel %vm654_vm8, %v1200_v13, 0  ;;  %v1474_v30 = vsel %vm620_vm7, %v1473_v19, %v1472_v4  ;;  %v1438_v32 = vrot.slane %v1427_v21, 3  ;;  %v848_v19 = vld [vmem:[%s2245_s12 + $0x1] sm:$0x1] }
 0x22f   : > { %v1167_v31 = vrot.slane %v1154_v9, 1  ;;  %v1475_v36 = vpack.c.b16 %v1474_v30, %v1474_v30  ;;  %v1440_v37 = vrot.slane %v1428_v29, 2  ;;  %v1442_v41 = vrot.slane %v1429_v35, 1  ;;  %v851_v21 = vld [vmem:[%s2245_s12 + $0xd] sm:$0x1] }
 0x230   : > { %v2070_v13 = vmov 2   ;;  %v709_v4 = vmul.f32 1.442695, %v708_v12  ;;  %v859_v23 = vpack.c.bf16 %v851_v21, %v851_v21  ;;  %v854_v30 = vld [vmem:[%s2245_s12 + $0x19] sm:$0x1] }
 0x231   : > { %v1168_v34 = vsel %vm620_vm7, %v1167_v31, %v1166_v28  ;;  %v1480_v42 = vsel %vm654_vm8, %v1475_v36, 0  ;;  %1990 = vset.pattern.permute.xlu0 %v2070_v13  ;;  %v856_v31 = vpack.c.bf16 %v848_v19, %v848_v19  ;;  %v855_v35 = vld [vmem:[%s2245_s12 + $0x1d] sm:$0x1]  ;;  %v862_v36 = vpack.c.bf16 %v854_v30, %v854_v30  ;;  %v1125_v19 = vld [vmem:[%s2245_s12 + $0xa] sm:$0x1] }
 0x232   : > { %v1169_v40 = vpack.c.b16 %v1168_v34, %v1168_v34  ;;  %v1010_v34 = vunpack.c.l.b16 %v859_v23  ;;  %2003 = vpow2.f32 %v709_v4 }
 0x235   : > { %v2356_v45 = vpop.eup %2001 }
 0x236   : > { %v727_v58 = vpack.c.bf16 %v2356_v45, %v2356_v45 }
 0x238   : > { %1898 = vmatmul.mubr.msk.bf16.vlgmr.msra.gmra.mrb[0].mxu1 %vm654_vm8, %v727_v58 }
 0x239   : > { %1902 = vmatpush3.bf16.xpose.msra.mxu1 %v2322_v26  ;;  %1903 = vmatprep.mubr.msk.bf16.mxu1 %vm2066_vm5, %v2065_v16  ;;  %v1433_v26 = vsel %vm605_vm1, %v1432_v61, %v1431_v5 }
 0x23a   : > { %1913 = vmatprep.subr.bf16.mxu1 %v2065_v16  ;;  %v1435_v24 = vsel %vm608_vm2, %v1434_v11, %v1433_v26  ;;  %v2069_v11 = vmov 1   ;;  %v850_v26 = vld [vmem:[%s2245_s12 + $0x9] sm:$0x1] }
 0x23b   : > { %v1437_v33 = vsel %vm611_vm3, %v1436_v27, %v1435_v24  ;;  %1989 = vset.pattern.permute.xlu1 %v2069_v11  ;;  %v852_v27 = vld [vmem:[%s2245_s12 + $0x11] sm:$0x1]  ;;  %v1008_v24 = vunpack.c.l.b16 %v857_v18  ;;  %v1124_v18 = vld [vmem:[%s2245_s12 + $0x6] sm:$0x1] }
 0x23c   : > { %v1439_v38 = vsel %vm614_vm4, %v1438_v32, %v1437_v33  ;;  %v860_v28 = vpack.c.bf16 %v852_v27, %v852_v27  ;;  %v1007_v33 = vunpack.c.l.b16 %v856_v31  ;;  %v1132_v21 = vpack.c.bf16 %v1124_v18, %v1124_v18  ;;  %v1127_v27 = vld [vmem:[%s2245_s12 + $0x12] sm:$0x1] }
 0x23d   : > { %v1441_v43 = vsel %vm617_vm6, %v1440_v37, %v1439_v38  ;;  %v1015_v3 = vrot.slane %v1008_v24, 7  ;;  %v2071_v37 = vmov 3   ;;  %v863_v38 = vpack.c.bf16 %v855_v35, %v855_v35 }
 0x23e   : > { %v1443_v44 = vsel %vm620_vm7, %v1442_v41, %v1441_v43  ;;  %v1011_v53 = vunpack.c.l.b16 %v860_v28  ;;  %v1019_v41 = vrot.slane %v1010_v34, 5  ;;  %v1283_v4 = vunpack.c.l.b16 %v1132_v21  ;;  %v1399_v28 = vld [vmem:[%s2245_s12 + $0x7] sm:$0x1]  ;;  %v1400_v34 = vld [vmem:[%s2245_s12 + $0xb] sm:$0x1] }
 0x23f   : > { %v1444_v46 = vpack.c.b16 %v1443_v44, %v1443_v44  ;;  %v1016_v43 = vsel %vm602_vm0, %v1015_v3, %v1007_v33  ;;  %v1135_v30 = vpack.c.bf16 %v1127_v27, %v1127_v27  ;;  %v1407_v35 = vpack.c.bf16 %v1399_v28, %v1399_v28 }
 0x240   : > { %1904 = vmatmul.mubr.msk.bf16.vlgmr.msra.gmra.mrb[4].mxu1 %vm654_vm8, %v894_v22  ;;  %v858_v22 = vpack.c.bf16 %v850_v26, %v850_v26  ;;  %v1021_v44 = vrot.slane %v1011_v53, 4 }
 0x241   : > { %1914 = vmatpush3.bf16.xpose.msra.mxu1 %v1205_v25  ;;  %1915 = vmatprep.mubr.msk.bf16.mxu1 %vm2066_vm5, %v2065_v16  ;;  %v853_v25 = vld [vmem:[%s2245_s12 + $0x15] sm:$0x1] }
 0x242   : > { %1925 = vmatprep.subr.bf16.mxu1 %v2065_v16  ;;  %v1009_v29 = vunpack.c.l.b16 %v858_v22  ;;  %v861_v32 = vpack.c.bf16 %v853_v25, %v853_v25  ;;  %v1133_v22 = vpack.c.bf16 %v1125_v19, %v1125_v19  ;;  %v1290_v25 = vrot.slane %v1283_v4, 7 }
 0x244   : > { %v1017_v12 = vrot.slane %v1009_v29, 6  ;;  %v1284_v23 = vunpack.c.l.b16 %v1133_v22  ;;  %v1128_v29 = vld [vmem:[%s2245_s12 + $0x16] sm:$0x1] }
 0x245   : > { %v1136_v53 = vpack.c.bf16 %v1128_v29, %v1128_v29  ;;  %v1405_v29 = vld [vmem:[%s2245_s12 + $0x1f] sm:$0x1] }
 0x246   : > { %v1292_v33 = vrot.slane %v1284_v23, 6 }
 0x248   : > { %1916 = vmatmul.mubr.msk.bf16.vlgmr.msra.gmra.mrb[8].mxu1 %vm654_vm8, %v1169_v40  ;;  %v1012_v40 = vunpack.c.l.b16 %v861_v32 }
 0x249   : > { %1926 = vmatpush3.bf16.xpose.msra.mxu1 %v1480_v42  ;;  %1927 = vmatprep.mubr.msk.bf16.mxu1 %vm2066_vm5, %v2065_v16  ;;  %v1013_v42 = vunpack.c.l.b16 %v862_v36  ;;  %v1129_v36 = vld [vmem:[%s2245_s12 + $0x1a] sm:$0x1] }
 0x250   : > { %1928 = vmatmul.mubr.msk.bf16.vlgmr.msra.gmra.mrb[12].mxu1 %vm654_vm8, %v1444_v46  ;;  %v1014_v46 = vunpack.c.l.b16 %v863_v38  ;;  %v1286_v38 = vunpack.c.l.b16 %v1135_v30 }
 0x30b   : > { %v2398_v47 = vpop.f32.mrb[0].mxu1 }
 0x30c   : > { %v1899_v48 = vpop.f32.mrb[1].mxu1 }
 0x30d   : > { %v803_v49 = vpop.f32.mrb[2].mxu1  ;;  %v1018_v48 = vsel %vm605_vm1, %v1017_v12, %v1016_v43  ;;  %v1398_v12 = vld [vmem:[%s2245_s12 + $0x3] sm:$0x1]  ;;  %v1130_v43 = vld [vmem:[%s2245_s12 + $0x1e] sm:$0x1] }
 0x30e   : > { %v1900_v50 = vpop.f32.mrb[3].mxu1  ;;  %v1023_v49 = vrot.slane %v1012_v40, 3 }
 0x313   : > { %v966_v51 = vpop.f32.mrb[4].mxu1 }
 0x314   : > { %v972_v52 = vmul.f32 0.35355338, %v966_v51  ;;  %v1905_v54 = vpop.f32.mrb[5].mxu1 }
 0x315   : > { %v969_v55 = vpop.f32.mrb[6].mxu1  ;;  %v1025_v54 = vrot.slane %v1013_v42, 2  ;;  %v1408_v42 = vpack.c.bf16 %v1400_v34, %v1400_v34 }
 0x316   : > { %v1906_v56 = vpop.f32.mrb[7].mxu1  ;;  %v2402_v57 = vsel %vm536_vm10, %v972_v52, -1e+09  ;;  %v1020_v52 = vsel %vm608_vm2, %v1019_v41, %v1018_v48  ;;  %v1401_v41 = vld [vmem:[%s2245_s12 + $0xf] sm:$0x1]  ;;  %v1406_v48 = vpack.c.bf16 %v1398_v12, %v1398_v12 }
 0x317   : > { %v975_v58 = vsel %vm654_vm8, %v2402_v57, -inf  ;;  %v1022_v56 = vsel %vm611_vm3, %v1021_v44, %v1020_v52  ;;  %v1137_v44 = vpack.c.bf16 %v1129_v36, %v1129_v36  ;;  %v1296_v52 = vrot.slane %v1286_v38, 4 }
 0x318   : > { %976 = vmax.xlane.f32.xlu1 %v975_v58  ;;  %v1027_v58 = vrot.slane %v1014_v46, 1 }
 0x31b   : > { %v1241_v59 = vpop.f32.mrb[8].mxu1 }
 0x31c   : > { %v1247_v60 = vmul.f32 0.35355338, %v1241_v59  ;;  %v1917_v61 = vpop.f32.mrb[9].mxu1  ;;  %v1024_v59 = vsel %vm614_vm4, %v1023_v49, %v1022_v56  ;;  %v1558_v49 = vunpack.c.l.b16 %v1407_v35  ;;  %v1409_v56 = vpack.c.bf16 %v1401_v41, %v1401_v41 }
 0x31d   : > { %v1244_v62 = vpop.f32.mrb[10].mxu1  ;;  %v1026_v61 = vsel %vm617_vm6, %v1025_v54, %v1024_v59  ;;  %v1402_v54 = vld [vmem:[%s2245_s12 + $0x13] sm:$0x1]  ;;  %v1413_v35 = vpack.c.bf16 %v1405_v29, %v1405_v29 }
 0x31e   : > { %v1918_v63 = vpop.f32.mrb[11].mxu1  ;;  %v2408_v1 = vsel %vm536_vm10, %v1247_v60, -1e+09  ;;  %v1028_v62 = vsel %vm620_vm7, %v1027_v58, %v1026_v61  ;;  %v1138_v58 = vpack.c.bf16 %v1130_v43, %v1130_v43  ;;  %v1559_v61 = vunpack.c.l.b16 %v1408_v42 }
 0x31f   : > { %v1250_v2 = vsel %vm654_vm8, %v2408_v1, -inf  ;;  %v1029_v63 = vpack.c.b16 %v1028_v62, %v1028_v62  ;;  %v1288_v62 = vunpack.c.l.b16 %v1137_v44  ;;  %v1560_v18 = vunpack.c.l.b16 %v1409_v56 }
 0x320   : > { %1251 = vmax.xlane.f32.xlu0 %v1250_v2  ;;  %v2458_v2 = vpop.eup %2003  ;;  %v1289_v21 = vunpack.c.l.b16 %v1138_v58  ;;  %v1564_v43 = vunpack.c.l.b16 %v1413_v35 }
 0x321   : > { %v1300_v22 = vrot.slane %v1288_v62, 2 }
 0x322   : > { %v1302_v28 = vrot.slane %v1289_v21, 1  ;;  %v1577_v56 = vrot.slane %v1564_v43, 1 }
 0x323   : > { %v1516_v5 = vpop.f32.mrb[12].mxu1 }
 0x324   : > { %v1522_v6 = vmul.f32 0.35355338, %v1516_v5  ;;  %v1929_v7 = vpop.f32.mrb[13].mxu1  ;;  %v1034_v5 = vsel %vm762_vm12, %v1029_v63, 0  ;;  %v1557_v63 = vunpack.c.l.b16 %v1406_v48  ;;  %v806_v48 = vld [vmem:[#allocation4] sm:$0xff] }
 0x325   : > { %v1519_v8 = vpop.f32.mrb[14].mxu1  ;;  %1908 = vmatpush3.bf16.msra.mxu0 %v1034_v5  ;;  %v1565_v5 = vrot.slane %v1558_v49, 7 }
 0x326   : > { %v1930_v0 = vpop.f32.mrb[15].mxu1  ;;  %v2414_v9 = vsel %vm536_vm10, %v1522_v6, -1e+09  ;;  %1919 = vmatprep.subr.bf16.mxu0 %v2065_v16 }
 0x327   : > { %v1525_v10 = vsel %vm654_vm8, %v2414_v9, -inf  ;;  %v1566_v27 = vsel %vm602_vm0, %v1565_v5, %v1557_v63 }
 0x328   : > { %1526 = vmax.xlane.f32.xlu0 %v1525_v10 }
 0x3a5   : > { %v977_v14 = vpop.xlane.xlu1 %976 }
 0x3a6   : > { %v2424_v17 = vmax.f32 %v2420_v15, %v977_v14  ;;  %v721_v14 = vsel %vm654_vm8, %v2356_v45, 0.0 }
 0x3a8   : > { %1090 = vst.msk [vmem:[#allocation2] sm:$0xff] %vm996_vm13, %v2424_v17  ;;  %984 = vperm.xlu1 %1989, %v2424_v17   ;;  %v979_v10 = vsub.f32 %v2420_v15, %v2424_v17  ;;  %v1123_v15 = vld [vmem:[%s2245_s12 + $0x2] sm:$0x1]  ;;  %v1126_v17 = vld [vmem:[%s2245_s12 + $0xe] sm:$0x1] }
 0x3a9   : > { %v1131_v45 = vpack.c.bf16 %v1123_v15, %v1123_v15  ;;  %v1134_v31 = vpack.c.bf16 %v1126_v17, %v1126_v17  ;;  %v1567_v15 = vrot.slane %v1559_v61, 6 }
 0x3aa   : > { %v980_v39 = vmul.f32 1.442695, %v979_v10  ;;  %v1403_v10 = vld [vmem:[%s2245_s12 + $0x17] sm:$0x1] }
 0x3ab   : > { %v1282_v24 = vunpack.c.l.b16 %v1131_v45  ;;  %v1285_v32 = vunpack.c.l.b16 %v1134_v31  ;;  %v1404_v45 = vld [vmem:[%s2245_s12 + $0x1b] sm:$0x1]  ;;  %v1411_v4 = vpack.c.bf16 %v1403_v10, %v1403_v10 }
 0x3ac   : > { %1991 = vset.pattern.permute.xlu1 %v2071_v37  ;;  %2005 = vpow2.f32 %v980_v39  ;;  %v1412_v30 = vpack.c.bf16 %v1404_v45, %v1404_v45  ;;  %v719_v45 = vld [vmem:[#allocation3] sm:$0xff] }
 0x3ad   : > { %v1252_v50 = vpop.xlane.xlu0 %1251  ;;  %v1291_v3 = vsel %vm602_vm0, %v1290_v25, %v1282_v24  ;;  %v1294_v40 = vrot.slane %v1285_v32, 5  ;;  %v1569_v25 = vrot.slane %v1560_v18, 5  ;;  %v1568_v32 = vsel %vm605_vm1, %v1567_v15, %v1566_v27 }
 0x3ae   : > { %v1293_v46 = vsel %vm605_vm1, %v1292_v33, %v1291_v3  ;;  %v1562_v34 = vunpack.c.l.b16 %v1411_v4  ;;  %v1563_v3 = vunpack.c.l.b16 %v1412_v30  ;;  %vm1088_vm0 = vcmask 130112  }
 0x3af   : > { %v2442_v51 = vld [vmem:[#allocation2] sm:$0xff]  ;;  %v1295_v59 = vsel %vm608_vm2, %v1294_v40, %v1293_v46  ;;  %v1570_v36 = vsel %vm608_vm2, %v1569_v25, %v1568_v32  ;;  %vm1363_vm1 = vcmask 195712   ;;  %vm1638_vm2 = vcmask 261312  }
 0x3b0   : > { %v2447_v55 = vmax.f32 %v2442_v51, %v1252_v50  ;;  %v1287_v50 = vunpack.c.l.b16 %v1136_v53  ;;  %v1297_v39 = vsel %vm611_vm3, %v1296_v52, %v1295_v59  ;;  %v1573_v12 = vrot.slane %v1562_v34, 3 }
 0x3b1   : > { %v1575_v44 = vrot.slane %v1563_v3, 2 }
 0x3b2   : > { %v1254_v60 = vsub.f32 %v2442_v51, %v2447_v55  ;;  %1365 = vst.msk [vmem:[#allocation2] sm:$0xff] %vm1271_vm15, %v2447_v55  ;;  %1259 = vperm.xlu0 %1990, %v2447_v55   ;;  %v720_v51 = vmul.f32 %v2458_v2, %v719_v45 }
 0x3b4   : > { %v1255_v21 = vmul.f32 1.442695, %v1254_v60 }
 0x3b5   : > { %v1527_v6 = vpop.xlane.xlu0 %1526 }
 0x3b6   : > { %1992 = vset.pattern.permute.xlu0 %v2067_v20  ;;  %v2480_v26 = vpop.eup %2005 }
 0x3b7   : > { %809 = vperm.xlu0 %1992, %v2458_v2  }
 0x3b9   : > { %v2464_v7 = vld [vmem:[#allocation2] sm:$0xff] }
 0x3ba   : > { %v2467_v8 = vmax.f32 %v2464_v7, %v1527_v6  ;;  %v1298_v6 = vrot.slane %v1287_v50, 3 }
 0x3bb   : > { %1995 = vset.pattern.permute.xlu0 %v2071_v37 }
 0x3bc   : > { %v1529_v0 = vsub.f32 %v2464_v7, %v2467_v8  ;;  %1640 = vst.msk [vmem:[#allocation2] sm:$0xff] %vm1546_vm9, %v2467_v8  ;;  %1534 = vperm.xlu1 %1991, %v2467_v8   ;;  %v1299_v31 = vsel %vm614_vm4, %v1298_v6, %v1297_v39 }
 0x3bd   : > { %v1301_v33 = vsel %vm617_vm6, %v1300_v22, %v1299_v31 }
 0x3be   : > { %v1303_v53 = vsel %vm620_vm7, %v1302_v28, %v1301_v33 }
 0x3bf   : > { %v1304_v42 = vpack.c.b16 %v1303_v53, %v1303_v53 }
 0x3c0   : > { %1993 = vset.pattern.permute.xlu1 %v2069_v11 }
 0x3e0   : > { %722 = vadd.xlane.f32.xlu1 %v721_v14  ;;  %v1410_v14 = vpack.c.bf16 %v1402_v54, %v1402_v54  ;;  %v1309_v54 = vsel %vm762_vm12, %v1304_v42, 0 }
 0x3e2   : > { %v1561_v23 = vunpack.c.l.b16 %v1410_v14 }
 0x3f1   : > { %1079 = vperm.xlu1 %1993, %v2480_v26  }
 0x3f5   : > { %1994 = vset.pattern.permute.xlu1 %v2070_v13 }
 0x427   : > { %v985_v19 = vpop.permute.xlu1 %984 }
 0x428   : > { %v987_v17 = vsub.f32 %v2402_v57, %v985_v19  ;;  %v1571_v57 = vrot.slane %v1561_v23, 4  ;;  %v1530_v23 = vmul.f32 1.442695, %v1529_v0 }
 0x42a   : > { %v988_v24 = vmul.f32 1.442695, %v987_v17  ;;  %v1572_v40 = vsel %vm611_vm3, %v1571_v57, %v1570_v36 }
 0x42b   : > { %v1574_v49 = vsel %vm614_vm4, %v1573_v12, %v1572_v40 }
 0x42c   : > { %2007 = vpow2.f32 %v988_v24  ;;  %v1576_v62 = vsel %vm617_vm6, %v1575_v44, %v1574_v49 }
 0x42d   : > { %v1578_v63 = vsel %vm620_vm7, %v1577_v56, %v1576_v62 }
 0x42e   : > { %v1579_v10 = vpack.c.b16 %v1578_v63, %v1578_v63 }
 0x430   : > { %v1584_v19 = vsel %vm762_vm12, %v1579_v10, 0 }
 0x431   : > { %v1260_v38 = vpop.permute.xlu0 %1259 }
 0x432   : > { %v1262_v41 = vsub.f32 %v2408_v1, %v1260_v38 }
 0x434   : > { %v1263_v46 = vmul.f32 1.442695, %v1262_v41 }
 0x436   : > { %v2008_v50 = vpop.eup %2007  ;;  %2009 = vpow2.f32 %v1263_v46  ;;  %v810_v52 = vpop.permute.xlu0 %809 }
 0x437   : > { %v812_v58 = vmul.f32 %v810_v52, %v806_v48  ;;  %v992_v59 = vsel %vm654_vm8, %v2008_v50, 0.0  ;;  %v998_v61 = vpack.c.bf16 %v2008_v50, %v2008_v50 }
 0x438   : > { %993 = vadd.xlane.f32.xlu0 %v992_v59 }
 0x439   : > { %v813_v1 = vadd.f32 %v812_v58, %v2398_v47  ;;  %1910 = vmatmul.mubr.msk.bf16.vlgmr.msra.gmra.mrb[4].mxu0 %vm654_vm8, %v998_v61 }
 0x43a   : > { %1920 = vmatpush3.bf16.msra.mxu0 %v1309_v54  ;;  %1921 = vmatprep.mubr.msk.bf16.mxu0 %vm2066_vm5, %v2065_v16 }
 0x43b   : > { %814 = vst.msk [vmem:[#allocation4] sm:$0xff] %vm654_vm8, %v813_v1  ;;  %v1535_v5 = vpop.permute.xlu1 %1534  ;;  %1931 = vmatprep.subr.bf16.mxu0 %v2065_v16 }
 0x43c   : > { %v1537_v6 = vsub.f32 %v2414_v9, %v1535_v5 }
 0x43e   : > { %v1538_v14 = vmul.f32 1.442695, %v1537_v6 }
 0x440   : > { %v2010_v39 = vpop.eup %2009  ;;  %2011 = vpow2.f32 %v1538_v14 }
 0x441   : > { %v1267_v47 = vsel %vm654_vm8, %v2010_v39, 0.0  ;;  %v1273_v18 = vpack.c.bf16 %v2010_v39, %v2010_v39  ;;  %2013 = vpow2.f32 %v1255_v21 }
 0x442   : > { %1268 = vadd.xlane.f32.xlu1 %v1267_v47  ;;  %2015 = vpow2.f32 %v1530_v23  ;;  %v1076_v41 = vld [vmem:[#allocation4] sm:$0xff] }
 0x443   : > { %1922 = vmatmul.mubr.msk.bf16.vlgmr.msra.gmra.mrb[8].mxu0 %vm654_vm8, %v1273_v18 }
 0x444   : > { %1932 = vmatpush3.bf16.msra.mxu0 %v1584_v19  ;;  %1933 = vmatprep.mubr.msk.bf16.mxu0 %vm2066_vm5, %v2065_v16 }
 0x44a   : > { %v2012_v9 = vpop.eup %2011 }
 0x44b   : > { %v1542_v15 = vsel %vm654_vm8, %v2012_v9, 0.0  ;;  %v1548_v17 = vpack.c.bf16 %v2012_v9, %v2012_v9  ;;  %v2014_v22 = vpop.eup %2013 }
 0x44c   : > { %1543 = vadd.xlane.f32.xlu0 %v1542_v15  ;;  %v2016_v29 = vpop.eup %2015 }
 0x44d   : > { %1934 = vmatmul.mubr.msk.bf16.vlgmr.msra.gmra.mrb[12].mxu0 %vm654_vm8, %v1548_v17 }
 0x453   : > { %1354 = vperm.xlu1 %1994, %v2014_v22  }
 0x457   : > { %1996 = vset.pattern.permute.xlu1 %v2067_v20 }
 0x46d   : > { %v723_v55 = vpop.xlane.xlu1 %722 }
 0x46e   : > { %v724_v60 = vadd.f32 %v723_v55, %v720_v51 }
 0x470   : > { %726 = vst.msk [vmem:[#allocation3] sm:$0xff] %vm725_vm11, %v724_v60 }
 0x471   : > { %v1080_v24 = vpop.permute.xlu1 %1079 }
 0x472   : > { %v1082_v42 = vmul.f32 %v1080_v24, %v1076_v41 }
 0x477   : > { %v990_v16 = vld [vmem:[#allocation3] sm:$0xff] }
 0x478   : > { %v991_v4 = vmul.f32 %v2480_v26, %v990_v16 }
 0x4c5   : > { %v994_v27 = vpop.xlane.xlu0 %993 }
 0x4c6   : > { %v995_v31 = vadd.f32 %v994_v27, %v991_v4 }
 0x4c8   : > { %997 = vst.msk [vmem:[#allocation3] sm:$0xff] %vm996_vm13, %v995_v31 }
 0x4cf   : > { %v1265_v20 = vld [vmem:[#allocation3] sm:$0xff]  ;;  %v1269_v2 = vpop.xlane.xlu1 %1268 }
 0x4d0   : > { %v1266_v25 = vmul.f32 %v2014_v22, %v1265_v20 }
 0x4d2   : > { %v1270_v28 = vadd.f32 %v1269_v2, %v1266_v25 }
 0x4d3   : > { %v1355_v48 = vpop.permute.xlu1 %1354 }
 0x4d4   : > { %1272 = vst.msk [vmem:[#allocation3] sm:$0xff] %vm1271_vm15, %v1270_v28 }
 0x4d9   : > { %v1544_v26 = vpop.xlane.xlu0 %1543 }
 0x4db   : > { %v1540_v30 = vld [vmem:[#allocation3] sm:$0xff] }
 0x4dc   : > { %v1541_v32 = vmul.f32 %v2016_v29, %v1540_v30 }
 0x4de   : > { %v1545_v33 = vadd.f32 %v1544_v26, %v1541_v32 }
 0x4e0   : > { %1547 = vst.msk [vmem:[#allocation3] sm:$0xff] %vm1546_vm9, %v1545_v33 }
 0x4e7   : > { %v1645_v34 = vld [vmem:[#allocation3] sm:$0xff] }
 0x4e8   : > { %1648 = vperm.xlu1 %1996, %v1645_v34  }
 0x4ec   : > { %1998 = vset.pattern.permute.xlu1 %v2070_v13 }
 0x4ed   : > { %1668 = vperm.xlu1 %1998, %v1645_v34  }
 0x4f1   : > { %1999 = vset.pattern.permute.xlu1 %v2071_v37 }
 0x4f2   : > { %1678 = vperm.xlu1 %1999, %v1645_v34  }
 0x50c   : > { %v1070_v7 = vpop.f32.mrb[4].mxu0 }
 0x50d   : > { %1084 = vrot.lane.b32.xlu0 %v1070_v7, %s2072_s13  ;;  %v1911_v8 = vpop.f32.mrb[5].mxu0 }
 0x50e   : > { %v1073_v0 = vpop.f32.mrb[6].mxu0 }
 0x50f   : > { %v1912_v57 = vpop.f32.mrb[7].mxu0 }
 0x511   : > { %1629 = vperm.xlu0 %1995, %v2016_v29  }
 0x515   : > { %1997 = vset.pattern.permute.xlu0 %v2069_v11 }
 0x516   : > { %v1345_v35 = vpop.f32.mrb[8].mxu0 }
 0x517   : > { %1359 = vrot.lane.b32.xlu0 %v1345_v35, %s2073_s14  ;;  %v1923_v36 = vpop.f32.mrb[9].mxu0 }
 0x518   : > { %v1348_v53 = vpop.f32.mrb[10].mxu0 }
 0x519   : > { %v1924_v3 = vpop.f32.mrb[11].mxu0 }
 0x520   : > { %v1620_v13 = vpop.f32.mrb[12].mxu0 }
 0x521   : > { %1634 = vrot.lane.b32.xlu0 %v1620_v13, %s2074_s15  ;;  %v1935_v12 = vpop.f32.mrb[13].mxu0 }
 0x522   : > { %v1623_v38 = vpop.f32.mrb[14].mxu0 }
 0x523   : > { %v1936_v40 = vpop.f32.mrb[15].mxu0 }
 0x525   : > { %1658 = vperm.xlu0 %1997, %v1645_v34  }
 0x529   : > { %2000 = vset.pattern.permute.xlu0 %v2071_v37 }
 0x567   : > { %v1649_v54 = vpop.permute.xlu1 %1648 }
 0x568   : > { %2017 = vrcp.f32 %v1649_v54 }
 0x56c   : > { %v1669_v56 = vpop.permute.xlu1 %1668 }
 0x571   : > { %v1679_v62 = vpop.permute.xlu1 %1678 }
 0x572   : > { %v2018_v63 = vpop.eup %2017 }
 0x57f   : > { %v1085_v43 = vpop.permute.xlu0 %1084 }
 0x580   : > { %v1087_v11 = vadd.f32 %v1085_v43, %v1082_v42 }
 0x582   : > { %1089 = vst.msk [vmem:[#allocation4] sm:$0xff] %vm1088_vm0, %v1087_v11 }
 0x589   : > { %v1351_v46 = vld [vmem:[#allocation4] sm:$0xff] }
 0x58a   : > { %v1357_v49 = vmul.f32 %v1355_v48, %v1351_v46 }
 0x590   : > { %v1630_v44 = vpop.permute.xlu0 %1629 }
 0x594   : > { %v1360_v50 = vpop.permute.xlu0 %1359 }
 0x595   : > { %v1362_v52 = vadd.f32 %v1360_v50, %v1357_v49 }
 0x597   : > { %1364 = vst.msk [vmem:[#allocation4] sm:$0xff] %vm1363_vm1, %v1362_v52 }
 0x598   : > { %v1635_v59 = vpop.permute.xlu0 %1634 }
 0x59e   : > { %v1626_v37 = vld [vmem:[#allocation4] sm:$0xff] }
 0x59f   : > { %v1632_v58 = vmul.f32 %v1630_v44, %v1626_v37 }
 0x5a1   : > { %v1637_v61 = vadd.f32 %v1635_v59, %v1632_v58 }
 0x5a3   : > { %1639 = vst.msk [vmem:[#allocation4] sm:$0xff] %vm1638_vm2, %v1637_v61 }
 0x5a4   : > { %v1659_v1 = vpop.permute.xlu0 %1658 }
 0x5a5   : > { %2019 = vrcp.f32 %v1659_v1 }
 0x5a6   : > { %2021 = vrcp.f32 %v1669_v56 }
 0x5a7   : > { %2023 = vrcp.f32 %v1679_v62 }
 0x5aa   : > { %v1644_v5 = vld [vmem:[#allocation4] sm:$0xff] }
 0x5ab   : > { %v1652_v6 = vmul.f32 %v2018_v63, %v1644_v5 }
 0x5ad   : > { %1653 = vst.msk [vmem:[%s511_s24] sm:$0xff] %vm654_vm8, %v1652_v6 }
 0x5af   : > { %v2020_v10 = vpop.eup %2019 }
 0x5b0   : > { %v2022_v14 = vpop.eup %2021  ;;  %v1662_v39 = vmul.f32 %v2020_v10, %v1644_v5 }
 0x5b1   : > { %v2024_v47 = vpop.eup %2023  ;;  %v1672_v18 = vmul.f32 %v2022_v14, %v1644_v5 }
 0x5b2   : > { %v1682_v19 = vmul.f32 %v2024_v47, %v1644_v5  ;;  %1663 = vst.msk [vmem:[%s511_s24] sm:$0xff] %vm1088_vm0, %v1662_v39 }
 0x5b3   : > { %1673 = vst.msk [vmem:[%s511_s24] sm:$0xff] %vm1363_vm1, %v1672_v18 }
 0x5b4   : > { %1683 = vst.msk [vmem:[%s511_s24] sm:$0xff] %vm1638_vm2, %v1682_v19 }
 0x5b5 PF: > { %s15_s22 = sadd.s32 1, %s2063_s22   ;;  %s2583_s18 = smov %s2051_s19 }
 0x5b6   : > { %p12_p10 = scmp.ge.s32.totalorder %s15_s22, 4   ;;  %s2584_s19 = smov %s2144_s27 }
 0x5b7   : > { %s2585_s20 = smov %s2059_s21  ;;  %s2586_s21 = smov %s2588_s23 }
 0x5b8   :  { %14 = sbr.rel (!%p12_p10) target bundleno = 3 (0x3), region = 182 }

</bundles_post_ra>
